<compile_context>
chip_gen: v5e
topology: v5e:2x2
jax: 0.10.0
libtpu: 0.0.40
codegen_flags: <defaults>
</compile_context>

<pallas_src>
import math
import functools

import numpy as np
import jax
import jax.numpy as jnp
from jax.experimental import pallas as pl
from jax.experimental.pallas import tpu as pltpu

# Default YOLOv5 training hyper-parameters (hyp_cfg_default.TRAIN).
HYP = dict(giou=0.05, cls=0.5, cls_pw=1.0, obj=1.0, obj_pw=1.0,
           fl_gamma=0.0, anchor_t=4.0, label_smoothing=0.0)

OBJ_TILE_ROWS = 1024        # slab block = (1024, 128) f32 = 512 KiB


def _bucket(n):
    """Smallest power of two >= max(n, 128): lane-dense padding with a small
    fixed set of shapes (few Mosaic recompiles across steps)."""
    return max(128, 1 << (int(n) - 1).bit_length())


# ----------------------------------------------------------------------------
# In-kernel math helpers
# ----------------------------------------------------------------------------
def _softplus(x):
    return jnp.maximum(x, 0.0) + jnp.log1p(jnp.exp(-jnp.abs(x)))


def _atan_poly(x):
    """arctan: one range reduction (|x|>1 -> pi/2 - atan(1/|x|)) + A&S 4.4.48
    odd minimax polynomial on [0, 1], |err| <= 1e-5."""
    ax = jnp.abs(x)
    big = ax > 1.0
    z = jnp.where(big, 1.0 / jnp.maximum(ax, 1e-30), ax)
    z2 = z * z
    p = 0.0208351
    p = p * z2 - 0.0851330
    p = p * z2 + 0.1801410
    p = p * z2 - 0.3302995
    p = p * z2 + 0.9998660
    t = z * p
    t = jnp.where(big, (math.pi / 2.0) - t, t)
    return jnp.where(x < 0, -t, jnp.where(x > 0, t, jnp.zeros_like(t)))


# ----------------------------------------------------------------------------
# Fused kernel: objectness baseline over the full grid (per block) + matched
# target loss (CIoU box + class BCE + sparse obj correction) on step 0.
# ----------------------------------------------------------------------------
def _fused_loss_kernel(x_ref, geo_ref, tb_ref, an_ref, cls_ref, tgt_ref, w_ref,
                       scal_ref, obj_ref, *,
                       row_ends, row_wts, tile_rows, inv_nc, cls_pw, obj_pw):
    i = pl.program_id(0)

    # ---- matched-row loss + accumulator init, once -------------------------
    @pl.when(i == 0)
    def _():
        obj_ref[...] = jnp.zeros_like(obj_ref)

        eps = 1e-9
        # All intermediates below are dense (R, 128) tiles.
        px = jax.nn.sigmoid(geo_ref[0]) * 2.0 - 0.5
        py = jax.nn.sigmoid(geo_ref[1]) * 2.0 - 0.5
        pw = (jax.nn.sigmoid(geo_ref[2]) * 2.0) ** 2 * an_ref[0]
        ph = (jax.nn.sigmoid(geo_ref[3]) * 2.0) ** 2 * an_ref[1]
        tx, ty, tw, th = tb_ref[0], tb_ref[1], tb_ref[2], tb_ref[3]

        b1x1, b1x2 = px - pw * 0.5, px + pw * 0.5
        b1y1, b1y2 = py - ph * 0.5, py + ph * 0.5
        b2x1, b2x2 = tx - tw * 0.5, tx + tw * 0.5
        b2y1, b2y2 = ty - th * 0.5, ty + th * 0.5

        inter = (jnp.maximum(jnp.minimum(b1x2, b2x2) - jnp.maximum(b1x1, b2x1), 0.0) *
                 jnp.maximum(jnp.minimum(b1y2, b2y2) - jnp.maximum(b1y1, b2y1), 0.0))
        w1, h1 = pw, ph + eps
        w2, h2 = tw, th + eps
        union = w1 * h1 + w2 * h2 - inter + eps
        iou = inter / union

        cw = jnp.maximum(b1x2, b2x2) - jnp.minimum(b1x1, b2x1)
        ch = jnp.maximum(b1y2, b2y2) - jnp.minimum(b1y1, b2y1)
        c2 = cw * cw + ch * ch + eps
        rho2 = ((b2x1 + b2x2 - b1x1 - b1x2) ** 2 +
                (b2y1 + b2y2 - b1y1 - b1y2) ** 2) * 0.25
        v = (4.0 / math.pi ** 2) * (_atan_poly(w2 / h2) - _atan_poly(w1 / h1)) ** 2
        alpha = v / (1.0 + eps - iou + v)
        ciou = iou - (rho2 / c2 + v * alpha)

        box_w = w_ref[0]    # 1/n_level for valid rows, 0 for padding
        obj_w = w_ref[1]    # balance/(bs*na*H*W) on de-duplicated winner rows

        lbox = jnp.sum(box_w * (1.0 - ciou))

        # Sparse objectness correction (replaces the dense tobj scatter):
        # BCE(x, t) - softplus(x) = t * (obj_pw*softplus(-x) - softplus(x)), gr=1.
        score = jnp.maximum(ciou, 0.0)
        xo = geo_ref[4]
        spn_o = jnp.maximum(-xo, 0.0) + jnp.log1p(jnp.exp(-jnp.abs(xo)))
        spp_o = xo + spn_o
        lobj_corr = jnp.sum(obj_w * score * (obj_pw * spn_o - spp_o))

        # Class BCE-with-logits (pos_weight = cls_pw), one softplus per element:
        #   pw*y*sp(-x) + (1-y)*sp(x) = (1 + (pw-1)*y)*sp(-x) + (1-y)*x
        xc = cls_ref[...]                                  # (nc, R, 128)
        yc = tgt_ref[...]
        spn_c = jnp.maximum(-xc, 0.0) + jnp.log1p(jnp.exp(-jnp.abs(xc)))
        lcl = (1.0 + (cls_pw - 1.0) * yc) * spn_c + (1.0 - yc) * xc
        lcls = jnp.sum(box_w * jnp.sum(lcl, axis=0)) * inv_nc

        lane = jax.lax.broadcasted_iota(jnp.int32, (1, 128), 1)
        scal_ref[...] = (jnp.where(lane == 0, lbox, 0.0) +
                         jnp.where(lane == 1, lcls, 0.0) +
                         jnp.where(lane == 2, lobj_corr, 0.0))

    # ---- objectness baseline for this block ---------------------------------
    x = x_ref[...]                                         # (tile_rows, 128)
    sp = jnp.maximum(x, 0.0) + jnp.log1p(jnp.exp(-jnp.abs(x)))   # softplus(x)
    # Per-row weight from static level boundaries (no weight input array).
    row = i * tile_rows + jax.lax.broadcasted_iota(jnp.int32, (tile_rows, 1), 0)
    w = jnp.zeros((tile_rows, 1), jnp.float32)
    for end, wt in zip(reversed(row_ends), reversed(row_wts)):
        w = jnp.where(row < end, wt, w)
    # Sublane-only reduction per step; cross-lane reduce happens once (host).
    obj_ref[...] += jnp.sum(w * sp, axis=0, keepdims=True)


def _fused_call(x2d, geo_t, tb_t, an_t, cls_t, tgt_t, w_t, *,
                row_ends, row_wts, nc):
    nrows = int(x2d.shape[0])
    nblk = nrows // OBJ_TILE_ROWS
    R = int(geo_t.shape[1])

    kern = functools.partial(
        _fused_loss_kernel,
        row_ends=tuple(int(e) for e in row_ends),
        row_wts=tuple(float(w) for w in row_wts),
        tile_rows=OBJ_TILE_ROWS,
        inv_nc=1.0 / float(nc),
        cls_pw=float(HYP['cls_pw']),
        obj_pw=float(HYP['obj_pw']))

    def full_spec(c):
        # Whole-array VMEM-resident block, constant index map (fetched once).
        return pl.BlockSpec((c, R, 128), lambda i: (0, 0, 0))

    return pl.pallas_call(
        kern,
        grid=(nblk,),
        in_specs=[
            pl.BlockSpec((OBJ_TILE_ROWS, 128), lambda i: (i, 0)),
            full_spec(5),    # geo: x, y, w, h, obj logits
            full_spec(4),    # target boxes
            full_spec(2),    # anchors
            full_spec(nc),   # class logits
            full_spec(nc),   # class targets
            full_spec(2),    # [box_w, obj_w]
        ],
        out_specs=(pl.BlockSpec((1, 128), lambda i: (0, 0)),
                   pl.BlockSpec((1, 128), lambda i: (0, 0))),
        out_shape=(jax.ShapeDtypeStruct((1, 128), jnp.float32),
                   jax.ShapeDtypeStruct((1, 128), jnp.float32)),
        compiler_params=pltpu.CompilerParams(
            dimension_semantics=("arbitrary",)),
    )(x2d, geo_t, tb_t, an_t, cls_t, tgt_t, w_t)


# ----------------------------------------------------------------------------
# Host-side glue mirroring the PyTorch module
# ----------------------------------------------------------------------------
def xyxy2cxcywh_np(b):
    out = np.empty_like(b)
    out[:, 0] = (b[:, 0] + b[:, 2]) / 2.0
    out[:, 1] = (b[:, 1] + b[:, 3]) / 2.0
    out[:, 2] = b[:, 2] - b[:, 0]
    out[:, 3] = b[:, 3] - b[:, 1]
    return out


def build_targets_np(p_shapes, targets, anchors_all, na, nl, anchor_t):
    """Exact numpy mirror of YoloV5Loss.build_targets."""
    nt = targets.shape[0]
    tcls, tbox, indices, anch = [], [], [], []
    gain = np.ones(7, dtype=np.float32)
    ai = np.tile(np.arange(na, dtype=np.float32).reshape(na, 1), (1, nt))
    targets = np.concatenate((np.tile(targets[None], (na, 1, 1)),
                              ai[:, :, None]), axis=2)      # (na, nt, 7)
    g = 0.5
    off = np.array([[0, 0], [1, 0], [0, 1], [-1, 0], [0, -1]],
                   dtype=np.float32) * g
    for i in range(nl):
        anchors = anchors_all[i].astype(np.float32)          # (na, 2)
        shp = p_shapes[i]                                     # (bs, na, H, W, no)
        gain[2:6] = np.array([shp[3], shp[2], shp[3], shp[2]], dtype=np.float32)
        t = targets * gain
        if nt:
            r = t[:, :, 4:6] / anchors[:, None]
            j = np.max(np.maximum(r, 1.0 / r), axis=2) < anchor_t
            t = t[j]
            gxy = t[:, 2:4]
            gxi = gain[[2, 3]] - gxy
            jk = (gxy % 1.0 < g) & (gxy > 1.0)
            lm = (gxi % 1.0 < g) & (gxi > 1.0)
            j_, k_ = jk.T
            l_, m_ = lm.T
            j = np.stack((np.ones_like(j_), j_, k_, l_, m_))
            t = np.tile(t[None], (5, 1, 1))[j]
            offsets = (np.zeros_like(gxy)[None] + off[:, None])[j]
        else:
            t = targets[0]
            offsets = np.zeros((0, 2), dtype=np.float32)
        b = t[:, 0].astype(np.int64)
        c = t[:, 1].astype(np.int64)
        gxy = t[:, 2:4]
        gwh = t[:, 4:6]
        gij = (gxy - offsets).astype(np.int64)
        gi, gj = gij.T
        a = t[:, 6].astype(np.int64)
        indices.append((b, a, gj, gi))
        tbox.append(np.concatenate((gxy - gij, gwh), axis=1).astype(np.float32))
        anch.append(anchors[a].astype(np.float32))
        tcls.append(c)
    return tcls, tbox, indices, anch


def yolov5_loss(p_list, raw_targets, labels_length, img_size,
                anchors_all, num_classes):
    nl, na = anchors_all.shape[0], anchors_all.shape[1]
    nc = num_classes
    balance = {3: [4.0, 1.0, 0.4]}.get(nl, [4.0, 1.0, 0.25, 0.06, 0.02])
    cp = 1.0 - 0.5 * HYP['label_smoothing']
    cn = 0.5 * HYP['label_smoothing']
    bs = int(p_list[0].shape[0])

    # ---- assemble normalized targets (mirrors the torch loop) --------------
    total = int(np.sum(labels_length))
    targets = np.zeros((total, 6), dtype=np.float32)
    cum = np.cumsum(labels_length)
    prv = 0
    for i, tgt in enumerate(raw_targets):
        cur = int(cum[i])
        ln = int(labels_length[i])
        targets[prv:cur, 0] = i
        targets[prv:cur, 1] = tgt[:ln, 4]
        targets[prv:cur, 2:] = xyxy2cxcywh_np(tgt[:ln, :4])
        prv = cur
    targets[:, 2:6] /= float(img_size)

    p_shapes = [tuple(pi.shape) for pi in p_list]
    tcls, tbox, indices, anch = build_targets_np(
        p_shapes, targets, anchors_all, na, nl, HYP['anchor_t'])

    # ---- matched-row tensors, dense (C, R, 128) tiles -----------------------
    geo_parts, cls_parts = [], []
    tb_parts, an_parts, tgt_parts, bw_parts, ow_parts = [], [], [], [], []
    n_total = 0
    for i, pi in enumerate(p_list):
        b, a, gj, gi = indices[i]
        n = int(b.shape[0])
        if n == 0:
            continue
        H, W = p_shapes[i][2], p_shapes[i][3]
        m = _bucket(n)
        pad = m - n

        b_p = np.zeros(m, np.int32); a_p = np.zeros(m, np.int32)
        gj_p = np.zeros(m, np.int32); gi_p = np.zeros(m, np.int32)
        b_p[:n], a_p[:n], gj_p[:n], gi_p[:n] = b, a, gj, gi
        # TODO(synk): this matched-cell gather stays as a wrapper-side XLA op.
        ps = pi[jnp.asarray(b_p), jnp.asarray(a_p),
                jnp.asarray(gj_p), jnp.asarray(gi_p)].astype(jnp.float32)
        geo_parts.append(ps[:, :5])
        cls_parts.append(ps[:, 5:])

        tb_parts.append(np.pad(tbox[i], ((0, pad), (0, 0))).astype(np.float32))
        an_parts.append(np.pad(anch[i], ((0, pad), (0, 0))).astype(np.float32))

        clst = np.zeros((m, nc), np.float32)
        clst[:n, :] = cn
        clst[np.arange(n), np.asarray(tcls[i], np.int64)] = cp
        tgt_parts.append(clst)

        bw = np.zeros(m, np.float32)
        bw[:n] = 1.0 / float(n)
        # duplicate (b, a, gj, gi) cells: keep the LAST matched row, mirroring
        # the serial in-place tobj[b, a, gj, gi] = ... assignment (gr = 1).
        lin = ((b.astype(np.int64) * na + a) * H + gj) * W + gi
        _, first_rev = np.unique(lin[::-1], return_index=True)
        winners = (n - 1) - first_rev
        ow = np.zeros(m, np.float32)
        ow[winners] = balance[i] / float(bs * na * H * W)
        bw_parts.append(bw)
        ow_parts.append(ow)
        n_total += n

    if n_total:
        geo_all = jnp.concatenate(geo_parts, axis=0)       # (Npad, 5)
        cls_all = jnp.concatenate(cls_parts, axis=0)       # (Npad, nc)
        tb_all = np.concatenate(tb_parts, axis=0)
        an_all = np.concatenate(an_parts, axis=0)
        tgt_all = np.concatenate(tgt_parts, axis=0)
        bw_all = np.concatenate(bw_parts)
        ow_all = np.concatenate(ow_parts)
        npad = int(tb_all.shape[0])
        R = npad // 128
        geo_t = jnp.transpose(geo_all).reshape(5, R, 128)
        cls_t = jnp.transpose(cls_all).reshape(nc, R, 128)
        tb_t = jnp.asarray(np.ascontiguousarray(tb_all.T).reshape(4, R, 128))
        an_t = jnp.asarray(np.ascontiguousarray(an_all.T).reshape(2, R, 128))
        tgt_t = jnp.asarray(np.ascontiguousarray(tgt_all.T).reshape(nc, R, 128))
        w_t = jnp.asarray(np.stack([bw_all, ow_all], axis=0).reshape(2, R, 128))
    else:
        R = 1
        geo_t = jnp.zeros((5, R, 128), jnp.float32)
        cls_t = jnp.zeros((nc, R, 128), jnp.float32)
        tb_t = jnp.zeros((4, R, 128), jnp.float32)
        an_t = jnp.zeros((2, R, 128), jnp.float32)
        tgt_t = jnp.zeros((nc, R, 128), jnp.float32)
        w_t = jnp.zeros((2, R, 128), jnp.float32)

    # ---- objectness-logit slab: each level padded only to a multiple of 128 -
    x_rows, row_ends, row_wts = [], [], []
    rows_cum = 0
    for i, pi in enumerate(p_list):
        H, W = p_shapes[i][2], p_shapes[i][3]
        n_el = bs * na * H * W
        lvl_rows = -(-n_el // 128)
        xf = pi[..., 4].astype(jnp.float32).reshape(-1)
        # pad with a large negative logit -> softplus ~ 0, no masking needed
        xf = jnp.pad(xf, (0, lvl_rows * 128 - n_el), constant_values=-100.0)
        x_rows.append(xf.reshape(lvl_rows, 128))
        rows_cum += lvl_rows
        row_ends.append(rows_cum)
        row_wts.append(balance[i] / float(n_el))
    x2d = jnp.concatenate(x_rows, axis=0)
    pad_rows = (-rows_cum) % OBJ_TILE_ROWS
    if pad_rows:
        x2d = jnp.pad(x2d, ((0, pad_rows), (0, 0)))         # weight-0 rows

    scal, obj_lanes = _fused_call(x2d, geo_t, tb_t, an_t, cls_t, tgt_t, w_t,
                                  row_ends=row_ends, row_wts=row_wts, nc=nc)

    lbox = scal[0, 0]
    lcls = scal[0, 1] if nc > 1 else jnp.zeros((), jnp.float32)
    lobj = jnp.sum(obj_lanes) + scal[0, 2]

    lbox = lbox * HYP['giou']
    lobj = lobj * HYP['obj']
    lcls = lcls * HYP['cls']
    loss = (lbox + lobj + lcls) * float(bs)
    return loss, lbox, lobj, lcls


# ----------------------------------------------------------------------------
# Demo
# ----------------------------------------------------------------------------
if __name__ == "__main__":
    key = jax.random.PRNGKey(0)
    bs, nc, img_size = 2, 8, 64
    na, nl = 3, 3
    strides = np.array([8.0, 16.0, 32.0], dtype=np.float32)
    anchors_px = np.array([[[10, 13], [16, 30], [33, 23]],
                           [[30, 61], [62, 45], [59, 119]],
                           [[116, 90], [156, 198], [373, 326]]],
                          dtype=np.float32)
    anchors_all = anchors_px / strides[:, None, None]   # det.anchors (grid units)

    no = nc + 5
    keys = jax.random.split(key, 8)
    p_list = []
    for li in range(nl):
        H = W = int(img_size // int(strides[li]))
        p_list.append(0.5 * jax.random.normal(
            keys[li], (bs, na, H, W, no), jnp.float32))

    labels_length = [3, 2]
    max_lab = max(labels_length)
    raw_targets = []
    for bi in range(bs):
        kc, kw, kcls = jax.random.split(keys[3 + bi], 3)
        cxcy = np.array(jax.random.uniform(kc, (max_lab, 2),
                                           minval=12.0, maxval=52.0))
        wh = np.array(jax.random.uniform(kw, (max_lab, 2),
                                         minval=8.0, maxval=36.0))
        cls = np.array(jax.random.randint(kcls, (max_lab,), 0, nc)
                       ).astype(np.float32)
        x1y1 = np.clip(cxcy - wh / 2.0, 0.0, img_size)
        x2y2 = np.clip(cxcy + wh / 2.0, 0.0, img_size)
        raw_targets.append(
            np.concatenate([x1y1, x2y2, cls[:, None]], axis=1).astype(np.float32))

    total_loss, lbox, lobj, lcls = yolov5_loss(
        p_list, raw_targets, labels_length, img_size, anchors_all, nc)
    jax.block_until_ready((total_loss, lbox, lobj, lcls))
    print("KERNEL_OK")
</pallas_src>

<mosaic_0001>
module attributes {stable_mosaic.version = 11 : i64} {
  func.func @_fused_loss_kernel(%arg0: i32, %arg1: memref<1024x128xf32, #tpu.memory_space<vmem>>, %arg2: memref<5x3x128xf32, #tpu.memory_space<vmem>>, %arg3: memref<4x3x128xf32, #tpu.memory_space<vmem>>, %arg4: memref<2x3x128xf32, #tpu.memory_space<vmem>>, %arg5: memref<8x3x128xf32, #tpu.memory_space<vmem>>, %arg6: memref<8x3x128xf32, #tpu.memory_space<vmem>>, %arg7: memref<2x3x128xf32, #tpu.memory_space<vmem>>, %arg8: memref<1x128xf32, #tpu.memory_space<vmem>>, %arg9: memref<1x128xf32, #tpu.memory_space<vmem>>) attributes {dimension_semantics = [#tpu.dimension_semantics<arbitrary>], iteration_bounds = array<i64: 1>, scalar_prefetch = 0 : i64, scratch_operands = 0 : i64, tpu.core_type = #tpu.core_type<tc>, window_params = [{transform_indices = @transform_0, window_bounds = array<i64: 1024, 128>}, {pipeline_mode = #tpu.pipeline_mode<synchronous>, transform_indices = @transform_1, window_bounds = array<i64: 5, 3, 128>}, {pipeline_mode = #tpu.pipeline_mode<synchronous>, transform_indices = @transform_2, window_bounds = array<i64: 4, 3, 128>}, {pipeline_mode = #tpu.pipeline_mode<synchronous>, transform_indices = @transform_3, window_bounds = array<i64: 2, 3, 128>}, {pipeline_mode = #tpu.pipeline_mode<synchronous>, transform_indices = @transform_4, window_bounds = array<i64: 8, 3, 128>}, {pipeline_mode = #tpu.pipeline_mode<synchronous>, transform_indices = @transform_5, window_bounds = array<i64: 8, 3, 128>}, {pipeline_mode = #tpu.pipeline_mode<synchronous>, transform_indices = @transform_6, window_bounds = array<i64: 2, 3, 128>}, {pipeline_mode = #tpu.pipeline_mode<synchronous>, transform_indices = @transform_7, window_bounds = array<i64: 1, 128>}, {pipeline_mode = #tpu.pipeline_mode<synchronous>, transform_indices = @transform_8, window_bounds = array<i64: 1, 128>}]} {
    %c0_i32 = arith.constant 0 : i32
    %0 = arith.cmpi eq, %arg0, %c0_i32 : i32
    %1 = arith.extui %0 : i1 to i32
    %c0_i32_0 = arith.constant 0 : i32
    %2 = arith.cmpi ne, %1, %c0_i32_0 : i32
    scf.if %2 {
      %cst_12 = arith.constant 0.000000e+00 : f32
      %36 = vector.broadcast %cst_12 : f32 to vector<1x128xf32>
      %c0_13 = arith.constant 0 : index
      %c0_14 = arith.constant 0 : index
      %37 = vector.load %arg9[%c0_13, %c0_14] : memref<1x128xf32, #tpu.memory_space<vmem>>, vector<1x128xf32>
      tpu.vector_store %arg9[%c0_13, %c0_14], %36 {strides = array<i32>} : memref<1x128xf32, #tpu.memory_space<vmem>>, vector<1x128xf32>,
      %c0_15 = arith.constant 0 : index
      %c0_16 = arith.constant 0 : index
      %c0_17 = arith.constant 0 : index
      %38 = vector.load %arg2[%c0_15, %c0_16, %c0_17] : memref<5x3x128xf32, #tpu.memory_space<vmem>>, vector<1x3x128xf32>
      %39 = vector.shape_cast %38 : vector<1x3x128xf32> to vector<3x128xf32>
      %40 = arith.negf %39 : vector<3x128xf32>
      %41 = math.exp %40 : vector<3x128xf32>
      %cst_18 = arith.constant 1.000000e+00 : f32
      %42 = vector.broadcast %cst_18 : f32 to vector<3x128xf32>
      %43 = arith.addf %42, %41 : vector<3x128xf32>
      %44 = arith.divf %42, %43 : vector<3x128xf32>
      %cst_19 = arith.constant 2.000000e+00 : f32
      %45 = vector.broadcast %cst_19 : f32 to vector<3x128xf32>
      %46 = arith.mulf %44, %45 : vector<3x128xf32>
      %cst_20 = arith.constant 5.000000e-01 : f32
      %47 = vector.broadcast %cst_20 : f32 to vector<3x128xf32>
      %48 = arith.subf %46, %47 : vector<3x128xf32>
      %c1 = arith.constant 1 : index
      %c0_21 = arith.constant 0 : index
      %c0_22 = arith.constant 0 : index
      %49 = vector.load %arg2[%c1, %c0_21, %c0_22] : memref<5x3x128xf32, #tpu.memory_space<vmem>>, vector<1x3x128xf32>
      %50 = vector.shape_cast %49 : vector<1x3x128xf32> to vector<3x128xf32>
      %51 = arith.negf %50 : vector<3x128xf32>
      %52 = math.exp %51 : vector<3x128xf32>
      %cst_23 = arith.constant 1.000000e+00 : f32
      %53 = vector.broadcast %cst_23 : f32 to vector<3x128xf32>
      %54 = arith.addf %53, %52 : vector<3x128xf32>
      %55 = arith.divf %53, %54 : vector<3x128xf32>
      %cst_24 = arith.constant 2.000000e+00 : f32
      %56 = vector.broadcast %cst_24 : f32 to vector<3x128xf32>
      %57 = arith.mulf %55, %56 : vector<3x128xf32>
      %cst_25 = arith.constant 5.000000e-01 : f32
      %58 = vector.broadcast %cst_25 : f32 to vector<3x128xf32>
      %59 = arith.subf %57, %58 : vector<3x128xf32>
      %c2 = arith.constant 2 : index
      %c0_26 = arith.constant 0 : index
      %c0_27 = arith.constant 0 : index
      %60 = vector.load %arg2[%c2, %c0_26, %c0_27] : memref<5x3x128xf32, #tpu.memory_space<vmem>>, vector<1x3x128xf32>
      %61 = vector.shape_cast %60 : vector<1x3x128xf32> to vector<3x128xf32>
      %62 = arith.negf %61 : vector<3x128xf32>
      %63 = math.exp %62 : vector<3x128xf32>
      %cst_28 = arith.constant 1.000000e+00 : f32
      %64 = vector.broadcast %cst_28 : f32 to vector<3x128xf32>
      %65 = arith.addf %64, %63 : vector<3x128xf32>
      %66 = arith.divf %64, %65 : vector<3x128xf32>
      %cst_29 = arith.constant 2.000000e+00 : f32
      %67 = vector.broadcast %cst_29 : f32 to vector<3x128xf32>
      %68 = arith.mulf %66, %67 : vector<3x128xf32>
      %69 = arith.mulf %68, %68 : vector<3x128xf32>
      %c0_30 = arith.constant 0 : index
      %c0_31 = arith.constant 0 : index
      %c0_32 = arith.constant 0 : index
      %70 = vector.load %arg4[%c0_30, %c0_31, %c0_32] : memref<2x3x128xf32, #tpu.memory_space<vmem>>, vector<1x3x128xf32>
      %71 = vector.shape_cast %70 : vector<1x3x128xf32> to vector<3x128xf32>
      %72 = arith.mulf %69, %71 : vector<3x128xf32>
      %c3 = arith.constant 3 : index
      %c0_33 = arith.constant 0 : index
      %c0_34 = arith.constant 0 : index
      %73 = vector.load %arg2[%c3, %c0_33, %c0_34] : memref<5x3x128xf32, #tpu.memory_space<vmem>>, vector<1x3x128xf32>
      %74 = vector.shape_cast %73 : vector<1x3x128xf32> to vector<3x128xf32>
      %75 = arith.negf %74 : vector<3x128xf32>
      %76 = math.exp %75 : vector<3x128xf32>
      %cst_35 = arith.constant 1.000000e+00 : f32
      %77 = vector.broadcast %cst_35 : f32 to vector<3x128xf32>
      %78 = arith.addf %77, %76 : vector<3x128xf32>
      %79 = arith.divf %77, %78 : vector<3x128xf32>
      %cst_36 = arith.constant 2.000000e+00 : f32
      %80 = vector.broadcast %cst_36 : f32 to vector<3x128xf32>
      %81 = arith.mulf %79, %80 : vector<3x128xf32>
      %82 = arith.mulf %81, %81 : vector<3x128xf32>
      %c1_37 = arith.constant 1 : index
      %c0_38 = arith.constant 0 : index
      %c0_39 = arith.constant 0 : index
      %83 = vector.load %arg4[%c1_37, %c0_38, %c0_39] : memref<2x3x128xf32, #tpu.memory_space<vmem>>, vector<1x3x128xf32>
      %84 = vector.shape_cast %83 : vector<1x3x128xf32> to vector<3x128xf32>
      %85 = arith.mulf %82, %84 : vector<3x128xf32>
      %c0_40 = arith.constant 0 : index
      %c0_41 = arith.constant 0 : index
      %c0_42 = arith.constant 0 : index
      %86 = vector.load %arg3[%c0_40, %c0_41, %c0_42] : memref<4x3x128xf32, #tpu.memory_space<vmem>>, vector<1x3x128xf32>
      %87 = vector.shape_cast %86 : vector<1x3x128xf32> to vector<3x128xf32>
      %c1_43 = arith.constant 1 : index
      %c0_44 = arith.constant 0 : index
      %c0_45 = arith.constant 0 : index
      %88 = vector.load %arg3[%c1_43, %c0_44, %c0_45] : memref<4x3x128xf32, #tpu.memory_space<vmem>>, vector<1x3x128xf32>
      %89 = vector.shape_cast %88 : vector<1x3x128xf32> to vector<3x128xf32>
      %c2_46 = arith.constant 2 : index
      %c0_47 = arith.constant 0 : index
      %c0_48 = arith.constant 0 : index
      %90 = vector.load %arg3[%c2_46, %c0_47, %c0_48] : memref<4x3x128xf32, #tpu.memory_space<vmem>>, vector<1x3x128xf32>
      %91 = vector.shape_cast %90 : vector<1x3x128xf32> to vector<3x128xf32>
      %c3_49 = arith.constant 3 : index
      %c0_50 = arith.constant 0 : index
      %c0_51 = arith.constant 0 : index
      %92 = vector.load %arg3[%c3_49, %c0_50, %c0_51] : memref<4x3x128xf32, #tpu.memory_space<vmem>>, vector<1x3x128xf32>
      %93 = vector.shape_cast %92 : vector<1x3x128xf32> to vector<3x128xf32>
      %cst_52 = arith.constant 5.000000e-01 : f32
      %94 = vector.broadcast %cst_52 : f32 to vector<3x128xf32>
      %95 = arith.mulf %72, %94 : vector<3x128xf32>
      %96 = arith.subf %48, %95 : vector<3x128xf32>
      %cst_53 = arith.constant 5.000000e-01 : f32
      %97 = vector.broadcast %cst_53 : f32 to vector<3x128xf32>
      %98 = arith.mulf %72, %97 : vector<3x128xf32>
      %99 = arith.addf %48, %98 : vector<3x128xf32>
      %cst_54 = arith.constant 5.000000e-01 : f32
      %100 = vector.broadcast %cst_54 : f32 to vector<3x128xf32>
      %101 = arith.mulf %85, %100 : vector<3x128xf32>
      %102 = arith.subf %59, %101 : vector<3x128xf32>
      %cst_55 = arith.constant 5.000000e-01 : f32
      %103 = vector.broadcast %cst_55 : f32 to vector<3x128xf32>
      %104 = arith.mulf %85, %103 : vector<3x128xf32>
      %105 = arith.addf %59, %104 : vector<3x128xf32>
      %cst_56 = arith.constant 5.000000e-01 : f32
      %106 = vector.broadcast %cst_56 : f32 to vector<3x128xf32>
      %107 = arith.mulf %91, %106 : vector<3x128xf32>
      %108 = arith.subf %87, %107 : vector<3x128xf32>
      %cst_57 = arith.constant 5.000000e-01 : f32
      %109 = vector.broadcast %cst_57 : f32 to vector<3x128xf32>
      %110 = arith.mulf %91, %109 : vector<3x128xf32>
      %111 = arith.addf %87, %110 : vector<3x128xf32>
      %cst_58 = arith.constant 5.000000e-01 : f32
      %112 = vector.broadcast %cst_58 : f32 to vector<3x128xf32>
      %113 = arith.mulf %93, %112 : vector<3x128xf32>
      %114 = arith.subf %89, %113 : vector<3x128xf32>
      %cst_59 = arith.constant 5.000000e-01 : f32
      %115 = vector.broadcast %cst_59 : f32 to vector<3x128xf32>
      %116 = arith.mulf %93, %115 : vector<3x128xf32>
      %117 = arith.addf %89, %116 : vector<3x128xf32>
      %118 = arith.minimumf %99, %111 : vector<3x128xf32>
      %119 = arith.maximumf %96, %108 : vector<3x128xf32>
      %120 = arith.subf %118, %119 : vector<3x128xf32>
      %cst_60 = arith.constant 0.000000e+00 : f32
      %121 = vector.broadcast %cst_60 : f32 to vector<3x128xf32>
      %122 = arith.maximumf %120, %121 : vector<3x128xf32>
      %123 = arith.minimumf %105, %117 : vector<3x128xf32>
      %124 = arith.maximumf %102, %114 : vector<3x128xf32>
      %125 = arith.subf %123, %124 : vector<3x128xf32>
      %cst_61 = arith.constant 0.000000e+00 : f32
      %126 = vector.broadcast %cst_61 : f32 to vector<3x128xf32>
      %127 = arith.maximumf %125, %126 : vector<3x128xf32>
      %128 = arith.mulf %122, %127 : vector<3x128xf32>
      %cst_62 = arith.constant 9.99999971E-10 : f32
      %129 = vector.broadcast %cst_62 : f32 to vector<3x128xf32>
      %130 = arith.addf %85, %129 : vector<3x128xf32>
      %cst_63 = arith.constant 9.99999971E-10 : f32
      %131 = vector.broadcast %cst_63 : f32 to vector<3x128xf32>
      %132 = arith.addf %93, %131 : vector<3x128xf32>
      %133 = arith.mulf %72, %130 : vector<3x128xf32>
      %134 = arith.mulf %91, %132 : vector<3x128xf32>
      %135 = arith.addf %133, %134 : vector<3x128xf32>
      %136 = arith.subf %135, %128 : vector<3x128xf32>
      %cst_64 = arith.constant 9.99999971E-10 : f32
      %137 = vector.broadcast %cst_64 : f32 to vector<3x128xf32>
      %138 = arith.addf %136, %137 : vector<3x128xf32>
      %139 = arith.divf %128, %138 : vector<3x128xf32>
      %140 = arith.maximumf %99, %111 : vector<3x128xf32>
      %141 = arith.minimumf %96, %108 : vector<3x128xf32>
      %142 = arith.subf %140, %141 : vector<3x128xf32>
      %143 = arith.maximumf %105, %117 : vector<3x128xf32>
      %144 = arith.minimumf %102, %114 : vector<3x128xf32>
      %145 = arith.subf %143, %144 : vector<3x128xf32>
      %146 = arith.mulf %142, %142 : vector<3x128xf32>
      %147 = arith.mulf %145, %145 : vector<3x128xf32>
      %148 = arith.addf %146, %147 : vector<3x128xf32>
      %cst_65 = arith.constant 9.99999971E-10 : f32
      %149 = vector.broadcast %cst_65 : f32 to vector<3x128xf32>
      %150 = arith.addf %148, %149 : vector<3x128xf32>
      %151 = arith.addf %108, %111 : vector<3x128xf32>
      %152 = arith.subf %151, %96 : vector<3x128xf32>
      %153 = arith.subf %152, %99 : vector<3x128xf32>
      %154 = arith.mulf %153, %153 : vector<3x128xf32>
      %155 = arith.addf %114, %117 : vector<3x128xf32>
      %156 = arith.subf %155, %102 : vector<3x128xf32>
      %157 = arith.subf %156, %105 : vector<3x128xf32>
      %158 = arith.mulf %157, %157 : vector<3x128xf32>
      %159 = arith.addf %154, %158 : vector<3x128xf32>
      %cst_66 = arith.constant 2.500000e-01 : f32
      %160 = vector.broadcast %cst_66 : f32 to vector<3x128xf32>
      %161 = arith.mulf %159, %160 : vector<3x128xf32>
      %162 = arith.divf %91, %132 : vector<3x128xf32>
      %163 = math.absf %162 : vector<3x128xf32>
      %cst_67 = arith.constant 1.000000e+00 : f32
      %164 = vector.broadcast %cst_67 : f32 to vector<3x128xf32>
      %165 = arith.cmpf ogt, %163, %164 : vector<3x128xf32>
      %cst_68 = arith.constant 1.000000e-30 : f32
      %166 = vector.broadcast %cst_68 : f32 to vector<3x128xf32>
      %167 = arith.maximumf %163, %166 : vector<3x128xf32>
      %cst_69 = arith.constant 1.000000e+00 : f32
      %168 = vector.broadcast %cst_69 : f32 to vector<3x128xf32>
      %169 = arith.divf %168, %167 : vector<3x128xf32>
      %170 = arith.select %165, %169, %163 : vector<3x128xi1>, vector<3x128xf32>
      %171 = arith.mulf %170, %170 : vector<3x128xf32>
      %cst_70 = arith.constant 2.083510e-02 : f32
      %172 = vector.broadcast %cst_70 : f32 to vector<3x128xf32>
      %173 = arith.mulf %172, %171 : vector<3x128xf32>
      %cst_71 = arith.constant 8.513300e-02 : f32
      %174 = vector.broadcast %cst_71 : f32 to vector<3x128xf32>
      %175 = arith.subf %173, %174 : vector<3x128xf32>
      %176 = arith.mulf %175, %171 : vector<3x128xf32>
      %cst_72 = arith.constant 1.801410e-01 : f32
      %177 = vector.broadcast %cst_72 : f32 to vector<3x128xf32>
      %178 = arith.addf %176, %177 : vector<3x128xf32>
      %179 = arith.mulf %178, %171 : vector<3x128xf32>
      %cst_73 = arith.constant 0.330299497 : f32
      %180 = vector.broadcast %cst_73 : f32 to vector<3x128xf32>
      %181 = arith.subf %179, %180 : vector<3x128xf32>
      %182 = arith.mulf %181, %171 : vector<3x128xf32>
      %cst_74 = arith.constant 9.998660e-01 : f32
      %183 = vector.broadcast %cst_74 : f32 to vector<3x128xf32>
      %184 = arith.addf %182, %183 : vector<3x128xf32>
      %185 = arith.mulf %170, %184 : vector<3x128xf32>
      %cst_75 = arith.constant 1.57079637 : f32
      %186 = vector.broadcast %cst_75 : f32 to vector<3x128xf32>
      %187 = arith.subf %186, %185 : vector<3x128xf32>
      %188 = arith.select %165, %187, %185 : vector<3x128xi1>, vector<3x128xf32>
      %cst_76 = arith.constant 0.000000e+00 : f32
      %189 = vector.broadcast %cst_76 : f32 to vector<3x128xf32>
      %190 = arith.cmpf olt, %162, %189 : vector<3x128xf32>
      %cst_77 = arith.constant 0.000000e+00 : f32
      %191 = vector.broadcast %cst_77 : f32 to vector<3x128xf32>
      %192 = arith.subf %191, %188 : vector<3x128xf32>
      %cst_78 = arith.constant 0.000000e+00 : f32
      %193 = vector.broadcast %cst_78 : f32 to vector<3x128xf32>
      %194 = arith.cmpf ogt, %162, %193 : vector<3x128xf32>
      %cst_79 = arith.constant 0.000000e+00 : f32
      %195 = vector.broadcast %cst_79 : f32 to vector<3x128xf32>
      %196 = arith.select %194, %188, %195 : vector<3x128xi1>, vector<3x128xf32>
      %197 = arith.select %190, %192, %196 : vector<3x128xi1>, vector<3x128xf32>
      %198 = arith.divf %72, %130 : vector<3x128xf32>
      %199 = math.absf %198 : vector<3x128xf32>
      %cst_80 = arith.constant 1.000000e+00 : f32
      %200 = vector.broadcast %cst_80 : f32 to vector<3x128xf32>
      %201 = arith.cmpf ogt, %199, %200 : vector<3x128xf32>
      %cst_81 = arith.constant 1.000000e-30 : f32
      %202 = vector.broadcast %cst_81 : f32 to vector<3x128xf32>
      %203 = arith.maximumf %199, %202 : vector<3x128xf32>
      %cst_82 = arith.constant 1.000000e+00 : f32
      %204 = vector.broadcast %cst_82 : f32 to vector<3x128xf32>
      %205 = arith.divf %204, %203 : vector<3x128xf32>
      %206 = arith.select %201, %205, %199 : vector<3x128xi1>, vector<3x128xf32>
      %207 = arith.mulf %206, %206 : vector<3x128xf32>
      %cst_83 = arith.constant 2.083510e-02 : f32
      %208 = vector.broadcast %cst_83 : f32 to vector<3x128xf32>
      %209 = arith.mulf %208, %207 : vector<3x128xf32>
      %cst_84 = arith.constant 8.513300e-02 : f32
      %210 = vector.broadcast %cst_84 : f32 to vector<3x128xf32>
      %211 = arith.subf %209, %210 : vector<3x128xf32>
      %212 = arith.mulf %211, %207 : vector<3x128xf32>
      %cst_85 = arith.constant 1.801410e-01 : f32
      %213 = vector.broadcast %cst_85 : f32 to vector<3x128xf32>
      %214 = arith.addf %212, %213 : vector<3x128xf32>
      %215 = arith.mulf %214, %207 : vector<3x128xf32>
      %cst_86 = arith.constant 0.330299497 : f32
      %216 = vector.broadcast %cst_86 : f32 to vector<3x128xf32>
      %217 = arith.subf %215, %216 : vector<3x128xf32>
      %218 = arith.mulf %217, %207 : vector<3x128xf32>
      %cst_87 = arith.constant 9.998660e-01 : f32
      %219 = vector.broadcast %cst_87 : f32 to vector<3x128xf32>
      %220 = arith.addf %218, %219 : vector<3x128xf32>
      %221 = arith.mulf %206, %220 : vector<3x128xf32>
      %cst_88 = arith.constant 1.57079637 : f32
      %222 = vector.broadcast %cst_88 : f32 to vector<3x128xf32>
      %223 = arith.subf %222, %221 : vector<3x128xf32>
      %224 = arith.select %201, %223, %221 : vector<3x128xi1>, vector<3x128xf32>
      %cst_89 = arith.constant 0.000000e+00 : f32
      %225 = vector.broadcast %cst_89 : f32 to vector<3x128xf32>
      %226 = arith.cmpf olt, %198, %225 : vector<3x128xf32>
      %cst_90 = arith.constant 0.000000e+00 : f32
      %227 = vector.broadcast %cst_90 : f32 to vector<3x128xf32>
      %228 = arith.subf %227, %224 : vector<3x128xf32>
      %cst_91 = arith.constant 0.000000e+00 : f32
      %229 = vector.broadcast %cst_91 : f32 to vector<3x128xf32>
      %230 = arith.cmpf ogt, %198, %229 : vector<3x128xf32>
      %cst_92 = arith.constant 0.000000e+00 : f32
      %231 = vector.broadcast %cst_92 : f32 to vector<3x128xf32>
      %232 = arith.select %230, %224, %231 : vector<3x128xi1>, vector<3x128xf32>
      %233 = arith.select %226, %228, %232 : vector<3x128xi1>, vector<3x128xf32>
      %234 = arith.subf %197, %233 : vector<3x128xf32>
      %235 = arith.mulf %234, %234 : vector<3x128xf32>
      %cst_93 = arith.constant 0.405284733 : f32
      %236 = vector.broadcast %cst_93 : f32 to vector<3x128xf32>
      %237 = arith.mulf %236, %235 : vector<3x128xf32>
      %cst_94 = arith.constant 1.000000e+00 : f32
      %238 = vector.broadcast %cst_94 : f32 to vector<3x128xf32>
      %239 = arith.subf %238, %139 : vector<3x128xf32>
      %240 = arith.addf %239, %237 : vector<3x128xf32>
      %241 = arith.divf %237, %240 : vector<3x128xf32>
      %242 = arith.divf %161, %150 : vector<3x128xf32>
      %243 = arith.mulf %237, %241 : vector<3x128xf32>
      %244 = arith.addf %242, %243 : vector<3x128xf32>
      %245 = arith.subf %139, %244 : vector<3x128xf32>
      %c0_95 = arith.constant 0 : index
      %c0_96 = arith.constant 0 : index
      %c0_97 = arith.constant 0 : index
      %246 = vector.load %arg7[%c0_95, %c0_96, %c0_97] : memref<2x3x128xf32, #tpu.memory_space<vmem>>, vector<1x3x128xf32>
      %247 = vector.shape_cast %246 : vector<1x3x128xf32> to vector<3x128xf32>
      %c1_98 = arith.constant 1 : index
      %c0_99 = arith.constant 0 : index
      %c0_100 = arith.constant 0 : index
      %248 = vector.load %arg7[%c1_98, %c0_99, %c0_100] : memref<2x3x128xf32, #tpu.memory_space<vmem>>, vector<1x3x128xf32>
      %249 = vector.shape_cast %248 : vector<1x3x128xf32> to vector<3x128xf32>
      %cst_101 = arith.constant 1.000000e+00 : f32
      %250 = vector.broadcast %cst_101 : f32 to vector<3x128xf32>
      %251 = arith.subf %250, %245 : vector<3x128xf32>
      %252 = arith.mulf %247, %251 : vector<3x128xf32>
      %253 = vector.shape_cast %252 : vector<3x128xf32> to vector<1x3x128xf32>
      %cst_102 = arith.constant dense<0.000000e+00> : vector<1xf32>
      %254 = vector.multi_reduction <add>, %253, %cst_102 [1, 2] : vector<1x3x128xf32> to vector<1xf32>
      %255 = vector.shape_cast %254 : vector<1xf32> to vector<1x1x1xf32>
      %256 = vector.extract %255[0, 0, 0] : f32 from vector<1x1x1xf32>
      %cst_103 = arith.constant 0.000000e+00 : f32
      %257 = vector.broadcast %cst_103 : f32 to vector<3x128xf32>
      %258 = arith.maximumf %245, %257 : vector<3x128xf32>
      %c4 = arith.constant 4 : index
      %c0_104 = arith.constant 0 : index
      %c0_105 = arith.constant 0 : index
      %259 = vector.load %arg2[%c4, %c0_104, %c0_105] : memref<5x3x128xf32, #tpu.memory_space<vmem>>, vector<1x3x128xf32>
      %260 = vector.shape_cast %259 : vector<1x3x128xf32> to vector<3x128xf32>
      %cst_106 = arith.constant 0.000000e+00 : f32
      %261 = vector.broadcast %cst_106 : f32 to vector<3x128xf32>
      %262 = arith.subf %261, %260 : vector<3x128xf32>
      %cst_107 = arith.constant 0.000000e+00 : f32
      %263 = vector.broadcast %cst_107 : f32 to vector<3x128xf32>
      %264 = arith.maximumf %262, %263 : vector<3x128xf32>
      %265 = math.absf %260 : vector<3x128xf32>
      %cst_108 = arith.constant 0.000000e+00 : f32
      %266 = vector.broadcast %cst_108 : f32 to vector<3x128xf32>
      %267 = arith.subf %266, %265 : vector<3x128xf32>
      %268 = math.exp %267 : vector<3x128xf32>
      %269 = math.log1p %268 : vector<3x128xf32>
      %270 = arith.addf %264, %269 : vector<3x128xf32>
      %271 = arith.addf %260, %270 : vector<3x128xf32>
      %272 = arith.mulf %249, %258 : vector<3x128xf32>
      %cst_109 = arith.constant 1.000000e+00 : f32
      %273 = vector.broadcast %cst_109 : f32 to vector<3x128xf32>
      %274 = arith.mulf %273, %270 : vector<3x128xf32>
      %275 = arith.subf %274, %271 : vector<3x128xf32>
      %276 = arith.mulf %272, %275 : vector<3x128xf32>
      %277 = vector.shape_cast %276 : vector<3x128xf32> to vector<1x3x128xf32>
      %cst_110 = arith.constant dense<0.000000e+00> : vector<1xf32>
      %278 = vector.multi_reduction <add>, %277, %cst_110 [1, 2] : vector<1x3x128xf32> to vector<1xf32>
      %279 = vector.shape_cast %278 : vector<1xf32> to vector<1x1x1xf32>
      %280 = vector.extract %279[0, 0, 0] : f32 from vector<1x1x1xf32>
      %c0_111 = arith.constant 0 : index
      %c0_112 = arith.constant 0 : index
      %c0_113 = arith.constant 0 : index
      %281 = vector.load %arg5[%c0_111, %c0_112, %c0_113] : memref<8x3x128xf32, #tpu.memory_space<vmem>>, vector<8x3x128xf32>
      %c0_114 = arith.constant 0 : index
      %c0_115 = arith.constant 0 : index
      %c0_116 = arith.constant 0 : index
      %282 = vector.load %arg6[%c0_114, %c0_115, %c0_116] : memref<8x3x128xf32, #tpu.memory_space<vmem>>, vector<8x3x128xf32>
      %cst_117 = arith.constant 0.000000e+00 : f32
      %283 = vector.broadcast %cst_117 : f32 to vector<8x3x128xf32>
      %284 = arith.subf %283, %281 : vector<8x3x128xf32>
      %cst_118 = arith.constant 0.000000e+00 : f32
      %285 = vector.broadcast %cst_118 : f32 to vector<8x3x128xf32>
      %286 = arith.maximumf %284, %285 : vector<8x3x128xf32>
      %287 = math.absf %281 : vector<8x3x128xf32>
      %cst_119 = arith.constant 0.000000e+00 : f32
      %288 = vector.broadcast %cst_119 : f32 to vector<8x3x128xf32>
      %289 = arith.subf %288, %287 : vector<8x3x128xf32>
      %290 = math.exp %289 : vector<8x3x128xf32>
      %291 = math.log1p %290 : vector<8x3x128xf32>
      %292 = arith.addf %286, %291 : vector<8x3x128xf32>
      %cst_120 = arith.constant 0.000000e+00 : f32
      %293 = vector.broadcast %cst_120 : f32 to vector<8x3x128xf32>
      %294 = arith.mulf %293, %282 : vector<8x3x128xf32>
      %cst_121 = arith.constant 1.000000e+00 : f32
      %295 = vector.broadcast %cst_121 : f32 to vector<8x3x128xf32>
      %296 = arith.addf %295, %294 : vector<8x3x128xf32>
      %297 = arith.mulf %296, %292 : vector<8x3x128xf32>
      %cst_122 = arith.constant 1.000000e+00 : f32
      %298 = vector.broadcast %cst_122 : f32 to vector<8x3x128xf32>
      %299 = arith.subf %298, %282 : vector<8x3x128xf32>
      %300 = arith.mulf %299, %281 : vector<8x3x128xf32>
      %301 = arith.addf %297, %300 : vector<8x3x128xf32>
      %cst_123 = arith.constant dense<0.000000e+00> : vector<3x128xf32>
      %302 = vector.multi_reduction <add>, %301, %cst_123 [0] : vector<8x3x128xf32> to vector<3x128xf32>
      %303 = arith.mulf %247, %302 : vector<3x128xf32>
      %304 = vector.shape_cast %303 : vector<3x128xf32> to vector<1x3x128xf32>
      %cst_124 = arith.constant dense<0.000000e+00> : vector<1xf32>
      %305 = vector.multi_reduction <add>, %304, %cst_124 [1, 2] : vector<1x3x128xf32> to vector<1xf32>
      %306 = vector.shape_cast %305 : vector<1xf32> to vector<1x1x1xf32>
      %307 = vector.extract %306[0, 0, 0] : f32 from vector<1x1x1xf32>
      %cst_125 = arith.constant 1.250000e-01 : f32
      %308 = arith.mulf %307, %cst_125 : f32
      %309 = tpu.iota {dimensions = array<i32: 1>} : vector<1x128xi32>
      %c0_i32_126 = arith.constant 0 : i32
      %310 = vector.broadcast %c0_i32_126 : i32 to vector<1x128xi32>
      %311 = arith.cmpi eq, %309, %310 : vector<1x128xi32>
      %cst_127 = arith.constant 0.000000e+00 : f32
      %312 = vector.broadcast %256 : f32 to vector<1x128xf32>
      %313 = vector.broadcast %cst_127 : f32 to vector<1x128xf32>
      %314 = arith.select %311, %312, %313 : vector<1x128xi1>, vector<1x128xf32>
      %c1_i32 = arith.constant 1 : i32
      %315 = vector.broadcast %c1_i32 : i32 to vector<1x128xi32>
      %316 = arith.cmpi eq, %309, %315 : vector<1x128xi32>
      %cst_128 = arith.constant 0.000000e+00 : f32
      %317 = vector.broadcast %308 : f32 to vector<1x128xf32>
      %318 = vector.broadcast %cst_128 : f32 to vector<1x128xf32>
      %319 = arith.select %316, %317, %318 : vector<1x128xi1>, vector<1x128xf32>
      %320 = arith.addf %314, %319 : vector<1x128xf32>
      %c2_i32 = arith.constant 2 : i32
      %321 = vector.broadcast %c2_i32 : i32 to vector<1x128xi32>
      %322 = arith.cmpi eq, %309, %321 : vector<1x128xi32>
      %cst_129 = arith.constant 0.000000e+00 : f32
      %323 = vector.broadcast %280 : f32 to vector<1x128xf32>
      %324 = vector.broadcast %cst_129 : f32 to vector<1x128xf32>
      %325 = arith.select %322, %323, %324 : vector<1x128xi1>, vector<1x128xf32>
      %326 = arith.addf %320, %325 : vector<1x128xf32>
      %c0_130 = arith.constant 0 : index
      %c0_131 = arith.constant 0 : index
      %327 = vector.load %arg8[%c0_130, %c0_131] : memref<1x128xf32, #tpu.memory_space<vmem>>, vector<1x128xf32>
      tpu.vector_store %arg8[%c0_130, %c0_131], %326 {strides = array<i32>} : memref<1x128xf32, #tpu.memory_space<vmem>>, vector<1x128xf32>,
    } else {
    }
    %c0 = arith.constant 0 : index
    %c0_1 = arith.constant 0 : index
    %3 = vector.load %arg1[%c0, %c0_1] : memref<1024x128xf32, #tpu.memory_space<vmem>>, vector<1024x128xf32>
    %cst = arith.constant 0.000000e+00 : f32
    %4 = vector.broadcast %cst : f32 to vector<1024x128xf32>
    %5 = arith.maximumf %3, %4 : vector<1024x128xf32>
    %6 = math.absf %3 : vector<1024x128xf32>
    %cst_2 = arith.constant 0.000000e+00 : f32
    %7 = vector.broadcast %cst_2 : f32 to vector<1024x128xf32>
    %8 = arith.subf %7, %6 : vector<1024x128xf32>
    %9 = math.exp %8 : vector<1024x128xf32>
    %10 = math.log1p %9 : vector<1024x128xf32>
    %11 = arith.addf %5, %10 : vector<1024x128xf32>
    %c1024_i32 = arith.constant 1024 : i32
    %12 = arith.muli %arg0, %c1024_i32 : i32
    %13 = tpu.iota {dimensions = array<i32: 0>} : vector<1024x1xi32>
    %14 = vector.broadcast %12 : i32 to vector<1024x1xi32>
    %15 = arith.addi %14, %13 : vector<1024x1xi32>
    %cst_3 = arith.constant 0.000000e+00 : f32
    %16 = vector.broadcast %cst_3 : f32 to vector<1024x1xf32>
    %c5_i32 = arith.constant 5 : i32
    %17 = vector.broadcast %c5_i32 : i32 to vector<1024x1xi32>
    %18 = arith.cmpi slt, %15, %17 : vector<1024x1xi32>
    %cst_4 = arith.constant 0.0166666675 : f32
    %19 = vector.broadcast %cst_4 : f32 to vector<1024x1xf32>
    %20 = arith.select %18, %19, %16 : vector<1024x1xi1>, vector<1024x1xf32>
    %c4_i32 = arith.constant 4 : i32
    %21 = vector.broadcast %c4_i32 : i32 to vector<1024x1xi32>
    %22 = arith.cmpi slt, %15, %21 : vector<1024x1xi32>
    %cst_5 = arith.constant 0.010416667 : f32
    %23 = vector.broadcast %cst_5 : f32 to vector<1024x1xf32>
    %24 = arith.select %22, %23, %20 : vector<1024x1xi1>, vector<1024x1xf32>
    %c3_i32 = arith.constant 3 : i32
    %25 = vector.broadcast %c3_i32 : i32 to vector<1024x1xi32>
    %26 = arith.cmpi slt, %15, %25 : vector<1024x1xi32>
    %cst_6 = arith.constant 0.010416667 : f32
    %27 = vector.broadcast %cst_6 : f32 to vector<1024x1xf32>
    %28 = arith.select %26, %27, %24 : vector<1024x1xi1>, vector<1024x1xf32>
    %c0_7 = arith.constant 0 : index
    %c0_8 = arith.constant 0 : index
    %29 = vector.load %arg9[%c0_7, %c0_8] : memref<1x128xf32, #tpu.memory_space<vmem>>, vector<1x128xf32>
    %30 = vector.broadcast %28 : vector<1024x1xf32> to vector<1024x128xf32>
    %31 = arith.mulf %30, %11 : vector<1024x128xf32>
    %cst_9 = arith.constant dense<0.000000e+00> : vector<128xf32>
    %32 = vector.multi_reduction <add>, %31, %cst_9 [0] : vector<1024x128xf32> to vector<128xf32>
    %33 = vector.shape_cast %32 : vector<128xf32> to vector<1x128xf32>
    %34 = arith.addf %29, %33 : vector<1x128xf32>
    %c0_10 = arith.constant 0 : index
    %c0_11 = arith.constant 0 : index
    %35 = vector.load %arg9[%c0_10, %c0_11] : memref<1x128xf32, #tpu.memory_space<vmem>>, vector<1x128xf32>
    tpu.vector_store %arg9[%c0_10, %c0_11], %34 {strides = array<i32>} : memref<1x128xf32, #tpu.memory_space<vmem>>, vector<1x128xf32>,
    return
  }
  func.func @transform_0(%arg0: i32) -> (i32, i32) {
    %c0_i32 = arith.constant 0 : i32
    %c0_i32_0 = arith.constant 0 : i32
    return %arg0, %c0_i32 : i32, i32
  }
  func.func @transform_1(%arg0: i32) -> (i32, i32, i32) {
    %c0_i32 = arith.constant 0 : i32
    %c0_i32_0 = arith.constant 0 : i32
    %c0_i32_1 = arith.constant 0 : i32
    %c0_i32_2 = arith.constant 0 : i32
    return %c0_i32, %c0_i32_0, %c0_i32_1 : i32, i32, i32
  }
  func.func @transform_2(%arg0: i32) -> (i32, i32, i32) {
    %c0_i32 = arith.constant 0 : i32
    %c0_i32_0 = arith.constant 0 : i32
    %c0_i32_1 = arith.constant 0 : i32
    %c0_i32_2 = arith.constant 0 : i32
    return %c0_i32, %c0_i32_0, %c0_i32_1 : i32, i32, i32
  }
  func.func @transform_3(%arg0: i32) -> (i32, i32, i32) {
    %c0_i32 = arith.constant 0 : i32
    %c0_i32_0 = arith.constant 0 : i32
    %c0_i32_1 = arith.constant 0 : i32
    %c0_i32_2 = arith.constant 0 : i32
    return %c0_i32, %c0_i32_0, %c0_i32_1 : i32, i32, i32
  }
  func.func @transform_4(%arg0: i32) -> (i32, i32, i32) {
    %c0_i32 = arith.constant 0 : i32
    %c0_i32_0 = arith.constant 0 : i32
    %c0_i32_1 = arith.constant 0 : i32
    %c0_i32_2 = arith.constant 0 : i32
    return %c0_i32, %c0_i32_0, %c0_i32_1 : i32, i32, i32
  }
  func.func @transform_5(%arg0: i32) -> (i32, i32, i32) {
    %c0_i32 = arith.constant 0 : i32
    %c0_i32_0 = arith.constant 0 : i32
    %c0_i32_1 = arith.constant 0 : i32
    %c0_i32_2 = arith.constant 0 : i32
    return %c0_i32, %c0_i32_0, %c0_i32_1 : i32, i32, i32
  }
  func.func @transform_6(%arg0: i32) -> (i32, i32, i32) {
    %c0_i32 = arith.constant 0 : i32
    %c0_i32_0 = arith.constant 0 : i32
    %c0_i32_1 = arith.constant 0 : i32
    %c0_i32_2 = arith.constant 0 : i32
    return %c0_i32, %c0_i32_0, %c0_i32_1 : i32, i32, i32
  }
  func.func @transform_7(%arg0: i32) -> (i32, i32) {
    %c0_i32 = arith.constant 0 : i32
    %c0_i32_0 = arith.constant 0 : i32
    %c0_i32_1 = arith.constant 0 : i32
    return %c0_i32, %c0_i32_0 : i32, i32
  }
  func.func @transform_8(%arg0: i32) -> (i32, i32) {
    %c0_i32 = arith.constant 0 : i32
    %c0_i32_0 = arith.constant 0 : i32
    %c0_i32_1 = arith.constant 0 : i32
    return %c0_i32, %c0_i32_0 : i32, i32
  }
}

</mosaic_0001>

<bundles_post_ra>
// kernel: tpu_custom_call.1
= control target key start
LH: loop header
LB: loop body
LE: loop exit
PB: predicated region body
PF: predicated region fallthrough
CT: control target
= control target key end

     0   :  { %14 = vsyncpa [#allocation3], 0  ;;  %s9411_s0 = inlined_call_operand.hbm [shape: f32[1024,128], index: 0, kind: input, shape index: {}]   ;;  %s9412_s1 = inlined_call_operand.vmem [shape: f32[5,3,128], index: 1, kind: input, shape index: {}]   ;;  %s9413_s2 = inlined_call_operand.vmem [shape: f32[4,3,128], index: 2, kind: input, shape index: {}]   ;;  %s9414_s3 = inlined_call_operand.vmem [shape: f32[2,3,128], index: 3, kind: input, shape index: {}]   ;;  %s9415_s4 = inlined_call_operand.vmem [shape: f32[8,3,128], index: 4, kind: input, shape index: {}]   ;;  %s9416_s5 = inlined_call_operand.vmem [shape: f32[8,3,128], index: 5, kind: input, shape index: {}]   ;;  %s9417_s6 = inlined_call_operand.vmem [shape: f32[2,3,128], index: 6, kind: input, shape index: {}]   ;;  %s9418_s7 = inlined_call_operand.hbm [shape: f32[1,128], index: 7, kind: output, shape index: {0}]   ;;  %s9419_s8 = inlined_call_operand.hbm [shape: f32[1,128], index: 8, kind: output, shape index: {1}]  }
   0x1   :  { %15 = vsyncpa [#allocation4], 0 }
   0x2   :  { %16 = vsyncpa [#allocation7], 0  ;;  %s21_s29 = sshll.u32 %s9411_s0, 4  ;;  %s4701_s30 = smov [#allocation2]   ;;  %s22_s29 = int_to_ptr.hbm [resolvable:$true] %s21_s29 }
   0x3   :  { %s23_s9 = sshll.u32 %s4701_s30, 4  ;;  %s4702_s10 = smov 128   ;;  %s24_s9 = int_to_ptr.vmem [resolvable:$true] %s23_s9 }
   0x4   :  { %s4703_s11 = smov 8  }
   0x5   :  { %29 = dma.hbm_to_vmem [thread:$0]  %s22_s29, 16384, %s24_s9, [#allocation3], %s4702_s10, %s4702_s10, %s4703_s11  }
   0x6   :  { %4695 = dma.done.wait [#allocation3], 16384  }
   0x7   :  { %4696 = vsyncadd [#allocation3], 4294950912  ;;  %v51_v0 = vld [vmem:[%s9412_s1] sm:$0x7]  ;;  %v4013_v1 = vld [vmem:[%s9412_s1 + $0x4] sm:$0x7] }
   0x8   :  { %v4016_v2 = vld [vmem:[%s9412_s1 + $0x8] sm:$0x7]  ;;  %v4011_v3 = vmul.f32 -1.442695, %v51_v0  ;;  %v4014_v4 = vmul.f32 -1.442695, %v4013_v1 }
   0x9   :  { %v4017_v5 = vmul.f32 -1.442695, %v4016_v2  ;;  %v4018_v6 = vld [vmem:[%s9412_s1 + $0xc] sm:$0x7]  ;;  %v4022_v59 = vld [vmem:[%s9413_s2 + $0x8] sm:$0x7] }
   0xa   :  { %4042 = vpow2.f32 %v4011_v3  ;;  %v4019_v7 = vmul.f32 -1.442695, %v4018_v6  ;;  %v4770_v8 = vld [vmem:[%s9413_s2 + $0xc] sm:$0x7]  ;;  %s4705_s19 = smov [#allocation5]   ;;  %s3985_s22 = sshll.u32 %s9418_s7, 4  ;;  %s3986_s22 = int_to_ptr.hbm [resolvable:$true] %s3985_s22 }
   0xb   :  { %4044 = vpow2.f32 %v4014_v4  ;;  %v4773_v9 = vadd.f32 1e-09, %v4770_v8  ;;  %v163_v26 = vmul.f32 0.5, %v4770_v8  ;;  %s3983_s20 = sshll.u32 %s4705_s19, 4  ;;  %s4706_s7 = smov [#allocation6]   ;;  %s3984_s20 = int_to_ptr.vmem [resolvable:$true] %s3983_s20 }
   0xc   :  { %4046 = vpow2.f32 %v4017_v5  ;;  %s3994_s23 = sshll.u32 %s4706_s7, 4  ;;  %s3996_s26 = sshll.u32 %s9419_s8, 4  ;;  %s3995_s23 = int_to_ptr.vmem [resolvable:$true] %s3994_s23  ;;  %s3997_s26 = int_to_ptr.hbm [resolvable:$true] %s3996_s26 }
   0xd   :  { %4048 = vpow2.f32 %v4019_v7  ;;  %v228_v39 = vand.u32 2147483648, %v4773_v9  ;;  %vm222_vm9 = vweird.f32 %v4773_v9  ;;  %v226_v50 = vand.u32 2147483647, %v4773_v9 }
   0xe   :  { %4050 = vrcp.f32 %v4773_v9 }
   0xf   :  { %v229_v55 = vor.u32 1.1754944e-38, %v228_v39  ;;  %vm227_vm15 = vcmp.eq.f32.partialorder %v226_v50, 8.507059e+37  ;;  %v178_v50 = vmul.f32 %v4022_v59, %v4773_v9 }
  0x10   :  { %v4043_v10 = vpop.eup %4042 }
  0x11   :  { %v4045_v11 = vpop.eup %4044  ;;  %v55_v12 = vadd.f32 1.0, %v4043_v10 }
  0x12   :  { %v4047_v13 = vpop.eup %4046  ;;  %v78_v14 = vadd.f32 1.0, %v4045_v11 }
  0x13   :  { %v4049_v15 = vpop.eup %4048  ;;  %4052 = vrcp.f32 %v55_v12  ;;  %v4776_v16 = vadd.f32 1.0, %v4047_v13  ;;  %v65_v18 = vand.u32 2147483647, %v55_v12  ;;  %v67_v19 = vand.u32 2147483648, %v55_v12 }
  0x14   :  { %4054 = vrcp.f32 %v78_v14  ;;  %v4778_v17 = vadd.f32 1.0, %v4049_v15  ;;  %v88_v20 = vand.u32 2147483647, %v78_v14  ;;  %v4051_v21 = vpop.eup %4050  ;;  %vm61_vm0 = vweird.f32 %v55_v12 }
  0x15   :  { %4056 = vrcp.f32 %v4776_v16  ;;  %vm84_vm1 = vweird.f32 %v78_v14  ;;  %v90_v23 = vand.u32 2147483648, %v78_v14  ;;  %vm4782_vm2 = vcmp.eq.f32.partialorder %v65_v18, 8.507059e+37  ;;  %v119_v18 = vld [vmem:[%s9414_s3] sm:$0x7] }
  0x16   :  { %4058 = vrcp.f32 %v4778_v17  ;;  %v68_v27 = vor.u32 1.1754944e-38, %v67_v19  ;;  %vm107_vm3 = vweird.f32 %v4776_v16  ;;  %v111_v28 = vand.u32 2147483647, %v4776_v16 }
  0x17   :  { %vm4788_vm4 = vcmp.eq.f32.partialorder %v88_v20, 8.507059e+37  ;;  %v113_v31 = vand.u32 2147483648, %v4776_v16  ;;  %vm132_vm5 = vweird.f32 %v4778_v17  ;;  %v218_v32 = vmul.f32 %v4051_v21, %v4773_v9 }
  0x18   :  { %v136_v34 = vand.u32 2147483647, %v4778_v17  ;;  %v138_v35 = vand.u32 2147483648, %v4778_v17  ;;  %vm223_vm13 = vweird.f32 %v4051_v21  ;;  %v91_v57 = vor.u32 1.1754944e-38, %v90_v23 }
  0x19   :  { %v4053_v22 = vpop.eup %4052  ;;  %v219_v38 = vsub.f32 1.0, %v218_v32  ;;  %vm4812_vm14 = vmor %vm222_vm9, %vm223_vm13  ;;  %v114_v62 = vor.u32 1.1754944e-38, %v113_v31  ;;  %v160_v23 = vmul.f32 0.5, %v4022_v59 }
  0x1a   :  { %v4055_v24 = vpop.eup %4054  ;;  %v57_v25 = vmul.f32 %v4053_v22, %v55_v12  ;;  %vm62_vm6 = vweird.f32 %v4053_v22  ;;  %v139_v2 = vor.u32 1.1754944e-38, %v138_v35 }
  0x1b   :  { %v80_v29 = vmul.f32 %v4055_v24, %v78_v14  ;;  %v4057_v36 = vpop.eup %4056  ;;  %vm85_vm7 = vweird.f32 %v4055_v24  ;;  %vm4801_vm10 = vmor %vm61_vm0, %vm62_vm6  ;;  %v220_v46 = vmul.f32 %v4051_v21, %v219_v38 }
  0x1c   :  { %v58_v33 = vsub.f32 1.0, %v57_v25  ;;  %v4059_v40 = vpop.eup %4058  ;;  %v103_v42 = vmul.f32 %v4057_v36, %v4776_v16  ;;  %vm108_vm8 = vweird.f32 %v4057_v36  ;;  %vm4807_vm12 = vmor %vm84_vm1, %vm85_vm7  ;;  %vm112_vm1 = vcmp.eq.f32.partialorder %v111_v28, 8.507059e+37  ;;  %v147_v25 = vld [vmem:[%s9413_s2] sm:$0x7] }
  0x1d   :  { %v81_v37 = vsub.f32 1.0, %v80_v29  ;;  %v128_v45 = vmul.f32 %v4059_v40, %v4778_v17  ;;  %vm133_vm11 = vweird.f32 %v4059_v40  ;;  %v221_v53 = vadd.f32 %v4051_v21, %v220_v46  ;;  %vm4826_vm0 = vmor %vm107_vm3, %vm108_vm8  ;;  %v4021_v29 = vld [vmem:[%s9413_s2 + $0x4] sm:$0x7] }
  0x1e   :  { %v59_v41 = vmul.f32 %v4053_v22, %v58_v33  ;;  %v104_v49 = vsub.f32 1.0, %v103_v42  ;;  %vm134_vm6 = vmor %vm132_vm5, %vm133_vm11  ;;  %vm137_vm3 = vcmp.eq.f32.partialorder %v136_v34, 8.507059e+37  ;;  %v4863_v33 = vsub.f32 %v147_v25, %v160_v23 }
  0x1f   :  { %v82_v44 = vmul.f32 %v4055_v24, %v81_v37  ;;  %v129_v52 = vsub.f32 1.0, %v128_v45  ;;  %v225_v0 = vsel %vm4812_vm14, %v4051_v21, %v221_v53  ;;  %v4865_v34 = vadd.f32 %v160_v23, %v147_v25 }
  0x20   :  { %v60_v47 = vadd.f32 %v4053_v22, %v59_v41  ;;  %v105_v58 = vmul.f32 %v4057_v36, %v104_v49  ;;  %v230_v3 = vsel %vm227_vm15, %v229_v55, %v225_v0  ;;  %v4869_v8 = vadd.f32 %v4021_v29, %v163_v26 }
  0x21   :  { %v83_v51 = vadd.f32 %v4055_v24, %v82_v44  ;;  %v130_v63 = vmul.f32 %v4059_v40, %v129_v52  ;;  %v4837_v6 = vmul.f32 %v4022_v59, %v230_v3 }
  0x22   :  { %v64_v56 = vsel %vm4801_vm10, %v4053_v22, %v60_v47  ;;  %v106_v1 = vadd.f32 %v4057_v36, %v105_v58  ;;  %v4020_v22 = vld [vmem:[%s9414_s3 + $0x4] sm:$0x7] }
  0x23   :  { %v87_v60 = vsel %vm4807_vm12, %v4055_v24, %v83_v51  ;;  %v69_v4 = vsel %vm4782_vm2, %v68_v27, %v64_v56  ;;  %v131_v5 = vadd.f32 %v4059_v40, %v130_v63  ;;  %v4844_v13 = vand.u32 2147483647, %v4837_v6 }
  0x24   :  { %v92_v7 = vsel %vm4788_vm4, %v91_v57, %v87_v60  ;;  %v110_v10 = vsel %vm4826_vm0, %v4057_v36, %v106_v1  ;;  %v71_v14 = vmul.f32 2.0, %v69_v4  ;;  %v4867_v36 = vsub.f32 %v4021_v29, %v163_v26 }
  0x25   :  { %v115_v11 = vsel %vm112_vm1, %v114_v62, %v110_v10  ;;  %v135_v12 = vsel %vm134_vm6, %v4059_v40, %v131_v5  ;;  %v94_v17 = vmul.f32 2.0, %v92_v7  ;;  %v234_v20 = vmax.f32 %v4844_v13, 1e-30 }
  0x26   :  { %v117_v15 = vmul.f32 2.0, %v115_v11  ;;  %v140_v16 = vsel %vm137_vm3, %v139_v2, %v135_v12  ;;  %v4012_v27 = vadd.f32 -0.5, %v71_v14  ;;  %vm233_vm8 = vcmp.gt.f32.partialorder %v4844_v13, 1.0 }
  0x27   :  { %v142_v19 = vmul.f32 2.0, %v140_v16  ;;  %4060 = vrcp.f32 %v234_v20  ;;  %v4015_v30 = vadd.f32 -0.5, %v94_v17  ;;  %vm240_vm2 = vweird.f32 %v234_v20 }
  0x28   :  { %v118_v21 = vmul.f32 %v117_v15, %v117_v15  ;;  %v244_v55 = vand.u32 2147483647, %v234_v20  ;;  %v246_v56 = vand.u32 2147483648, %v234_v20  ;;  %v9420_v12 = vmov 0.0  }
  0x29   :  { %v143_v24 = vmul.f32 %v142_v19, %v142_v19  ;;  %50 = vst [vmem:[#allocation6] sm:$0x1] %v9420_v12  ;;  %v211_v25 = vadd.f32 %v4869_v8, %v4867_v36 }
  0x2a   :  { %v4857_v28 = vmul.f32 %v119_v18, %v118_v21  ;;  %v247_v61 = vor.u32 1.1754944e-38, %v246_v56  ;;  %vm245_vm7 = vcmp.eq.f32.partialorder %v244_v55, 8.507059e+37 }
  0x2b   :  { %v146_v31 = vmul.f32 %v4020_v22, %v143_v24 }
  0x2c   :  { %v154_v32 = vmul.f32 0.5, %v4857_v28 }
  0x2d   :  { %v157_v35 = vmul.f32 0.5, %v146_v31  ;;  %v4061_v41 = vpop.eup %4060  ;;  %v175_v46 = vadd.f32 1e-09, %v146_v31 }
  0x2e   :  { %v4871_v37 = vsub.f32 %v4012_v27, %v154_v32  ;;  %v4873_v38 = vadd.f32 %v4012_v27, %v154_v32  ;;  %v236_v51 = vmul.f32 %v4061_v41, %v234_v20  ;;  %vm241_vm4 = vweird.f32 %v4061_v41 }
  0x2f   :  { %v4875_v39 = vsub.f32 %v4015_v30, %v157_v35  ;;  %v4877_v40 = vadd.f32 %v4015_v30, %v157_v35  ;;  %v177_v49 = vmul.f32 %v175_v46, %v4857_v28  ;;  %vm242_vm5 = vmor %vm240_vm2, %vm241_vm4  ;;  %4062 = vrcp.f32 %v175_v46 }
  0x30   :  { %v166_v42 = vmin.f32 %v4873_v38, %v4865_v34  ;;  %v167_v43 = vmax.f32 %v4871_v37, %v4863_v33  ;;  %v237_v54 = vsub.f32 1.0, %v236_v51  ;;  %v279_v7 = vand.u32 2147483648, %v175_v46 }
  0x31   :  { %v170_v44 = vmin.f32 %v4877_v40, %v4869_v8  ;;  %v171_v45 = vmax.f32 %v4875_v39, %v4867_v36  ;;  %v179_v58 = vadd.f32 %v178_v50, %v177_v49  ;;  %vm273_vm9 = vweird.f32 %v175_v46 }
  0x32   :  { %v168_v47 = vsub.f32 %v166_v42, %v167_v43  ;;  %v238_v60 = vmul.f32 %v4061_v41, %v237_v54  ;;  %v277_v11 = vand.u32 2147483647, %v175_v46  ;;  %v280_v17 = vor.u32 1.1754944e-38, %v279_v7 }
  0x33   :  { %v172_v48 = vsub.f32 %v170_v44, %v171_v45  ;;  %v207_v20 = vadd.f32 %v4865_v34, %v4863_v33  ;;  %v197_v27 = vmax.f32 %v4873_v38, %v4865_v34  ;;  %v198_v29 = vmin.f32 %v4871_v37, %v4863_v33 }
  0x34   :  { %v169_v52 = vmax.f32 %v168_v47, 0.0  ;;  %v239_v62 = vadd.f32 %v4061_v41, %v238_v60  ;;  %vm278_vm12 = vcmp.eq.f32.partialorder %v277_v11, 8.507059e+37  ;;  %v200_v30 = vmax.f32 %v4877_v40, %v4869_v8 }
  0x35   :  { %v173_v53 = vmax.f32 %v172_v48, 0.0  ;;  %v4063_v1 = vpop.eup %4062  ;;  %v201_v35 = vmin.f32 %v4875_v39, %v4867_v36  ;;  %v199_v42 = vsub.f32 %v197_v27, %v198_v29  ;;  %v212_v33 = vsub.f32 %v211_v25, %v4875_v39  ;;  %v4933_v36 = vld [vmem:[%s9415_s4] sm:$0x7] }
  0x36   :  { %v243_v9 = vsel %vm242_vm5, %v4061_v41, %v239_v62  ;;  %v269_v4 = vmul.f32 %v4063_v1, %v175_v46  ;;  %vm274_vm10 = vweird.f32 %v4063_v1  ;;  %v208_v41 = vsub.f32 %v207_v20, %v4871_v37  ;;  %v4938_v37 = vld [vmem:[%s9415_s4 + $0x4] sm:$0x7] }
  0x37   :  { %v4889_v57 = vmul.f32 %v173_v53, %v169_v52  ;;  %v248_v59 = vsel %vm245_vm7, %v247_v61, %v243_v9  ;;  %vm275_vm11 = vmor %vm273_vm9, %vm274_vm10  ;;  %v202_v8 = vsub.f32 %v200_v30, %v201_v35  ;;  %v203_v46 = vmul.f32 %v199_v42, %v199_v42  ;;  %v4947_v52 = vld [vmem:[%s9415_s4 + $0x8] sm:$0x7]  ;;  %v4997_v30 = vld [vmem:[%s9415_s4 + $0x18] sm:$0x7] }
  0x38   :  { %v4896_v0 = vsel %vm233_vm8, %v248_v59, %v4844_v13  ;;  %v270_v10 = vsub.f32 1.0, %v269_v4  ;;  %v209_v45 = vsub.f32 %v208_v41, %v4873_v38  ;;  %v438_v39 = vand.u32 2147483647, %v4933_v36  ;;  %v4965_v4 = vld [vmem:[%s9415_s4 + $0x10] sm:$0x7] }
  0x39   :  { %v180_v63 = vsub.f32 %v179_v58, %v4889_v57  ;;  %v251_v3 = vmul.f32 %v4896_v0, %v4896_v0  ;;  %v439_v48 = vand.u32 2147483647, %v4938_v37  ;;  %v204_v38 = vmul.f32 %v202_v8, %v202_v8  ;;  %v5003_v35 = vld [vmem:[%s9415_s4 + $0x1c] sm:$0x7] }
  0x3a   :  { %v271_v15 = vmul.f32 %v4063_v1, %v270_v10  ;;  %v210_v50 = vmul.f32 %v209_v45, %v209_v45  ;;  %v213_v51 = vsub.f32 %v212_v33, %v4877_v40  ;;  %v440_v54 = vand.u32 2147483647, %v4947_v52  ;;  %v4957_v40 = vld [vmem:[%s9415_s4 + $0xc] sm:$0x7] }
  0x3b   :  { %v4898_v2 = vadd.f32 1e-09, %v180_v63  ;;  %v252_v5 = vmul.f32 0.0208351, %v251_v3  ;;  %v446_v55 = vsub.f32 0.0, %v438_v39  ;;  %v447_v61 = vsub.f32 0.0, %v439_v48 }
  0x3c   :  { %v272_v18 = vadd.f32 %v4063_v1, %v271_v15  ;;  %v441_v9 = vand.u32 2147483647, %v4957_v40  ;;  %v448_v59 = vsub.f32 0.0, %v440_v54  ;;  %v442_v10 = vand.u32 2147483647, %v4965_v4 }
  0x3d   :  { %4064 = vrcp.f32 %v4898_v2  ;;  %v4024_v14 = vadd.f32 -0.085133, %v252_v5  ;;  %vm187_vm13 = vweird.f32 %v4898_v2  ;;  %v191_v53 = vand.u32 2147483647, %v4898_v2  ;;  %v4979_v15 = vld [vmem:[%s9415_s4 + $0x14] sm:$0x7] }
  0x3e   :  { %v276_v21 = vsel %vm275_vm11, %v4063_v1, %v272_v18  ;;  %v193_v58 = vand.u32 2147483648, %v4898_v2  ;;  %v454_v5 = vmul.f32 1.442695, %v446_v55  ;;  %v449_v11 = vsub.f32 0.0, %v441_v9 }
  0x3f   :  { %v254_v16 = vmul.f32 %v4024_v14, %v251_v3  ;;  %v281_v24 = vsel %vm278_vm12, %v280_v17, %v276_v21  ;;  %v214_v14 = vmul.f32 %v213_v51, %v213_v51  ;;  %v458_v17 = vmul.f32 1.442695, %v448_v59 }
  0x40   :  { %v4911_v26 = vmul.f32 %v281_v24, %v4857_v28  ;;  %vm4981_vm6 = vcmp.eq.f32.partialorder %v191_v53, 8.507059e+37  ;;  %v194_v21 = vor.u32 1.1754944e-38, %v193_v58  ;;  %v460_v25 = vmul.f32 1.442695, %v449_v11 }
  0x41   :  { %v255_v19 = vadd.f32 0.180141, %v254_v16  ;;  %v456_v16 = vmul.f32 1.442695, %v447_v61  ;;  %vm265_vm5 = vcmp.gt.f32.partialorder %v4837_v6, 0.0  ;;  %v215_v8 = vadd.f32 %v214_v14, %v210_v50 }
  0x42   :  { %v4925_v28 = vand.u32 2147483647, %v4911_v26  ;;  %v445_v45 = vand.u32 2147483647, %v5003_v35  ;;  %vm263_vm7 = vcmp.lt.f32.partialorder %v4837_v6, 0.0  ;;  %v422_v11 = vsub.f32 0.0, %v4933_v36 }
  0x43   :  { %v4906_v22 = vpop.eup %4064  ;;  %v256_v23 = vmul.f32 %v255_v19, %v251_v3  ;;  %vm316_vm9 = vcmp.gt.f32.partialorder %v4911_v26, 0.0  ;;  %vm314_vm11 = vcmp.lt.f32.partialorder %v4911_v26, 0.0 }
  0x44   :  { %v183_v32 = vmul.f32 %v4906_v22, %v4898_v2  ;;  %v285_v34 = vmax.f32 %v4925_v28, 1e-30  ;;  %vm188_vm14 = vweird.f32 %v4906_v22  ;;  %v443_v2 = vand.u32 2147483647, %v4979_v15 }
  0x45   :  { %v4025_v31 = vadd.f32 -0.3302995, %v256_v23  ;;  %vm4972_vm1 = vmor %vm187_vm13, %vm188_vm14  ;;  %vm284_vm4 = vcmp.gt.f32.partialorder %v4925_v28, 1.0  ;;  %v424_v23 = vsub.f32 0.0, %v4947_v52 }
  0x46   :  { %v184_v44 = vsub.f32 1.0, %v183_v32  ;;  %4066 = vrcp.f32 %v285_v34  ;;  %v295_v60 = vand.u32 2147483647, %v285_v34  ;;  %vm291_vm15 = vweird.f32 %v285_v34 }
  0x47   :  { %v258_v43 = vmul.f32 %v4025_v31, %v251_v3  ;;  %v297_v3 = vand.u32 2147483648, %v285_v34  ;;  %4068 = vpow2.f32 %v454_v5  ;;  %v450_v31 = vsub.f32 0.0, %v442_v10 }
  0x48   :  { %v185_v49 = vmul.f32 %v4906_v22, %v184_v44  ;;  %4070 = vpow2.f32 %v456_v16  ;;  %vm296_vm2 = vcmp.eq.f32.partialorder %v295_v60, 8.507059e+37  ;;  %v205_v32 = vadd.f32 %v204_v38, %v203_v46 }
  0x49   :  { %v259_v47 = vadd.f32 0.999866, %v258_v43  ;;  %v298_v24 = vor.u32 1.1754944e-38, %v297_v3  ;;  %4072 = vpow2.f32 %v458_v17  ;;  %v444_v44 = vand.u32 2147483647, %v4997_v30 }
  0x4a   :  { %v186_v1 = vadd.f32 %v4906_v22, %v185_v49  ;;  %4074 = vpow2.f32 %v460_v25  ;;  %v462_v46 = vmul.f32 1.442695, %v450_v31  ;;  %v5021_v39 = vadd.f32 1e-09, %v205_v32 }
  0x4b   :  { %v260_v62 = vmul.f32 %v259_v47, %v4896_v0  ;;  %v453_v60 = vsub.f32 0.0, %v445_v45  ;;  %v425_v31 = vsub.f32 0.0, %v4957_v40 }
  0x4c   :  { %v4067_v56 = vpop.eup %4066  ;;  %v190_v27 = vsel %vm4972_vm1, %v4906_v22, %v186_v1  ;;  %vm344_vm12 = vweird.f32 %v5021_v39 }
  0x4d   :  { %v287_v63 = vmul.f32 %v4067_v56, %v285_v34  ;;  %vm292_vm0 = vweird.f32 %v4067_v56  ;;  %v261_v19 = vsub.f32 1.5707964, %v260_v62  ;;  %v451_v34 = vsub.f32 0.0, %v443_v2  ;;  %v4069_v42 = vpop.eup %4068 }
  0x4e   :  { %vm4987_vm3 = vmor %vm291_vm15, %vm292_vm0  ;;  %v195_v33 = vsel %vm4981_vm6, %v194_v21, %v190_v27  ;;  %v5019_v47 = vpop.eup %4070  ;;  %v470_v38 = vadd.f32 1.0, %v4069_v42  ;;  %v473_v61 = vmul.f32 -0.5, %v4069_v42  ;;  %v476_v10 = vand.u32 2147483647, %v4069_v42 }
  0x4f   :  { %v288_v7 = vsub.f32 1.0, %v287_v63  ;;  %v262_v22 = vsel %vm233_vm8, %v261_v19, %v260_v62  ;;  %v5026_v51 = vmul.f32 %v195_v33, %v4889_v57  ;;  %v464_v53 = vmul.f32 1.442695, %v451_v34  ;;  %v5031_v54 = vpop.eup %4072 }
  0x50   :  { %v264_v48 = vsub.f32 0.0, %v262_v22  ;;  %v266_v50 = vsel %vm265_vm5, %v262_v22, 0.0  ;;  %4076 = vlog2.f32 %v470_v38  ;;  %v479_v58 = vadd.f32 1.0, %v5019_v47  ;;  %v5035_v57 = vpop.eup %4074 }
  0x51   :  { %v289_v20 = vmul.f32 %v4067_v56, %v288_v7  ;;  %4078 = vpow2.f32 %v462_v46  ;;  %v482_v62 = vmul.f32 -0.5, %v5019_v47  ;;  %v5037_v63 = vmul.f32 0.25, %v215_v8 }
  0x52   :  { %v5039_v9 = vsel %vm263_vm7, %v264_v48, %v266_v50  ;;  %4080 = vrcp.f32 %v5021_v39  ;;  %v322_v59 = vsub.f32 1.0, %v5026_v51  ;;  %v474_v1 = vadd.f32 1.0, %v473_v61 }
  0x53   :  { %v290_v29 = vadd.f32 %v4067_v56, %v289_v20  ;;  %4082 = vpow2.f32 %v464_v53  ;;  %v488_v3 = vadd.f32 1.0, %v5031_v54  ;;  %v468_v0 = vmul.f32 1.442695, %v453_v60 }
  0x54   :  { %4084 = vlog2.f32 %v479_v58  ;;  %v483_v14 = vadd.f32 1.0, %v482_v62  ;;  %v497_v16 = vadd.f32 1.0, %v5035_v57  ;;  %v423_v19 = vsub.f32 0.0, %v4938_v37 }
  0x55   :  { %v294_v41 = vsel %vm4987_vm3, %v4067_v56, %v290_v29  ;;  %v452_v56 = vsub.f32 0.0, %v444_v44  ;;  %v5047_v20 = vmul.f32 %v4069_v42, %v474_v1  ;;  %v491_v2 = vmul.f32 -0.5, %v5031_v54 }
  0x56   :  { %v299_v43 = vsel %vm296_vm2, %v298_v24, %v294_v41  ;;  %v4077_v17 = vpop.eup %4076  ;;  %v485_v25 = vand.u32 2147483647, %v5019_v47  ;;  %4086 = vlog2.f32 %v488_v3  ;;  %vm5059_vm8 = vcmp.lt.f32.partialorder %v476_v10, 0.0004427343 }
  0x57   :  { %v5016_v13 = vsel %vm284_vm4, %v299_v43, %v4925_v28  ;;  %v466_v7 = vmul.f32 1.442695, %v452_v56  ;;  %v5050_v21 = vpop.eup %4078  ;;  %v5053_v24 = vmul.f32 0.6931472, %v4077_v17  ;;  %v5067_v34 = vmax.f32 %v422_v11, 0.0 }
  0x58   :  { %v302_v49 = vmul.f32 %v5016_v13, %v5016_v13  ;;  %v5056_v27 = vpop.eup %4080  ;;  %v5070_v42 = vmul.f32 %v5019_v47, %v483_v14  ;;  %v5073_v44 = vmax.f32 %v423_v19, 0.0  ;;  %v492_v8 = vadd.f32 1.0, %v491_v2 }
  0x59   :  { %4088 = vpow2.f32 %v466_v7  ;;  %v5063_v22 = vpop.eup %4082  ;;  %v340_v41 = vmul.f32 %v5056_v27, %v5021_v39  ;;  %v5075_v46 = vmax.f32 %v424_v23, 0.0  ;;  %v478_v48 = vsel %vm5059_vm8, %v5047_v20, %v5053_v24  ;;  %v5224_v24 = vld [vmem:[%s9416_s5 + $0x10] sm:$0x7] }
  0x5a   :  { %v303_v55 = vmul.f32 0.0208351, %v302_v49  ;;  %4090 = vpow2.f32 %v468_v0  ;;  %v4085_v33 = vpop.eup %4084  ;;  %vm5081_vm10 = vcmp.lt.f32.partialorder %v485_v25, 0.0004427343  ;;  %v426_v50 = vsub.f32 0.0, %v4965_v4 }
  0x5b   :  { %4092 = vlog2.f32 %v497_v16  ;;  %v341_v45 = vsub.f32 1.0, %v340_v41  ;;  %v5087_v53 = vmax.f32 %v425_v31, 0.0  ;;  %v427_v60 = vsub.f32 0.0, %v4979_v15 }
  0x5c   :  { %v4026_v6 = vadd.f32 -0.085133, %v303_v55  ;;  %v494_v55 = vand.u32 2147483647, %v5031_v54  ;;  %v4087_v56 = vpop.eup %4086  ;;  %v5092_v61 = vmul.f32 0.6931472, %v4085_v33  ;;  %vm345_vm13 = vweird.f32 %v5056_v27 }
  0x5d   :  { %v342_v58 = vmul.f32 %v5056_v27, %v341_v45  ;;  %v500_v62 = vmul.f32 -0.5, %v5035_v57  ;;  %v350_v1 = vand.u32 2147483648, %v5021_v39  ;;  %v428_v3 = vsub.f32 0.0, %v4997_v30  ;;  %vm5109_vm14 = vmor %vm344_vm12, %vm345_vm13 }
  0x5e   :  { %v305_v5 = vmul.f32 %v4026_v6, %v302_v49  ;;  %v348_v11 = vand.u32 2147483647, %v5021_v39  ;;  %v5113_v17 = vmax.f32 %v426_v50, 0.0  ;;  %vm5117_vm15 = vcmp.lt.f32.partialorder %v494_v55, 0.0004427343 }
  0x5f   :  { %v5095_v6 = vpop.eup %4088  ;;  %v343_v10 = vadd.f32 %v5056_v27, %v342_v58  ;;  %v351_v19 = vor.u32 1.1754944e-38, %v350_v1  ;;  %v5121_v2 = vmax.f32 %v427_v60, 0.0  ;;  %v501_v39 = vadd.f32 1.0, %v500_v62 }
  0x60   :  { %v306_v18 = vadd.f32 0.180141, %v305_v5  ;;  %v5100_v5 = vmul.f32 %v5031_v54, %v492_v8  ;;  %v5102_v7 = vpop.eup %4090  ;;  %v5115_v54 = vmul.f32 0.6931472, %v4087_v56  ;;  %v5131_v31 = vmax.f32 %v428_v3, 0.0 }
  0x61   :  { %v4093_v0 = vpop.eup %4092  ;;  %v347_v25 = vsel %vm5109_vm14, %v5056_v27, %v343_v10  ;;  %vm349_vm0 = vcmp.eq.f32.partialorder %v348_v11, 8.507059e+37  ;;  %v503_v41 = vand.u32 2147483647, %v5035_v57  ;;  %v506_v33 = vadd.f32 1.0, %v5050_v21 }
  0x62   :  { %v307_v29 = vmul.f32 %v306_v18, %v302_v49  ;;  %v496_v8 = vsel %vm5117_vm15, %v5100_v5, %v5115_v54  ;;  %v515_v27 = vadd.f32 1.0, %v5063_v22  ;;  %v518_v45 = vmul.f32 -0.5, %v5063_v22  ;;  %v5175_v18 = vld [vmem:[%s9416_s5 + $0x4] sm:$0x7] }
  0x63   :  { %v499_v50 = vmul.f32 0.6931472, %v4093_v0  ;;  %4094 = vlog2.f32 %v506_v33  ;;  %v5146_v55 = vsel %vm349_vm0, %v351_v19, %v347_v25  ;;  %v502_v28 = vmul.f32 %v5035_v57, %v501_v39  ;;  %v5167_v0 = vld [vmem:[%s9416_s5] sm:$0x7] }
  0x64   :  { %v4027_v43 = vadd.f32 -0.3302995, %v307_v29  ;;  %v429_v29 = vsub.f32 0.0, %v5003_v35  ;;  %v512_v56 = vand.u32 2147483647, %v5050_v21  ;;  %4096 = vlog2.f32 %v515_v27 }
  0x65   :  { %vm5152_vm1 = vcmp.lt.f32.partialorder %v503_v41, 0.0004427343  ;;  %v524_v62 = vadd.f32 1.0, %v5095_v6  ;;  %v519_v3 = vadd.f32 1.0, %v518_v45  ;;  %v527_v57 = vmul.f32 -0.5, %v5095_v6 }
  0x66   :  { %v309_v47 = vmul.f32 %v4027_v43, %v302_v49  ;;  %v509_v43 = vmul.f32 -0.5, %v5050_v21  ;;  %v5158_v1 = vmax.f32 %v429_v29, 0.0  ;;  %v521_v5 = vand.u32 2147483647, %v5063_v22 }
  0x67   :  { %4098 = vlog2.f32 %v524_v62  ;;  %v530_v26 = vand.u32 2147483647, %v5095_v6  ;;  %v533_v10 = vadd.f32 1.0, %v5102_v7  ;;  %v536_v16 = vmul.f32 -0.5, %v5102_v7 }
  0x68   :  { %v310_v49 = vadd.f32 0.999866, %v309_v47  ;;  %vm5178_vm6 = vcmp.lt.f32.partialorder %v512_v56, 0.0004427343  ;;  %v520_v33 = vmul.f32 %v5063_v22, %v519_v3  ;;  %vm5191_vm3 = vcmp.lt.f32.partialorder %v521_v5, 0.0004427343 }
  0x69   :  { %v4095_v54 = vpop.eup %4094  ;;  %4100 = vlog2.f32 %v533_v10  ;;  %vm5195_vm2 = vcmp.lt.f32.partialorder %v530_v26, 0.0004427343  ;;  %v542_v22 = vadd.f32 %v478_v48, %v5067_v34  ;;  %v544_v34 = vadd.f32 %v496_v8, %v5075_v46  ;;  %v5255_v5 = vld [vmem:[%s9416_s5 + $0x1c] sm:$0x7] }
  0x6a   :  { %v311_v14 = vmul.f32 %v310_v49, %v5016_v13  ;;  %v487_v13 = vsel %vm5081_vm10, %v5070_v42, %v5092_v61  ;;  %v510_v61 = vadd.f32 1.0, %v509_v43  ;;  %v4097_v25 = vpop.eup %4096  ;;  %v508_v41 = vmul.f32 0.6931472, %v4095_v54 }
  0x6b   :  { %v537_v43 = vadd.f32 1.0, %v536_v16  ;;  %v543_v45 = vadd.f32 %v487_v13, %v5073_v44  ;;  %v550_v48 = vmul.f32 0.0, %v5167_v0  ;;  %v5240_v13 = vld [vmem:[%s9416_s5 + $0x18] sm:$0x7]  ;;  %v551_v46 = vmul.f32 0.0, %v5175_v18 }
  0x6c   :  { %v312_v23 = vsub.f32 1.5707964, %v311_v14  ;;  %v511_v19 = vmul.f32 %v5050_v21, %v510_v61  ;;  %vm362_vm8 = vcmask 1042432  }
  0x6d   :  { %v4099_v20 = vpop.eup %4098  ;;  %v538_v56 = vmul.f32 %v5102_v7, %v537_v43  ;;  %v557_v43 = vmul.f32 0.0, %v5255_v5 }
  0x6e   :  { %v313_v42 = vsel %vm284_vm4, %v312_v23, %v311_v14  ;;  %v528_v14 = vadd.f32 1.0, %v527_v57  ;;  %v539_v23 = vand.u32 2147483647, %v5102_v7  ;;  %v526_v61 = vmul.f32 0.6931472, %v4099_v20 }
  0x6f   :  { %v315_v38 = vsub.f32 0.0, %v313_v42  ;;  %v317_v47 = vsel %vm316_vm9, %v313_v42, 0.0  ;;  %v5189_v42 = vld [vmem:[%s9416_s5 + $0x8] sm:$0x7]  ;;  %v4101_v8 = vpop.eup %4100  ;;  %v554_v7 = vmul.f32 0.0, %v5224_v24 }
  0x70   :  { %vm5217_vm4 = vcmp.lt.f32.partialorder %v539_v23, 0.0004427343  ;;  %v535_v3 = vmul.f32 0.6931472, %v4101_v8  ;;  %v578_v8 = vsub.f32 1.0, %v5224_v24 }
  0x71   :  { %v318_v58 = vsel %vm314_vm11, %v315_v38, %v317_v47  ;;  %v5214_v47 = vld [vmem:[%s9416_s5 + $0xc] sm:$0x7]  ;;  %v562_v21 = vadd.f32 1.0, %v554_v7 }
  0x72   :  { %v319_v49 = vsub.f32 %v5039_v9, %v318_v58  ;;  %v505_v9 = vsel %vm5152_vm1, %v502_v28, %v499_v50  ;;  %v517_v50 = vmul.f32 0.6931472, %v4097_v25  ;;  %v529_v28 = vmul.f32 %v5095_v6, %v528_v14  ;;  %v5235_v6 = vld [vmem:[%s9416_s5 + $0x14] sm:$0x7] }
  0x73   :  { %v545_v44 = vadd.f32 %v505_v9, %v5087_v53  ;;  %v552_v53 = vmul.f32 0.0, %v5189_v42  ;;  %v553_v62 = vmul.f32 0.0, %v5214_v47  ;;  %v555_v10 = vmul.f32 0.0, %v5235_v6 }
  0x74   :  { %v320_v11 = vmul.f32 %v319_v49, %v319_v49  ;;  %v523_v49 = vsel %vm5191_vm3, %v520_v33, %v517_v50  ;;  %v532_v26 = vsel %vm5195_vm2, %v529_v28, %v526_v61  ;;  %v558_v9 = vadd.f32 1.0, %v550_v48 }
  0x75   :  { %v559_v14 = vadd.f32 1.0, %v551_v46  ;;  %v560_v16 = vadd.f32 1.0, %v552_v53  ;;  %v547_v39 = vadd.f32 %v523_v49, %v5121_v2  ;;  %v561_v23 = vadd.f32 1.0, %v553_v62 }
  0x76   :  { %v5183_v29 = vmul.f32 0.40528473, %v320_v11  ;;  %v556_v11 = vmul.f32 0.0, %v5240_v13  ;;  %v563_v50 = vadd.f32 1.0, %v555_v10  ;;  %v566_v32 = vmul.f32 %v558_v9, %v542_v22 }
  0x77   :  { %v567_v20 = vmul.f32 %v559_v14, %v543_v45  ;;  %v569_v48 = vmul.f32 %v561_v23, %v545_v44  ;;  %v574_v2 = vsub.f32 1.0, %v5167_v0  ;;  %v575_v46 = vsub.f32 1.0, %v5175_v18 }
  0x78   :  { %v5209_v38 = vadd.f32 %v322_v59, %v5183_v29  ;;  %v514_v59 = vsel %vm5178_vm6, %v511_v19, %v508_v41  ;;  %v548_v41 = vadd.f32 %v532_v26, %v5131_v31  ;;  %v564_v28 = vadd.f32 1.0, %v556_v11 }
  0x79   :  { %v546_v57 = vadd.f32 %v514_v59, %v5113_v17  ;;  %v541_v17 = vsel %vm5217_vm4, %v538_v56, %v535_v3  ;;  %v568_v59 = vmul.f32 %v560_v16, %v544_v34  ;;  %v576_v31 = vsub.f32 1.0, %v5189_v42 }
  0x7a   :  { %4102 = vrcp.f32 %v5209_v38  ;;  %v333_v58 = vand.u32 2147483647, %v5209_v38  ;;  %v335_v60 = vand.u32 2147483648, %v5209_v38  ;;  %vm329_vm5 = vweird.f32 %v5209_v38 }
  0x7b   :  { %v549_v33 = vadd.f32 %v541_v17, %v5158_v1  ;;  %v570_v1 = vmul.f32 %v562_v21, %v546_v57  ;;  %v577_v53 = vsub.f32 1.0, %v5214_v47  ;;  %v580_v22 = vsub.f32 1.0, %v5240_v13 }
  0x7c   :  { %vm5264_vm7 = vcmp.eq.f32.partialorder %v333_v58, 8.507059e+37  ;;  %v336_v19 = vor.u32 1.1754944e-38, %v335_v60  ;;  %v579_v58 = vsub.f32 1.0, %v5235_v6  ;;  %v582_v45 = vmul.f32 %v574_v2, %v4933_v36 }
  0x7d   :  { %v583_v34 = vmul.f32 %v575_v46, %v4938_v37  ;;  %v565_v18 = vadd.f32 1.0, %v557_v43  ;;  %v584_v42 = vmul.f32 %v576_v31, %v4947_v52  ;;  %v585_v47 = vmul.f32 %v577_v53, %v4957_v40 }
  0x7e   :  { %v586_v24 = vmul.f32 %v578_v8, %v4965_v4  ;;  %v571_v6 = vmul.f32 %v563_v50, %v547_v39  ;;  %v581_v36 = vsub.f32 1.0, %v5255_v5  ;;  %v590_v13 = vadd.f32 %v582_v45, %v566_v32 }
  0x7f   :  { %v587_v37 = vmul.f32 %v579_v58, %v4979_v15  ;;  %v591_v61 = vadd.f32 %v583_v34, %v567_v20  ;;  %v593_v62 = vadd.f32 %v585_v47, %v569_v48  ;;  %v572_v3 = vmul.f32 %v564_v28, %v548_v41  ;;  %v4029_v15 = vld [vmem:[%s9412_s1 + $0x10] sm:$0x7] }
  0x80   :  { %v4103_v25 = vpop.eup %4102  ;;  %v588_v52 = vmul.f32 %v580_v22, %v4997_v30  ;;  %v594_v57 = vadd.f32 %v586_v24, %v570_v1  ;;  %v598_v4 = vsel %vm362_vm8, %v590_v13, 0.0  ;;  %v353_v10 = vmul.f32 %v5146_v55, %v5037_v63 }
  0x81   :  { %v325_v27 = vmul.f32 %v4103_v25, %v5209_v38  ;;  %vm330_vm9 = vweird.f32 %v4103_v25  ;;  %v592_v38 = vadd.f32 %v584_v42, %v568_v59  ;;  %v599_v7 = vsel %vm362_vm8, %v591_v61, 0.0 }
  0x82   :  { %vm5285_vm10 = vmor %vm329_vm5, %vm330_vm9  ;;  %v600_v30 = vadd.f32 %v599_v7, %v598_v4  ;;  %v573_v11 = vmul.f32 %v565_v18, %v549_v33  ;;  %v589_v9 = vmul.f32 %v581_v36, %v5003_v35  ;;  %v595_v17 = vadd.f32 %v587_v37, %v571_v6  ;;  %v4028_v18 = vld [vmem:[%s9417_s6 + $0x4] sm:$0x7] }
  0x83   :  { %v326_v56 = vsub.f32 1.0, %v325_v27  ;;  %v601_v5 = vsel %vm362_vm8, %v592_v38, 0.0  ;;  %v603_v14 = vsel %vm362_vm8, %v593_v62, 0.0  ;;  %v596_v39 = vadd.f32 %v588_v52, %v572_v3  ;;  %v357_v27 = vld [vmem:[%s9417_s6] sm:$0x7] }
  0x84   :  { %v602_v54 = vadd.f32 %v601_v5, %v600_v30  ;;  %v605_v23 = vsel %vm362_vm8, %v594_v57, 0.0  ;;  %v597_v21 = vadd.f32 %v589_v9, %v573_v11  ;;  %v607_v63 = vsel %vm362_vm8, %v595_v17, 0.0 }
  0x85   :  { %v327_v60 = vmul.f32 %v4103_v25, %v326_v56  ;;  %v376_v8 = vsub.f32 0.0, %v4029_v15 }
  0x86   :  { %v604_v41 = vadd.f32 %v603_v14, %v602_v54  ;;  %v611_v32 = vsel %vm362_vm8, %v597_v21, 0.0  ;;  %v9421_v54 = vlaneseq }
  0x87   :  { %v328_v44 = vadd.f32 %v4103_v25, %v327_v60  ;;  %v377_v45 = vmax.f32 %v376_v8, 0.0 }
  0x88   :  { %v606_v33 = vadd.f32 %v605_v23, %v604_v41 }
  0x89   :  { %v332_v49 = vsel %vm5285_vm10, %v4103_v25, %v328_v44 }
  0x8a   :  { %v337_v40 = vsel %vm5264_vm7, %v336_v19, %v332_v49  ;;  %v378_v19 = vand.u32 2147483647, %v4029_v15  ;;  %v608_v28 = vadd.f32 %v607_v63, %v606_v33  ;;  %v5326_v33 = vld [vmem:[#allocation2] sm:$0xff] }
  0x8b   :  { %v338_v26 = vmul.f32 %v337_v40, %v5183_v29  ;;  %9995 = vst [vmem:[#allocation11_spill] sm:$0xff] %v5326_v33 }
  0x8c   :  { %v379_v43 = vsub.f32 0.0, %v378_v19  ;;  %v626_v19 = vand.u32 127, %v9421_v54  ;;  %v5447_v54 = vld [vmem:[#allocation2 + $0x130] sm:$0xff] }
  0x8d   :  { %v354_v16 = vmul.f32 %v338_v26, %v5183_v29  ;;  %v609_v29 = vsel %vm362_vm8, %v596_v39, 0.0  ;;  %10033 = vst [vmem:[#allocation49_spill] sm:$0xff] %v5447_v54 }
  0x8e   :  { %v380_v35 = vmul.f32 1.442695, %v379_v43  ;;  %v610_v59 = vadd.f32 %v609_v29, %v608_v28  ;;  %vm627_vm12 = vcmp.eq.s32.totalorder %v626_v19, 0  ;;  %vm630_vm13 = vcmp.eq.s32.totalorder %v626_v19, 1  ;;  %v5332_v29 = vld [vmem:[#allocation2 + $0x18] sm:$0xff]  ;;  %v5336_v28 = vld [vmem:[#allocation2 + $0x28] sm:$0xff] }
  0x8f   :  { %v355_v25 = vadd.f32 %v354_v16, %v353_v10  ;;  %vm634_vm14 = vcmp.eq.s32.totalorder %v626_v19, 2  ;;  %9998 = vst [vmem:[#allocation14_spill] sm:$0xff] %v5332_v29  ;;  %v898_v8 = vand.u32 2147483647, %v5332_v29  ;;  %v5420_v19 = vld [vmem:[#allocation2 + $0xf0] sm:$0xff] }
  0x90   :  { %4104 = vpow2.f32 %v380_v35  ;;  %v612_v56 = vadd.f32 %v611_v32, %v610_v59  ;;  %v5328_v35 = vld [vmem:[#allocation2 + $0x8] sm:$0xff]  ;;  %10000 = vst [vmem:[#allocation16_spill] sm:$0xff] %v5336_v28  ;;  %v5338_v32 = vld [vmem:[#allocation2 + $0x30] sm:$0xff]  ;;  %v5342_v59 = vld [vmem:[#allocation2 + $0x40] sm:$0xff] }
  0x91   :  { %v356_v55 = vsub.f32 %v5026_v51, %v355_v25  ;;  %9996 = vst [vmem:[#allocation12_spill] sm:$0xff] %v5328_v35 }
  0x92   :  { %v613_v2 = vmul.f32 %v612_v56, %v357_v27  ;;  %10001 = vst [vmem:[#allocation17_spill] sm:$0xff] %v5338_v32  ;;  %v895_v56 = vand.u32 2147483647, %v5326_v33 }
  0x93   :  { %v360_v50 = vsub.f32 1.0, %v356_v55  ;;  %v373_v0 = vmax.f32 %v356_v55, 0.0  ;;  %10003 = vst [vmem:[#allocation19_spill] sm:$0xff] %v5342_v59 }
  0x94   :  { %v614_v1 = vsel %vm362_vm8, %v613_v2, 0.0  ;;  %v5349_v2 = vld [vmem:[#allocation2 + $0x58] sm:$0xff]  ;;  %10025 = vst [vmem:[#allocation41_spill] sm:$0xff] %v5420_v19 }
  0x95   :  { %v361_v20 = vmul.f32 %v360_v50, %v357_v27  ;;  %615 = vadd.xlane.f32.xlu1 %v614_v1  ;;  %v393_v44 = vmul.f32 %v4028_v18, %v373_v0  ;;  %v5330_v27 = vld [vmem:[#allocation2 + $0x10] sm:$0xff]  ;;  %v5334_v50 = vld [vmem:[#allocation2 + $0x20] sm:$0xff]  ;;  %10006 = vst [vmem:[#allocation22_spill] sm:$0xff] %v5349_v2  ;;  %v5362_v0 = vld [vmem:[#allocation2 + $0x68] sm:$0xff] }
  0x96   :  { %v4105_v51 = vpop.eup %4104  ;;  %9997 = vst [vmem:[#allocation13_spill] sm:$0xff] %v5330_v27  ;;  %v5353_v1 = vld [vmem:[#allocation2 + $0x60] sm:$0xff]  ;;  %v5364_v18 = vld [vmem:[#allocation2 + $0x70] sm:$0xff] }
  0x97   :  { %v363_v48 = vsel %vm362_vm8, %v361_v20, 0.0  ;;  %v382_v46 = vadd.f32 1.0, %v4105_v51  ;;  %v385_v31 = vmul.f32 -0.5, %v4105_v51  ;;  %v388_v58 = vand.u32 2147483647, %v4105_v51  ;;  %9999 = vst [vmem:[#allocation15_spill] sm:$0xff] %v5334_v50 }
  0x98   :  { %364 = vadd.xlane.f32.xlu0 %v363_v48  ;;  %v5340_v20 = vld [vmem:[#allocation2 + $0x38] sm:$0xff]  ;;  %v5344_v48 = vld [vmem:[#allocation2 + $0x48] sm:$0xff]  ;;  %10007 = vst [vmem:[#allocation23_spill] sm:$0xff] %v5353_v1 }
  0x99   :  { %4106 = vlog2.f32 %v382_v46  ;;  %v386_v53 = vadd.f32 1.0, %v385_v31  ;;  %vm389_vm11 = vcmp.lt.f32.partialorder %v388_v58, 0.0004427343  ;;  %10002 = vst [vmem:[#allocation18_spill] sm:$0xff] %v5340_v20  ;;  %v896_v46 = vand.u32 2147483647, %v5328_v35 }
  0x9a   :  { %10004 = vst [vmem:[#allocation20_spill] sm:$0xff] %v5344_v48  ;;  %v897_v31 = vand.u32 2147483647, %v5330_v27 }
  0x9b   :  { %v387_v60 = vmul.f32 %v4105_v51, %v386_v53  ;;  %v5347_v51 = vld [vmem:[#allocation2 + $0x50] sm:$0xff]  ;;  %10008 = vst [vmem:[#allocation24_spill] sm:$0xff] %v5362_v0 }
  0x9c   :  { %10005 = vst [vmem:[#allocation21_spill] sm:$0xff] %v5347_v51  ;;  %v10050_v58 = vand.u32 2147483647, %v5347_v51 }
  0x9d   :  { %10009 = vst [vmem:[#allocation25_spill] sm:$0xff] %v5364_v18 }
  0x9f   :  { %v4107_v22 = vpop.eup %4106 }
  0xa0   :  { %v384_v34 = vmul.f32 0.6931472, %v4107_v22 }
  0xa2   :  { %v390_v42 = vsel %vm389_vm11, %v387_v60, %v384_v34  ;;  %v1026_v60 = vsub.f32 0.0, %v898_v8  ;;  %v5551_v8 = vld [vmem:[#allocation2 + $0x190] sm:$0xff] }
  0xa3   :  { %v391_v47 = vadd.f32 %v390_v42, %v377_v45  ;;  %v5439_v42 = vld [vmem:[#allocation2 + $0x120] sm:$0xff]  ;;  %v10049_v45 = vand.u32 2147483647, %v5344_v48  ;;  %v10054_v48 = vand.u32 2147483647, %v5362_v0  ;;  %10056 = vst [vmem:[#allocation61_spill] sm:$0xff] %v5551_v8 }
  0xa4   :  { %10031 = vst [vmem:[#allocation47_spill] sm:$0xff] %v5439_v42  ;;  %v5617_v0 = vld [vmem:[#allocation2 + $0x1b8] sm:$0xff] }
  0xa5   :  { %v392_v24 = vadd.f32 %v4029_v15, %v391_v47  ;;  %v1032_v29 = vsub.f32 0.0, %v10049_v45  ;;  %v5545_v45 = vsub.f32 0.0, %v10054_v48  ;;  %10066 = vst [vmem:[#allocation66_spill] sm:$0xff] %v5617_v0 }
  0xa7   :  { %v394_v6 = vsub.f32 %v391_v47, %v392_v24  ;;  %v5483_v47 = vld [vmem:[#allocation2 + $0x168] sm:$0xff] }
  0xa8   :  { %10040 = vst [vmem:[#allocation56_spill] sm:$0xff] %v5483_v47 }
  0xa9   :  { %v395_v36 = vmul.f32 %v394_v6, %v393_v44  ;;  %v5370_v6 = vld [vmem:[#allocation2 + $0x78] sm:$0xff] }
  0xaa   :  { %10010 = vst [vmem:[#allocation26_spill] sm:$0xff] %v5370_v6 }
  0xab   :  { %v396_v13 = vsel %vm362_vm8, %v395_v36, 0.0  ;;  %v5372_v36 = vld [vmem:[#allocation2 + $0x80] sm:$0xff] }
  0xac   :  { %397 = vadd.xlane.f32.xlu0 %v396_v13  ;;  %10011 = vst [vmem:[#allocation27_spill] sm:$0xff] %v5372_v36  ;;  %v5465_v13 = vld [vmem:[#allocation2 + $0x158] sm:$0xff]  ;;  %v911_v12 = vand.u32 2147483647, %v5372_v36  ;;  %v5516_v36 = vld [vmem:[#allocation2 + $0x180] sm:$0xff] }
  0xad   :  { %10038 = vst [vmem:[#allocation54_spill] sm:$0xff] %v5465_v13 }
  0xae   :  { %10046 = vst [vmem:[#allocation59_spill] sm:$0xff] %v5516_v36 }
 0x108   :  { %v616_v57 = vpop.xlane.xlu1 %615 }
 0x109   :  { %v617_v40 = vrot.slane %v616_v57, 4 }
 0x10b   :  { %v365_v37 = vpop.xlane.xlu0 %364  ;;  %v618_v4 = vadd.f32 %v617_v40, %v616_v57  ;;  %v5476_v57 = vld [vmem:[#allocation2 + $0x160] sm:$0xff]  ;;  %v1024_v40 = vsub.f32 0.0, %v896_v46 }
 0x10c   :  { %v366_v61 = vrot.slane %v365_v37, 4  ;;  %10039 = vst [vmem:[#allocation55_spill] sm:$0xff] %v5476_v57 }
 0x10d   :  { %v619_v5 = vrot.slane %v618_v4, 2 }
 0x10e   :  { %v367_v38 = vadd.f32 %v366_v61, %v365_v37 }
 0x10f   :  { %v620_v10 = vadd.f32 %v619_v5, %v618_v4  ;;  %v5386_v4 = vld [vmem:[#allocation2 + $0x98] sm:$0xff]  ;;  %v5429_v5 = vld [vmem:[#allocation2 + $0x108] sm:$0xff] }
 0x110   :  { %v368_v62 = vrot.slane %v367_v38, 2  ;;  %10014 = vst [vmem:[#allocation30_spill] sm:$0xff] %v5386_v4  ;;  %v914_v53 = vand.u32 2147483647, %v5386_v4  ;;  %v5505_v4 = vld [vmem:[#allocation2 + $0x178] sm:$0xff] }
 0x111   :  { %v621_v9 = vrot.slane %v620_v10, 1  ;;  %10028 = vst [vmem:[#allocation44_spill] sm:$0xff] %v5429_v5 }
 0x112   :  { %v369_v49 = vadd.f32 %v368_v62, %v367_v38  ;;  %v5378_v62 = vld [vmem:[#allocation2 + $0x88] sm:$0xff]  ;;  %10043 = vst [vmem:[#allocation58_spill] sm:$0xff] %v5505_v4 }
 0x113   :  { %v622_v16 = vadd.f32 %v621_v9, %v620_v10  ;;  %10012 = vst [vmem:[#allocation28_spill] sm:$0xff] %v5378_v62  ;;  %v5398_v9 = vld [vmem:[#allocation2 + $0xb8] sm:$0xff]  ;;  %v5424_v10 = vld [vmem:[#allocation2 + $0x100] sm:$0xff]  ;;  %v912_v22 = vand.u32 2147483647, %v5378_v62 }
 0x114   :  { %v370_v3 = vrot.slane %v369_v49, 1  ;;  %10018 = vst [vmem:[#allocation34_spill] sm:$0xff] %v5398_v9  ;;  %v918_v24 = vand.u32 2147483647, %v5398_v9  ;;  %v10042_v9 = vand.u32 2147483647, %v5334_v50 }
 0x115   :  { %10027 = vst [vmem:[#allocation43_spill] sm:$0xff] %v5424_v10 }
 0x116   :  { %v371_v52 = vadd.f32 %v370_v3, %v369_v49  ;;  %v5380_v49 = vld [vmem:[#allocation2 + $0x90] sm:$0xff]  ;;  %v5449_v3 = vld [vmem:[#allocation2 + $0x138] sm:$0xff] }
 0x117   :  { %10013 = vst [vmem:[#allocation29_spill] sm:$0xff] %v5380_v49  ;;  %v913_v37 = vand.u32 2147483647, %v5380_v49  ;;  %v10057_v49 = vand.u32 2147483647, %v5370_v6 }
 0x118   :  { %4030 = vpush %v371_v52  ;;  %v5433_v52 = vld [vmem:[#allocation2 + $0x118] sm:$0xff] }
 0x119   :  { %10030 = vst [vmem:[#allocation46_spill] sm:$0xff] %v5433_v52  ;;  %v5562_v48 = vsub.f32 0.0, %v913_v37  ;;  %v5576_v37 = vsub.f32 0.0, %v918_v24 }
 0x11a   :  { %10034 = vst [vmem:[#allocation50_spill] sm:$0xff] %v5449_v3 }
 0x11f   :  { %v398_v7 = vpop.xlane.xlu0 %397 }
 0x120   :  { %v399_v15 = vrot.slane %v398_v7, 4 }
 0x122   :  { %v400_v26 = vadd.f32 %v399_v15, %v398_v7  ;;  %v5388_v7 = vld [vmem:[#allocation2 + $0xa0] sm:$0xff]  ;;  %v5457_v15 = vld [vmem:[#allocation2 + $0x148] sm:$0xff] }
 0x123   :  { %10015 = vst [vmem:[#allocation31_spill] sm:$0xff] %v5388_v7  ;;  %v915_v61 = vand.u32 2147483647, %v5388_v7  ;;  %v5498_v7 = vld [vmem:[#allocation2 + $0x170] sm:$0xff] }
 0x124   :  { %v401_v30 = vrot.slane %v400_v26, 2  ;;  %10036 = vst [vmem:[#allocation52_spill] sm:$0xff] %v5457_v15 }
 0x125   :  { %10041 = vst [vmem:[#allocation57_spill] sm:$0xff] %v5498_v7 }
 0x126   :  { %v402_v11 = vadd.f32 %v401_v30, %v400_v26  ;;  %v5394_v30 = vld [vmem:[#allocation2 + $0xa8] sm:$0xff] }
 0x127   :  { %10016 = vst [vmem:[#allocation32_spill] sm:$0xff] %v5394_v30  ;;  %v5441_v26 = vld [vmem:[#allocation2 + $0x128] sm:$0xff]  ;;  %v916_v44 = vand.u32 2147483647, %v5394_v30  ;;  %v10044_v30 = vand.u32 2147483647, %v5336_v28 }
 0x128   :  { %v403_v17 = vrot.slane %v402_v11, 1  ;;  %10032 = vst [vmem:[#allocation48_spill] sm:$0xff] %v5441_v26 }
 0x129   :  { %v5569_v35 = vsub.f32 0.0, %v916_v44  ;;  %v5583_v44 = vld [vmem:[#allocation2 + $0x1a0] sm:$0xff] }
 0x12a   :  { %v404_v14 = vadd.f32 %v403_v17, %v402_v11  ;;  %v5396_v11 = vld [vmem:[#allocation2 + $0xb0] sm:$0xff]  ;;  %v5400_v17 = vld [vmem:[#allocation2 + $0xc0] sm:$0xff]  ;;  %10059 = vst [vmem:[#allocation63_spill] sm:$0xff] %v5583_v44 }
 0x12b   :  { %10017 = vst [vmem:[#allocation33_spill] sm:$0xff] %v5396_v11  ;;  %v917_v38 = vand.u32 2147483647, %v5396_v11  ;;  %v919_v34 = vand.u32 2147483647, %v5400_v17 }
 0x12c   :  { %4032 = vpush %v404_v14  ;;  %v5418_v14 = vld [vmem:[#allocation2 + $0xe8] sm:$0xff]  ;;  %v10045_v11 = vand.u32 2147483647, %v5338_v32  ;;  %v10048_v32 = vand.u32 2147483647, %v5342_v59 }
 0x12d   :  { %4034 = vpush %v622_v16  ;;  %v1023_v16 = vsub.f32 0.0, %v895_v56  ;;  %v1025_v56 = vsub.f32 0.0, %v897_v31  ;;  %v1028_v31 = vsub.f32 0.0, %v10044_v30  ;;  %v10052_v30 = vand.u32 2147483647, %v5349_v2 }
 0x12e   :  { %10019 = vst [vmem:[#allocation35_spill] sm:$0xff] %v5400_v17  ;;  %v1027_v17 = vsub.f32 0.0, %v10042_v9  ;;  %v1029_v62 = vsub.f32 0.0, %v10045_v11  ;;  %v1031_v11 = vsub.f32 0.0, %v10048_v32  ;;  %v10053_v32 = vand.u32 2147483647, %v5353_v1 }
 0x12f   :  { %10024 = vst [vmem:[#allocation40_spill] sm:$0xff] %v5418_v14  ;;  %v1034_v59 = vsub.f32 0.0, %v10052_v30  ;;  %v1151_v27 = vmul.f32 1.442695, %v1023_v16  ;;  %v5555_v2 = vsub.f32 0.0, %v10057_v49  ;;  %v5557_v30 = vsub.f32 0.0, %v911_v12 }
 0x130   :  { %v1035_v28 = vsub.f32 0.0, %v10053_v32  ;;  %v5559_v32 = vsub.f32 0.0, %v912_v22  ;;  %v1153_v9 = vmul.f32 1.442695, %v1024_v40  ;;  %v5564_v1 = vsub.f32 0.0, %v914_v53  ;;  %v5574_v40 = vld [vmem:[#allocation2 + $0x198] sm:$0xff] }
 0x131   :  { %v1157_v49 = vmul.f32 1.442695, %v1026_v60  ;;  %v5572_v6 = vsub.f32 0.0, %v917_v38  ;;  %4108 = vpow2.f32 %v1151_v27  ;;  %v1159_v22 = vmul.f32 1.442695, %v1027_v17  ;;  %10058 = vst [vmem:[#allocation62_spill] sm:$0xff] %v5574_v40 }
 0x132   :  { %v5578_v53 = vsub.f32 0.0, %v919_v34  ;;  %4110 = vpow2.f32 %v1153_v9  ;;  %v1163_v60 = vmul.f32 1.442695, %v1029_v62  ;;  %v5590_v34 = vld [vmem:[#allocation2 + $0x1a8] sm:$0xff]  ;;  %v1167_v62 = vmul.f32 1.442695, %v1031_v11 }
 0x133   :  { %10061 = vst [vmem:[#allocation64_spill] sm:$0xff] %v5590_v34  ;;  %v1169_v38 = vmul.f32 1.442695, %v1032_v29  ;;  %v1173_v29 = vmul.f32 1.442695, %v1034_v59 }
 0x134   :  { %v1177_v59 = vmul.f32 1.442695, %v5545_v45  ;;  %v1181_v45 = vmul.f32 1.442695, %v5555_v2  ;;  %v1185_v2 = vmul.f32 1.442695, %v5559_v32 }
 0x135   :  { %v1189_v32 = vmul.f32 1.442695, %v5564_v1  ;;  %v1193_v1 = vmul.f32 1.442695, %v5569_v35  ;;  %v1197_v35 = vmul.f32 1.442695, %v5576_v37 }
 0x149   :  { %s4031_s6 = spop %4030 }
 0x14a   :  { %v628_v39 = vstv %s4031_s6 }
 0x14b   :  { %v629_v41 = vsel %vm627_vm12, %v628_v39, 0.0  ;;  %v5422_v39 = vld [vmem:[#allocation2 + $0xf8] sm:$0xff] }
 0x14c   :  { %10026 = vst [vmem:[#allocation42_spill] sm:$0xff] %v5422_v39 }
 0x15d   :  { %s4033_s17 = spop %4032 }
 0x15e   :  { %s4035_s0 = spop %4034  ;;  %v635_v25 = vstv %s4033_s17 }
 0x15f   :  { %s624_s18 = smul.f32 0.125, %s4035_s0  ;;  %v636_v63 = vsel %vm634_vm14, %v635_v25, 0.0  ;;  %v5408_v25 = vld [vmem:[#allocation2 + $0xd0] sm:$0xff] }
 0x160   :  { %10021 = vst [vmem:[#allocation37_spill] sm:$0xff] %v5408_v25  ;;  %v10060_v27 = vand.u32 2147483647, %v5408_v25 }
 0x161   :  { %v631_v23 = vstv %s624_s18 }
 0x162   :  { %v632_v43 = vsel %vm630_vm13, %v631_v23, 0.0  ;;  %v5406_v23 = vld [vmem:[#allocation2 + $0xc8] sm:$0xff]  ;;  %v5588_v17 = vsub.f32 0.0, %v10060_v27  ;;  %v5599_v27 = vpop.eup %4108 }
 0x163   :  { %v633_v21 = vadd.f32 %v632_v43, %v629_v41  ;;  %10020 = vst [vmem:[#allocation36_spill] sm:$0xff] %v5406_v23  ;;  %v5410_v41 = vld [vmem:[#allocation2 + $0xd8] sm:$0xff]  ;;  %v5412_v43 = vld [vmem:[#allocation2 + $0xe0] sm:$0xff]  ;;  %v920_v46 = vand.u32 2147483647, %v5406_v23 }
 0x164   :  { %10022 = vst [vmem:[#allocation38_spill] sm:$0xff] %v5410_v41  ;;  %v10047_v23 = vand.u32 2147483647, %v5340_v20  ;;  %v1033_v20 = vsub.f32 0.0, %v10050_v58  ;;  %v10055_v58 = vand.u32 2147483647, %v5364_v18 }
 0x165   :  { %v637_v55 = vadd.f32 %v636_v63, %v633_v21  ;;  %10023 = vst [vmem:[#allocation39_spill] sm:$0xff] %v5412_v43  ;;  %v5431_v63 = vld [vmem:[#allocation2 + $0x110] sm:$0xff]  ;;  %v5455_v21 = vld [vmem:[#allocation2 + $0x140] sm:$0xff]  ;;  %v5567_v18 = vsub.f32 0.0, %v915_v61  ;;  %v5581_v16 = vsub.f32 0.0, %v920_v46 }
 0x166   :  { %10029 = vst [vmem:[#allocation45_spill] sm:$0xff] %v5431_v63  ;;  %v1030_v50 = vsub.f32 0.0, %v10047_v23  ;;  %v5534_v23 = vld [vmem:[#allocation2 + $0x188] sm:$0xff]  ;;  %v5549_v51 = vsub.f32 0.0, %v10055_v58  ;;  %v1155_v58 = vmul.f32 1.442695, %v1025_v56 }
 0x167   :  { %638 = vst [vmem:[#allocation5] sm:$0x1] %v637_v55  ;;  %v5463_v55 = vld [vmem:[#allocation2 + $0x150] sm:$0xff]  ;;  %v1161_v56 = vmul.f32 1.442695, %v1028_v31 }
 0x168   :  { %10035 = vst [vmem:[#allocation51_spill] sm:$0xff] %v5455_v21  ;;  %4112 = vpow2.f32 %v1155_v58  ;;  %v1165_v24 = vmul.f32 1.442695, %v1030_v50  ;;  %v10062_v9 = vand.u32 2147483647, %v5410_v41  ;;  %v5636_v50 = vadd.f32 1.0, %v5599_v27 }
 0x169   :  { %10037 = vst [vmem:[#allocation53_spill] sm:$0xff] %v5463_v55  ;;  %4114 = vpow2.f32 %v1157_v49  ;;  %v5601_v49 = vld [vmem:[#allocation2 + $0x1b0] sm:$0xff]  ;;  %v10064_v31 = vand.u32 2147483647, %v5412_v43  ;;  %v10065_v58 = vand.u32 2147483647, %v5418_v14 }
 0x16a   :  { %10051 = vst [vmem:[#allocation60_spill] sm:$0xff] %v5534_v23  ;;  %v5595_v46 = vsub.f32 0.0, %v10062_v9  ;;  %4116 = vpow2.f32 %v1159_v22  ;;  %v1171_v9 = vmul.f32 1.442695, %v1033_v20  ;;  %v5608_v22 = vpop.eup %4110  ;;  %v1410_v20 = vmul.f32 -0.5, %v5599_v27  ;;  %v5631_v43 = vld [vmem:[#allocation2 + $0x1c0] sm:$0xff] }
 0x16b   :  { %4118 = vpow2.f32 %v1161_v56  ;;  %10063 = vst [vmem:[#allocation65_spill] sm:$0xff] %v5601_v49  ;;  %v5606_v12 = vsub.f32 0.0, %v10064_v31  ;;  %v5613_v56 = vsub.f32 0.0, %v10065_v58  ;;  %v1175_v31 = vmul.f32 1.442695, %v1035_v28 }
 0x16c   :  { %4120 = vpow2.f32 %v1163_v60  ;;  %v10067_v14 = vand.u32 2147483647, %v5420_v19  ;;  %10068 = vst [vmem:[#allocation67_spill] sm:$0xff] %v5631_v43  ;;  %v1179_v28 = vmul.f32 1.442695, %v5549_v51  ;;  %v1411_v25 = vadd.f32 1.0, %v1410_v20 }
 0x16d   :  { %4122 = vpow2.f32 %v1165_v24  ;;  %v1187_v20 = vmul.f32 1.442695, %v5562_v48  ;;  %v1201_v37 = vmul.f32 1.442695, %v5581_v16  ;;  %3988 = dma.vmem_to_hbm [thread:$0]  %s3984_s20, 16, %s3986_s22, [#allocation4]  }
 0x16e   :  { %v5615_v61 = vpop.eup %4112  ;;  %4124 = vpow2.f32 %v1167_v62  ;;  %v5626_v58 = vsub.f32 0.0, %v10067_v14  ;;  %v5648_v62 = vld [vmem:[#allocation2 + $0x1c8] sm:$0xff]  ;;  %v5654_v14 = vld [vmem:[#allocation2 + $0x1d0] sm:$0xff]  ;;  %v5681_v48 = vmul.f32 %v5599_v27, %v1411_v25  ;;  %v1195_v25 = vmul.f32 1.442695, %v5572_v6 }
 0x16f   :  { %v5621_v60 = vpop.eup %4114  ;;  %4126 = vpow2.f32 %v1169_v38  ;;  %v10069_v38 = vand.u32 2147483647, %v5422_v39  ;;  %10071 = vst [vmem:[#allocation69_spill] sm:$0xff] %v5648_v62  ;;  %v1428_v16 = vmul.f32 -0.5, %v5615_v61 }
 0x170   :  { %v5629_v24 = vpop.eup %4116  ;;  %4128 = vpow2.f32 %v1171_v9  ;;  %v1183_v9 = vmul.f32 1.442695, %v5557_v30  ;;  %10072 = vst [vmem:[#allocation70_spill] sm:$0xff] %v5654_v14 }
 0x171   :  { %v5638_v11 = vpop.eup %4118  ;;  %v5643_v19 = vsub.f32 0.0, %v10069_v38  ;;  %4130 = vpow2.f32 %v1173_v29  ;;  %v10073_v29 = vand.u32 2147483647, %v5424_v10  ;;  %v10076_v10 = vand.u32 2147483647, %v5429_v5 }
 0x172   :  { %v5646_v41 = vpop.eup %4120  ;;  %4132 = vpow2.f32 %v1175_v31  ;;  %v1419_v31 = vmul.f32 -0.5, %v5608_v22 }
 0x173   :  { %10070 = vst [vmem:[#allocation68_spill] sm:$0xff] %v5646_v41  ;;  %v5652_v33 = vpop.eup %4122  ;;  %v5659_v39 = vsub.f32 0.0, %v10073_v29  ;;  %4134 = vpow2.f32 %v1177_v59  ;;  %v5672_v29 = vsub.f32 0.0, %v10076_v10 }
 0x174   :  { %v5662_v41 = vpop.eup %4124  ;;  %4136 = vpow2.f32 %v1179_v28  ;;  %v1191_v28 = vmul.f32 1.442695, %v5567_v18  ;;  %v5711_v18 = vld [vmem:[#allocation2 + $0x1e8] sm:$0xff] }
 0x175   :  { %10074 = vst [vmem:[#allocation71_spill] sm:$0xff] %v5662_v41  ;;  %v5667_v51 = vpop.eup %4126  ;;  %4138 = vpow2.f32 %v1181_v45  ;;  %v5677_v41 = vld [vmem:[#allocation2 + $0x1d8] sm:$0xff]  ;;  %v10080_v45 = vand.u32 2147483647, %v5431_v63 }
 0x176   :  { %10075 = vst [vmem:[#allocation72_spill] sm:$0xff] %v5667_v51  ;;  %v5675_v59 = vpop.eup %4128  ;;  %4140 = vpow2.f32 %v1183_v9  ;;  %v5694_v9 = vld [vmem:[#allocation2 + $0x1e0] sm:$0xff] }
 0x177   :  { %10077 = vst [vmem:[#allocation73_spill] sm:$0xff] %v5675_v59  ;;  %v5684_v38 = vpop.eup %4130  ;;  %v5689_v30 = vsub.f32 0.0, %v10080_v45  ;;  %4142 = vpow2.f32 %v1185_v2  ;;  %v10084_v2 = vand.u32 2147483647, %v5433_v52  ;;  %v1420_v59 = vadd.f32 1.0, %v1419_v31  ;;  %v5717_v45 = vld [vmem:[#allocation2 + $0x1f0] sm:$0xff] }
 0x178   :  { %10078 = vst [vmem:[#allocation74_spill] sm:$0xff] %v5677_v41  ;;  %v5692_v5 = vpop.eup %4132  ;;  %4144 = vpow2.f32 %v1187_v20  ;;  %v1199_v20 = vmul.f32 1.442695, %v5578_v53  ;;  %v1203_v31 = vmul.f32 1.442695, %v5588_v17 }
 0x179   :  { %10079 = vst [vmem:[#allocation75_spill] sm:$0xff] %v5684_v38  ;;  %v5699_v38 = vadd.f32 1.0, %v5608_v22  ;;  %v5701_v10 = vpop.eup %4134  ;;  %v5706_v63 = vsub.f32 0.0, %v10084_v2  ;;  %4146 = vpow2.f32 %v1189_v32  ;;  %v10089_v32 = vand.u32 2147483647, %v5439_v42  ;;  %v5740_v42 = vld [vmem:[#allocation2 + $0x1f8] sm:$0xff] }
 0x17a   :  { %10081 = vst [vmem:[#allocation76_spill] sm:$0xff] %v5692_v5  ;;  %v5709_v5 = vpop.eup %4136  ;;  %4148 = vpow2.f32 %v1191_v28  ;;  %v10092_v2 = vand.u32 2147483647, %v5441_v26  ;;  %v1207_v17 = vmul.f32 1.442695, %v5606_v12  ;;  %v5757_v28 = vld [vmem:[#allocation2 + $0x200] sm:$0xff] }
 0x17b   :  { %10082 = vst [vmem:[#allocation77_spill] sm:$0xff] %v5694_v9  ;;  %v5722_v52 = vsub.f32 0.0, %v10089_v32  ;;  %4150 = vpow2.f32 %v1193_v1  ;;  %v1205_v1 = vmul.f32 1.442695, %v5595_v46  ;;  %v10097_v46 = vand.u32 2147483647, %v5447_v54 }
 0x17c   :  { %10083 = vst [vmem:[#allocation78_spill] sm:$0xff] %v5701_v10  ;;  %v5715_v10 = vpop.eup %4138  ;;  %4152 = vpow2.f32 %v1195_v25  ;;  %v5745_v25 = vmul.f32 %v5608_v22, %v1420_v59  ;;  %v1209_v26 = vmul.f32 1.442695, %v5613_v56  ;;  %v1211_v59 = vmul.f32 1.442695, %v5626_v58 }
 0x17d   :  { %10085 = vst [vmem:[#allocation79_spill] sm:$0xff] %v5709_v5  ;;  %v5725_v5 = vpop.eup %4140  ;;  %4154 = vpow2.f32 %v1197_v35  ;;  %v5764_v35 = vld [vmem:[#allocation2 + $0x208] sm:$0xff]  ;;  %v1213_v56 = vmul.f32 1.442695, %v5643_v19  ;;  %v10103_v58 = vand.u32 2147483647, %v5449_v3 }
 0x17e   :  { %10086 = vst [vmem:[#allocation80_spill] sm:$0xff] %v5711_v18  ;;  %v5730_v6 = vpop.eup %4142  ;;  %4156 = vpow2.f32 %v1199_v20  ;;  %v1425_v20 = vadd.f32 1.0, %v5615_v61  ;;  %v10106_v19 = vand.u32 2147483647, %v5455_v21  ;;  %v1413_v21 = vand.u32 2147483647, %v5599_v27 }
 0x17f   :  { %10087 = vst [vmem:[#allocation81_spill] sm:$0xff] %v5715_v10  ;;  %v5734_v10 = vsub.f32 0.0, %v10092_v2  ;;  %v5738_v32 = vpop.eup %4144  ;;  %v5752_v2 = vsub.f32 0.0, %v10097_v46  ;;  %4158 = vpow2.f32 %v1201_v37  ;;  %v1429_v37 = vadd.f32 1.0, %v1428_v16 }
 0x180   :  { %10088 = vst [vmem:[#allocation82_spill] sm:$0xff] %v5717_v45  ;;  %v5747_v53 = vpop.eup %4146  ;;  %4160 = vpow2.f32 %v1203_v31  ;;  %v5774_v12 = vsub.f32 0.0, %v10103_v58  ;;  %v5783_v16 = vsub.f32 0.0, %v10106_v19  ;;  %v1437_v19 = vmul.f32 -0.5, %v5621_v60 }
 0x181   :  { %10090 = vst [vmem:[#allocation83_spill] sm:$0xff] %v5725_v5  ;;  %4162 = vpow2.f32 %v1205_v1  ;;  %v5796_v1 = vld [vmem:[#allocation2 + $0x218] sm:$0xff]  ;;  %vm5848_vm15 = vcmp.lt.f32.partialorder %v1413_v21, 0.0004427343 }
 0x182   :  { %10091 = vst [vmem:[#allocation84_spill] sm:$0xff] %v5730_v6  ;;  %4164 = vpow2.f32 %v1207_v17  ;;  %v5778_v6 = vld [vmem:[#allocation2 + $0x210] sm:$0xff]  ;;  %v10108_v17 = vand.u32 2147483647, %v5457_v15 }
 0x183   :  { %10093 = vst [vmem:[#allocation85_spill] sm:$0xff] %v5738_v32  ;;  %v5755_v32 = vpop.eup %4148  ;;  %4166 = vpow2.f32 %v1209_v26  ;;  %v1217_v26 = vmul.f32 1.442695, %v5672_v29  ;;  %v5814_v29 = vld [vmem:[#allocation2 + $0x220] sm:$0xff] }
 0x184   :  { %10094 = vst [vmem:[#allocation86_spill] sm:$0xff] %v5740_v42  ;;  %v5792_v3 = vsub.f32 0.0, %v10108_v17  ;;  %4168 = vpow2.f32 %v1211_v59  ;;  %v10113_v17 = vand.u32 2147483647, %v5463_v55  ;;  %v1219_v59 = vmul.f32 1.442695, %v5689_v30 }
 0x185   :  { %10095 = vst [vmem:[#allocation87_spill] sm:$0xff] %v5745_v25  ;;  %4170 = vpow2.f32 %v1213_v56  ;;  %v10117_v55 = vand.u32 2147483647, %v5465_v13  ;;  %v5972_v25 = vld [vmem:[#allocation2 + $0x270] sm:$0xff] }
 0x186   :  { %10096 = vst [vmem:[#allocation88_spill] sm:$0xff] %v5747_v53  ;;  %v5762_v53 = vpop.eup %4150  ;;  %v5808_v15 = vsub.f32 0.0, %v10113_v17  ;;  %4172 = vlog2.f32 %v5636_v50  ;;  %v1221_v50 = vmul.f32 1.442695, %v5706_v63  ;;  %v5836_v17 = vld [vmem:[#allocation2 + $0x230] sm:$0xff] }
 0x187   :  { %10098 = vst [vmem:[#allocation89_spill] sm:$0xff] %v5755_v32  ;;  %v5768_v54 = vpop.eup %4152  ;;  %v1215_v32 = vmul.f32 1.442695, %v5659_v39  ;;  %v5800_v39 = vmul.f32 %v5615_v61, %v1429_v37  ;;  %v5824_v30 = vsub.f32 0.0, %v10117_v55  ;;  %v5830_v37 = vld [vmem:[#allocation2 + $0x228] sm:$0xff]  ;;  %v5852_v55 = vld [vmem:[#allocation2 + $0x238] sm:$0xff] }
 0x188   :  { %10099 = vst [vmem:[#allocation90_spill] sm:$0xff] %v5757_v28  ;;  %v10122_v63 = vand.u32 2147483647, %v5476_v57 }
 0x189   :  { %10100 = vst [vmem:[#allocation91_spill] sm:$0xff] %v5762_v53  ;;  %v5776_v53 = vpop.eup %4154  ;;  %4174 = vpow2.f32 %v1215_v32  ;;  %v1422_v32 = vand.u32 2147483647, %v5608_v22  ;;  %v5862_v22 = vld [vmem:[#allocation2 + $0x240] sm:$0xff] }
 0x18a   :  { %10101 = vst [vmem:[#allocation92_spill] sm:$0xff] %v5764_v35  ;;  %v5786_v46 = vpop.eup %4156  ;;  %4176 = vlog2.f32 %v5699_v38  ;;  %v5841_v13 = vsub.f32 0.0, %v10122_v63  ;;  %v1223_v38 = vmul.f32 1.442695, %v5722_v52  ;;  %v1446_v52 = vmul.f32 -0.5, %v5629_v24 }
 0x18b   :  { %10102 = vst [vmem:[#allocation93_spill] sm:$0xff] %v5768_v54  ;;  %4178 = vpow2.f32 %v1217_v26  ;;  %vm5869_vm0 = vcmp.lt.f32.partialorder %v1422_v32, 0.0004427343  ;;  %v1227_v32 = vmul.f32 1.442695, %v5752_v2  ;;  %v5889_v54 = vld [vmem:[#allocation2 + $0x250] sm:$0xff] }
 0x18c   :  { %10104 = vst [vmem:[#allocation94_spill] sm:$0xff] %v5776_v53  ;;  %v5794_v53 = vpop.eup %4158  ;;  %4180 = vpow2.f32 %v1219_v59  ;;  %v10127_v59 = vand.u32 2147483647, %v5483_v47  ;;  %v1225_v47 = vmul.f32 1.442695, %v5734_v10 }
 0x18d   :  { %10105 = vst [vmem:[#allocation95_spill] sm:$0xff] %v5778_v6  ;;  %v5803_v31 = vpop.eup %4160  ;;  %4182 = vlog2.f32 %v1425_v20  ;;  %v10130_v20 = vand.u32 2147483647, %v5498_v7  ;;  %v5881_v7 = vld [vmem:[#allocation2 + $0x248] sm:$0xff]  ;;  %v10139_v10 = vand.u32 2147483647, %v5505_v4 }
 0x18e   :  { %10107 = vst [vmem:[#allocation96_spill] sm:$0xff] %v5786_v46  ;;  %v5812_v56 = vpop.eup %4162  ;;  %v5857_v57 = vsub.f32 0.0, %v10127_v59  ;;  %4184 = vpow2.f32 %v1221_v50  ;;  %v1229_v63 = vmul.f32 1.442695, %v5774_v12  ;;  %v10142_v12 = vmov 0  ;;  %v5952_v4 = vld [vmem:[#allocation2 + $0x268] sm:$0xff] }
 0x18f   :  { %10109 = vst [vmem:[#allocation97_spill] sm:$0xff] %v5794_v53  ;;  %v5819_v58 = vpop.eup %4164  ;;  %4186 = vpow2.f32 %v1223_v38  ;;  %v10145_v2 = vand.u32 2147483647, %v5534_v23  ;;  %v10149_v38 = vand.u32 2147483647, %v5551_v8 }
 0x190   :  { %10110 = vst [vmem:[#allocation98_spill] sm:$0xff] %v5796_v1 }
 0x191   :  { %10111 = vst [vmem:[#allocation99_spill] sm:$0xff] %v5800_v39  ;;  %v5935_v23 = vsub.f32 0.0, %v10149_v38  ;;  %v1440_v38 = vand.u32 2147483647, %v5621_v60  ;;  %v10168_v39 = vld [vmem:[#allocation68_spill] sm:$0xff] }
 0x192   :  { %10112 = vst [vmem:[#allocation100_spill] sm:$0xff] %v5803_v31  ;;  %v1434_v31 = vadd.f32 1.0, %v5621_v60 }
 0x193   :  { %10114 = vst [vmem:[#allocation101_spill] sm:$0xff] %v5812_v56  ;;  %v5828_v56 = vpop.eup %4166  ;;  %vm5983_vm6 = vcmp.lt.f32.partialorder %v1440_v38, 0.0004427343 }
 0x194   :  { %10115 = vst [vmem:[#allocation102_spill] sm:$0xff] %v5814_v29  ;;  %v5834_v53 = vpop.eup %4168  ;;  %4188 = vlog2.f32 %v1434_v31  ;;  %v5916_v31 = vsub.f32 0.0, %v10145_v2 }
 0x195   :  { %10116 = vst [vmem:[#allocation103_spill] sm:$0xff] %v5819_v58  ;;  %v1438_v58 = vadd.f32 1.0, %v1437_v19  ;;  %4190 = vpow2.f32 %v1225_v47  ;;  %v5924_v47 = vld [vmem:[#allocation2 + $0x258] sm:$0xff] }
 0x196   :  { %10118 = vst [vmem:[#allocation104_spill] sm:$0xff] %v5828_v56  ;;  %v5844_v56 = vpop.eup %4170  ;;  %4192 = vpow2.f32 %v1227_v32  ;;  %v1455_v32 = vmul.f32 -0.5, %v5638_v11 }
 0x197   :  { %10119 = vst [vmem:[#allocation105_spill] sm:$0xff] %v5830_v37  ;;  %v4173_v27 = vpop.eup %4172  ;;  %v5874_v59 = vmul.f32 %v5621_v60, %v1438_v58  ;;  %v1443_v58 = vadd.f32 1.0, %v5629_v24  ;;  %4194 = vpow2.f32 %v1229_v63  ;;  %v5942_v63 = vld [vmem:[#allocation2 + $0x260] sm:$0xff] }
 0x198   :  { %10120 = vst [vmem:[#allocation106_spill] sm:$0xff] %v5834_v53  ;;  %v5860_v26 = vpop.eup %4174  ;;  %v10131_v53 = vmov 0 }
 0x199   :  { %10121 = vst [vmem:[#allocation107_spill] sm:$0xff] %v5836_v17  ;;  %v10132_v53 = vsel %vm5869_vm0, 4294967295, %v10131_v53  ;;  %v4177_v50 = vpop.eup %4176 }
 0x19a   :  { %10123 = vst [vmem:[#allocation108_spill] sm:$0xff] %v5844_v56  ;;  %v5867_v56 = vsub.f32 0.0, %v10130_v20  ;;  %v5879_v21 = vpop.eup %4178  ;;  %v5884_v20 = vmul.f32 0.6931472, %v4173_v27  ;;  %v10140_v27 = vand.u32 2147483647, %v5516_v36 }
 0x19b   :  { %10126 = vst [vmem:[#allocation109_spill] sm:$0xff] %v5852_v55  ;;  %v5887_v46 = vpop.eup %4180 }
 0x19c   :  { %10128 = vst [vmem:[#allocation110_spill] sm:$0xff] %v5860_v26  ;;  %v1431_v26 = vand.u32 2147483647, %v5615_v61  ;;  %v5894_v61 = vsub.f32 0.0, %v10139_v10  ;;  %v4183_v5 = vpop.eup %4182  ;;  %v5901_v42 = vsub.f32 0.0, %v10140_v27 }
 0x19d   :  { %10129 = vst [vmem:[#allocation111_spill] sm:$0xff] %v5862_v22  ;;  %v5905_v51 = vpop.eup %4184  ;;  %v1231_v10 = vmul.f32 1.442695, %v5783_v16  ;;  %v10152_v16 = vand.u32 2147483647, %v5574_v40 }
 0x19e   :  { %10133 = vst [vmem:[#allocation112_spill] sm:$0xff] %v10132_v53  ;;  %vm5909_vm1 = vcmp.lt.f32.partialorder %v1431_v26, 0.0004427343  ;;  %v5922_v27 = vpop.eup %4186  ;;  %v5927_v26 = vmul.f32 0.6931472, %v4183_v5  ;;  %v6033_v53 = vld [vmem:[#allocation2 + $0x290] sm:$0xff] }
 0x19f   :  { %10134 = vst [vmem:[#allocation113_spill] sm:$0xff] %v5874_v59  ;;  %v10143_v12 = vsel %vm5909_vm1, 4294967295, %v10142_v12  ;;  %v4189_v2 = vpop.eup %4188  ;;  %4196 = vpow2.f32 %v1231_v10  ;;  %v1237_v10 = vmul.f32 1.442695, %v5824_v30  ;;  %v1449_v40 = vand.u32 2147483647, %v5629_v24 }
 0x1a0   :  { %10135 = vst [vmem:[#allocation114_spill] sm:$0xff] %v5879_v21  ;;  %v1447_v21 = vadd.f32 1.0, %v1446_v52  ;;  %4198 = vlog2.f32 %v1443_v58  ;;  %v5950_v36 = vpop.eup %4190  ;;  %v5963_v8 = vmul.f32 0.6931472, %v4189_v2  ;;  %v1456_v2 = vadd.f32 1.0, %v1455_v32  ;;  %v5995_v58 = vld [vmem:[#allocation2 + $0x280] sm:$0xff] }
 0x1a1   :  { %10136 = vst [vmem:[#allocation115_spill] sm:$0xff] %v5881_v7  ;;  %v5965_v60 = vpop.eup %4192  ;;  %vm6001_vm3 = vcmp.lt.f32.partialorder %v1449_v40, 0.0004427343  ;;  %v1461_v30 = vadd.f32 1.0, %v10168_v39  ;;  %v6016_v40 = vld [vmem:[#allocation2 + $0x288] sm:$0xff] }
 0x1a2   :  { %10137 = vst [vmem:[#allocation116_spill] sm:$0xff] %v5887_v46  ;;  %v5903_v46 = vmul.f32 0.6931472, %v4177_v50  ;;  %v5930_v52 = vmul.f32 %v5629_v24, %v1447_v21  ;;  %v1233_v50 = vmul.f32 1.442695, %v5792_v3  ;;  %v1452_v3 = vadd.f32 1.0, %v5638_v11 }
 0x1a3   :  { %10138 = vst [vmem:[#allocation117_spill] sm:$0xff] %v5889_v54  ;;  %v1235_v21 = vmul.f32 1.442695, %v5808_v15  ;;  %v10158_v24 = vmov 0 }
 0x1a4   :  { %10141 = vst [vmem:[#allocation118_spill] sm:$0xff] %v5903_v46  ;;  %v5956_v46 = vsub.f32 0.0, %v10152_v16  ;;  %4200 = vpow2.f32 %v1233_v50  ;;  %v5970_v16 = vpop.eup %4194  ;;  %v1239_v50 = vmul.f32 1.442695, %v5841_v13  ;;  %v10159_v24 = vsel %vm5983_vm6, 4294967295, %v10158_v24 }
 0x1a5   :  { %10144 = vst [vmem:[#allocation119_spill] sm:$0xff] %v10143_v12  ;;  %v10156_v12 = vand.u32 2147483647, %v5583_v44  ;;  %4202 = vpow2.f32 %v1235_v21  ;;  %v5987_v5 = vpop.eup %4196  ;;  %v10162_v21 = vand.u32 2147483647, %v5590_v34  ;;  %v6021_v34 = vmul.f32 %v5638_v11, %v1456_v2 }
 0x1a6   :  { %10146 = vst [vmem:[#allocation120_spill] sm:$0xff] %v5924_v47  ;;  %4204 = vlog2.f32 %v1452_v3  ;;  %v4199_v44 = vpop.eup %4198  ;;  %v10164_v13 = vand.u32 2147483647, %v5601_v49  ;;  %v10165_v3 = vmov 0 }
 0x1a7   :  { %10147 = vst [vmem:[#allocation121_spill] sm:$0xff] %v5927_v26  ;;  %v5977_v15 = vsub.f32 0.0, %v10156_v12  ;;  %v5979_v26 = vld [vmem:[#allocation2 + $0x278] sm:$0xff]  ;;  %v5993_v32 = vsub.f32 0.0, %v10162_v21  ;;  %4206 = vpow2.f32 %v1237_v10  ;;  %v10166_v3 = vsel %vm6001_vm3, 4294967295, %v10165_v3  ;;  %v6071_v10 = vld [vmem:[#allocation2 + $0x2a0] sm:$0xff] }
 0x1a8   :  { %10148 = vst [vmem:[#allocation122_spill] sm:$0xff] %v5930_v52  ;;  %v5999_v38 = vsub.f32 0.0, %v10164_v13  ;;  %v1464_v12 = vmul.f32 -0.5, %v10168_v39  ;;  %v1241_v21 = vmul.f32 1.442695, %v5857_v57  ;;  %4208 = vpow2.f32 %v1239_v50 }
 0x1a9   :  { %10150 = vst [vmem:[#allocation123_spill] sm:$0xff] %v5942_v63  ;;  %v1458_v13 = vand.u32 2147483647, %v5638_v11  ;;  %v1245_v11 = vmul.f32 1.442695, %v5894_v61  ;;  %4210 = vlog2.f32 %v1461_v30  ;;  %v1470_v61 = vadd.f32 1.0, %v5652_v33 }
 0x1aa   :  { %10151 = vst [vmem:[#allocation124_spill] sm:$0xff] %v5952_v4  ;;  %v6014_v49 = vpop.eup %4200  ;;  %v1465_v2 = vadd.f32 1.0, %v1464_v12  ;;  %4212 = vpow2.f32 %v1241_v21  ;;  %v1467_v21 = vand.u32 2147483647, %v10168_v39  ;;  %v1473_v30 = vmul.f32 -0.5, %v5652_v33 }
 0x1ab   :  { %10153 = vst [vmem:[#allocation125_spill] sm:$0xff] %v5963_v8  ;;  %v6023_v57 = vpop.eup %4202  ;;  %v10172_v8 = vand.u32 2147483647, %v5617_v0  ;;  %vm6044_vm2 = vcmp.lt.f32.partialorder %v1458_v13, 0.0004427343  ;;  %v6064_v0 = vld [vmem:[#allocation2 + $0x298] sm:$0xff] }
 0x1ac   :  { %10154 = vst [vmem:[#allocation126_spill] sm:$0xff] %v5970_v16  ;;  %vm6092_vm4 = vcmp.lt.f32.partialorder %v1467_v21, 0.0004427343  ;;  %v10206_v21 = vand.u32 2147483647, %v5717_v45 }
 0x1ad   :  { %10155 = vst [vmem:[#allocation127_spill] sm:$0xff] %v5972_v25  ;;  %v6029_v59 = vsub.f32 0.0, %v10172_v8  ;;  %v1247_v8 = vmul.f32 1.442695, %v5901_v42  ;;  %v1253_v42 = vmul.f32 1.442695, %v5956_v46 }
 0x1ae   :  { %10157 = vst [vmem:[#allocation128_spill] sm:$0xff] %v5979_v26  ;;  %v1474_v46 = vadd.f32 1.0, %v1473_v30 }
 0x1af   :  { %10160 = vst [vmem:[#allocation129_spill] sm:$0xff] %v10159_v24  ;;  %v6031_v24 = vmul.f32 0.6931472, %v4199_v44  ;;  %v10177_v44 = vmov 0 }
 0x1b0   :  { %10161 = vst [vmem:[#allocation130_spill] sm:$0xff] %v5987_v5  ;;  %v1243_v5 = vmul.f32 1.442695, %v5867_v56  ;;  %v10175_v56 = vand.u32 2147483647, %v5631_v43  ;;  %v10178_v44 = vsel %vm6044_vm2, 4294967295, %v10177_v44 }
 0x1b1   :  { %10163 = vst [vmem:[#allocation131_spill] sm:$0xff] %v5995_v58 }
 0x1b2   :  { %10167 = vst [vmem:[#allocation132_spill] sm:$0xff] %v10166_v3  ;;  %v6037_v50 = vsub.f32 0.0, %v10175_v56  ;;  %v10180_v56 = vand.u32 2147483647, %v5648_v62  ;;  %4214 = vpow2.f32 %v1243_v5  ;;  %v1249_v5 = vmul.f32 1.442695, %v5916_v31 }
 0x1b3   :  { %10169 = vst [vmem:[#allocation68_spill] sm:$0xff] %v6014_v49  ;;  %v4205_v49 = vpop.eup %4204  ;;  %4216 = vpow2.f32 %v1245_v11  ;;  %v10186_v62 = vand.u32 2147483647, %v5654_v14  ;;  %v10187_v31 = vand.u32 2147483647, %v5677_v41  ;;  %v10195_v41 = vld [vmem:[#allocation71_spill] sm:$0xff] }
 0x1b4   :  { %10170 = vst [vmem:[#allocation133_spill] sm:$0xff] %v6016_v40  ;;  %v6040_v16 = vpop.eup %4206  ;;  %v6051_v43 = vsub.f32 0.0, %v10180_v56  ;;  %v6059_v12 = vmul.f32 0.6931472, %v4205_v49  ;;  %v6068_v56 = vmul.f32 %v10168_v39, %v1465_v2  ;;  %4218 = vpow2.f32 %v1247_v8  ;;  %v6099_v49 = vld [vmem:[#allocation2 + $0x2a8] sm:$0xff] }
 0x1b5   :  { %10171 = vst [vmem:[#allocation134_spill] sm:$0xff] %v6021_v34  ;;  %v6062_v13 = vpop.eup %4208  ;;  %v6082_v39 = vsub.f32 0.0, %v10187_v31  ;;  %v1251_v2 = vmul.f32 1.442695, %v5935_v23  ;;  %4220 = vlog2.f32 %v1470_v61  ;;  %v10189_v8 = vmov 0  ;;  %v6101_v23 = vld [vmem:[#allocation2 + $0x2b0] sm:$0xff] }
 0x1b6   :  { %10173 = vst [vmem:[#allocation135_spill] sm:$0xff] %v6031_v24  ;;  %v6077_v24 = vsub.f32 0.0, %v10186_v62  ;;  %v4211_v52 = vpop.eup %4210  ;;  %v10190_v8 = vsel %vm6092_vm4, 4294967295, %v10189_v8  ;;  %v1476_v11 = vand.u32 2147483647, %v5652_v33  ;;  %4222 = vpow2.f32 %v1249_v5  ;;  %v6120_v62 = vld [vmem:[#allocation2 + $0x2b8] sm:$0xff] }
 0x1b7   :  { %10174 = vst [vmem:[#allocation136_spill] sm:$0xff] %v6033_v53  ;;  %v6085_v3 = vpop.eup %4212  ;;  %v1479_v14 = vadd.f32 1.0, %v10195_v41  ;;  %4224 = vpow2.f32 %v1251_v2  ;;  %v1255_v5 = vmul.f32 1.442695, %v5977_v15  ;;  %v1482_v30 = vmul.f32 -0.5, %v10195_v41 }
 0x1b8   :  { %10176 = vst [vmem:[#allocation137_spill] sm:$0xff] %v6040_v16  ;;  %v6097_v31 = vpop.eup %4214  ;;  %4226 = vpow2.f32 %v1253_v42  ;;  %vm6127_vm5 = vcmp.lt.f32.partialorder %v1476_v11, 0.0004427343  ;;  %v1485_v11 = vand.u32 2147483647, %v10195_v41 }
 0x1b9   :  { %10179 = vst [vmem:[#allocation138_spill] sm:$0xff] %v10178_v44  ;;  %v6111_v44 = vmul.f32 0.6931472, %v4211_v52  ;;  %v10202_v52 = vmov 0  ;;  %4228 = vlog2.f32 %v1479_v14  ;;  %v10252_v16 = vand.u32 2147483647, %v5852_v55 }
 0x1ba   :  { %10181 = vst [vmem:[#allocation139_spill] sm:$0xff] %v6059_v12  ;;  %v10196_v12 = vand.u32 2147483647, %v5694_v9  ;;  %v10203_v52 = vsel %vm6127_vm5, 4294967295, %v10202_v52  ;;  %4230 = vpow2.f32 %v1255_v5  ;;  %v1261_v5 = vmul.f32 1.442695, %v6029_v59 }
 0x1bb   :  { %10182 = vst [vmem:[#allocation140_spill] sm:$0xff] %v6062_v13  ;;  %vm6176_vm7 = vcmp.lt.f32.partialorder %v1485_v11, 0.0004427343  ;;  %v1263_v13 = vmul.f32 1.442695, %v6037_v50  ;;  %v6197_v50 = vld [vmem:[#allocation2 + $0x2d8] sm:$0xff] }
 0x1bc   :  { %10183 = vst [vmem:[#allocation141_spill] sm:$0xff] %v6064_v0  ;;  %v6109_v34 = vsub.f32 0.0, %v10196_v12  ;;  %v10201_v12 = vand.u32 2147483647, %v5711_v18  ;;  %v10222_v18 = vand.u32 2147483647, %v5764_v35 }
 0x1bd   :  { %10184 = vst [vmem:[#allocation142_spill] sm:$0xff] %v6068_v56 }
 0x1be   :  { %10185 = vst [vmem:[#allocation143_spill] sm:$0xff] %v6071_v10  ;;  %v6125_v9 = vsub.f32 0.0, %v10201_v12  ;;  %v1259_v12 = vmul.f32 1.442695, %v5999_v38  ;;  %v6169_v38 = vld [vmem:[#allocation2 + $0x2d0] sm:$0xff] }
 0x1bf   :  { %10188 = vst [vmem:[#allocation144_spill] sm:$0xff] %v6085_v3  ;;  %v1257_v3 = vmul.f32 1.442695, %v5993_v32  ;;  %v6148_v32 = vld [vmem:[#allocation2 + $0x2c0] sm:$0xff] }
 0x1c0   :  { %10191 = vst [vmem:[#allocation145_spill] sm:$0xff] %v10190_v8  ;;  %v10211_v8 = vld [vmem:[#allocation86_spill] sm:$0xff] }
 0x1c1   :  { %10192 = vst [vmem:[#allocation146_spill] sm:$0xff] %v6097_v31  ;;  %v6113_v31 = vpop.eup %4216  ;;  %v10212_v42 = vand.u32 2147483647, %v10211_v8  ;;  %4232 = vpow2.f32 %v1257_v3 }
 0x1c2   :  { %10193 = vst [vmem:[#allocation147_spill] sm:$0xff] %v6099_v49  ;;  %v6118_v61 = vpop.eup %4218  ;;  %4234 = vpow2.f32 %v1259_v12  ;;  %v10227_v12 = vand.u32 2147483647, %v5778_v6 }
 0x1c3   :  { %10194 = vst [vmem:[#allocation148_spill] sm:$0xff] %v6101_v23  ;;  %v4221_v2 = vpop.eup %4220 }
 0x1c4   :  { %10197 = vst [vmem:[#allocation71_spill] sm:$0xff] %v6111_v44  ;;  %v6146_v15 = vpop.eup %4222  ;;  %v6158_v44 = vsub.f32 0.0, %v10212_v42  ;;  %v6160_v56 = vmul.f32 0.6931472, %v4221_v2  ;;  %v10217_v42 = vand.u32 2147483647, %v5757_v28 }
 0x1c5   :  { %10198 = vst [vmem:[#allocation149_spill] sm:$0xff] %v6113_v31  ;;  %v6138_v31 = vsub.f32 0.0, %v10206_v21  ;;  %v10210_v21 = vld [vmem:[#allocation72_spill] sm:$0xff]  ;;  %v10218_v2 = vmov 0  ;;  %v10238_v28 = vand.u32 2147483647, %v5814_v29 }
 0x1c6   :  { %10199 = vst [vmem:[#allocation150_spill] sm:$0xff] %v6118_v61  ;;  %v6134_v61 = vmul.f32 %v5652_v33, %v1474_v46  ;;  %v6150_v33 = vld [vmem:[#allocation2 + $0x2c8] sm:$0xff]  ;;  %v1483_v46 = vadd.f32 1.0, %v1482_v30  ;;  %v1488_v45 = vadd.f32 1.0, %v10210_v21  ;;  %v1491_v30 = vmul.f32 -0.5, %v10210_v21  ;;  %v6267_v29 = vld [vmem:[#allocation2 + $0x300] sm:$0xff] }
 0x1c7   :  { %10200 = vst [vmem:[#allocation151_spill] sm:$0xff] %v6120_v62  ;;  %v6174_v8 = vsub.f32 0.0, %v10217_v42  ;;  %v10219_v2 = vsel %vm6176_vm7, 4294967295, %v10218_v2  ;;  %v1265_v42 = vmul.f32 1.442695, %v6051_v43  ;;  %v6218_v43 = vld [vmem:[#allocation2 + $0x2e8] sm:$0xff] }
 0x1c8   :  { %10204 = vst [vmem:[#allocation152_spill] sm:$0xff] %v10203_v52  ;;  %4236 = vlog2.f32 %v1488_v45  ;;  %v1494_v11 = vand.u32 2147483647, %v10210_v21 }
 0x1c9   :  { %10205 = vst [vmem:[#allocation153_spill] sm:$0xff] %v6134_v61  ;;  %4238 = vpow2.f32 %v1261_v5  ;;  %v1267_v5 = vmul.f32 1.442695, %v6077_v24  ;;  %v10239_v24 = vld [vmem:[#allocation75_spill] sm:$0xff] }
 0x1ca   :  { %10207 = vst [vmem:[#allocation154_spill] sm:$0xff] %v6146_v15  ;;  %v6162_v15 = vpop.eup %4224  ;;  %4240 = vpow2.f32 %v1263_v13  ;;  %vm6225_vm8 = vcmp.lt.f32.partialorder %v1494_v11, 0.0004427343 }
 0x1cb   :  { %10208 = vst [vmem:[#allocation155_spill] sm:$0xff] %v6148_v32  ;;  %v6167_v14 = vpop.eup %4226  ;;  %4242 = vpow2.f32 %v1265_v42  ;;  %v10242_v42 = vand.u32 2147483647, %v5830_v37 }
 0x1cc   :  { %10209 = vst [vmem:[#allocation156_spill] sm:$0xff] %v6150_v33  ;;  %v4229_v3 = vpop.eup %4228 }
 0x1cd   :  { %10213 = vst [vmem:[#allocation72_spill] sm:$0xff] %v6160_v56  ;;  %v6195_v59 = vpop.eup %4230  ;;  %v6207_v56 = vsub.f32 0.0, %v10227_v12  ;;  %v6209_v61 = vmul.f32 0.6931472, %v4229_v3  ;;  %v10232_v12 = vand.u32 2147483647, %v5796_v1 }
 0x1ce   :  { %10214 = vst [vmem:[#allocation157_spill] sm:$0xff] %v6162_v15  ;;  %v6187_v15 = vsub.f32 0.0, %v10222_v18  ;;  %v1492_v18 = vadd.f32 1.0, %v1491_v30  ;;  %v6211_v52 = vpop.eup %4232  ;;  %v10233_v3 = vmov 0  ;;  %v1506_v1 = vadd.f32 1.0, %v10239_v24 }
 0x1cf   :  { %10215 = vst [vmem:[#allocation158_spill] sm:$0xff] %v6167_v14  ;;  %v6183_v14 = vmul.f32 %v10195_v41, %v1483_v46  ;;  %v6199_v41 = vld [vmem:[#allocation2 + $0x2e0] sm:$0xff]  ;;  %v10226_v46 = vld [vmem:[#allocation73_spill] sm:$0xff]  ;;  %v6216_v45 = vpop.eup %4234  ;;  %v6223_v6 = vsub.f32 0.0, %v10232_v12  ;;  %v10234_v3 = vsel %vm6225_vm8, 4294967295, %v10233_v3  ;;  %v6238_v12 = vsub.f32 0.0, %v10238_v28 }
 0x1d0   :  { %10216 = vst [vmem:[#allocation159_spill] sm:$0xff] %v6169_v38  ;;  %v1497_v35 = vadd.f32 1.0, %v10226_v46  ;;  %v1500_v30 = vmul.f32 -0.5, %v10226_v46  ;;  %v4237_v13 = vpop.eup %4236  ;;  %v1503_v11 = vand.u32 2147483647, %v10226_v46 }
 0x1d1   :  { %10220 = vst [vmem:[#allocation160_spill] sm:$0xff] %v10219_v2 }
 0x1d2   :  { %10221 = vst [vmem:[#allocation161_spill] sm:$0xff] %v6183_v14  ;;  %4244 = vlog2.f32 %v1497_v35  ;;  %v1501_v28 = vadd.f32 1.0, %v1500_v30  ;;  %v6258_v14 = vmul.f32 0.6931472, %v4237_v13  ;;  %vm6274_vm9 = vcmp.lt.f32.partialorder %v1503_v11, 0.0004427343 }
 0x1d3   :  { %10223 = vst [vmem:[#allocation162_spill] sm:$0xff] %v6195_v59  ;;  %v1269_v59 = vmul.f32 1.442695, %v6082_v39  ;;  %v6246_v39 = vpop.eup %4238  ;;  %4246 = vpow2.f32 %v1267_v5  ;;  %v1273_v5 = vmul.f32 1.442695, %v6125_v9  ;;  %v10248_v13 = vmov 0 }
 0x1d4   :  { %10224 = vst [vmem:[#allocation163_spill] sm:$0xff] %v6197_v50  ;;  %v6260_v2 = vpop.eup %4240  ;;  %v10249_v13 = vsel %vm6274_vm9, 4294967295, %v10248_v13  ;;  %v6281_v37 = vmul.f32 %v10226_v46, %v1501_v28  ;;  %v1512_v11 = vand.u32 2147483647, %v10239_v24  ;;  %v10256_v28 = vld [vmem:[#allocation76_spill] sm:$0xff] }
 0x1d5   :  { %10225 = vst [vmem:[#allocation164_spill] sm:$0xff] %v6199_v41  ;;  %4248 = vpow2.f32 %v1269_v59  ;;  %v6265_v30 = vpop.eup %4242  ;;  %v1515_v55 = vadd.f32 1.0, %v10256_v28  ;;  %v10260_v46 = vand.u32 2147483647, %v5881_v7  ;;  %v6332_v7 = vld [vmem:[#allocation2 + $0x320] sm:$0xff] }
 0x1d6   :  { %10228 = vst [vmem:[#allocation73_spill] sm:$0xff] %v6209_v61  ;;  %v6256_v61 = vsub.f32 0.0, %v10242_v42  ;;  %v10247_v42 = vand.u32 2147483647, %v5836_v17  ;;  %4250 = vlog2.f32 %v1506_v1  ;;  %v10257_v1 = vand.u32 2147483647, %v5862_v22 }
 0x1d7   :  { %10229 = vst [vmem:[#allocation165_spill] sm:$0xff] %v6211_v52  ;;  %v6234_v52 = vld [vmem:[#allocation2 + $0x2f0] sm:$0xff]  ;;  %vm6320_vm10 = vcmp.lt.f32.partialorder %v1512_v11, 0.0004427343  ;;  %v1518_v17 = vmul.f32 -0.5, %v10256_v28 }
 0x1d8   :  { %10230 = vst [vmem:[#allocation166_spill] sm:$0xff] %v6216_v45  ;;  %v6232_v45 = vmul.f32 %v10210_v21, %v1492_v18  ;;  %v6248_v21 = vld [vmem:[#allocation2 + $0x2f8] sm:$0xff]  ;;  %v1271_v18 = vmul.f32 1.442695, %v6109_v34  ;;  %v1509_v34 = vmul.f32 -0.5, %v10239_v24  ;;  %v6272_v35 = vsub.f32 0.0, %v10247_v42  ;;  %v4245_v59 = vpop.eup %4244 }
 0x1d9   :  { %10231 = vst [vmem:[#allocation167_spill] sm:$0xff] %v6218_v43  ;;  %v1277_v42 = vmul.f32 1.442695, %v6158_v44  ;;  %v6293_v9 = vpop.eup %4246  ;;  %v1283_v22 = vmul.f32 1.442695, %v6207_v56 }
 0x1da   :  { %10235 = vst [vmem:[#allocation168_spill] sm:$0xff] %v10234_v3  ;;  %4252 = vpow2.f32 %v1271_v18  ;;  %v6295_v18 = vld [vmem:[#allocation2 + $0x308] sm:$0xff] }
 0x1db   :  { %10236 = vst [vmem:[#allocation169_spill] sm:$0xff] %v6232_v45  ;;  %4254 = vpow2.f32 %v1273_v5  ;;  %v6307_v45 = vmul.f32 0.6931472, %v4245_v59  ;;  %v6309_v3 = vpop.eup %4248  ;;  %v6314_v5 = vsub.f32 0.0, %v10260_v46  ;;  %v10262_v59 = vmov 0 }
 0x1dc   :  { %10237 = vst [vmem:[#allocation170_spill] sm:$0xff] %v6234_v52  ;;  %v4251_v44 = vpop.eup %4250  ;;  %v10263_v59 = vsel %vm6320_vm10, 4294967295, %v10262_v59  ;;  %v1285_v46 = vmul.f32 1.442695, %v6223_v6  ;;  %v10278_v6 = vand.u32 2147483647, %v5952_v4 }
 0x1dd   :  { %10240 = vst [vmem:[#allocation75_spill] sm:$0xff] %v6246_v39  ;;  %v1275_v39 = vmul.f32 1.442695, %v6138_v31  ;;  %v6297_v31 = vld [vmem:[#allocation2 + $0x310] sm:$0xff]  ;;  %v6388_v4 = vld [vmem:[#allocation2 + $0x340] sm:$0xff] }
 0x1de   :  { %10241 = vst [vmem:[#allocation171_spill] sm:$0xff] %v6248_v21 }
 0x1df   :  { %10243 = vst [vmem:[#allocation172_spill] sm:$0xff] %v6258_v14  ;;  %v6305_v14 = vsub.f32 0.0, %v10257_v1  ;;  %4256 = vpow2.f32 %v1275_v39  ;;  %v1281_v1 = vmul.f32 1.442695, %v6187_v15 }
 0x1e0   :  { %10244 = vst [vmem:[#allocation173_spill] sm:$0xff] %v6260_v2  ;;  %v6317_v2 = vld [vmem:[#allocation2 + $0x318] sm:$0xff]  ;;  %4258 = vpow2.f32 %v1277_v42  ;;  %v10268_v42 = vand.u32 2147483647, %v5889_v54  ;;  %v6355_v54 = vld [vmem:[#allocation2 + $0x330] sm:$0xff] }
 0x1e1   :  { %10245 = vst [vmem:[#allocation174_spill] sm:$0xff] %v6265_v30  ;;  %v6285_v30 = vsub.f32 0.0, %v10252_v16  ;;  %v1510_v16 = vadd.f32 1.0, %v1509_v34  ;;  %v1279_v34 = vmul.f32 1.442695, %v6174_v8  ;;  %4260 = vlog2.f32 %v1515_v55 }
 0x1e2   :  { %10246 = vst [vmem:[#allocation175_spill] sm:$0xff] %v6267_v29  ;;  %v6337_v11 = vsub.f32 0.0, %v10268_v42  ;;  %v6353_v42 = vmul.f32 0.6931472, %v4251_v44  ;;  %v1287_v44 = vmul.f32 1.442695, %v6238_v12 }
 0x1e3   :  { %10250 = vst [vmem:[#allocation176_spill] sm:$0xff] %v10249_v13  ;;  %v6330_v8 = vmul.f32 %v10239_v24, %v1510_v16  ;;  %v6346_v24 = vld [vmem:[#allocation2 + $0x328] sm:$0xff]  ;;  %v10271_v16 = vand.u32 2147483647, %v5924_v47  ;;  %4262 = vpow2.f32 %v1279_v34  ;;  %v10279_v13 = vld [vmem:[#allocation78_spill] sm:$0xff] }
 0x1e4   :  { %10251 = vst [vmem:[#allocation177_spill] sm:$0xff] %v6281_v37  ;;  %4264 = vpow2.f32 %v1281_v1  ;;  %v1524_v56 = vadd.f32 1.0, %v10279_v13  ;;  %v10280_v12 = vand.u32 2147483647, %v5972_v25  ;;  %v1291_v25 = vmul.f32 1.442695, %v6272_v35 }
 0x1e5   :  { %10253 = vst [vmem:[#allocation178_spill] sm:$0xff] %v6293_v9  ;;  %v6325_v9 = vpop.eup %4252  ;;  %v6351_v15 = vsub.f32 0.0, %v10271_v16  ;;  %v10275_v16 = vand.u32 2147483647, %v5942_v63  ;;  %4266 = vpow2.f32 %v1283_v22  ;;  %v1527_v35 = vmul.f32 -0.5, %v10279_v13 }
 0x1e6   :  { %10254 = vst [vmem:[#allocation179_spill] sm:$0xff] %v6295_v18  ;;  %v6344_v39 = vpop.eup %4254  ;;  %4268 = vpow2.f32 %v1285_v46  ;;  %v10286_v46 = vand.u32 2147483647, %v5979_v26  ;;  %v10291_v26 = vand.u32 2147483647, %v5995_v58 }
 0x1e7   :  { %10255 = vst [vmem:[#allocation180_spill] sm:$0xff] %v6297_v31  ;;  %v6359_v37 = vpop.eup %4256  ;;  %v6365_v47 = vsub.f32 0.0, %v10275_v16  ;;  %4270 = vpow2.f32 %v1287_v44  ;;  %v10293_v44 = vand.u32 2147483647, %v6016_v40 }
 0x1e8   :  { %10258 = vst [vmem:[#allocation76_spill] sm:$0xff] %v6307_v45  ;;  %v1519_v45 = vadd.f32 1.0, %v1518_v17  ;;  %v6368_v34 = vpop.eup %4258  ;;  %v6375_v17 = vsub.f32 0.0, %v10278_v6  ;;  %v1289_v6 = vmul.f32 1.442695, %v6256_v61  ;;  %v6406_v22 = vsub.f32 0.0, %v10286_v46 }
 0x1e9   :  { %10259 = vst [vmem:[#allocation181_spill] sm:$0xff] %v6309_v3  ;;  %v4261_v55 = vpop.eup %4260  ;;  %v1293_v61 = vmul.f32 1.442695, %v6285_v30  ;;  %4272 = vlog2.f32 %v1524_v56  ;;  %v6422_v30 = vsub.f32 0.0, %v10291_v26  ;;  %v6425_v56 = vld [vmem:[#allocation2 + $0x358] sm:$0xff] }
 0x1ea   :  { %10261 = vst [vmem:[#allocation182_spill] sm:$0xff] %v6317_v2  ;;  %v6393_v63 = vmul.f32 %v10256_v28, %v1519_v45  ;;  %v6395_v16 = vpop.eup %4262  ;;  %v6409_v45 = vmul.f32 0.6931472, %v4261_v55  ;;  %4274 = vpow2.f32 %v1289_v6  ;;  %v1295_v55 = vmul.f32 1.442695, %v6305_v14 }
 0x1eb   :  { %10264 = vst [vmem:[#allocation183_spill] sm:$0xff] %v10263_v59  ;;  %v1521_v59 = vand.u32 2147483647, %v10256_v28  ;;  %v6400_v1 = vpop.eup %4264  ;;  %v10288_v28 = vld [vmem:[#allocation79_spill] sm:$0xff]  ;;  %4276 = vpow2.f32 %v1291_v25  ;;  %v1297_v14 = vmul.f32 1.442695, %v6314_v5 }
 0x1ec   :  { %10265 = vst [vmem:[#allocation184_spill] sm:$0xff] %v6325_v9  ;;  %4278 = vpow2.f32 %v1293_v61  ;;  %v1528_v25 = vadd.f32 1.0, %v1527_v35  ;;  %v6448_v9 = vld [vmem:[#allocation2 + $0x360] sm:$0xff]  ;;  %v10305_v5 = vand.u32 2147483647, %v6071_v10 }
 0x1ed   :  { %10266 = vst [vmem:[#allocation185_spill] sm:$0xff] %v6330_v8  ;;  %v6417_v8 = vld [vmem:[#allocation2 + $0x350] sm:$0xff]  ;;  %vm6432_vm11 = vcmp.lt.f32.partialorder %v1521_v59, 0.0004427343  ;;  %v1530_v59 = vand.u32 2147483647, %v10279_v13 }
 0x1ee   :  { %10267 = vst [vmem:[#allocation186_spill] sm:$0xff] %v6332_v7  ;;  %v1301_v61 = vmul.f32 1.442695, %v6351_v15  ;;  %v10314_v10 = vand.u32 2147483647, %v6099_v49 }
 0x1ef   :  { %10269 = vst [vmem:[#allocation187_spill] sm:$0xff] %v6344_v39  ;;  %v6370_v39 = vld [vmem:[#allocation2 + $0x338] sm:$0xff]  ;;  %vm6483_vm12 = vcmp.lt.f32.partialorder %v1530_v59, 0.0004427343  ;;  %v1539_v59 = vand.u32 2147483647, %v10288_v28 }
 0x1f0   :  { %10270 = vst [vmem:[#allocation188_spill] sm:$0xff] %v6346_v24  ;;  %v10369_v3 = vand.u32 2147483647, %v6297_v31 }
 0x1f1   :  { %10272 = vst [vmem:[#allocation189_spill] sm:$0xff] %v6353_v42  ;;  %v6402_v42 = vld [vmem:[#allocation2 + $0x348] sm:$0xff]  ;;  %vm6532_vm13 = vcmp.lt.f32.partialorder %v1539_v59, 0.0004427343 }
 0x1f2   :  { %10273 = vst [vmem:[#allocation190_spill] sm:$0xff] %v6355_v54 }
 0x1f3   :  { %10274 = vst [vmem:[#allocation191_spill] sm:$0xff] %v6359_v37  ;;  %v6382_v37 = vsub.f32 0.0, %v10280_v12  ;;  %v10299_v12 = vand.u32 2147483647, %v6033_v53  ;;  %v1299_v53 = vmul.f32 1.442695, %v6337_v11  ;;  %v6481_v11 = vmul.f32 %v10279_v13, %v1528_v25 }
 0x1f4   :  { %10276 = vst [vmem:[#allocation192_spill] sm:$0xff] %v6368_v34  ;;  %v6430_v34 = vsub.f32 0.0, %v10293_v44  ;;  %v1305_v25 = vmul.f32 1.442695, %v6375_v17  ;;  %v1309_v17 = vmul.f32 1.442695, %v6406_v22 }
 0x1f5   :  { %10277 = vst [vmem:[#allocation193_spill] sm:$0xff] %v6370_v39  ;;  %v6445_v44 = vsub.f32 0.0, %v10299_v12  ;;  %v1536_v12 = vmul.f32 -0.5, %v10288_v28  ;;  %v10324_v13 = vmov 0 }
 0x1f6   :  { %10281 = vst [vmem:[#allocation78_spill] sm:$0xff] %v6388_v4  ;;  %v10325_v13 = vsel %vm6532_vm13, 4294967295, %v10324_v13  ;;  %v1313_v59 = vmul.f32 1.442695, %v6430_v34  ;;  %v10338_v34 = vand.u32 2147483647, %v6197_v50 }
 0x1f7   :  { %10282 = vst [vmem:[#allocation194_spill] sm:$0xff] %v6393_v63 }
 0x1f8   :  { %10283 = vst [vmem:[#allocation195_spill] sm:$0xff] %v6395_v16  ;;  %v1533_v16 = vadd.f32 1.0, %v10288_v28 }
 0x1f9   :  { %10284 = vst [vmem:[#allocation196_spill] sm:$0xff] %v6400_v1  ;;  %v6415_v1 = vpop.eup %4266 }
 0x1fa   :  { %10285 = vst [vmem:[#allocation197_spill] sm:$0xff] %v6402_v42  ;;  %v6436_v46 = vpop.eup %4268  ;;  %4280 = vlog2.f32 %v1533_v16  ;;  %v10302_v16 = vand.u32 2147483647, %v6064_v0 }
 0x1fb   :  { %10287 = vst [vmem:[#allocation198_spill] sm:$0xff] %v6409_v45  ;;  %v6441_v58 = vpop.eup %4270  ;;  %4282 = vpow2.f32 %v1295_v55  ;;  %v6467_v55 = vld [vmem:[#allocation2 + $0x370] sm:$0xff]  ;;  %v6472_v45 = vsub.f32 0.0, %v10305_v5  ;;  %v6489_v5 = vld [vmem:[#allocation2 + $0x378] sm:$0xff] }
 0x1fc   :  { %10289 = vst [vmem:[#allocation79_spill] sm:$0xff] %v6415_v1  ;;  %v10294_v1 = vmov 0  ;;  %v4273_v40 = vpop.eup %4272  ;;  %v6462_v6 = vsub.f32 0.0, %v10302_v16  ;;  %4284 = vpow2.f32 %v1297_v14  ;;  %v1303_v16 = vmul.f32 1.442695, %v6365_v47 }
 0x1fd   :  { %10290 = vst [vmem:[#allocation199_spill] sm:$0xff] %v6417_v8  ;;  %v10295_v1 = vsel %vm6432_vm11, 4294967295, %v10294_v1  ;;  %v6478_v0 = vmul.f32 0.6931472, %v4273_v40  ;;  %v6495_v47 = vsub.f32 0.0, %v10314_v10  ;;  %v1537_v40 = vadd.f32 1.0, %v1536_v12 }
 0x1fe   :  { %10292 = vst [vmem:[#allocation200_spill] sm:$0xff] %v6425_v56  ;;  %4286 = vpow2.f32 %v1299_v53  ;;  %v10316_v14 = vand.u32 2147483647, %v6101_v23  ;;  %v10317_v10 = vld [vmem:[#allocation81_spill] sm:$0xff]  ;;  %v6508_v12 = vld [vmem:[#allocation2 + $0x380] sm:$0xff]  ;;  %v6518_v23 = vld [vmem:[#allocation2 + $0x388] sm:$0xff] }
 0x1ff   :  { %10296 = vst [vmem:[#allocation201_spill] sm:$0xff] %v10295_v1  ;;  %4288 = vpow2.f32 %v1301_v61  ;;  %v1542_v49 = vadd.f32 1.0, %v10317_v10  ;;  %v1307_v53 = vmul.f32 1.442695, %v6382_v37  ;;  %v6551_v61 = vld [vmem:[#allocation2 + $0x398] sm:$0xff] }
 0x200   :  { %10297 = vst [vmem:[#allocation202_spill] sm:$0xff] %v6436_v46  ;;  %v6450_v46 = vld [vmem:[#allocation2 + $0x368] sm:$0xff]  ;;  %v6505_v15 = vsub.f32 0.0, %v10316_v14  ;;  %4290 = vpow2.f32 %v1303_v16  ;;  %v10321_v14 = vand.u32 2147483647, %v6120_v62  ;;  %v6528_v16 = vmul.f32 %v10288_v28, %v1537_v40  ;;  %v6541_v28 = vld [vmem:[#allocation2 + $0x390] sm:$0xff] }
 0x201   :  { %10298 = vst [vmem:[#allocation203_spill] sm:$0xff] %v6441_v58  ;;  %v6465_v58 = vpop.eup %4274  ;;  %4292 = vpow2.f32 %v1305_v25  ;;  %v1311_v62 = vmul.f32 1.442695, %v6422_v30  ;;  %v10329_v25 = vand.u32 2147483647, %v6148_v32 }
 0x202   :  { %10300 = vst [vmem:[#allocation204_spill] sm:$0xff] %v6448_v9  ;;  %v6475_v35 = vpop.eup %4276  ;;  %4294 = vlog2.f32 %v1542_v49  ;;  %v10332_v30 = vand.u32 2147483647, %v6150_v33  ;;  %v1548_v49 = vand.u32 2147483647, %v10317_v10 }
 0x203   :  { %10301 = vst [vmem:[#allocation205_spill] sm:$0xff] %v6450_v46  ;;  %v6487_v26 = vpop.eup %4278  ;;  %v6546_v22 = vsub.f32 0.0, %v10329_v25  ;;  %4296 = vpow2.f32 %v1307_v53  ;;  %v10333_v25 = vld [vmem:[#allocation83_spill] sm:$0xff]  ;;  %v10336_v33 = vand.u32 2147483647, %v6169_v38 }
 0x204   :  { %10303 = vst [vmem:[#allocation206_spill] sm:$0xff] %v6465_v58  ;;  %v10309_v58 = vmov 0  ;;  %v1551_v32 = vadd.f32 1.0, %v10333_v25  ;;  %4298 = vpow2.f32 %v1309_v17  ;;  %v1315_v17 = vmul.f32 1.442695, %v6445_v44 }
 0x205   :  { %10304 = vst [vmem:[#allocation207_spill] sm:$0xff] %v6467_v55  ;;  %v10310_v58 = vsel %vm6483_vm12, 4294967295, %v10309_v58  ;;  %4300 = vpow2.f32 %v1311_v62  ;;  %v1554_v62 = vmul.f32 -0.5, %v10333_v25  ;;  %vm6597_vm14 = vcmp.lt.f32.partialorder %v1548_v49, 0.0004427343 }
 0x206   :  { %10306 = vst [vmem:[#allocation208_spill] sm:$0xff] %v6475_v35  ;;  %v4281_v35 = vpop.eup %4280  ;;  %4302 = vpow2.f32 %v1313_v59  ;;  %v10342_v59 = vand.u32 2147483647, %v6199_v41  ;;  %v10343_v44 = vmov 0  ;;  %v10349_v49 = vand.u32 2147483647, %v6218_v43 }
 0x207   :  { %10307 = vst [vmem:[#allocation209_spill] sm:$0xff] %v6478_v0  ;;  %v6525_v1 = vmul.f32 0.6931472, %v4281_v35  ;;  %v1545_v35 = vmul.f32 -0.5, %v10317_v10  ;;  %v6573_v0 = vsub.f32 0.0, %v10336_v33  ;;  %4304 = vlog2.f32 %v1551_v32  ;;  %v6619_v32 = vld [vmem:[#allocation2 + $0x3b8] sm:$0xff] }
 0x208   :  { %10308 = vst [vmem:[#allocation210_spill] sm:$0xff] %v6481_v11  ;;  %v1317_v33 = vmul.f32 1.442695, %v6462_v6  ;;  %v6595_v50 = vsub.f32 0.0, %v10342_v59  ;;  %v10344_v44 = vsel %vm6597_vm14, 4294967295, %v10343_v44  ;;  %v6613_v41 = vsub.f32 0.0, %v10349_v49 }
 0x209   :  { %10311 = vst [vmem:[#allocation211_spill] sm:$0xff] %v10310_v58  ;;  %v1546_v40 = vadd.f32 1.0, %v1545_v35  ;;  %v1319_v6 = vmul.f32 1.442695, %v6472_v45  ;;  %4306 = vpow2.f32 %v1315_v17  ;;  %v6625_v59 = vld [vmem:[#allocation2 + $0x3c0] sm:$0xff] }
 0x20a   :  { %10312 = vst [vmem:[#allocation212_spill] sm:$0xff] %v6487_v26  ;;  %v6500_v26 = vpop.eup %4282  ;;  %4308 = vpow2.f32 %v1317_v33  ;;  %v10355_v17 = vand.u32 2147483647, %v6234_v52  ;;  %v10356_v33 = vmov 0  ;;  %v10358_v49 = vand.u32 2147483647, %v6248_v21 }
 0x20b   :  { %10313 = vst [vmem:[#allocation213_spill] sm:$0xff] %v6489_v5  ;;  %v6516_v63 = vpop.eup %4284 }
 0x20c   :  { %10315 = vst [vmem:[#allocation214_spill] sm:$0xff] %v6500_v26  ;;  %v6523_v26 = vsub.f32 0.0, %v10321_v14  ;;  %v6539_v14 = vpop.eup %4286  ;;  %v6642_v52 = vsub.f32 0.0, %v10358_v49  ;;  %v6658_v49 = vld [vmem:[#allocation2 + $0x3d0] sm:$0xff] }
 0x20d   :  { %10318 = vst [vmem:[#allocation81_spill] sm:$0xff] %v6508_v12  ;;  %v6549_v37 = vpop.eup %4288 }
 0x20e   :  { %10319 = vst [vmem:[#allocation215_spill] sm:$0xff] %v6516_v63  ;;  %v6563_v53 = vpop.eup %4290  ;;  %v6568_v63 = vld [vmem:[#allocation2 + $0x3a0] sm:$0xff] }
 0x20f   :  { %10320 = vst [vmem:[#allocation216_spill] sm:$0xff] %v6518_v23 }
 0x210   :  { %10322 = vst [vmem:[#allocation217_spill] sm:$0xff] %v6525_v1  ;;  %v6575_v1 = vpop.eup %4292 }
 0x211   :  { %10323 = vst [vmem:[#allocation218_spill] sm:$0xff] %v6528_v16  ;;  %v4295_v16 = vpop.eup %4294 }
 0x212   :  { %10326 = vst [vmem:[#allocation219_spill] sm:$0xff] %v10325_v13  ;;  %v6583_v13 = vld [vmem:[#allocation2 + $0x3a8] sm:$0xff]  ;;  %v6588_v35 = vpop.eup %4296  ;;  %v6615_v11 = vmul.f32 0.6931472, %v4295_v16  ;;  %v6630_v16 = vsub.f32 0.0, %v10355_v17 }
 0x213   :  { %10327 = vst [vmem:[#allocation220_spill] sm:$0xff] %v6539_v14  ;;  %v6556_v14 = vsub.f32 0.0, %v10332_v30  ;;  %v10346_v30 = vld [vmem:[#allocation84_spill] sm:$0xff] }
 0x214   :  { %10328 = vst [vmem:[#allocation221_spill] sm:$0xff] %v6541_v28  ;;  %v1560_v38 = vadd.f32 1.0, %v10346_v30  ;;  %v1563_v43 = vmul.f32 -0.5, %v10346_v30 }
 0x215   :  { %10330 = vst [vmem:[#allocation222_spill] sm:$0xff] %v6549_v37  ;;  %v6580_v37 = vsub.f32 0.0, %v10338_v34  ;;  %v6608_v34 = vpop.eup %4298 }
 0x216   :  { %10331 = vst [vmem:[#allocation223_spill] sm:$0xff] %v6551_v61  ;;  %v6617_v58 = vpop.eup %4300  ;;  %4310 = vlog2.f32 %v1560_v38  ;;  %v1325_v38 = vmul.f32 1.442695, %v6523_v26  ;;  %v1121_v26 = vsub.f32 0.0, %v10369_v3  ;;  %v10374_v3 = vand.u32 2147483647, %v6317_v2 }
 0x217   :  { %10334 = vst [vmem:[#allocation83_spill] sm:$0xff] %v6563_v53  ;;  %v6590_v53 = vld [vmem:[#allocation2 + $0x3b0] sm:$0xff]  ;;  %4312 = vpow2.f32 %v1319_v6  ;;  %v6649_v6 = vld [vmem:[#allocation2 + $0x3c8] sm:$0xff] }
 0x218   :  { %10335 = vst [vmem:[#allocation224_spill] sm:$0xff] %v6568_v63  ;;  %v1122_v31 = vsub.f32 0.0, %v10374_v3  ;;  %v10378_v3 = vand.u32 2147483647, %v6346_v24 }
 0x219   :  { %10337 = vst [vmem:[#allocation225_spill] sm:$0xff] %v6575_v1  ;;  %v1557_v1 = vand.u32 2147483647, %v10333_v25 }
 0x21a   :  { %10339 = vst [vmem:[#allocation226_spill] sm:$0xff] %v6583_v13 }
 0x21b   :  { %10340 = vst [vmem:[#allocation227_spill] sm:$0xff] %v6588_v35  ;;  %v6605_v35 = vmul.f32 %v10317_v10, %v1546_v40  ;;  %v1321_v10 = vmul.f32 1.442695, %v6495_v47  ;;  %v1555_v40 = vadd.f32 1.0, %v1554_v62  ;;  %v1323_v47 = vmul.f32 1.442695, %v6505_v15 }
 0x21c   :  { %10341 = vst [vmem:[#allocation228_spill] sm:$0xff] %v6590_v53  ;;  %vm6635_vm13 = vcmp.lt.f32.partialorder %v1557_v1, 0.0004427343  ;;  %v10360_v62 = vld [vmem:[#allocation85_spill] sm:$0xff] }
 0x21d   :  { %10345 = vst [vmem:[#allocation229_spill] sm:$0xff] %v10344_v44  ;;  %v10357_v33 = vsel %vm6635_vm13, 4294967295, %v10356_v33  ;;  %4314 = vpow2.f32 %v1321_v10  ;;  %v6653_v15 = vmul.f32 %v10333_v25, %v1555_v40  ;;  %v1569_v45 = vadd.f32 1.0, %v10360_v62 }
 0x21e   :  { %10347 = vst [vmem:[#allocation84_spill] sm:$0xff] %v6605_v35  ;;  %4316 = vpow2.f32 %v1323_v47  ;;  %v1327_v25 = vmul.f32 1.442695, %v6546_v22  ;;  %v1566_v40 = vand.u32 2147483647, %v10346_v30  ;;  %v10372_v47 = vmov 0 }
 0x21f   :  { %10348 = vst [vmem:[#allocation230_spill] sm:$0xff] %v6608_v34  ;;  %v6623_v34 = vpop.eup %4302  ;;  %4318 = vpow2.f32 %v1325_v38  ;;  %v1329_v22 = vmul.f32 1.442695, %v6556_v14 }
 0x220   :  { %10350 = vst [vmem:[#allocation231_spill] sm:$0xff] %v6615_v11  ;;  %v1564_v11 = vadd.f32 1.0, %v1563_v43  ;;  %4320 = vlog2.f32 %v1569_v45  ;;  %vm6698_vm14 = vcmp.lt.f32.partialorder %v1566_v40, 0.0004427343 }
 0x221   :  { %10351 = vst [vmem:[#allocation232_spill] sm:$0xff] %v6617_v58  ;;  %v4305_v58 = vpop.eup %4304  ;;  %4322 = vpow2.f32 %v1327_v25  ;;  %v10373_v47 = vsel %vm6698_vm14, 4294967295, %v10372_v47  ;;  %v1575_v25 = vand.u32 2147483647, %v10360_v62 }
 0x222   :  { %10352 = vst [vmem:[#allocation233_spill] sm:$0xff] %v6619_v32  ;;  %v6656_v21 = vpop.eup %4306  ;;  %v6663_v17 = vmul.f32 0.6931472, %v4305_v58  ;;  %v1572_v58 = vmul.f32 -0.5, %v10360_v62  ;;  %v6691_v38 = vmul.f32 %v10346_v30, %v1564_v11  ;;  %4324 = vpow2.f32 %v1329_v22  ;;  %v10379_v22 = vld [vmem:[#allocation88_spill] sm:$0xff] }
 0x223   :  { %10353 = vst [vmem:[#allocation234_spill] sm:$0xff] %v6623_v34  ;;  %v10363_v34 = vand.u32 2147483647, %v6267_v29  ;;  %v6665_v35 = vpop.eup %4308  ;;  %v10366_v29 = vand.u32 2147483647, %v6295_v18 }
 0x224   :  { %10354 = vst [vmem:[#allocation235_spill] sm:$0xff] %v6625_v59  ;;  %v4311_v1 = vpop.eup %4310  ;;  %v1331_v18 = vmul.f32 1.442695, %v6573_v0  ;;  %v1573_v11 = vadd.f32 1.0, %v1572_v58  ;;  %v10377_v0 = vand.u32 2147483647, %v6332_v7 }
 0x225   :  { %10359 = vst [vmem:[#allocation236_spill] sm:$0xff] %v6649_v6  ;;  %v1119_v44 = vsub.f32 0.0, %v10363_v34  ;;  %v1120_v34 = vsub.f32 0.0, %v10366_v29  ;;  %v6676_v43 = vpop.eup %4312  ;;  %v6696_v45 = vmul.f32 0.6931472, %v4311_v1  ;;  %v10384_v7 = vld [vmem:[#allocation89_spill] sm:$0xff] }
 0x226   :  { %10361 = vst [vmem:[#allocation85_spill] sm:$0xff] %v6656_v21  ;;  %v6670_v21 = vld [vmem:[#allocation2 + $0x3d8] sm:$0xff]  ;;  %v6693_v10 = vpop.eup %4314  ;;  %v1333_v29 = vmul.f32 1.442695, %v6580_v37  ;;  %v1335_v1 = vmul.f32 1.442695, %v6595_v50  ;;  %4326 = vpow2.f32 %v1331_v18 }
 0x227   :  { %10362 = vst [vmem:[#allocation237_spill] sm:$0xff] %v6658_v49  ;;  %v6706_v30 = vpop.eup %4316  ;;  %v1123_v2 = vsub.f32 0.0, %v10377_v0  ;;  %v1337_v37 = vmul.f32 1.442695, %v6613_v41  ;;  %v1339_v18 = vmul.f32 1.442695, %v6630_v16  ;;  %v6728_v41 = vmul.f32 %v10360_v62, %v1573_v11 }
 0x228   :  { %10364 = vst [vmem:[#allocation238_spill] sm:$0xff] %v6665_v35  ;;  %v6681_v35 = vld [vmem:[#allocation2 + $0x3e0] sm:$0xff]  ;;  %v6711_v40 = vpop.eup %4318  ;;  %4328 = vpow2.f32 %v1333_v29  ;;  %vm6734_vm13 = vcmp.lt.f32.partialorder %v1575_v25, 0.0004427343  ;;  %v10382_v50 = vmov 0 }
 0x229   :  { %10365 = vst [vmem:[#allocation239_spill] sm:$0xff] %v6670_v21  ;;  %v4321_v58 = vpop.eup %4320  ;;  %4330 = vpow2.f32 %v1335_v1  ;;  %v10383_v50 = vsel %vm6734_vm13, 4294967295, %v10382_v50  ;;  %v1341_v16 = vmul.f32 1.442695, %v6642_v52  ;;  %v10386_v11 = vand.u32 2147483647, %v6370_v39 }
 0x22a   :  { %10367 = vst [vmem:[#allocation240_spill] sm:$0xff] %v6676_v43  ;;  %v6730_v0 = vpop.eup %4322  ;;  %v1587_v43 = vadd.f32 1.0, %v10384_v7  ;;  %4332 = vpow2.f32 %v1337_v37  ;;  %v6741_v29 = vmul.f32 0.6931472, %v4321_v58  ;;  %v10388_v58 = vand.u32 2147483647, %v6388_v4 }
 0x22b   :  { %10368 = vst [vmem:[#allocation241_spill] sm:$0xff] %v6681_v35  ;;  %v6743_v62 = vpop.eup %4324  ;;  %v6766_v37 = vld [vmem:[#allocation2 + $0x3f0] sm:$0xff] }
 0x22c   :  { %10370 = vst [vmem:[#allocation242_spill] sm:$0xff] %v6693_v10  ;;  %v1578_v10 = vadd.f32 1.0, %v10379_v22  ;;  %v6747_v25 = vpop.eup %4326  ;;  %v1127_v14 = vsub.f32 0.0, %v10388_v58  ;;  %v6772_v58 = vmul.f32 -0.5, %v10384_v7 }
 0x22d   :  { %10371 = vst [vmem:[#allocation243_spill] sm:$0xff] %v6696_v45  ;;  %v1345_v45 = vmul.f32 1.442695, %v1120_v34 }
 0x22e   :  { %10375 = vst [vmem:[#allocation244_spill] sm:$0xff] %v6706_v30  ;;  %v1124_v30 = vsub.f32 0.0, %v10378_v3  ;;  %v10381_v3 = vand.u32 2147483647, %v6355_v54  ;;  %v1126_v54 = vsub.f32 0.0, %v10386_v11  ;;  %4334 = vlog2.f32 %v1578_v10  ;;  %v6754_v39 = vpop.eup %4328  ;;  %v6764_v11 = vld [vmem:[#allocation2 + $0x3e8] sm:$0xff] }
 0x22f   :  { %10376 = vst [vmem:[#allocation245_spill] sm:$0xff] %v6711_v40  ;;  %v1581_v40 = vmul.f32 -0.5, %v10379_v22  ;;  %4336 = vpow2.f32 %v1339_v18  ;;  %v6762_v18 = vpop.eup %4330 }
 0x230   :  { %10380 = vst [vmem:[#allocation88_spill] sm:$0xff] %v6730_v0  ;;  %v1125_v24 = vsub.f32 0.0, %v10381_v3  ;;  %v1343_v3 = vmul.f32 1.442695, %v1119_v44  ;;  %4338 = vlog2.f32 %v1587_v43  ;;  %v10390_v44 = vand.u32 2147483647, %v6402_v42 }
 0x231   :  { %10385 = vst [vmem:[#allocation89_spill] sm:$0xff] %v6743_v62  ;;  %v1582_v1 = vadd.f32 1.0, %v1581_v40  ;;  %v1347_v62 = vmul.f32 1.442695, %v1121_v26  ;;  %4340 = vpow2.f32 %v1341_v16  ;;  %v1349_v40 = vmul.f32 1.442695, %v1122_v31  ;;  %v6774_v31 = vpop.eup %4332 }
 0x232   :  { %10387 = vst [vmem:[#allocation246_spill] sm:$0xff] %v6747_v25  ;;  %v1128_v10 = vsub.f32 0.0, %v10390_v44  ;;  %4342 = vpow2.f32 %v1343_v3  ;;  %v1351_v26 = vmul.f32 1.442695, %v1123_v2  ;;  %v1017_v16 = vand.u32 2147483647, %v6658_v49 }
 0x233   :  { %10389 = vst [vmem:[#allocation247_spill] sm:$0xff] %v6754_v39  ;;  %v6769_v43 = vmul.f32 %v10379_v22, %v1582_v1  ;;  %v1018_v44 = vand.u32 2147483647, %v6670_v21  ;;  %4344 = vpow2.f32 %v1345_v45  ;;  %v1353_v34 = vmul.f32 1.442695, %v1124_v30  ;;  %v6780_v0 = vld [vmem:[#allocation2 + $0x3f8] sm:$0xff] }
 0x234   :  { %10391 = vst [vmem:[#allocation248_spill] sm:$0xff] %v6762_v18  ;;  %v6778_v52 = vpop.eup %4334  ;;  %v1019_v2 = vand.u32 2147483647, %v6681_v35  ;;  %v10393_v3 = vand.u32 2147483647, %v6417_v8  ;;  %4346 = vpow2.f32 %v1347_v62 }
 0x235   :  { %10392 = vst [vmem:[#allocation249_spill] sm:$0xff] %v6774_v31  ;;  %v1355_v42 = vmul.f32 1.442695, %v1125_v24  ;;  %v6785_v4 = vpop.eup %4336  ;;  %v1020_v31 = vand.u32 2147483647, %v6764_v11  ;;  %4348 = vpow2.f32 %v1349_v40 }
 0x236   :  { %v1129_v1 = vsub.f32 0.0, %v10393_v3  ;;  %10394 = vst [vmem:[#allocation250_spill] sm:$0xff] %v6785_v4  ;;  %v10395_v49 = vand.u32 2147483647, %v6425_v56  ;;  %v1357_v45 = vmul.f32 1.442695, %v1126_v54  ;;  %v6790_v30 = vpop.eup %4338  ;;  %4350 = vpow2.f32 %v1351_v26 }
 0x237   :  { %v1021_v18 = vand.u32 2147483647, %v6766_v37  ;;  %v10396_v35 = vand.u32 2147483647, %v6448_v9  ;;  %v1359_v3 = vmul.f32 1.442695, %v1127_v14  ;;  %v6795_v62 = vpop.eup %4340  ;;  %4352 = vpow2.f32 %v1353_v34 }
 0x238   :  { %v1130_v21 = vsub.f32 0.0, %v10395_v49  ;;  %10397 = vst [vmem:[#allocation251_spill] sm:$0xff] %v6795_v62  ;;  %v1022_v24 = vand.u32 2147483647, %v6780_v0  ;;  %v10398_v11 = vand.u32 2147483647, %v6450_v46  ;;  %v6800_v40 = vpop.eup %4342  ;;  %4354 = vpow2.f32 %v1355_v42 }
 0x239   :  { %v1131_v39 = vsub.f32 0.0, %v10396_v35  ;;  %v1361_v49 = vmul.f32 1.442695, %v1128_v10  ;;  %10399 = vst [vmem:[#allocation252_spill] sm:$0xff] %v6800_v40  ;;  %v10400_v54 = vand.u32 2147483647, %v6467_v55  ;;  %v6806_v14 = vpop.eup %4344  ;;  %4356 = vpow2.f32 %v1357_v45 }
 0x23a   :  { %v1132_v8 = vsub.f32 0.0, %v10398_v11  ;;  %v10401_v37 = vand.u32 2147483647, %v6489_v5  ;;  %v1363_v35 = vmul.f32 1.442695, %v1129_v1  ;;  %10402 = vst [vmem:[#allocation253_spill] sm:$0xff] %v6806_v14  ;;  %v6812_v34 = vpop.eup %4346  ;;  %4358 = vpow2.f32 %v1359_v3 }
 0x23b   :  { %v1133_v56 = vsub.f32 0.0, %v10400_v54  ;;  %v10403_v26 = vand.u32 2147483647, %v6508_v12  ;;  %v10404_v46 = vand.u32 2147483647, %v6518_v23  ;;  %10405 = vst [vmem:[#allocation254_spill] sm:$0xff] %v6812_v34  ;;  %v6818_v1 = vpop.eup %4348  ;;  %4360 = vpow2.f32 %v1361_v49 }
 0x23c   :  { %v1134_v9 = vsub.f32 0.0, %v10401_v37  ;;  %v1365_v10 = vmul.f32 1.442695, %v1130_v21  ;;  %v10406_v55 = vand.u32 2147483647, %v6541_v28  ;;  %10408 = vst [vmem:[#allocation255_spill] sm:$0xff] %v6818_v1  ;;  %v6824_v45 = vpop.eup %4350  ;;  %4362 = vpow2.f32 %v1363_v35 }
 0x23d   :  { %v1135_v0 = vsub.f32 0.0, %v10403_v26  ;;  %v1136_v11 = vsub.f32 0.0, %v10404_v46  ;;  %v10407_v5 = vand.u32 2147483647, %v6551_v61  ;;  %v1367_v42 = vmul.f32 1.442695, %v1131_v39  ;;  %v6830_v3 = vpop.eup %4352 }
 0x23e   :  { %v1137_v54 = vsub.f32 0.0, %v10406_v55  ;;  %v10409_v12 = vand.u32 2147483647, %v6568_v63  ;;  %v10410_v23 = vand.u32 2147483647, %v6583_v13  ;;  %10411 = vst [vmem:[#allocation256_spill] sm:$0xff] %v6824_v45  ;;  %4364 = vpow2.f32 %v1365_v10  ;;  %v6836_v49 = vpop.eup %4354 }
 0x23f   :  { %v1138_v37 = vsub.f32 0.0, %v10407_v5  ;;  %v1369_v21 = vmul.f32 1.442695, %v1132_v8  ;;  %v10412_v28 = vand.u32 2147483647, %v6590_v53  ;;  %10414 = vst [vmem:[#allocation257_spill] sm:$0xff] %v6830_v3  ;;  %4366 = vpow2.f32 %v1367_v42 }
 0x240   :  { %v1139_v26 = vsub.f32 0.0, %v10409_v12  ;;  %v1140_v46 = vsub.f32 0.0, %v10410_v23  ;;  %v10413_v61 = vand.u32 2147483647, %v6619_v32  ;;  %v1371_v39 = vmul.f32 1.442695, %v1133_v56  ;;  %v6838_v32 = vpop.eup %4356 }
 0x241   :  { %v1141_v55 = vsub.f32 0.0, %v10412_v28  ;;  %v10415_v63 = vand.u32 2147483647, %v6625_v59  ;;  %v10416_v13 = vand.u32 2147483647, %v6649_v6  ;;  %10417 = vst [vmem:[#allocation258_spill] sm:$0xff] %v6836_v49  ;;  %4368 = vpow2.f32 %v1369_v21 }
 0x242   :  { %v1142_v5 = vsub.f32 0.0, %v10413_v61  ;;  %v1373_v8 = vmul.f32 1.442695, %v1134_v9  ;;  %v1145_v45 = vsub.f32 0.0, %v1017_v16  ;;  %v1146_v53 = vsub.f32 0.0, %v1018_v44  ;;  %10418 = vst [vmem:[#allocation259_spill] sm:$0xff] %v6838_v32 }
 0x243   :  { %v1143_v12 = vsub.f32 0.0, %v10415_v63  ;;  %v1144_v23 = vsub.f32 0.0, %v10416_v13  ;;  %v1375_v28 = vmul.f32 1.442695, %v1135_v0  ;;  %v1147_v61 = vsub.f32 0.0, %v1019_v2  ;;  %v6846_v13 = vpop.eup %4358  ;;  %v10465_v32 = vld [vmem:[#allocation106_spill] sm:$0xff] }
 0x244   :  { %v1148_v56 = vsub.f32 0.0, %v1020_v31  ;;  %v1377_v35 = vmul.f32 1.442695, %v1136_v11  ;;  %v10419_v59 = vand.u32 2147483647, %v10379_v22  ;;  %v10420_v63 = vmov 0  ;;  %v6848_v44 = vpop.eup %4360 }
 0x245   :  { %10422 = vst [vmem:[#allocation260_spill] sm:$0xff] %v6846_v13  ;;  %v1149_v9 = vsub.f32 0.0, %v1021_v18  ;;  %v1150_v10 = vsub.f32 0.0, %v1022_v24  ;;  %4370 = vpow2.f32 %v1371_v39  ;;  %v1379_v16 = vmul.f32 1.442695, %v1137_v54  ;;  %v10424_v31 = vld [vmem:[#allocation11_spill] sm:$0xff]  ;;  %v6859_v11 = vpop.eup %4362 }
 0x246   :  { %vm6842_vm13 = vcmp.lt.f32.partialorder %v10419_v59, 0.0004427343  ;;  %10423 = vst [vmem:[#allocation261_spill] sm:$0xff] %v6848_v44  ;;  %4372 = vpow2.f32 %v1373_v8  ;;  %v1381_v0 = vmul.f32 1.442695, %v1138_v37  ;;  %v10425_v42 = vmax.f32 %v10424_v31, 0.0  ;;  %v6861_v21 = vpop.eup %4364 }
 0x247   :  { %v10421_v63 = vsel %vm6842_vm13, 4294967295, %v10420_v63  ;;  %v1383_v2 = vmul.f32 1.442695, %v1139_v26  ;;  %v10426_v59 = vsel %vm5848_vm15, %v5681_v48, %v5884_v20  ;;  %10427 = vst [vmem:[#allocation11_spill] sm:$0xff] %v6859_v11  ;;  %4374 = vpow2.f32 %v1375_v28  ;;  %v6864_v8 = vpop.eup %4366  ;;  %v10430_v20 = vld [vmem:[#allocation91_spill] sm:$0xff]  ;;  %v10459_v11 = vld [vmem:[#allocation104_spill] sm:$0xff] }
 0x248   :  { %v6857_v22 = vadd.f32 %v10426_v59, %v10425_v42  ;;  %v1385_v18 = vmul.f32 1.442695, %v1140_v46  ;;  %v1387_v24 = vmul.f32 1.442695, %v1141_v55  ;;  %v1389_v54 = vmul.f32 1.442695, %v1142_v5  ;;  %v6868_v42 = vpop.eup %4368 }
 0x249   :  { %10428 = vst [vmem:[#allocation262_spill] sm:$0xff] %v6861_v21  ;;  %4376 = vpow2.f32 %v1377_v35  ;;  %v1391_v37 = vmul.f32 1.442695, %v1143_v12  ;;  %v1393_v26 = vmul.f32 1.442695, %v1144_v23  ;;  %v1591_v39 = vadd.f32 1.0, %v6772_v58 }
 0x24a   :  { %10429 = vst [vmem:[#allocation263_spill] sm:$0xff] %v6864_v8  ;;  %4378 = vpow2.f32 %v1379_v16  ;;  %v1395_v19 = vmul.f32 1.442695, %v1145_v45  ;;  %v1593_v48 = vand.u32 2147483647, %v10384_v7  ;;  %v1599_v31 = vmul.f32 -0.5, %v10430_v20 }
 0x24b   :  { %10431 = vst [vmem:[#allocation91_spill] sm:$0xff] %v6868_v42  ;;  %4380 = vpow2.f32 %v1381_v0  ;;  %v1397_v46 = vmul.f32 1.442695, %v1146_v53  ;;  %v1399_v55 = vmul.f32 1.442695, %v1147_v61  ;;  %v10432_v5 = vld [vmem:[#allocation93_spill] sm:$0xff]  ;;  %v6871_v35 = vpop.eup %4370  ;;  %v6883_v53 = vmul.f32 %v10384_v7, %v1591_v39 }
 0x24c   :  { %v1608_v28 = vmul.f32 -0.5, %v10432_v5  ;;  %10433 = vst [vmem:[#allocation93_spill] sm:$0xff] %v6871_v35  ;;  %4382 = vpow2.f32 %v1383_v2  ;;  %v1401_v12 = vmul.f32 1.442695, %v1148_v56  ;;  %v6874_v58 = vmul.f32 0.6931472, %v6778_v52  ;;  %v6877_v16 = vpop.eup %4372 }
 0x24d   :  { %v10435_v23 = vld [vmem:[#allocation94_spill] sm:$0xff]  ;;  %4384 = vpow2.f32 %v1385_v18  ;;  %v1403_v59 = vmul.f32 1.442695, %v1149_v9  ;;  %v6880_v6 = vmul.f32 0.6931472, %v6790_v30  ;;  %10438 = vst [vmem:[#allocation266_spill] sm:$0xff] %v6883_v53  ;;  %v6885_v61 = vpop.eup %4374 }
 0x24e   :  { %10434 = vst [vmem:[#allocation264_spill] sm:$0xff] %v6874_v58  ;;  %v1617_v45 = vmul.f32 -0.5, %v10435_v23  ;;  %4386 = vpow2.f32 %v1387_v24  ;;  %v1405_v0 = vmul.f32 1.442695, %v1150_v10  ;;  %vm6887_vm15 = vcmp.lt.f32.partialorder %v1593_v48, 0.0004427343 }
 0x24f   :  { %10436 = vst [vmem:[#allocation94_spill] sm:$0xff] %v6877_v16  ;;  %v10440_v56 = vmov 0  ;;  %v1600_v52 = vadd.f32 1.0, %v1599_v31  ;;  %v6891_v2 = vpop.eup %4376  ;;  %4388 = vpow2.f32 %v1389_v54  ;;  %v1596_v9 = vadd.f32 1.0, %v10430_v20  ;;  %v10444_v30 = vld [vmem:[#allocation96_spill] sm:$0xff]  ;;  %v10447_v31 = vld [vmem:[#allocation97_spill] sm:$0xff] }
 0x250   :  { %10437 = vst [vmem:[#allocation265_spill] sm:$0xff] %v6880_v6  ;;  %v10441_v56 = vsel %vm6887_vm15, 4294967295, %v10440_v56  ;;  %v1609_v18 = vadd.f32 1.0, %v1608_v28  ;;  %v1626_v16 = vmul.f32 -0.5, %v10444_v30  ;;  %v6895_v35 = vpop.eup %4378  ;;  %4390 = vpow2.f32 %v1391_v37  ;;  %v10471_v3 = vld [vmem:[#allocation110_spill] sm:$0xff] }
 0x251   :  { %10439 = vst [vmem:[#allocation267_spill] sm:$0xff] %v6885_v61  ;;  %v1602_v10 = vand.u32 2147483647, %v10430_v20  ;;  %v1618_v24 = vadd.f32 1.0, %v1617_v45  ;;  %v6902_v39 = vpop.eup %4380  ;;  %4392 = vpow2.f32 %v1393_v26  ;;  %v1605_v48 = vadd.f32 1.0, %v10432_v5 }
 0x252   :  { %10442 = vst [vmem:[#allocation268_spill] sm:$0xff] %v10441_v56  ;;  %v1635_v37 = vmul.f32 -0.5, %v10447_v31  ;;  %v6910_v28 = vpop.eup %4382  ;;  %4394 = vpow2.f32 %v1395_v19  ;;  %v6913_v7 = vmul.f32 %v10430_v20, %v1600_v52  ;;  %v1611_v45 = vand.u32 2147483647, %v10432_v5 }
 0x253   :  { %10443 = vst [vmem:[#allocation269_spill] sm:$0xff] %v6891_v2  ;;  %v6917_v26 = vpop.eup %4384  ;;  %4396 = vpow2.f32 %v1397_v46  ;;  %v1627_v54 = vadd.f32 1.0, %v1626_v16  ;;  %v10451_v2 = vld [vmem:[#allocation100_spill] sm:$0xff]  ;;  %v6926_v19 = vmul.f32 %v10435_v23, %v1618_v24  ;;  %v1620_v20 = vand.u32 2147483647, %v10435_v23 }
 0x254   :  { %10445 = vst [vmem:[#allocation96_spill] sm:$0xff] %v6895_v35  ;;  %v6920_v35 = vmul.f32 %v10432_v5, %v1609_v18  ;;  %v1644_v61 = vmul.f32 -0.5, %v10451_v2  ;;  %v6923_v42 = vpop.eup %4386  ;;  %4398 = vpow2.f32 %v1399_v55  ;;  %v1623_v52 = vadd.f32 1.0, %v10444_v30  ;;  %v10454_v18 = vld [vmem:[#allocation101_spill] sm:$0xff] }
 0x255   :  { %10446 = vst [vmem:[#allocation270_spill] sm:$0xff] %v6902_v39  ;;  %v1614_v39 = vadd.f32 1.0, %v10435_v23  ;;  %4400 = vpow2.f32 %v1401_v12  ;;  %v1629_v46 = vand.u32 2147483647, %v10444_v30  ;;  %v1636_v5 = vadd.f32 1.0, %v1635_v37 }
 0x256   :  { %10448 = vst [vmem:[#allocation97_spill] sm:$0xff] %v6910_v28  ;;  %v6930_v28 = vpop.eup %4388  ;;  %v1653_v16 = vmul.f32 -0.5, %v10454_v18  ;;  %4402 = vpow2.f32 %v1403_v59  ;;  %v1632_v55 = vadd.f32 1.0, %v10447_v31  ;;  %v1638_v24 = vand.u32 2147483647, %v10447_v31 }
 0x257   :  { %10449 = vst [vmem:[#allocation271_spill] sm:$0xff] %v6913_v7  ;;  %4404 = vlog2.f32 %v1596_v9  ;;  %v1641_v12 = vadd.f32 1.0, %v10451_v2  ;;  %v1645_v37 = vadd.f32 1.0, %v1644_v61  ;;  %v1647_v59 = vand.u32 2147483647, %v10451_v2 }
 0x258   :  { %10450 = vst [vmem:[#allocation272_spill] sm:$0xff] %v6917_v26  ;;  %v6934_v26 = vpop.eup %4390  ;;  %4406 = vpow2.f32 %v1405_v0  ;;  %v1671_v44 = vmul.f32 -0.5, %v10459_v11  ;;  %vm6952_vm15 = vcmp.lt.f32.partialorder %v1602_v10, 0.0004427343  ;;  %v6957_v9 = vmul.f32 %v10447_v31, %v1636_v5  ;;  %v10469_v5 = vld [vmem:[#allocation108_spill] sm:$0xff] }
 0x259   :  { %10452 = vst [vmem:[#allocation100_spill] sm:$0xff] %v6923_v42  ;;  %v10456_v42 = vld [vmem:[#allocation103_spill] sm:$0xff]  ;;  %v6939_v23 = vpop.eup %4392  ;;  %4408 = vlog2.f32 %v1605_v48  ;;  %v1654_v61 = vadd.f32 1.0, %v1653_v16  ;;  %v1680_v49 = vmul.f32 -0.5, %v10465_v32  ;;  %vm6966_vm13 = vcmp.lt.f32.partialorder %v1611_v45, 0.0004427343 }
 0x25a   :  { %10453 = vst [vmem:[#allocation273_spill] sm:$0xff] %v6930_v28  ;;  %v1662_v8 = vmul.f32 -0.5, %v10456_v42  ;;  %v6942_v28 = vmul.f32 %v10444_v30, %v1627_v54  ;;  %v6945_v21 = vpop.eup %4394  ;;  %v1656_v30 = vand.u32 2147483647, %v10454_v18  ;;  %4410 = vlog2.f32 %v1614_v39 }
 0x25b   :  { %10455 = vst [vmem:[#allocation101_spill] sm:$0xff] %v6934_v26  ;;  %v1650_v26 = vadd.f32 1.0, %v10454_v18  ;;  %v6950_v13 = vpop.eup %4396  ;;  %v1659_v54 = vadd.f32 1.0, %v10456_v42  ;;  %v10467_v10 = vmov 0  ;;  %4412 = vlog2.f32 %v1623_v52  ;;  %v10473_v52 = vld [vmem:[#allocation114_spill] sm:$0xff] }
 0x25c   :  { %10457 = vst [vmem:[#allocation103_spill] sm:$0xff] %v6939_v23  ;;  %v10461_v23 = vmov 0  ;;  %v6960_v0 = vpop.eup %4398  ;;  %v10468_v10 = vsel %vm6966_vm13, 4294967295, %v10467_v10  ;;  %v6971_v48 = vmul.f32 %v10451_v2, %v1645_v37  ;;  %v1665_v31 = vand.u32 2147483647, %v10456_v42 }
 0x25d   :  { %10458 = vst [vmem:[#allocation274_spill] sm:$0xff] %v6945_v21  ;;  %v10462_v23 = vsel %vm6952_vm15, 4294967295, %v10461_v23  ;;  %v1663_v21 = vadd.f32 1.0, %v1662_v8  ;;  %v1689_v16 = vmul.f32 -0.5, %v10469_v5  ;;  %4414 = vlog2.f32 %v1632_v55 }
 0x25e   :  { %10460 = vst [vmem:[#allocation104_spill] sm:$0xff] %v6950_v13  ;;  %v6964_v13 = vpop.eup %4400  ;;  %v1668_v8 = vadd.f32 1.0, %v10459_v11  ;;  %4416 = vlog2.f32 %v1641_v12  ;;  %v6980_v1 = vmul.f32 %v10454_v18, %v1654_v61  ;;  %v1677_v2 = vadd.f32 1.0, %v10465_v32 }
 0x25f   :  { %10463 = vst [vmem:[#allocation275_spill] sm:$0xff] %v10462_v23  ;;  %v6975_v39 = vpop.eup %4402  ;;  %v1707_v37 = vmul.f32 -0.5, %v10473_v52  ;;  %4418 = vlog2.f32 %v1650_v26  ;;  %v1674_v55 = vand.u32 2147483647, %v10459_v11  ;;  %vm6990_vm14 = vcmp.lt.f32.partialorder %v1620_v20, 0.0004427343 }
 0x260   :  { %10464 = vst [vmem:[#allocation276_spill] sm:$0xff] %v6960_v0  ;;  %v1672_v0 = vadd.f32 1.0, %v1671_v44  ;;  %v4405_v45 = vpop.eup %4404  ;;  %v1681_v44 = vadd.f32 1.0, %v1680_v49  ;;  %vm6994_vm12 = vcmp.lt.f32.partialorder %v1629_v46, 0.0004427343  ;;  %v10478_v18 = vmov 0 }
 0x261   :  { %10466 = vst [vmem:[#allocation106_spill] sm:$0xff] %v6964_v13  ;;  %v1698_v13 = vmul.f32 -0.5, %v10471_v3  ;;  %v6984_v34 = vpop.eup %4406  ;;  %v10479_v18 = vsel %vm6994_vm12, 4294967295, %v10478_v18  ;;  %4420 = vlog2.f32 %v1659_v54  ;;  %v1683_v12 = vand.u32 2147483647, %v10465_v32 }
 0x262   :  { %10470 = vst [vmem:[#allocation108_spill] sm:$0xff] %v6975_v39  ;;  %v6987_v39 = vmul.f32 %v10456_v42, %v1663_v21  ;;  %v4409_v14 = vpop.eup %4408  ;;  %v1686_v26 = vadd.f32 1.0, %v10469_v5  ;;  %v1690_v61 = vadd.f32 1.0, %v1689_v16  ;;  %v7000_v42 = vmul.f32 0.6931472, %v4405_v45 }
 0x263   :  { %10472 = vst [vmem:[#allocation110_spill] sm:$0xff] %v6980_v1  ;;  %v4411_v21 = vpop.eup %4410  ;;  %vm7002_vm11 = vcmp.lt.f32.partialorder %v1638_v24, 0.0004427343  ;;  %4422 = vlog2.f32 %v1668_v8  ;;  %v7007_v20 = vmul.f32 %v10459_v11, %v1672_v0  ;;  %v1699_v46 = vadd.f32 1.0, %v1698_v13  ;;  %v10496_v0 = vld [vmem:[#allocation116_spill] sm:$0xff]  ;;  %v10746_v1 = vld [vmem:[#allocation189_spill] sm:$0xff] }
 0x264   :  { %10474 = vst [vmem:[#allocation114_spill] sm:$0xff] %v6984_v34  ;;  %v4413_v34 = vpop.eup %4412  ;;  %vm7009_vm10 = vcmp.lt.f32.partialorder %v1647_v59, 0.0004427343  ;;  %v10485_v54 = vmov 0  ;;  %vm7013_vm9 = vcmp.lt.f32.partialorder %v1656_v30, 0.0004427343  ;;  %4424 = vlog2.f32 %v1677_v2 }
 0x265   :  { %10475 = vst [vmem:[#allocation277_spill] sm:$0xff] %v6987_v39  ;;  %v10486_v54 = vsel %vm7009_vm10, 4294967295, %v10485_v54  ;;  %v1692_v24 = vand.u32 2147483647, %v10469_v5  ;;  %v1695_v16 = vadd.f32 1.0, %v10471_v3  ;;  %v1708_v45 = vadd.f32 1.0, %v1707_v37  ;;  %v4415_v8 = vpop.eup %4414 }
 0x266   :  { %10480 = vst [vmem:[#allocation278_spill] sm:$0xff] %v10479_v18  ;;  %v7019_v4 = vmul.f32 0.6931472, %v4409_v14  ;;  %vm7021_vm8 = vcmp.lt.f32.partialorder %v1665_v31, 0.0004427343  ;;  %v10489_v13 = vmov 0  ;;  %v7030_v59 = vmul.f32 %v10465_v32, %v1681_v44  ;;  %v4417_v25 = vpop.eup %4416 }
 0x267   :  { %10481 = vst [vmem:[#allocation279_spill] sm:$0xff] %v7000_v42  ;;  %v10490_v13 = vsel %vm7021_vm8, 4294967295, %v10489_v13  ;;  %vm7025_vm7 = vcmp.lt.f32.partialorder %v1674_v55, 0.0004427343  ;;  %v10492_v11 = vmov 0  ;;  %v1704_v30 = vadd.f32 1.0, %v10473_v52  ;;  %v4419_v6 = vpop.eup %4418 }
 0x268   :  { %10484 = vst [vmem:[#allocation280_spill] sm:$0xff] %v7007_v20  ;;  %v10493_v11 = vsel %vm7025_vm7, 4294967295, %v10492_v11  ;;  %v1716_v2 = vmul.f32 -0.5, %v10496_v0  ;;  %vm7034_vm5 = vcmp.lt.f32.partialorder %v1683_v12, 0.0004427343  ;;  %v10497_v37 = vmov 0  ;;  %v4421_v53 = vpop.eup %4420 }
 0x269   :  { %10491 = vst [vmem:[#allocation281_spill] sm:$0xff] %v10490_v13  ;;  %v10498_v37 = vsel %vm7034_vm5, 4294967295, %v10497_v37  ;;  %4426 = vlog2.f32 %v1686_v26  ;;  %v7039_v14 = vmul.f32 %v10469_v5, %v1690_v61  ;;  %v1701_v31 = vand.u32 2147483647, %v10471_v3  ;;  %v4423_v42 = vpop.eup %4422 }
 0x26a   :  { %10494 = vst [vmem:[#allocation282_spill] sm:$0xff] %v10493_v11  ;;  %v1713_v55 = vadd.f32 1.0, %v10496_v0  ;;  %v7048_v44 = vmul.f32 %v10471_v3, %v1699_v46  ;;  %v1710_v12 = vand.u32 2147483647, %v10473_v52  ;;  %v1722_v26 = vadd.f32 1.0, %v5905_v51 }
 0x26b   :  { %10495 = vst [vmem:[#allocation283_spill] sm:$0xff] %v7030_v59  ;;  %v7052_v5 = vmul.f32 0.6931472, %v4411_v21  ;;  %vm7054_vm4 = vcmp.lt.f32.partialorder %v1692_v24, 0.0004427343  ;;  %v10502_v61 = vmov 0  ;;  %4428 = vlog2.f32 %v1695_v16  ;;  %v4425_v24 = vpop.eup %4424 }
 0x26c   :  { %10499 = vst [vmem:[#allocation116_spill] sm:$0xff] %v10498_v37  ;;  %v10503_v61 = vsel %vm7054_vm4, 4294967295, %v10502_v61  ;;  %v7059_v56 = vmul.f32 %v10473_v52, %v1708_v45  ;;  %v1731_v32 = vadd.f32 1.0, %v5922_v27  ;;  %v7066_v46 = vmul.f32 0.6931472, %v4413_v34  ;;  %v10874_v62 = vld [vmem:[#allocation277_spill] sm:$0xff] }
 0x26d   :  { %10500 = vst [vmem:[#allocation284_spill] sm:$0xff] %v7039_v14  ;;  %4430 = vlog2.f32 %v1704_v30  ;;  %v1717_v21 = vadd.f32 1.0, %v1716_v2  ;;  %v7068_v7 = vmul.f32 0.6931472, %v4415_v8  ;;  %v1719_v16 = vand.u32 2147483647, %v10496_v0 }
 0x26e   :  { %10501 = vst [vmem:[#allocation285_spill] sm:$0xff] %v7048_v44  ;;  %4432 = vlog2.f32 %v1713_v55  ;;  %v1725_v52 = vmul.f32 -0.5, %v5905_v51  ;;  %v7072_v45 = vmul.f32 0.6931472, %v4417_v25  ;;  %v7074_v23 = vmul.f32 0.6931472, %v4419_v6 }
 0x26f   :  { %10504 = vst [vmem:[#allocation286_spill] sm:$0xff] %v10503_v61  ;;  %vm7076_vm15 = vcmp.lt.f32.partialorder %v1701_v31, 0.0004427343  ;;  %v10507_v58 = vmov 0  ;;  %vm7080_vm13 = vcmp.lt.f32.partialorder %v1710_v12, 0.0004427343  ;;  %4434 = vlog2.f32 %v1722_v26  ;;  %v4427_v30 = vpop.eup %4426 }
 0x270   :  { %10505 = vst [vmem:[#allocation287_spill] sm:$0xff] %v7059_v56  ;;  %v10508_v58 = vsel %vm7076_vm15, 4294967295, %v10507_v58  ;;  %v10510_v34 = vmov 0  ;;  %v1734_v8 = vmul.f32 -0.5, %v5922_v27  ;;  %v7085_v2 = vmul.f32 0.6931472, %v4421_v53 }
 0x271   :  { %10506 = vst [vmem:[#allocation288_spill] sm:$0xff] %v7074_v23  ;;  %v10511_v34 = vsel %vm7080_vm13, 4294967295, %v10510_v34  ;;  %v7087_v55 = vmul.f32 0.6931472, %v4423_v42  ;;  %v1728_v25 = vand.u32 2147483647, %v5905_v51  ;;  %4436 = vlog2.f32 %v1731_v32  ;;  %v4429_v26 = vpop.eup %4428 }
 0x272   :  { %10509 = vst [vmem:[#allocation289_spill] sm:$0xff] %v10508_v58  ;;  %v7098_v12 = vmul.f32 0.6931472, %v4425_v24  ;;  %v1740_v53 = vadd.f32 1.0, %v5950_v36  ;;  %v7106_v32 = vmul.f32 %v10496_v0, %v1717_v21  ;;  %vm7108_vm2 = vcmp.lt.f32.partialorder %v1719_v16, 0.0004427343 }
 0x273   :  { %10512 = vst [vmem:[#allocation290_spill] sm:$0xff] %v10511_v34  ;;  %v10517_v6 = vmov 0  ;;  %v1726_v3 = vadd.f32 1.0, %v1725_v52  ;;  %v4431_v18 = vpop.eup %4430  ;;  %v7120_v42 = vmul.f32 0.6931472, %v4427_v30  ;;  %v1735_v0 = vadd.f32 1.0, %v1734_v8 }
 0x274   :  { %10513 = vst [vmem:[#allocation291_spill] sm:$0xff] %v7085_v2  ;;  %v10518_v6 = vsel %vm7108_vm2, 4294967295, %v10517_v6  ;;  %v4433_v21 = vpop.eup %4432  ;;  %vm7130_vm10 = vcmp.lt.f32.partialorder %v1728_v25, 0.0004427343  ;;  %v10521_v24 = vmov 0  ;;  %v1749_v31 = vadd.f32 1.0, %v5965_v60 }
 0x275   :  { %10514 = vst [vmem:[#allocation292_spill] sm:$0xff] %v7087_v55  ;;  %v10522_v24 = vsel %vm7130_vm10, 4294967295, %v10521_v24  ;;  %v4435_v30 = vpop.eup %4434  ;;  %4438 = vlog2.f32 %v1740_v53  ;;  %v1743_v16 = vmul.f32 -0.5, %v5950_v36  ;;  %v10524_v2 = vld [vmem:[#allocation126_spill] sm:$0xff]  ;;  %v7141_v11 = vmul.f32 0.6931472, %v4429_v26 }
 0x276   :  { %10515 = vst [vmem:[#allocation293_spill] sm:$0xff] %v7098_v12  ;;  %v1758_v39 = vadd.f32 1.0, %v10524_v2  ;;  %v7143_v25 = vmul.f32 0.6931472, %v4431_v18  ;;  %v7146_v52 = vmul.f32 %v5905_v51, %v1726_v3  ;;  %v1737_v55 = vand.u32 2147483647, %v5922_v27 }
 0x277   :  { %10516 = vst [vmem:[#allocation294_spill] sm:$0xff] %v7106_v32  ;;  %v4437_v13 = vpop.eup %4436  ;;  %v7153_v53 = vmul.f32 0.6931472, %v4433_v21  ;;  %v7156_v12 = vmul.f32 %v5922_v27, %v1735_v0  ;;  %v1746_v26 = vand.u32 2147483647, %v5950_v36  ;;  %4440 = vlog2.f32 %v1749_v31  ;;  %v10530_v3 = vld [vmem:[#allocation130_spill] sm:$0xff] }
 0x278   :  { %10519 = vst [vmem:[#allocation295_spill] sm:$0xff] %v10518_v6  ;;  %v1752_v18 = vmul.f32 -0.5, %v5965_v60  ;;  %v1761_v51 = vmul.f32 -0.5, %v10524_v2  ;;  %v1767_v59 = vadd.f32 1.0, %v10530_v3  ;;  %v7162_v37 = vmul.f32 0.6931472, %v4435_v30 }
 0x279   :  { %10520 = vst [vmem:[#allocation296_spill] sm:$0xff] %v7120_v42  ;;  %v7164_v20 = vmul.f32 0.6931472, %v4437_v13  ;;  %v1744_v61 = vadd.f32 1.0, %v1743_v16  ;;  %4442 = vlog2.f32 %v1758_v39  ;;  %vm7174_vm4 = vcmp.lt.f32.partialorder %v1737_v55, 0.0004427343 }
 0x27a   :  { %10523 = vst [vmem:[#allocation297_spill] sm:$0xff] %v10522_v24  ;;  %v10533_v0 = vmov 0  ;;  %v10536_v21 = vld [vmem:[#allocation68_spill] sm:$0xff]  ;;  %vm7183_vm5 = vcmp.lt.f32.partialorder %v1746_v26, 0.0004427343  ;;  %v10537_v16 = vmov 0  ;;  %4444 = vlog2.f32 %v1767_v59 }
 0x27b   :  { %10525 = vst [vmem:[#allocation126_spill] sm:$0xff] %v7141_v11  ;;  %v10534_v0 = vsel %vm7174_vm4, 4294967295, %v10533_v0  ;;  %v1776_v30 = vadd.f32 1.0, %v10536_v21  ;;  %v4439_v13 = vpop.eup %4438  ;;  %v10538_v16 = vsel %vm7183_vm5, 4294967295, %v10537_v16  ;;  %v1755_v27 = vand.u32 2147483647, %v5965_v60 }
 0x27c   :  { %10526 = vst [vmem:[#allocation298_spill] sm:$0xff] %v7143_v25  ;;  %v1770_v31 = vmul.f32 -0.5, %v10530_v3  ;;  %v1753_v55 = vadd.f32 1.0, %v1752_v18  ;;  %v1762_v8 = vadd.f32 1.0, %v1761_v51  ;;  %v1764_v25 = vand.u32 2147483647, %v10524_v2 }
 0x27d   :  { %10527 = vst [vmem:[#allocation299_spill] sm:$0xff] %v7146_v52  ;;  %v7199_v39 = vmul.f32 %v5950_v36, %v1744_v61  ;;  %v4441_v18 = vpop.eup %4440  ;;  %v7202_v51 = vmul.f32 0.6931472, %v4439_v13  ;;  %v1773_v59 = vand.u32 2147483647, %v10530_v3  ;;  %4446 = vlog2.f32 %v1776_v30  ;;  %v10545_v36 = vld [vmem:[#allocation137_spill] sm:$0xff] }
 0x27e   :  { %10528 = vst [vmem:[#allocation300_spill] sm:$0xff] %v7153_v53  ;;  %v1785_v53 = vadd.f32 1.0, %v6023_v57  ;;  %v1779_v32 = vmul.f32 -0.5, %v10536_v21  ;;  %vm7206_vm10 = vcmp.lt.f32.partialorder %v1755_v27, 0.0004427343  ;;  %v10542_v56 = vmov 0 }
 0x27f   :  { %10529 = vst [vmem:[#allocation301_spill] sm:$0xff] %v7156_v12  ;;  %v4443_v24 = vpop.eup %4442  ;;  %v10543_v56 = vsel %vm7206_vm10, 4294967295, %v10542_v56  ;;  %v1782_v26 = vand.u32 2147483647, %v10536_v21  ;;  %v1794_v61 = vadd.f32 1.0, %v10545_v36  ;;  %v7216_v13 = vmul.f32 %v10524_v2, %v1762_v8  ;;  %v10696_v23 = vld [vmem:[#allocation142_spill] sm:$0xff] }
 0x280   :  { %10531 = vst [vmem:[#allocation130_spill] sm:$0xff] %v7162_v37  ;;  %vm7218_vm4 = vcmp.lt.f32.partialorder %v1764_v25, 0.0004427343  ;;  %v10548_v30 = vmov 0  ;;  %v1788_v27 = vmul.f32 -0.5, %v6023_v57  ;;  %4448 = vlog2.f32 %v1785_v53  ;;  %v10552_v37 = vld [vmem:[#allocation140_spill] sm:$0xff]  ;;  %v4445_v6 = vpop.eup %4444 }
 0x281   :  { %10532 = vst [vmem:[#allocation302_spill] sm:$0xff] %v7164_v20  ;;  %v7213_v20 = vmul.f32 %v5965_v60, %v1753_v55  ;;  %v10549_v30 = vsel %vm7218_vm4, 4294967295, %v10548_v30  ;;  %v7223_v12 = vmul.f32 0.6931472, %v4441_v18  ;;  %v1803_v52 = vadd.f32 1.0, %v10552_v37  ;;  %v10561_v18 = vld [vmem:[#allocation144_spill] sm:$0xff] }
 0x282   :  { %10535 = vst [vmem:[#allocation303_spill] sm:$0xff] %v10534_v0  ;;  %v1771_v0 = vadd.f32 1.0, %v1770_v31  ;;  %v1797_v31 = vmul.f32 -0.5, %v10545_v36  ;;  %v7231_v2 = vmul.f32 0.6931472, %v4443_v24  ;;  %v10554_v8 = vmov 0 }
 0x283   :  { %10539 = vst [vmem:[#allocation68_spill] sm:$0xff] %v10538_v16  ;;  %vm7233_vm2 = vcmp.lt.f32.partialorder %v1773_v59, 0.0004427343  ;;  %v1780_v25 = vadd.f32 1.0, %v1779_v32  ;;  %vm7240_vm13 = vcmp.lt.f32.partialorder %v1782_v26, 0.0004427343  ;;  %4450 = vlog2.f32 %v1794_v61  ;;  %v4447_v11 = vpop.eup %4446 }
 0x284   :  { %10540 = vst [vmem:[#allocation304_spill] sm:$0xff] %v7199_v39  ;;  %v10555_v8 = vsel %vm7233_vm2, 4294967295, %v10554_v8  ;;  %v7238_v55 = vmul.f32 %v10530_v3, %v1771_v0  ;;  %v10558_v53 = vmov 0  ;;  %v1812_v34 = vadd.f32 1.0, %v10561_v18 }
 0x285   :  { %10541 = vst [vmem:[#allocation305_spill] sm:$0xff] %v7202_v51  ;;  %v10559_v53 = vsel %vm7240_vm13, 4294967295, %v10558_v53  ;;  %v1789_v16 = vadd.f32 1.0, %v1788_v27  ;;  %v1791_v24 = vand.u32 2147483647, %v6023_v57  ;;  %v1806_v60 = vmul.f32 -0.5, %v10552_v37 }
 0x286   :  { %10544 = vst [vmem:[#allocation306_spill] sm:$0xff] %v10543_v56  ;;  %v1800_v59 = vand.u32 2147483647, %v10545_v36  ;;  %v7252_v3 = vmul.f32 0.6931472, %v4445_v6  ;;  %v1798_v0 = vadd.f32 1.0, %v1797_v31  ;;  %4452 = vlog2.f32 %v1803_v52  ;;  %v4449_v44 = vpop.eup %4448 }
 0x287   :  { %10546 = vst [vmem:[#allocation137_spill] sm:$0xff] %v7213_v20  ;;  %v7259_v61 = vmul.f32 %v10536_v21, %v1780_v25  ;;  %v1809_v27 = vand.u32 2147483647, %v10552_v37  ;;  %v10564_v51 = vld [vmem:[#allocation146_spill] sm:$0xff]  ;;  %v7263_v58 = vmul.f32 0.6931472, %v4447_v11  ;;  %4454 = vlog2.f32 %v1812_v34 }
 0x288   :  { %10547 = vst [vmem:[#allocation307_spill] sm:$0xff] %v7216_v13  ;;  %v1821_v39 = vadd.f32 1.0, %v10564_v51  ;;  %v1815_v6 = vmul.f32 -0.5, %v10561_v18  ;;  %v10566_v31 = vld [vmem:[#allocation149_spill] sm:$0xff]  ;;  %v7268_v32 = vmul.f32 %v6023_v57, %v1789_v16  ;;  %vm7270_vm10 = vcmp.lt.f32.partialorder %v1791_v24, 0.0004427343 }
 0x289   :  { %10550 = vst [vmem:[#allocation308_spill] sm:$0xff] %v10549_v30  ;;  %v1830_v52 = vadd.f32 1.0, %v10566_v31  ;;  %v10568_v26 = vmov 0  ;;  %vm7274_vm4 = vcmp.lt.f32.partialorder %v1800_v59, 0.0004427343  ;;  %v10571_v21 = vmov 0 }
 0x28a   :  { %10551 = vst [vmem:[#allocation309_spill] sm:$0xff] %v7223_v12  ;;  %v10569_v26 = vsel %vm7270_vm10, 4294967295, %v10568_v26  ;;  %v10572_v21 = vsel %vm7274_vm4, 4294967295, %v10571_v21  ;;  %v1807_v25 = vadd.f32 1.0, %v1806_v60  ;;  %v7283_v34 = vmul.f32 %v10545_v36, %v1798_v0  ;;  %v10575_v16 = vld [vmem:[#allocation150_spill] sm:$0xff] }
 0x28b   :  { %10553 = vst [vmem:[#allocation140_spill] sm:$0xff] %v7231_v2  ;;  %v4451_v2 = vpop.eup %4450  ;;  %v1824_v57 = vmul.f32 -0.5, %v10564_v51  ;;  %v1839_v24 = vadd.f32 1.0, %v10575_v16  ;;  %v7287_v13 = vmul.f32 0.6931472, %v4449_v44  ;;  %v10577_v59 = vmov 0 }
 0x28c   :  { %10556 = vst [vmem:[#allocation310_spill] sm:$0xff] %v10555_v8  ;;  %vm7289_vm5 = vcmp.lt.f32.partialorder %v1809_v27, 0.0004427343  ;;  %v1818_v60 = vand.u32 2147483647, %v10561_v18  ;;  %4456 = vlog2.f32 %v1821_v39  ;;  %v4453_v30 = vpop.eup %4452  ;;  %v1816_v0 = vadd.f32 1.0, %v1815_v6 }
 0x28d   :  { %10557 = vst [vmem:[#allocation311_spill] sm:$0xff] %v7238_v55  ;;  %v10578_v59 = vsel %vm7289_vm5, 4294967295, %v10577_v59  ;;  %4458 = vlog2.f32 %v1830_v52  ;;  %v1833_v11 = vmul.f32 -0.5, %v10566_v31  ;;  %v7302_v44 = vmul.f32 %v10552_v37, %v1807_v25  ;;  %v10582_v55 = vld [vmem:[#allocation154_spill] sm:$0xff]  ;;  %v4455_v39 = vpop.eup %4454  ;;  %v10587_v52 = vld [vmem:[#allocation157_spill] sm:$0xff] }
 0x28e   :  { %10560 = vst [vmem:[#allocation312_spill] sm:$0xff] %v10559_v53  ;;  %v1827_v27 = vand.u32 2147483647, %v10564_v51  ;;  %v1848_v8 = vadd.f32 1.0, %v10582_v55  ;;  %v1825_v12 = vadd.f32 1.0, %v1824_v57  ;;  %4460 = vlog2.f32 %v1839_v24 }
 0x28f   :  { %10562 = vst [vmem:[#allocation144_spill] sm:$0xff] %v7252_v3  ;;  %v7299_v3 = vmul.f32 0.6931472, %v4451_v2  ;;  %v1836_v20 = vand.u32 2147483647, %v10566_v31  ;;  %v1842_v36 = vmul.f32 -0.5, %v10575_v16  ;;  %v7320_v57 = vmul.f32 %v10561_v18, %v1816_v0 }
 0x290   :  { %10563 = vst [vmem:[#allocation313_spill] sm:$0xff] %v7259_v61  ;;  %v7312_v6 = vmul.f32 0.6931472, %v4453_v30  ;;  %vm7314_vm13 = vcmp.lt.f32.partialorder %v1818_v60, 0.0004427343  ;;  %v10584_v37 = vmov 0  ;;  %4462 = vlog2.f32 %v1848_v8 }
 0x291   :  { %10565 = vst [vmem:[#allocation146_spill] sm:$0xff] %v7263_v58  ;;  %v10585_v37 = vsel %vm7314_vm13, 4294967295, %v10584_v37  ;;  %v1857_v25 = vadd.f32 1.0, %v10587_v52  ;;  %v1834_v58 = vadd.f32 1.0, %v1833_v11  ;;  %v1845_v24 = vand.u32 2147483647, %v10575_v16 }
 0x292   :  { %10567 = vst [vmem:[#allocation149_spill] sm:$0xff] %v7268_v32  ;;  %v1851_v61 = vmul.f32 -0.5, %v10582_v55  ;;  %v4457_v53 = vpop.eup %4456  ;;  %v7328_v60 = vmul.f32 0.6931472, %v4455_v39  ;;  %vm7330_vm10 = vcmp.lt.f32.partialorder %v1827_v27, 0.0004427343  ;;  %v7335_v11 = vmul.f32 %v10564_v51, %v1825_v12 }
 0x293   :  { %10570 = vst [vmem:[#allocation314_spill] sm:$0xff] %v10569_v26  ;;  %v10590_v2 = vmov 0  ;;  %v4459_v18 = vpop.eup %4458  ;;  %vm7337_vm2 = vcmp.lt.f32.partialorder %v1836_v20, 0.0004427343  ;;  %v10594_v0 = vmov 0  ;;  %4464 = vlog2.f32 %v1857_v25  ;;  %v10597_v8 = vld [vmem:[#allocation158_spill] sm:$0xff] }
 0x294   :  { %10573 = vst [vmem:[#allocation315_spill] sm:$0xff] %v10572_v21  ;;  %v10591_v2 = vsel %vm7330_vm10, 4294967295, %v10590_v2  ;;  %v10595_v0 = vsel %vm7337_vm2, 4294967295, %v10594_v0  ;;  %v1854_v32 = vand.u32 2147483647, %v10582_v55  ;;  %v1860_v39 = vmul.f32 -0.5, %v10587_v52 }
 0x295   :  { %10574 = vst [vmem:[#allocation316_spill] sm:$0xff] %v7283_v34  ;;  %v1866_v30 = vadd.f32 1.0, %v10597_v8  ;;  %v7348_v12 = vmul.f32 0.6931472, %v4457_v53  ;;  %v7351_v20 = vmul.f32 %v10566_v31, %v1834_v58  ;;  %vm7353_vm4 = vcmp.lt.f32.partialorder %v1845_v24, 0.0004427343 }
 0x296   :  { %10576 = vst [vmem:[#allocation150_spill] sm:$0xff] %v7287_v13  ;;  %v1843_v13 = vadd.f32 1.0, %v1842_v36  ;;  %v10600_v51 = vmov 0  ;;  %v1852_v36 = vadd.f32 1.0, %v1851_v61  ;;  %v7361_v27 = vmul.f32 0.6931472, %v4459_v18 }
 0x297   :  { %10579 = vst [vmem:[#allocation317_spill] sm:$0xff] %v10578_v59  ;;  %v10601_v51 = vsel %vm7353_vm4, 4294967295, %v10600_v51  ;;  %vm7368_vm5 = vcmp.lt.f32.partialorder %v1854_v32, 0.0004427343  ;;  %v10606_v58 = vmov 0  ;;  %v1861_v18 = vadd.f32 1.0, %v1860_v39 }
 0x298   :  { %10580 = vst [vmem:[#allocation318_spill] sm:$0xff] %v7299_v3  ;;  %v4461_v3 = vpop.eup %4460  ;;  %v7366_v59 = vmul.f32 %v10575_v16, %v1843_v13  ;;  %v10607_v58 = vsel %vm7368_vm5, 4294967295, %v10606_v58  ;;  %v1863_v61 = vand.u32 2147483647, %v10587_v52  ;;  %4466 = vlog2.f32 %v1866_v30  ;;  %v10611_v16 = vld [vmem:[#allocation165_spill] sm:$0xff] }
 0x299   :  { %10581 = vst [vmem:[#allocation319_spill] sm:$0xff] %v7302_v44  ;;  %v10604_v44 = vld [vmem:[#allocation162_spill] sm:$0xff]  ;;  %v4463_v24 = vpop.eup %4462  ;;  %v1872_v25 = vand.u32 2147483647, %v10597_v8  ;;  %v7382_v32 = vmul.f32 %v10582_v55, %v1852_v36  ;;  %v10614_v13 = vmov 0  ;;  %v1887_v36 = vmul.f32 -0.5, %v10611_v16 }
 0x29a   :  { %10583 = vst [vmem:[#allocation154_spill] sm:$0xff] %v7312_v6  ;;  %v1869_v6 = vmul.f32 -0.5, %v10597_v8  ;;  %v1875_v53 = vadd.f32 1.0, %v10604_v44  ;;  %v1878_v31 = vmul.f32 -0.5, %v10604_v44  ;;  %v4465_v21 = vpop.eup %4464  ;;  %v1881_v39 = vand.u32 2147483647, %v10604_v44 }
 0x29b   :  { %10586 = vst [vmem:[#allocation320_spill] sm:$0xff] %v10585_v37  ;;  %v7374_v37 = vmul.f32 0.6931472, %v4461_v3  ;;  %v7391_v26 = vmul.f32 0.6931472, %v4463_v24  ;;  %v7403_v3 = vmul.f32 %v10587_v52, %v1861_v18 }
 0x29c   :  { %10588 = vst [vmem:[#allocation157_spill] sm:$0xff] %v7320_v57  ;;  %v10612_v57 = vlaneseq  ;;  %v1870_v30 = vadd.f32 1.0, %v1869_v6  ;;  %4468 = vlog2.f32 %v1875_v53  ;;  %vm7393_vm10 = vcmp.lt.f32.partialorder %v1863_v61, 0.0004427343  ;;  %v10621_v53 = vld [vmem:[#allocation166_spill] sm:$0xff] }
 0x29d   :  { %10589 = vst [vmem:[#allocation321_spill] sm:$0xff] %v7328_v60  ;;  %v1884_v60 = vadd.f32 1.0, %v10611_v16  ;;  %v10615_v13 = vsel %vm7393_vm10, 4294967295, %v10614_v13  ;;  %v1879_v55 = vadd.f32 1.0, %v1878_v31  ;;  %vm7405_vm2 = vcmp.lt.f32.partialorder %v1872_v25, 0.0004427343 }
 0x29e   :  { %10592 = vst [vmem:[#allocation322_spill] sm:$0xff] %v10591_v2  ;;  %v2689_v34 = vshrl.u32 %v10612_v57, 7  ;;  %v10618_v6 = vmov 0  ;;  %v1893_v61 = vadd.f32 1.0, %v10621_v53  ;;  %v7410_v24 = vmul.f32 0.6931472, %v4465_v21 }
 0x29f   :  { %10593 = vst [vmem:[#allocation323_spill] sm:$0xff] %v7335_v11  ;;  %v10619_v6 = vsel %vm7405_vm2, 4294967295, %v10618_v6  ;;  %4470 = vlog2.f32 %v1884_v60  ;;  %v1896_v31 = vmul.f32 -0.5, %v10621_v53  ;;  %vm7416_vm4 = vcmp.lt.f32.partialorder %v1881_v39, 0.0004427343  ;;  %v10627_v25 = vld [vmem:[#allocation75_spill] sm:$0xff] }
 0x2a0   :  { %10596 = vst [vmem:[#allocation324_spill] sm:$0xff] %v10595_v0  ;;  %vm2946_vm13 = vcmp.lt.s32.totalorder %v2689_v34, 5  ;;  %v10624_v57 = vmov 0  ;;  %v1890_v52 = vand.u32 2147483647, %v10611_v16  ;;  %v1902_v18 = vadd.f32 1.0, %v10627_v25 }
 0x2a1   :  { %10598 = vst [vmem:[#allocation158_spill] sm:$0xff] %v7348_v12  ;;  %v10625_v57 = vsel %vm7416_vm4, 4294967295, %v10624_v57  ;;  %v7427_v60 = vmul.f32 %v10604_v44, %v1879_v55  ;;  %4472 = vlog2.f32 %v1893_v61  ;;  %v1905_v39 = vmul.f32 -0.5, %v10627_v25  ;;  %v10631_v44 = vld [vmem:[#allocation173_spill] sm:$0xff] }
 0x2a2   :  { %10599 = vst [vmem:[#allocation325_spill] sm:$0xff] %v7351_v20  ;;  %v7414_v20 = vmul.f32 %v10597_v8, %v1870_v30  ;;  %v1899_v8 = vand.u32 2147483647, %v10621_v53  ;;  %vm3202_vm15 = vcmp.lt.s32.totalorder %v2689_v34, 4  ;;  %v1897_v21 = vadd.f32 1.0, %v1896_v31 }
 0x2a3   :  { %10602 = vst [vmem:[#allocation326_spill] sm:$0xff] %v10601_v51  ;;  %v1911_v55 = vadd.f32 1.0, %v10631_v44  ;;  %vm7439_vm5 = vcmp.lt.f32.partialorder %v1890_v52, 0.0004427343  ;;  %4474 = vlog2.f32 %v1902_v18  ;;  %v1908_v61 = vand.u32 2147483647, %v10627_v25 }
 0x2a4   :  { %10603 = vst [vmem:[#allocation327_spill] sm:$0xff] %v7361_v27  ;;  %v4467_v27 = vpop.eup %4466  ;;  %vm7450_vm10 = vcmp.lt.f32.partialorder %v1899_v8, 0.0004427343  ;;  %v10637_v31 = vmov 0  ;;  %v1906_v52 = vadd.f32 1.0, %v1905_v39  ;;  %v10640_v18 = vld [vmem:[#allocation174_spill] sm:$0xff] }
 0x2a5   :  { %10605 = vst [vmem:[#allocation162_spill] sm:$0xff] %v7366_v59  ;;  %v4469_v30 = vpop.eup %4468  ;;  %v10629_v59 = vmov 0.0   ;;  %v10638_v31 = vsel %vm7450_vm10, 4294967295, %v10637_v31  ;;  %v1917_v0 = vand.u32 2147483647, %v10631_v44  ;;  %4476 = vlog2.f32 %v1911_v55  ;;  %v10646_v8 = vld [vmem:[#allocation118_spill] sm:$0xff] }
 0x2a6   :  { %10608 = vst [vmem:[#allocation328_spill] sm:$0xff] %v10607_v58  ;;  %v3074_v51 = vsel %vm2946_vm13, 0.016666668, %v10629_v59  ;;  %v7436_v58 = vmul.f32 0.6931472, %v4467_v27  ;;  %v1914_v59 = vmul.f32 -0.5, %v10631_v44 }
 0x2a7   :  { %10609 = vst [vmem:[#allocation329_spill] sm:$0xff] %v7374_v37  ;;  %v1888_v37 = vadd.f32 1.0, %v1887_v36  ;;  %v10632_v36 = vmov 0  ;;  %v3330_v27 = vsel %vm3202_vm15, 0.010416667, %v3074_v51  ;;  %vm3458_vm13 = vcmp.lt.s32.totalorder %v2689_v34, 3 }
 0x2a8   :  { %10610 = vst [vmem:[#allocation330_spill] sm:$0xff] %v7382_v32  ;;  %v10633_v36 = vsel %vm7439_vm5, 4294967295, %v10632_v36  ;;  %v7445_v32 = vmul.f32 0.6931472, %v4469_v30  ;;  %v1915_v56 = vadd.f32 1.0, %v1914_v59  ;;  %v1923_v42 = vmul.f32 -0.5, %v10640_v18 }
 0x2a9   :  { %10613 = vst [vmem:[#allocation165_spill] sm:$0xff] %v7391_v26  ;;  %v4471_v26 = vpop.eup %4470  ;;  %vm7477_vm15 = vcmp.lt.f32.partialorder %v1908_v61, 0.0004427343  ;;  %v1926_v55 = vand.u32 2147483647, %v10640_v18  ;;  %v10656_v59 = vld [vmem:[#allocation121_spill] sm:$0xff] }
 0x2aa   :  { %10616 = vst [vmem:[#allocation331_spill] sm:$0xff] %v10615_v13  ;;  %v7448_v13 = vmul.f32 %v10611_v16, %v1888_v37  ;;  %v10642_v37 = vld [vmem:[#allocation12_spill] sm:$0xff]  ;;  %v10645_v16 = vld [vmem:[#allocation87_spill] sm:$0xff]  ;;  %v4473_v11 = vpop.eup %4472  ;;  %v7470_v2 = vmul.f32 0.6931472, %v4471_v26  ;;  %v10662_v61 = vld [vmem:[#allocation178_spill] sm:$0xff] }
 0x2ab   :  { %10617 = vst [vmem:[#allocation332_spill] sm:$0xff] %v7403_v3  ;;  %v7461_v3 = vmul.f32 %v10621_v53, %v1897_v21  ;;  %v10643_v34 = vmax.f32 %v10642_v37, 0.0  ;;  %v10647_v39 = vsel %vm5869_vm0, %v10645_v16, %v10646_v8  ;;  %v10649_v21 = vmov 0  ;;  %v10652_v37 = vld [vmem:[#allocation13_spill] sm:$0xff]  ;;  %v10655_v26 = vld [vmem:[#allocation99_spill] sm:$0xff] }
 0x2ac   :  { %10620 = vst [vmem:[#allocation333_spill] sm:$0xff] %v10619_v6  ;;  %v3586_v6 = vsel %vm3458_vm13, 0.010416667, %v3330_v27  ;;  %v10650_v21 = vsel %vm7477_vm15, 4294967295, %v10649_v21  ;;  %v10657_v16 = vsel %vm5909_vm1, %v10655_v26, %v10656_v59  ;;  %v4475_v27 = vpop.eup %4474  ;;  %vm7492_vm0 = vcmp.lt.f32.partialorder %v1917_v0, 0.0004427343 }
 0x2ad   :  { %10622 = vst [vmem:[#allocation166_spill] sm:$0xff] %v7410_v24  ;;  %v1920_v24 = vadd.f32 1.0, %v10640_v18  ;;  %v2560_v12 = vadd.f32 %v10647_v39, %v10643_v34  ;;  %v10653_v34 = vmax.f32 %v10652_v37, 0.0  ;;  %v7490_v39 = vmul.f32 %v10627_v25, %v1906_v52  ;;  %v10664_v37 = vld [vmem:[#allocation14_spill] sm:$0xff]  ;;  %v10668_v26 = vld [vmem:[#allocation125_spill] sm:$0xff] }
 0x2ae   :  { %10623 = vst [vmem:[#allocation334_spill] sm:$0xff] %v7414_v20  ;;  %v10659_v53 = vmov 0  ;;  %v1929_v30 = vadd.f32 1.0, %v10662_v61  ;;  %v3715_v25 = vmul.f32 %v3586_v6, %v6857_v22  ;;  %v7515_v51 = vmul.f32 0.6931472, %v4475_v27  ;;  %v10675_v22 = vld [vmem:[#allocation15_spill] sm:$0xff] }
 0x2af   :  { %10626 = vst [vmem:[#allocation335_spill] sm:$0xff] %v10625_v57  ;;  %v2561_v8 = vadd.f32 %v10657_v16, %v10653_v34  ;;  %v10660_v53 = vsel %vm7492_vm0, 4294967295, %v10659_v53  ;;  %4478 = vlog2.f32 %v1920_v24  ;;  %v10667_v57 = vld [vmem:[#allocation113_spill] sm:$0xff]  ;;  %v3716_v52 = vmul.f32 0.0, %v2560_v12  ;;  %v10684_v6 = vld [vmem:[#allocation138_spill] sm:$0xff] }
 0x2b0   :  { %10628 = vst [vmem:[#allocation75_spill] sm:$0xff] %v7427_v60  ;;  %v10665_v60 = vmax.f32 %v10664_v37, 0.0  ;;  %v10669_v34 = vsel %vm5983_vm6, %v10667_v57, %v10668_v26  ;;  %v7512_v24 = vmul.f32 %v10631_v44, %v1915_v56  ;;  %v1932_v16 = vmul.f32 -0.5, %v10662_v61  ;;  %v4477_v37 = vpop.eup %4476  ;;  %v10679_v26 = vld [vmem:[#allocation135_spill] sm:$0xff]  ;;  %v10681_v44 = vld [vmem:[#allocation181_spill] sm:$0xff] }
 0x2b1   :  { %10630 = vst [vmem:[#allocation336_spill] sm:$0xff] %v7436_v58  ;;  %vm7517_vm1 = vcmp.lt.f32.partialorder %v1926_v55, 0.0004427343  ;;  %v10672_v57 = vmov 0  ;;  %v10676_v12 = vmax.f32 %v10675_v22, 0.0  ;;  %v3717_v56 = vmul.f32 0.0, %v2561_v8 }
 0x2b2   :  { %10634 = vst [vmem:[#allocation173_spill] sm:$0xff] %v10633_v36  ;;  %v2562_v59 = vadd.f32 %v10669_v34, %v10665_v60  ;;  %v10673_v57 = vsel %vm7517_vm1, 4294967295, %v10672_v57  ;;  %v10678_v60 = vld [vmem:[#allocation122_spill] sm:$0xff]  ;;  %4480 = vlog2.f32 %v1929_v30  ;;  %v1941_v27 = vmul.f32 -0.5, %v10681_v44  ;;  %v10682_v22 = vld [vmem:[#allocation16_spill] sm:$0xff] }
 0x2b3   :  { %10635 = vst [vmem:[#allocation337_spill] sm:$0xff] %v7445_v32  ;;  %v7497_v32 = vmul.f32 0.6931472, %v4473_v11  ;;  %v1924_v11 = vadd.f32 1.0, %v1923_v42  ;;  %v10680_v34 = vsel %vm6001_vm3, %v10678_v60, %v10679_v26  ;;  %v1935_v42 = vand.u32 2147483647, %v10662_v61 }
 0x2b4   :  { %10636 = vst [vmem:[#allocation338_spill] sm:$0xff] %v7448_v13  ;;  %v2563_v0 = vadd.f32 %v10680_v34, %v10676_v12  ;;  %v10683_v13 = vmax.f32 %v10682_v22, 0.0  ;;  %vm10685_vm6 = vnez %v10684_v6  ;;  %v10686_v36 = vld [vmem:[#allocation134_spill] sm:$0xff]  ;;  %v10687_v60 = vld [vmem:[#allocation139_spill] sm:$0xff]  ;;  %v3718_v30 = vmul.f32 0.0, %v2562_v59  ;;  %v10691_v55 = vld [vmem:[#allocation184_spill] sm:$0xff] }
 0x2b5   :  { %10639 = vst [vmem:[#allocation339_spill] sm:$0xff] %v10638_v31  ;;  %v10688_v12 = vsel %vm10685_vm6, %v10686_v36, %v10687_v60  ;;  %v3843_v26 = vadd.f32 %v3716_v52, %v3715_v25  ;;  %v4479_v34 = vpop.eup %4478  ;;  %v7542_v58 = vmul.f32 0.6931472, %v4477_v37  ;;  %v7545_v20 = vmul.f32 %v10640_v18, %v1924_v11  ;;  %v10692_v22 = vld [vmem:[#allocation17_spill] sm:$0xff]  ;;  %v10697_v36 = vld [vmem:[#allocation71_spill] sm:$0xff]  ;;  %v10699_v60 = vld [vmem:[#allocation18_spill] sm:$0xff] }
 0x2b6   :  { %10641 = vst [vmem:[#allocation174_spill] sm:$0xff] %v7461_v3  ;;  %v2564_v8 = vadd.f32 %v10688_v12, %v10683_v13  ;;  %v1933_v14 = vadd.f32 1.0, %v1932_v16  ;;  %v1944_v31 = vand.u32 2147483647, %v10681_v44  ;;  %v10693_v3 = vmax.f32 %v10692_v22, 0.0  ;;  %v10694_v6 = vld [vmem:[#allocation145_spill] sm:$0xff] }
 0x2b7   :  { %10648 = vst [vmem:[#allocation12_spill] sm:$0xff] %v7470_v2  ;;  %v1938_v2 = vadd.f32 1.0, %v10681_v44  ;;  %vm10695_vm3 = vnez %v10694_v6  ;;  %v3719_v25 = vmul.f32 0.0, %v2563_v0  ;;  %v3844_v52 = vadd.f32 %v3843_v26, %v3717_v56  ;;  %v10701_v22 = vld [vmem:[#allocation152_spill] sm:$0xff]  ;;  %v10703_v6 = vld [vmem:[#allocation153_spill] sm:$0xff] }
 0x2b8   :  { %10651 = vst [vmem:[#allocation112_spill] sm:$0xff] %v10650_v21  ;;  %v10698_v13 = vsel %vm10695_vm3, %v10696_v23, %v10697_v36  ;;  %v1942_v11 = vadd.f32 1.0, %v1941_v27  ;;  %v1950_v16 = vmul.f32 -0.5, %v10691_v55  ;;  %v1953_v37 = vand.u32 2147483647, %v10691_v55  ;;  %v10704_v23 = vld [vmem:[#allocation72_spill] sm:$0xff]  ;;  %v4481_v36 = vpop.eup %4480 }
 0x2b9   :  { %10658 = vst [vmem:[#allocation87_spill] sm:$0xff] %v7490_v39  ;;  %v2565_v59 = vadd.f32 %v10698_v13, %v10693_v3  ;;  %4482 = vlog2.f32 %v1938_v2  ;;  %v10700_v12 = vmax.f32 %v10699_v60, 0.0  ;;  %vm10702_vm13 = vnez %v10701_v22  ;;  %v10720_v2 = vld [vmem:[#allocation187_spill] sm:$0xff]  ;;  %v10741_v39 = vld [vmem:[#allocation22_spill] sm:$0xff] }
 0x2ba   :  { %10661 = vst [vmem:[#allocation118_spill] sm:$0xff] %v10660_v53  ;;  %v10705_v3 = vsel %vm10702_vm13, %v10703_v6, %v10704_v23  ;;  %v3720_v56 = vmul.f32 0.0, %v2564_v8  ;;  %v3845_v26 = vadd.f32 %v3844_v52, %v3718_v30  ;;  %v7573_v27 = vmul.f32 0.6931472, %v4479_v34  ;;  %v10712_v8 = vld [vmem:[#allocation19_spill] sm:$0xff]  ;;  %v10714_v52 = vld [vmem:[#allocation160_spill] sm:$0xff] }
 0x2bb   :  { %10663 = vst [vmem:[#allocation13_spill] sm:$0xff] %v7497_v32  ;;  %v1947_v32 = vadd.f32 1.0, %v10691_v55  ;;  %v2566_v0 = vadd.f32 %v10705_v3, %v10700_v12  ;;  %v7576_v13 = vmul.f32 %v10662_v61, %v1933_v14  ;;  %vm7578_vm6 = vcmp.lt.f32.partialorder %v1935_v42, 0.0004427343  ;;  %v10716_v12 = vld [vmem:[#allocation161_spill] sm:$0xff]  ;;  %v10743_v21 = vld [vmem:[#allocation183_spill] sm:$0xff] }
 0x2bc   :  { %10670 = vst [vmem:[#allocation119_spill] sm:$0xff] %v7512_v24  ;;  %v10707_v60 = vmov 0  ;;  %vm7582_vm3 = vcmp.lt.f32.partialorder %v1944_v31, 0.0004427343  ;;  %v10709_v22 = vmov 0  ;;  %v10713_v30 = vmax.f32 %v10712_v8, 0.0 }
 0x2bd   :  { %10671 = vst [vmem:[#allocation99_spill] sm:$0xff] %v7515_v51  ;;  %v10708_v60 = vsel %vm7578_vm6, 4294967295, %v10707_v60  ;;  %v10710_v22 = vsel %vm7582_vm3, 4294967295, %v10709_v22  ;;  %4484 = vlog2.f32 %v1947_v32  ;;  %vm10715_vm13 = vnez %v10714_v52  ;;  %v10717_v6 = vld [vmem:[#allocation73_spill] sm:$0xff]  ;;  %v10724_v8 = vld [vmem:[#allocation20_spill] sm:$0xff] }
 0x2be   :  { %10674 = vst [vmem:[#allocation121_spill] sm:$0xff] %v10673_v57  ;;  %v10718_v34 = vsel %vm10715_vm13, %v10716_v12, %v10717_v6  ;;  %v3721_v3 = vmul.f32 0.0, %v2565_v59  ;;  %v3846_v14 = vadd.f32 %v3845_v26, %v3719_v25  ;;  %v7594_v61 = vmul.f32 %v10681_v44, %v1942_v11  ;;  %v10728_v12 = vld [vmem:[#allocation169_spill] sm:$0xff] }
 0x2bf   :  { %10689 = vst [vmem:[#allocation178_spill] sm:$0xff] %v7542_v58  ;;  %v2567_v23 = vadd.f32 %v10718_v34, %v10713_v30  ;;  %v1951_v42 = vadd.f32 1.0, %v1950_v16  ;;  %v1956_v31 = vadd.f32 1.0, %v10720_v2  ;;  %v1959_v18 = vmul.f32 -0.5, %v10720_v2  ;;  %v10726_v58 = vld [vmem:[#allocation168_spill] sm:$0xff]  ;;  %v4483_v11 = vpop.eup %4482  ;;  %v10731_v34 = vld [vmem:[#allocation191_spill] sm:$0xff] }
 0x2c0   :  { %10690 = vst [vmem:[#allocation14_spill] sm:$0xff] %v7545_v20  ;;  %vm7598_vm0 = vcmp.lt.f32.partialorder %v1953_v37, 0.0004427343  ;;  %v10721_v32 = vmov 0  ;;  %v10725_v52 = vmax.f32 %v10724_v8, 0.0  ;;  %vm10727_vm15 = vnez %v10726_v58  ;;  %v10729_v30 = vld [vmem:[#allocation172_spill] sm:$0xff] }
 0x2c1   :  { %10706 = vst [vmem:[#allocation129_spill] sm:$0xff] %v7573_v27  ;;  %v10722_v32 = vsel %vm7598_vm0, 4294967295, %v10721_v32  ;;  %v10730_v59 = vsel %vm10727_vm15, %v10728_v12, %v10729_v30  ;;  %v3722_v26 = vmul.f32 0.0, %v2566_v0  ;;  %v3847_v44 = vadd.f32 %v3846_v14, %v3720_v56  ;;  %v10732_v24 = vld [vmem:[#allocation21_spill] sm:$0xff]  ;;  %v10734_v12 = vld [vmem:[#allocation176_spill] sm:$0xff] }
 0x2c2   :  { %10711 = vst [vmem:[#allocation113_spill] sm:$0xff] %v10710_v22  ;;  %v2568_v25 = vadd.f32 %v10730_v59, %v10725_v52  ;;  %v7613_v37 = vmul.f32 0.6931472, %v4481_v36  ;;  %v1962_v6 = vand.u32 2147483647, %v10720_v2  ;;  %v1968_v8 = vmul.f32 -0.5, %v10731_v34 }
 0x2c3   :  { %10719 = vst [vmem:[#allocation125_spill] sm:$0xff] %v7594_v61  ;;  %v1965_v58 = vadd.f32 1.0, %v10731_v34  ;;  %v10733_v53 = vmax.f32 %v10732_v24, 0.0  ;;  %vm10735_vm15 = vnez %v10734_v12  ;;  %v10736_v0 = vld [vmem:[#allocation177_spill] sm:$0xff]  ;;  %v10737_v56 = vld [vmem:[#allocation76_spill] sm:$0xff]  ;;  %v3723_v30 = vmul.f32 0.0, %v2567_v23  ;;  %v4485_v57 = vpop.eup %4484 }
 0x2c4   :  { %10723 = vst [vmem:[#allocation15_spill] sm:$0xff] %v10722_v32  ;;  %v10738_v14 = vsel %vm10735_vm15, %v10736_v0, %v10737_v56  ;;  %v3848_v59 = vadd.f32 %v3847_v44, %v3721_v3  ;;  %v7626_v16 = vmul.f32 %v10691_v55, %v1951_v42  ;;  %4486 = vlog2.f32 %v1956_v31  ;;  %v10740_v27 = vld [vmem:[#allocation192_spill] sm:$0xff]  ;;  %v10745_v12 = vld [vmem:[#allocation185_spill] sm:$0xff]  ;;  %v10789_v22 = vld [vmem:[#allocation27_spill] sm:$0xff] }
 0x2c5   :  { %v2569_v52 = vadd.f32 %v10738_v14, %v10733_v53  ;;  %v1960_v36 = vadd.f32 1.0, %v1959_v18  ;;  %v1974_v20 = vadd.f32 1.0, %v10740_v27  ;;  %v1971_v51 = vand.u32 2147483647, %v10731_v34  ;;  %v10753_v44 = vld [vmem:[#allocation201_spill] sm:$0xff] }
 0x2c6   :  { %10739 = vst [vmem:[#allocation132_spill] sm:$0xff] %v7626_v16  ;;  %v10742_v24 = vmax.f32 %v10741_v39, 0.0  ;;  %vm10744_vm13 = vnez %v10743_v21  ;;  %v3724_v23 = vmul.f32 0.0, %v2568_v25  ;;  %v3849_v3 = vadd.f32 %v3848_v59, %v3722_v26  ;;  %v10751_v21 = vld [vmem:[#allocation23_spill] sm:$0xff]  ;;  %v10755_v25 = vld [vmem:[#allocation194_spill] sm:$0xff] }
 0x2c7   :  { %v10747_v0 = vsel %vm10744_vm13, %v10745_v12, %v10746_v1  ;;  %v7641_v18 = vmul.f32 0.6931472, %v4483_v11  ;;  %v1969_v42 = vadd.f32 1.0, %v1968_v8  ;;  %v1977_v31 = vmul.f32 -0.5, %v10740_v27  ;;  %v10756_v26 = vld [vmem:[#allocation198_spill] sm:$0xff]  ;;  %v10761_v12 = vld [vmem:[#allocation195_spill] sm:$0xff] }
 0x2c8   :  { %v2570_v53 = vadd.f32 %v10747_v0, %v10742_v24  ;;  %vm7644_vm15 = vcmp.lt.f32.partialorder %v1962_v6, 0.0004427343  ;;  %4488 = vlog2.f32 %v1965_v58  ;;  %v10752_v1 = vmax.f32 %v10751_v21, 0.0  ;;  %v10762_v21 = vld [vmem:[#allocation24_spill] sm:$0xff] }
 0x2c9   :  { %10748 = vst [vmem:[#allocation122_spill] sm:$0xff] %v7641_v18  ;;  %vm10754_vm13 = vnez %v10753_v44  ;;  %v3725_v59 = vmul.f32 0.0, %v2569_v52  ;;  %v3850_v24 = vadd.f32 %v3849_v3, %v3723_v30  ;;  %v7655_v11 = vmul.f32 0.6931472, %v4485_v57  ;;  %v10766_v52 = vld [vmem:[#allocation210_spill] sm:$0xff]  ;;  %v10767_v30 = vld [vmem:[#allocation209_spill] sm:$0xff] }
 0x2ca   :  { %v10757_v56 = vsel %vm10754_vm13, %v10755_v25, %v10756_v26  ;;  %v7658_v8 = vmul.f32 %v10720_v2, %v1960_v36  ;;  %4490 = vlog2.f32 %v1974_v20  ;;  %v1980_v6 = vand.u32 2147483647, %v10740_v27  ;;  %v10764_v25 = vld [vmem:[#allocation211_spill] sm:$0xff]  ;;  %v4487_v36 = vpop.eup %4486  ;;  %v10779_v18 = vld [vmem:[#allocation26_spill] sm:$0xff] }
 0x2cb   :  { %v2571_v14 = vadd.f32 %v10757_v56, %v10752_v1  ;;  %10758 = vst [vmem:[#allocation135_spill] sm:$0xff] %v7655_v11  ;;  %vm7661_vm6 = vcmp.lt.f32.partialorder %v1971_v51, 0.0004427343  ;;  %v10759_v58 = vmov 0  ;;  %v1983_v0 = vadd.f32 1.0, %v10761_v12 }
 0x2cc   :  { %v10760_v58 = vsel %vm7661_vm6, 4294967295, %v10759_v58  ;;  %v10763_v44 = vmax.f32 %v10762_v21, 0.0  ;;  %vm10765_vm13 = vnez %v10764_v25  ;;  %v3726_v1 = vmul.f32 0.0, %v2570_v53  ;;  %v10769_v25 = vld [vmem:[#allocation25_spill] sm:$0xff]  ;;  %v10773_v53 = vld [vmem:[#allocation218_spill] sm:$0xff] }
 0x2cd   :  { %v10768_v57 = vsel %vm10765_vm13, %v10766_v52, %v10767_v30  ;;  %v3851_v2 = vadd.f32 %v3850_v24, %v3724_v23  ;;  %v7678_v51 = vmul.f32 %v10731_v34, %v1969_v42  ;;  %v1978_v26 = vadd.f32 1.0, %v1977_v31  ;;  %v10771_v52 = vld [vmem:[#allocation219_spill] sm:$0xff]  ;;  %v10774_v23 = vld [vmem:[#allocation217_spill] sm:$0xff]  ;;  %v10778_v31 = vld [vmem:[#allocation196_spill] sm:$0xff] }
 0x2ce   :  { %v2572_v3 = vadd.f32 %v10768_v57, %v10763_v44  ;;  %v1986_v56 = vmul.f32 -0.5, %v10761_v12  ;;  %v1989_v21 = vand.u32 2147483647, %v10761_v12  ;;  %v10770_v55 = vmax.f32 %v10769_v25, 0.0 }
 0x2cf   :  { %vm10772_vm13 = vnez %v10771_v52  ;;  %v3727_v30 = vmul.f32 0.0, %v2571_v14  ;;  %v3852_v57 = vadd.f32 %v3851_v2, %v3725_v59  ;;  %vm7693_vm3 = vcmp.lt.f32.partialorder %v1980_v6, 0.0004427343  ;;  %v4489_v52 = vpop.eup %4488  ;;  %v10783_v14 = vld [vmem:[#allocation84_spill] sm:$0xff]  ;;  %v10784_v59 = vld [vmem:[#allocation231_spill] sm:$0xff] }
 0x2d0   :  { %v10775_v24 = vsel %vm10772_vm13, %v10773_v53, %v10774_v23  ;;  %v10776_v42 = vmov 0  ;;  %v1992_v20 = vadd.f32 1.0, %v10778_v31  ;;  %v1995_v25 = vmul.f32 -0.5, %v10778_v31  ;;  %v4491_v6 = vpop.eup %4490 }
 0x2d1   :  { %v2573_v44 = vadd.f32 %v10775_v24, %v10770_v55  ;;  %v10777_v42 = vsel %vm7693_vm3, 4294967295, %v10776_v42  ;;  %4492 = vlog2.f32 %v1983_v0  ;;  %v10780_v53 = vmax.f32 %v10779_v18, 0.0  ;;  %v10781_v55 = vld [vmem:[#allocation229_spill] sm:$0xff]  ;;  %v10788_v18 = vld [vmem:[#allocation79_spill] sm:$0xff] }
 0x2d2   :  { %vm10782_vm13 = vnez %v10781_v55  ;;  %v3728_v24 = vmul.f32 0.0, %v2572_v3  ;;  %v3853_v34 = vadd.f32 %v3852_v57, %v3726_v1  ;;  %v7706_v11 = vmul.f32 0.6931472, %v4487_v36 }
 0x2d3   :  { %v10785_v2 = vsel %vm10782_vm13, %v10783_v14, %v10784_v59  ;;  %v7709_v16 = vmul.f32 %v10740_v27, %v1978_v26  ;;  %v1987_v32 = vadd.f32 1.0, %v1986_v56  ;;  %v1998_v61 = vand.u32 2147483647, %v10778_v31 }
 0x2d4   :  { %v2574_v23 = vadd.f32 %v10785_v2, %v10780_v53  ;;  %vm7712_vm0 = vcmp.lt.f32.partialorder %v1989_v21, 0.0004427343  ;;  %v10786_v0 = vmov 0  ;;  %v2001_v55 = vadd.f32 1.0, %v10788_v18  ;;  %v10793_v53 = vld [vmem:[#allocation28_spill] sm:$0xff] }
 0x2d5   :  { %v10787_v0 = vsel %vm7712_vm0, 4294967295, %v10786_v0  ;;  %v10790_v14 = vmax.f32 %v10789_v22, 0.0  ;;  %vm10791_vm13 = vnez %v10357_v33  ;;  %v3729_v36 = vmul.f32 0.0, %v2573_v44  ;;  %v10796_v33 = vld [vmem:[#allocation243_spill] sm:$0xff] }
 0x2d6   :  { %v10792_v3 = vsel %vm10791_vm13, %v6653_v15, %v6663_v17  ;;  %v3854_v27 = vadd.f32 %v3853_v34, %v3727_v30  ;;  %v7724_v26 = vmul.f32 0.6931472, %v4489_v52  ;;  %4494 = vlog2.f32 %v1992_v20  ;;  %v10798_v34 = vld [vmem:[#allocation202_spill] sm:$0xff]  ;;  %v10825_v20 = vld [vmem:[#allocation271_spill] sm:$0xff] }
 0x2d7   :  { %v2575_v1 = vadd.f32 %v10792_v3, %v10790_v14  ;;  %v1996_v56 = vadd.f32 1.0, %v1995_v25  ;;  %v2004_v21 = vmul.f32 -0.5, %v10788_v18  ;;  %v7727_v57 = vmul.f32 0.6931472, %v4491_v6  ;;  %v4493_v52 = vpop.eup %4492 }
 0x2d8   :  { %v10794_v59 = vmax.f32 %v10793_v53, 0.0  ;;  %vm10795_vm1 = vnez %v10373_v47  ;;  %v3730_v17 = vmul.f32 0.0, %v2574_v23  ;;  %v3855_v15 = vadd.f32 %v3854_v27, %v3728_v24 }
 0x2d9   :  { %v10797_v22 = vsel %vm10795_vm1, %v6691_v38, %v10796_v33  ;;  %v7741_v44 = vmul.f32 %v10761_v12, %v1987_v32  ;;  %v2007_v30 = vand.u32 2147483647, %v10788_v18  ;;  %v2010_v25 = vadd.f32 1.0, %v10798_v34  ;;  %v10801_v38 = vld [vmem:[#allocation29_spill] sm:$0xff] }
 0x2da   :  { %v2576_v2 = vadd.f32 %v10797_v22, %v10794_v59  ;;  %vm7745_vm13 = vcmp.lt.f32.partialorder %v1998_v61, 0.0004427343  ;;  %4496 = vlog2.f32 %v2001_v55  ;;  %v10802_v23 = vmax.f32 %v10801_v38, 0.0  ;;  %v10812_v22 = vld [vmem:[#allocation203_spill] sm:$0xff] }
 0x2db   :  { %vm10803_vm1 = vnez %v10383_v50  ;;  %v3731_v32 = vmul.f32 0.0, %v2575_v1  ;;  %v3856_v12 = vadd.f32 %v3855_v15, %v3729_v36  ;;  %v7761_v61 = vmul.f32 %v10778_v31, %v1996_v56  ;;  %v10808_v1 = vld [vmem:[#allocation264_spill] sm:$0xff]  ;;  %v10813_v38 = vld [vmem:[#allocation31_spill] sm:$0xff] }
 0x2dc   :  { %v10804_v24 = vsel %vm10803_vm1, %v6728_v41, %v6741_v29  ;;  %v2005_v3 = vadd.f32 1.0, %v2004_v21  ;;  %v2013_v55 = vmul.f32 -0.5, %v10798_v34  ;;  %v10805_v41 = vld [vmem:[#allocation30_spill] sm:$0xff]  ;;  %vm10807_vm1 = vnez %v10421_v63  ;;  %v4495_v31 = vpop.eup %4494 }
 0x2dd   :  { %v2577_v6 = vadd.f32 %v10804_v24, %v10802_v23  ;;  %v10806_v29 = vmax.f32 %v10805_v41, 0.0  ;;  %v10809_v36 = vsel %vm10807_vm1, %v6769_v43, %v10808_v1  ;;  %v3732_v53 = vmul.f32 0.0, %v2576_v2  ;;  %v10815_v23 = vld [vmem:[#allocation268_spill] sm:$0xff]  ;;  %v10817_v43 = vld [vmem:[#allocation266_spill] sm:$0xff]  ;;  %v10818_v24 = vld [vmem:[#allocation265_spill] sm:$0xff] }
 0x2de   :  { %v3857_v59 = vadd.f32 %v3856_v12, %v3730_v17  ;;  %v7775_v56 = vmul.f32 0.6931472, %v4493_v52  ;;  %vm7777_vm6 = vcmp.lt.f32.partialorder %v2007_v30, 0.0004427343  ;;  %4498 = vlog2.f32 %v2010_v25 }
 0x2df   :  { %v2578_v27 = vadd.f32 %v10809_v36, %v10806_v29  ;;  %v2016_v33 = vand.u32 2147483647, %v10798_v34  ;;  %v2019_v15 = vadd.f32 1.0, %v10812_v22  ;;  %v10814_v63 = vmax.f32 %v10813_v38, 0.0  ;;  %v10820_v36 = vld [vmem:[#allocation206_spill] sm:$0xff]  ;;  %v10821_v38 = vld [vmem:[#allocation32_spill] sm:$0xff] }
 0x2e0   :  { %vm10816_vm3 = vnez %v10815_v23  ;;  %v3733_v12 = vmul.f32 0.0, %v2577_v6  ;;  %v3858_v52 = vadd.f32 %v3857_v59, %v3731_v32  ;;  %v7791_v30 = vmul.f32 %v10788_v18, %v2005_v3  ;;  %v4497_v1 = vpop.eup %4496  ;;  %v10823_v23 = vld [vmem:[#allocation275_spill] sm:$0xff] }
 0x2e1   :  { %v10819_v2 = vsel %vm10816_vm3, %v10817_v43, %v10818_v24  ;;  %v2014_v41 = vadd.f32 1.0, %v2013_v55  ;;  %v2022_v25 = vmul.f32 -0.5, %v10812_v22  ;;  %v2025_v29 = vand.u32 2147483647, %v10812_v22  ;;  %v10826_v43 = vld [vmem:[#allocation279_spill] sm:$0xff]  ;;  %v11231_v55 = vld [vmem:[#allocation102_spill] sm:$0xff] }
 0x2e2   :  { %v2579_v17 = vadd.f32 %v10819_v2, %v10814_v63  ;;  %v2028_v50 = vadd.f32 1.0, %v10820_v36  ;;  %v10822_v14 = vmax.f32 %v10821_v38, 0.0  ;;  %vm10824_vm1 = vnez %v10823_v23  ;;  %v10830_v2 = vld [vmem:[#allocation33_spill] sm:$0xff] }
 0x2e3   :  { %v10827_v63 = vsel %vm10824_vm1, %v10825_v20, %v10826_v43  ;;  %v3734_v32 = vmul.f32 0.0, %v2578_v27  ;;  %v3859_v59 = vadd.f32 %v3858_v52, %v3732_v53  ;;  %v7807_v3 = vmul.f32 0.6931472, %v4495_v31 }
 0x2e4   :  { %v2580_v6 = vadd.f32 %v10827_v63, %v10822_v14  ;;  %vm7809_vm3 = vcmp.lt.f32.partialorder %v2016_v33, 0.0004427343  ;;  %v2031_v24 = vmul.f32 -0.5, %v10820_v36  ;;  %4500 = vlog2.f32 %v2019_v15  ;;  %v4499_v52 = vpop.eup %4498 }
 0x2e5   :  { %v10831_v38 = vmax.f32 %v10830_v2, 0.0  ;;  %vm10832_vm1 = vnez %v10468_v10  ;;  %v3735_v27 = vmul.f32 0.0, %v2579_v17  ;;  %v3860_v53 = vadd.f32 %v3859_v59, %v3733_v12  ;;  %v10837_v10 = vld [vmem:[#allocation34_spill] sm:$0xff]  ;;  %v10842_v2 = vld [vmem:[#allocation35_spill] sm:$0xff] }
 0x2e6   :  { %v10833_v20 = vsel %vm10832_vm1, %v6920_v35, %v7019_v4  ;;  %v7821_v31 = vmul.f32 0.6931472, %v4497_v1  ;;  %v7824_v33 = vmul.f32 %v10798_v34, %v2014_v41  ;;  %v2023_v23 = vadd.f32 1.0, %v2022_v25  ;;  %v10840_v25 = vld [vmem:[#allocation208_spill] sm:$0xff] }
 0x2e7   :  { %v2581_v14 = vadd.f32 %v10833_v20, %v10831_v38  ;;  %v2034_v43 = vand.u32 2147483647, %v10820_v36  ;;  %vm7827_vm0 = vcmp.lt.f32.partialorder %v2025_v29, 0.0004427343  ;;  %v10834_v15 = vmov 0  ;;  %v10841_v1 = vld [vmem:[#allocation212_spill] sm:$0xff] }
 0x2e8   :  { %v10835_v15 = vsel %vm7827_vm0, 4294967295, %v10834_v15  ;;  %4502 = vlog2.f32 %v2028_v50  ;;  %v10838_v63 = vmax.f32 %v10837_v10, 0.0  ;;  %v10839_v4 = vsel %vm6990_vm14, %v6926_v19, %v7052_v5 }
 0x2e9   :  { %10836 = vst [vmem:[#allocation181_spill] sm:$0xff] %v10835_v15  ;;  %v3736_v17 = vmul.f32 0.0, %v2580_v6  ;;  %v3861_v12 = vadd.f32 %v3860_v53, %v3734_v32  ;;  %v2032_v41 = vadd.f32 1.0, %v2031_v24  ;;  %v2037_v29 = vadd.f32 1.0, %v10840_v25  ;;  %v10875_v24 = vld [vmem:[#allocation291_spill] sm:$0xff] }
 0x2ea   :  { %v2582_v35 = vadd.f32 %v10839_v4, %v10838_v63  ;;  %v2040_v50 = vmul.f32 -0.5, %v10840_v25  ;;  %v2046_v59 = vadd.f32 1.0, %v10841_v1  ;;  %v10843_v40 = vmax.f32 %v10842_v2, 0.0  ;;  %v4501_v63 = vpop.eup %4500  ;;  %v11026_v15 = vld [vmem:[#allocation315_spill] sm:$0xff] }
 0x2eb   :  { %v10845_v19 = vsel %vm6994_vm12, %v6942_v28, %v7066_v46  ;;  %v3737_v6 = vmul.f32 0.0, %v2581_v14  ;;  %v3862_v32 = vadd.f32 %v3861_v12, %v3735_v27  ;;  %v7856_v20 = vmul.f32 0.6931472, %v4499_v52  ;;  %v10850_v46 = vld [vmem:[#allocation36_spill] sm:$0xff] }
 0x2ec   :  { %v2583_v5 = vadd.f32 %v10845_v19, %v10843_v40  ;;  %v7859_v53 = vmul.f32 %v10812_v22, %v2023_v23  ;;  %vm7861_vm14 = vcmp.lt.f32.partialorder %v2034_v43, 0.0004427343  ;;  %v10847_v10 = vmov 0  ;;  %v10854_v40 = vld [vmem:[#allocation37_spill] sm:$0xff]  ;;  %v10865_v19 = vld [vmem:[#allocation110_spill] sm:$0xff] }
 0x2ed   :  { %v10848_v10 = vsel %vm7861_vm14, 4294967295, %v10847_v10  ;;  %v2043_v28 = vand.u32 2147483647, %v10840_v25  ;;  %v10851_v14 = vmax.f32 %v10850_v46, 0.0  ;;  %v10852_v27 = vsel %vm7002_vm11, %v6957_v9, %v7068_v7 }
 0x2ee   :  { %10846 = vst [vmem:[#allocation16_spill] sm:$0xff] %v7859_v53  ;;  %v3738_v52 = vmul.f32 0.0, %v2582_v35  ;;  %v3863_v12 = vadd.f32 %v3862_v32, %v3736_v17  ;;  %v7874_v22 = vmul.f32 %v10820_v36, %v2032_v41  ;;  %4504 = vlog2.f32 %v2037_v29  ;;  %v4503_v2 = vpop.eup %4502  ;;  %v10859_v29 = vld [vmem:[#allocation214_spill] sm:$0xff] }
 0x2ef   :  { %10849 = vst [vmem:[#allocation138_spill] sm:$0xff] %v10848_v10  ;;  %v2584_v4 = vadd.f32 %v10852_v27, %v10851_v14  ;;  %v2041_v23 = vadd.f32 1.0, %v2040_v50  ;;  %v2049_v43 = vmul.f32 -0.5, %v10841_v1  ;;  %4506 = vlog2.f32 %v2046_v59 }
 0x2f0   :  { %10853 = vst [vmem:[#allocation134_spill] sm:$0xff] %v7874_v22  ;;  %v10855_v38 = vmax.f32 %v10854_v40, 0.0  ;;  %vm10856_vm12 = vnez %v10486_v54  ;;  %v3739_v9 = vmul.f32 0.0, %v2583_v5  ;;  %v3864_v35 = vadd.f32 %v3863_v12, %v3737_v6  ;;  %v10863_v54 = vld [vmem:[#allocation38_spill] sm:$0xff]  ;;  %v10866_v5 = vld [vmem:[#allocation288_spill] sm:$0xff]  ;;  %v10870_v40 = vld [vmem:[#allocation215_spill] sm:$0xff] }
 0x2f1   :  { %v10857_v49 = vsel %vm10856_vm12, %v6971_v48, %v7072_v45  ;;  %v7888_v17 = vmul.f32 0.6931472, %v4501_v63  ;;  %v2052_v41 = vand.u32 2147483647, %v10841_v1  ;;  %v2055_v50 = vadd.f32 1.0, %v10859_v29  ;;  %v10906_v22 = vld [vmem:[#allocation296_spill] sm:$0xff] }
 0x2f2   :  { %v2585_v7 = vadd.f32 %v10857_v49, %v10855_v38  ;;  %vm7892_vm11 = vcmp.lt.f32.partialorder %v2043_v28, 0.0004427343  ;;  %v10860_v59 = vmov 0  ;;  %v2058_v48 = vmul.f32 -0.5, %v10859_v29  ;;  %v10871_v49 = vld [vmem:[#allocation39_spill] sm:$0xff] }
 0x2f3   :  { %10858 = vst [vmem:[#allocation139_spill] sm:$0xff] %v7888_v17  ;;  %v10861_v59 = vsel %vm7892_vm11, 4294967295, %v10860_v59  ;;  %v10864_v45 = vmax.f32 %v10863_v54, 0.0  ;;  %v10867_v6 = vsel %vm7013_vm9, %v10865_v19, %v10866_v5  ;;  %v3740_v63 = vmul.f32 0.0, %v2584_v4  ;;  %v10880_v5 = vld [vmem:[#allocation40_spill] sm:$0xff] }
 0x2f4   :  { %10862 = vst [vmem:[#allocation184_spill] sm:$0xff] %v10861_v59  ;;  %v3865_v46 = vadd.f32 %v3864_v35, %v3738_v52  ;;  %v7904_v14 = vmul.f32 0.6931472, %v4503_v2  ;;  %v7907_v27 = vmul.f32 %v10840_v25, %v2041_v23  ;;  %v2050_v28 = vadd.f32 1.0, %v2049_v43  ;;  %v4505_v2 = vpop.eup %4504 }
 0x2f5   :  { %v2586_v32 = vadd.f32 %v10867_v6, %v10864_v45  ;;  %v2061_v12 = vand.u32 2147483647, %v10859_v29  ;;  %v2064_v38 = vadd.f32 1.0, %v10870_v40  ;;  %v10872_v54 = vmax.f32 %v10871_v49, 0.0  ;;  %v4507_v35 = vpop.eup %4506 }
 0x2f6   :  { %10868 = vst [vmem:[#allocation17_spill] sm:$0xff] %v7904_v14  ;;  %v10876_v19 = vsel %vm7021_vm8, %v10874_v62, %v10875_v24  ;;  %v3741_v4 = vmul.f32 0.0, %v2585_v7  ;;  %v3866_v52 = vadd.f32 %v3865_v46, %v3739_v9  ;;  %vm7922_vm9 = vcmp.lt.f32.partialorder %v2052_v41, 0.0004427343  ;;  %v10883_v7 = vld [vmem:[#allocation280_spill] sm:$0xff]  ;;  %v10903_v14 = vld [vmem:[#allocation286_spill] sm:$0xff] }
 0x2f7   :  { %10869 = vst [vmem:[#allocation145_spill] sm:$0xff] %v7907_v27  ;;  %v2587_v45 = vadd.f32 %v10876_v19, %v10872_v54  ;;  %v10877_v23 = vmov 0  ;;  %4508 = vlog2.f32 %v2055_v50  ;;  %v2067_v43 = vmul.f32 -0.5, %v10870_v40  ;;  %v10884_v9 = vld [vmem:[#allocation292_spill] sm:$0xff] }
 0x2f8   :  { %v10878_v23 = vsel %vm7922_vm9, 4294967295, %v10877_v23  ;;  %v2059_v36 = vadd.f32 1.0, %v2058_v48  ;;  %v10881_v24 = vmax.f32 %v10880_v5, 0.0  ;;  %v10885_v46 = vsel %vm7025_vm7, %v10883_v7, %v10884_v9  ;;  %v10887_v19 = vld [vmem:[#allocation220_spill] sm:$0xff]  ;;  %v10896_v7 = vld [vmem:[#allocation293_spill] sm:$0xff] }
 0x2f9   :  { %10879 = vst [vmem:[#allocation142_spill] sm:$0xff] %v10878_v23  ;;  %v3742_v54 = vmul.f32 0.0, %v2586_v32  ;;  %v3867_v62 = vadd.f32 %v3866_v52, %v3740_v63  ;;  %v7939_v50 = vmul.f32 %v10841_v1, %v2050_v28  ;;  %v2070_v48 = vand.u32 2147483647, %v10870_v40  ;;  %v10893_v63 = vld [vmem:[#allocation116_spill] sm:$0xff]  ;;  %v10895_v52 = vld [vmem:[#allocation283_spill] sm:$0xff] }
 0x2fa   :  { %v2588_v49 = vadd.f32 %v10885_v46, %v10881_v24  ;;  %v2073_v5 = vadd.f32 1.0, %v10887_v19  ;;  %vm7943_vm8 = vcmp.lt.f32.partialorder %v2061_v12, 0.0004427343  ;;  %v10888_v6 = vmov 0  ;;  %v10891_v24 = vld [vmem:[#allocation41_spill] sm:$0xff]  ;;  %v10931_v23 = vld [vmem:[#allocation295_spill] sm:$0xff] }
 0x2fb   :  { %10886 = vst [vmem:[#allocation71_spill] sm:$0xff] %v7939_v50  ;;  %v10889_v6 = vsel %vm7943_vm8, 4294967295, %v10888_v6  ;;  %4510 = vlog2.f32 %v2064_v38  ;;  %v10892_v32 = vmax.f32 %v10891_v24, 0.0  ;;  %vm10894_vm7 = vnez %v10893_v63  ;;  %v10901_v38 = vld [vmem:[#allocation42_spill] sm:$0xff]  ;;  %v10905_v63 = vld [vmem:[#allocation284_spill] sm:$0xff] }
 0x2fc   :  { %10890 = vst [vmem:[#allocation18_spill] sm:$0xff] %v10889_v6  ;;  %v10897_v9 = vsel %vm10894_vm7, %v10895_v52, %v10896_v7  ;;  %v3743_v41 = vmul.f32 0.0, %v2587_v45  ;;  %v3868_v1 = vadd.f32 %v3867_v62, %v3741_v4  ;;  %v7954_v28 = vmul.f32 0.6931472, %v4505_v2  ;;  %v10912_v7 = vld [vmem:[#allocation43_spill] sm:$0xff]  ;;  %v10978_v6 = vld [vmem:[#allocation309_spill] sm:$0xff] }
 0x2fd   :  { %v2589_v46 = vadd.f32 %v10897_v9, %v10892_v32  ;;  %v7956_v25 = vmul.f32 0.6931472, %v4507_v35  ;;  %v2068_v34 = vadd.f32 1.0, %v2067_v43  ;;  %v2076_v12 = vmul.f32 -0.5, %v10887_v19  ;;  %v4509_v2 = vpop.eup %4508  ;;  %v10914_v9 = vld [vmem:[#allocation289_spill] sm:$0xff] }
 0x2fe   :  { %10898 = vst [vmem:[#allocation152_spill] sm:$0xff] %v7954_v28  ;;  %v7960_v18 = vmul.f32 %v10859_v29, %v2059_v36  ;;  %v10902_v24 = vmax.f32 %v10901_v38, 0.0  ;;  %vm10904_vm1 = vnez %v10903_v14  ;;  %v3744_v45 = vmul.f32 0.0, %v2588_v49  ;;  %v10911_v29 = vld [vmem:[#allocation222_spill] sm:$0xff] }
 0x2ff   :  { %10899 = vst [vmem:[#allocation153_spill] sm:$0xff] %v7956_v25  ;;  %v10907_v52 = vsel %vm10904_vm1, %v10905_v63, %v10906_v22  ;;  %v3869_v4 = vadd.f32 %v3868_v1, %v3742_v54  ;;  %vm7969_vm12 = vcmp.lt.f32.partialorder %v2070_v48, 0.0004427343  ;;  %v10908_v35 = vmov 0  ;;  %v10916_v22 = vld [vmem:[#allocation285_spill] sm:$0xff]  ;;  %v10917_v38 = vld [vmem:[#allocation126_spill] sm:$0xff] }
 0x300   :  { %10900 = vst [vmem:[#allocation72_spill] sm:$0xff] %v7960_v18  ;;  %v2590_v32 = vadd.f32 %v10907_v52, %v10902_v24  ;;  %v10909_v35 = vsel %vm7969_vm12, 4294967295, %v10908_v35  ;;  %4512 = vlog2.f32 %v2073_v5  ;;  %v2079_v43 = vand.u32 2147483647, %v10887_v19  ;;  %v10928_v24 = vld [vmem:[#allocation83_spill] sm:$0xff]  ;;  %v10929_v25 = vld [vmem:[#allocation45_spill] sm:$0xff] }
 0x301   :  { %10910 = vst [vmem:[#allocation19_spill] sm:$0xff] %v10909_v35  ;;  %v2082_v36 = vadd.f32 1.0, %v10911_v29  ;;  %v2085_v62 = vmul.f32 -0.5, %v10911_v29  ;;  %v10913_v14 = vmax.f32 %v10912_v7, 0.0  ;;  %vm10915_vm7 = vnez %v10914_v9  ;;  %v4511_v7 = vpop.eup %4510  ;;  %v10972_v35 = vld [vmem:[#allocation230_spill] sm:$0xff] }
 0x302   :  { %v10918_v49 = vsel %vm10915_vm7, %v10916_v22, %v10917_v38  ;;  %v3745_v1 = vmul.f32 0.0, %v2589_v46  ;;  %v3870_v48 = vadd.f32 %v3869_v4, %v3743_v41  ;;  %v7992_v63 = vmul.f32 %v10870_v40, %v2068_v34  ;;  %v10922_v41 = vld [vmem:[#allocation290_spill] sm:$0xff]  ;;  %v10924_v4 = vld [vmem:[#allocation287_spill] sm:$0xff] }
 0x303   :  { %v2591_v54 = vadd.f32 %v10918_v49, %v10913_v14  ;;  %v2077_v52 = vadd.f32 1.0, %v2076_v12  ;;  %v2088_v9 = vand.u32 2147483647, %v10911_v29  ;;  %v10920_v14 = vld [vmem:[#allocation44_spill] sm:$0xff]  ;;  %vm10923_vm1 = vnez %v10922_v41  ;;  %v10925_v22 = vld [vmem:[#allocation298_spill] sm:$0xff] }
 0x304   :  { %10919 = vst [vmem:[#allocation160_spill] sm:$0xff] %v7992_v63  ;;  %v10921_v46 = vmax.f32 %v10920_v14, 0.0  ;;  %v10926_v38 = vsel %vm10923_vm1, %v10924_v4, %v10925_v22  ;;  %v3746_v5 = vmul.f32 0.0, %v2590_v32  ;;  %v3871_v28 = vadd.f32 %v3870_v48, %v3744_v45  ;;  %v10933_v14 = vld [vmem:[#allocation294_spill] sm:$0xff]  ;;  %v10934_v41 = vld [vmem:[#allocation300_spill] sm:$0xff] }
 0x305   :  { %v8002_v27 = vmul.f32 0.6931472, %v4509_v2  ;;  %4514 = vlog2.f32 %v2082_v36  ;;  %v2091_v34 = vadd.f32 1.0, %v10928_v24  ;;  %v2094_v40 = vmul.f32 -0.5, %v10928_v24  ;;  %v10950_v48 = vld [vmem:[#allocation130_spill] sm:$0xff] }
 0x306   :  { %v2592_v49 = vadd.f32 %v10926_v38, %v10921_v46  ;;  %v2086_v12 = vadd.f32 1.0, %v2085_v62  ;;  %v10930_v50 = vmax.f32 %v10929_v25, 0.0  ;;  %vm10932_vm7 = vnez %v10931_v23  ;;  %v4513_v32 = vpop.eup %4512  ;;  %v10944_v62 = vld [vmem:[#allocation225_spill] sm:$0xff]  ;;  %v10975_v18 = vld [vmem:[#allocation306_spill] sm:$0xff] }
 0x307   :  { %10927 = vst [vmem:[#allocation161_spill] sm:$0xff] %v8002_v27  ;;  %v10935_v59 = vsel %vm10932_vm7, %v10933_v14, %v10934_v41  ;;  %v3747_v4 = vmul.f32 0.0, %v2591_v54  ;;  %v3872_v46 = vadd.f32 %v3871_v28, %v3745_v1  ;;  %v8013_v45 = vmul.f32 0.6931472, %v4511_v7  ;;  %v10947_v54 = vld [vmem:[#allocation297_spill] sm:$0xff]  ;;  %v10949_v1 = vld [vmem:[#allocation299_spill] sm:$0xff] }
 0x308   :  { %v2593_v10 = vadd.f32 %v10935_v59, %v10930_v50  ;;  %v8016_v2 = vmul.f32 %v10887_v19, %v2077_v52  ;;  %vm8018_vm1 = vcmp.lt.f32.partialorder %v2079_v43, 0.0004427343  ;;  %v10938_v36 = vmov 0  ;;  %v10945_v50 = vld [vmem:[#allocation46_spill] sm:$0xff]  ;;  %v10953_v41 = vld [vmem:[#allocation47_spill] sm:$0xff]  ;;  %v10973_v27 = vld [vmem:[#allocation49_spill] sm:$0xff] }
 0x309   :  { %10936 = vst [vmem:[#allocation73_spill] sm:$0xff] %v8013_v45  ;;  %v10939_v36 = vsel %vm8018_vm1, 4294967295, %v10938_v36  ;;  %v2097_v25 = vand.u32 2147483647, %v10928_v24  ;;  %vm8023_vm9 = vcmp.lt.f32.partialorder %v2088_v9, 0.0004427343  ;;  %vm10948_vm7 = vnez %v10947_v54 }
 0x30a   :  { %10937 = vst [vmem:[#allocation187_spill] sm:$0xff] %v8016_v2  ;;  %v10941_v23 = vmov 0  ;;  %v2100_v59 = vadd.f32 1.0, %v10944_v62  ;;  %v10946_v28 = vmax.f32 %v10945_v50, 0.0  ;;  %v10951_v19 = vsel %vm10948_vm7, %v10949_v1, %v10950_v48  ;;  %v10955_v54 = vld [vmem:[#allocation303_spill] sm:$0xff]  ;;  %v10957_v1 = vld [vmem:[#allocation301_spill] sm:$0xff] }
 0x30b   :  { %10940 = vst [vmem:[#allocation20_spill] sm:$0xff] %v10939_v36  ;;  %v10942_v23 = vsel %vm8023_vm9, 4294967295, %v10941_v23  ;;  %v3748_v43 = vmul.f32 0.0, %v2592_v49  ;;  %v3873_v7 = vadd.f32 %v3872_v46, %v3746_v5  ;;  %4516 = vlog2.f32 %v2091_v34  ;;  %v11006_v36 = vld [vmem:[#allocation312_spill] sm:$0xff] }
 0x30c   :  { %10943 = vst [vmem:[#allocation168_spill] sm:$0xff] %v10942_v23  ;;  %v2594_v52 = vadd.f32 %v10951_v19, %v10946_v28  ;;  %v2095_v22 = vadd.f32 1.0, %v2094_v40  ;;  %v2103_v38 = vmul.f32 -0.5, %v10944_v62  ;;  %v8041_v14 = vmul.f32 %v10911_v29, %v2086_v12  ;;  %v10958_v28 = vld [vmem:[#allocation302_spill] sm:$0xff]  ;;  %v4515_v19 = vpop.eup %4514  ;;  %v10961_v29 = vld [vmem:[#allocation227_spill] sm:$0xff] }
 0x30d   :  { %v10954_v50 = vmax.f32 %v10953_v41, 0.0  ;;  %vm10956_vm11 = vnez %v10955_v54  ;;  %v3749_v46 = vmul.f32 0.0, %v2593_v10  ;;  %v3874_v48 = vadd.f32 %v3873_v7, %v3747_v4  ;;  %v10966_v4 = vld [vmem:[#allocation68_spill] sm:$0xff] }
 0x30e   :  { %10952 = vst [vmem:[#allocation169_spill] sm:$0xff] %v8041_v14  ;;  %v10959_v49 = vsel %vm10956_vm11, %v10957_v1, %v10958_v28  ;;  %v8054_v40 = vmul.f32 0.6931472, %v4513_v32  ;;  %v2109_v12 = vadd.f32 1.0, %v10961_v29  ;;  %v2112_v41 = vmul.f32 -0.5, %v10961_v29  ;;  %v10968_v7 = vld [vmem:[#allocation304_spill] sm:$0xff] }
 0x30f   :  { %v2595_v5 = vadd.f32 %v10959_v49, %v10954_v50  ;;  %vm8058_vm7 = vcmp.lt.f32.partialorder %v2097_v25, 0.0004427343  ;;  %v10962_v54 = vmov 0  ;;  %4518 = vlog2.f32 %v2100_v59  ;;  %v10964_v50 = vld [vmem:[#allocation48_spill] sm:$0xff]  ;;  %v10969_v1 = vld [vmem:[#allocation305_spill] sm:$0xff] }
 0x310   :  { %10960 = vst [vmem:[#allocation172_spill] sm:$0xff] %v8054_v40  ;;  %v10963_v54 = vsel %vm8058_vm7, 4294967295, %v10962_v54  ;;  %v10965_v10 = vmax.f32 %v10964_v50, 0.0  ;;  %vm10967_vm11 = vnez %v10966_v4  ;;  %v3750_v34 = vmul.f32 0.0, %v2594_v52  ;;  %v10977_v4 = vld [vmem:[#allocation137_spill] sm:$0xff] }
 0x311   :  { %v10970_v28 = vsel %vm10967_vm11, %v10968_v7, %v10969_v1  ;;  %v3875_v32 = vadd.f32 %v3874_v48, %v3748_v43  ;;  %v8070_v9 = vmul.f32 %v10928_v24, %v2095_v22  ;;  %v2104_v45 = vadd.f32 1.0, %v2103_v38  ;;  %v4517_v48 = vpop.eup %4516  ;;  %v10981_v1 = vld [vmem:[#allocation50_spill] sm:$0xff] }
 0x312   :  { %v2596_v49 = vadd.f32 %v10970_v28, %v10965_v10  ;;  %v2106_v25 = vand.u32 2147483647, %v10944_v62  ;;  %v2115_v63 = vand.u32 2147483647, %v10961_v29  ;;  %v2118_v59 = vadd.f32 1.0, %v10972_v35  ;;  %v10983_v28 = vld [vmem:[#allocation308_spill] sm:$0xff] }
 0x313   :  { %10971 = vst [vmem:[#allocation191_spill] sm:$0xff] %v8070_v9  ;;  %v10974_v50 = vmax.f32 %v10973_v27, 0.0  ;;  %vm10976_vm12 = vnez %v10975_v18  ;;  %v3751_v52 = vmul.f32 0.0, %v2595_v5  ;;  %v3876_v43 = vadd.f32 %v3875_v32, %v3749_v46  ;;  %v11040_v9 = vld [vmem:[#allocation319_spill] sm:$0xff] }
 0x314   :  { %v10979_v7 = vsel %vm10976_vm12, %v10977_v4, %v10978_v6  ;;  %v8086_v22 = vmul.f32 0.6931472, %v4515_v19  ;;  %4520 = vlog2.f32 %v2109_v12  ;;  %v2113_v38 = vadd.f32 1.0, %v2112_v41  ;;  %v10985_v6 = vld [vmem:[#allocation307_spill] sm:$0xff]  ;;  %v10991_v41 = vld [vmem:[#allocation232_spill] sm:$0xff] }
 0x315   :  { %v2597_v10 = vadd.f32 %v10979_v7, %v10974_v50  ;;  %v2121_v27 = vmul.f32 -0.5, %v10972_v35  ;;  %v10982_v18 = vmax.f32 %v10981_v1, 0.0  ;;  %vm10984_vm11 = vnez %v10983_v28  ;;  %v10986_v50 = vld [vmem:[#allocation140_spill] sm:$0xff]  ;;  %v4519_v1 = vpop.eup %4518 }
 0x316   :  { %10980 = vst [vmem:[#allocation21_spill] sm:$0xff] %v8086_v22  ;;  %v10987_v5 = vsel %vm10984_vm11, %v10985_v6, %v10986_v50  ;;  %v3752_v32 = vmul.f32 0.0, %v2596_v49  ;;  %v3877_v4 = vadd.f32 %v3876_v43, %v3750_v34  ;;  %v8097_v7 = vmul.f32 %v10944_v62, %v2104_v45  ;;  %v10997_v34 = vld [vmem:[#allocation310_spill] sm:$0xff]  ;;  %v10999_v45 = vld [vmem:[#allocation311_spill] sm:$0xff]  ;;  %v11000_v62 = vld [vmem:[#allocation144_spill] sm:$0xff] }
 0x317   :  { %v2598_v46 = vadd.f32 %v10987_v5, %v10982_v18  ;;  %vm8099_vm12 = vcmp.lt.f32.partialorder %v2106_v25, 0.0004427343  ;;  %v10989_v19 = vmov 0  ;;  %v2124_v12 = vand.u32 2147483647, %v10972_v35  ;;  %v10995_v18 = vld [vmem:[#allocation51_spill] sm:$0xff] }
 0x318   :  { %10988 = vst [vmem:[#allocation176_spill] sm:$0xff] %v8097_v7  ;;  %v10990_v19 = vsel %vm8099_vm12, 4294967295, %v10989_v19  ;;  %v2127_v24 = vadd.f32 1.0, %v10991_v41  ;;  %vm8105_vm1 = vcmp.lt.f32.partialorder %v2115_v63, 0.0004427343  ;;  %v10992_v28 = vmov 0 }
 0x319   :  { %v10993_v28 = vsel %vm8105_vm1, 4294967295, %v10992_v28  ;;  %4522 = vlog2.f32 %v2118_v59  ;;  %v10996_v49 = vmax.f32 %v10995_v18, 0.0  ;;  %vm10998_vm11 = vnez %v10997_v34  ;;  %v11004_v34 = vld [vmem:[#allocation52_spill] sm:$0xff]  ;;  %v11015_v5 = vld [vmem:[#allocation53_spill] sm:$0xff]  ;;  %v11017_v22 = vld [vmem:[#allocation314_spill] sm:$0xff] }
 0x31a   :  { %10994 = vst [vmem:[#allocation177_spill] sm:$0xff] %v10993_v28  ;;  %v11001_v25 = vsel %vm10998_vm11, %v10999_v45, %v11000_v62  ;;  %v3753_v6 = vmul.f32 0.0, %v2597_v10  ;;  %v3878_v50 = vadd.f32 %v3877_v4, %v3751_v52  ;;  %v8120_v63 = vmul.f32 0.6931472, %v4517_v48  ;;  %v11009_v10 = vld [vmem:[#allocation146_spill] sm:$0xff]  ;;  %v11068_v28 = vld [vmem:[#allocation324_spill] sm:$0xff] }
 0x31b   :  { %v2599_v43 = vadd.f32 %v11001_v25, %v10996_v49  ;;  %v8123_v40 = vmul.f32 %v10961_v29, %v2113_v38  ;;  %v2130_v59 = vmul.f32 -0.5, %v10991_v41  ;;  %v2122_v18 = vadd.f32 1.0, %v2121_v27  ;;  %v11008_v49 = vld [vmem:[#allocation313_spill] sm:$0xff]  ;;  %v4521_v25 = vpop.eup %4520  ;;  %v11014_v38 = vld [vmem:[#allocation234_spill] sm:$0xff] }
 0x31c   :  { %11002 = vst [vmem:[#allocation76_spill] sm:$0xff] %v8120_v63  ;;  %v11005_v2 = vmax.f32 %v11004_v34, 0.0  ;;  %vm11007_vm11 = vnez %v11006_v36  ;;  %v3754_v45 = vmul.f32 0.0, %v2598_v46  ;;  %v3879_v62 = vadd.f32 %v3878_v50, %v3752_v32 }
 0x31d   :  { %11003 = vst [vmem:[#allocation192_spill] sm:$0xff] %v8123_v40  ;;  %v11010_v52 = vsel %vm11007_vm11, %v11008_v49, %v11009_v10  ;;  %vm8133_vm9 = vcmp.lt.f32.partialorder %v2124_v12, 0.0004427343  ;;  %v11011_v48 = vmov 0  ;;  %4524 = vlog2.f32 %v2127_v24  ;;  %v11019_v49 = vld [vmem:[#allocation149_spill] sm:$0xff] }
 0x31e   :  { %v2600_v4 = vadd.f32 %v11010_v52, %v11005_v2  ;;  %v11012_v48 = vsel %vm8133_vm9, 4294967295, %v11011_v48  ;;  %v2133_v29 = vand.u32 2147483647, %v10991_v41  ;;  %v2136_v27 = vadd.f32 1.0, %v11014_v38  ;;  %v11020_v2 = vld [vmem:[#allocation150_spill] sm:$0xff] }
 0x31f   :  { %11013 = vst [vmem:[#allocation22_spill] sm:$0xff] %v11012_v48  ;;  %v2139_v34 = vmul.f32 -0.5, %v11014_v38  ;;  %v11016_v36 = vmax.f32 %v11015_v5, 0.0  ;;  %vm11018_vm8 = vnez %v11017_v22  ;;  %v3755_v50 = vmul.f32 0.0, %v2599_v43  ;;  %v4523_v23 = vpop.eup %4522  ;;  %v11023_v5 = vld [vmem:[#allocation85_spill] sm:$0xff]  ;;  %v11024_v22 = vld [vmem:[#allocation54_spill] sm:$0xff] }
 0x320   :  { %v11021_v46 = vsel %vm11018_vm8, %v11019_v49, %v11020_v2  ;;  %v3880_v12 = vadd.f32 %v3879_v62, %v3753_v6  ;;  %v8151_v10 = vmul.f32 0.6931472, %v4519_v1  ;;  %v2131_v52 = vadd.f32 1.0, %v2130_v59  ;;  %v11029_v43 = vld [vmem:[#allocation318_spill] sm:$0xff] }
 0x321   :  { %v2601_v32 = vadd.f32 %v11021_v46, %v11016_v36  ;;  %v2142_v14 = vand.u32 2147483647, %v11014_v38  ;;  %v2145_v17 = vadd.f32 1.0, %v11023_v5  ;;  %v11025_v53 = vmax.f32 %v11024_v22, 0.0  ;;  %v11028_v36 = vld [vmem:[#allocation316_spill] sm:$0xff]  ;;  %v11036_v22 = vld [vmem:[#allocation55_spill] sm:$0xff] }
 0x322   :  { %11022 = vst [vmem:[#allocation183_spill] sm:$0xff] %v8151_v10  ;;  %vm11027_vm8 = vnez %v11026_v15  ;;  %v3756_v49 = vmul.f32 0.0, %v2600_v4  ;;  %v3881_v2 = vadd.f32 %v3880_v12, %v3754_v45  ;;  %v8162_v46 = vmul.f32 0.6931472, %v4521_v25  ;;  %v11038_v15 = vld [vmem:[#allocation317_spill] sm:$0xff]  ;;  %v11080_v48 = vld [vmem:[#allocation162_spill] sm:$0xff] }
 0x323   :  { %v11030_v6 = vsel %vm11027_vm8, %v11028_v36, %v11029_v43  ;;  %v8165_v1 = vmul.f32 %v10972_v35, %v2122_v18  ;;  %vm8167_vm11 = vcmp.lt.f32.partialorder %v2133_v29, 0.0004427343  ;;  %v11033_v59 = vmov 0  ;;  %v11041_v36 = vld [vmem:[#allocation154_spill] sm:$0xff]  ;;  %v4525_v12 = vpop.eup %4524  ;;  %v11053_v43 = vld [vmem:[#allocation321_spill] sm:$0xff] }
 0x324   :  { %v2602_v62 = vadd.f32 %v11030_v6, %v11025_v53  ;;  %11031 = vst [vmem:[#allocation185_spill] sm:$0xff] %v8162_v46  ;;  %v11034_v59 = vsel %vm8167_vm11, 4294967295, %v11033_v59  ;;  %4526 = vlog2.f32 %v2136_v27  ;;  %v2140_v24 = vadd.f32 1.0, %v2139_v34 }
 0x325   :  { %11032 = vst [vmem:[#allocation189_spill] sm:$0xff] %v8165_v1  ;;  %v11037_v63 = vmax.f32 %v11036_v22, 0.0  ;;  %vm11039_vm7 = vnez %v11038_v15  ;;  %v3757_v45 = vmul.f32 0.0, %v2601_v32  ;;  %v3882_v25 = vadd.f32 %v3881_v2, %v3755_v50  ;;  %v11050_v32 = vld [vmem:[#allocation320_spill] sm:$0xff]  ;;  %v11052_v50 = vld [vmem:[#allocation157_spill] sm:$0xff] }
 0x326   :  { %11035 = vst [vmem:[#allocation23_spill] sm:$0xff] %v11034_v59  ;;  %v11042_v53 = vsel %vm11039_vm7, %v11040_v9, %v11041_v36  ;;  %v8182_v18 = vmul.f32 0.6931472, %v4523_v23  ;;  %v8185_v29 = vmul.f32 %v10991_v41, %v2131_v52  ;;  %v2148_v27 = vmul.f32 -0.5, %v11023_v5  ;;  %v11048_v9 = vld [vmem:[#allocation56_spill] sm:$0xff]  ;;  %v11055_v52 = vld [vmem:[#allocation238_spill] sm:$0xff] }
 0x327   :  { %v2603_v4 = vadd.f32 %v11042_v53, %v11037_v63  ;;  %vm8188_vm8 = vcmp.lt.f32.partialorder %v2142_v14, 0.0004427343  ;;  %v11045_v34 = vmov 0  ;;  %4528 = vlog2.f32 %v2145_v17  ;;  %v11057_v53 = vld [vmem:[#allocation57_spill] sm:$0xff] }
 0x328   :  { %11043 = vst [vmem:[#allocation201_spill] sm:$0xff] %v8182_v18  ;;  %v11046_v34 = vsel %vm8188_vm8, 4294967295, %v11045_v34  ;;  %v11049_v63 = vmax.f32 %v11048_v9, 0.0  ;;  %vm11051_vm7 = vnez %v11050_v32  ;;  %v3758_v23 = vmul.f32 0.0, %v2602_v62  ;;  %v11059_v32 = vld [vmem:[#allocation322_spill] sm:$0xff]  ;;  %v11061_v62 = vld [vmem:[#allocation323_spill] sm:$0xff] }
 0x329   :  { %11044 = vst [vmem:[#allocation194_spill] sm:$0xff] %v8185_v29  ;;  %v11054_v6 = vsel %vm11051_vm7, %v11052_v50, %v11053_v43  ;;  %v3883_v22 = vadd.f32 %v3882_v25, %v3756_v49  ;;  %v2151_v14 = vand.u32 2147483647, %v11023_v5  ;;  %v2154_v15 = vadd.f32 1.0, %v11055_v52  ;;  %v11062_v49 = vld [vmem:[#allocation158_spill] sm:$0xff] }
 0x32a   :  { %11047 = vst [vmem:[#allocation198_spill] sm:$0xff] %v11046_v34  ;;  %v2604_v2 = vadd.f32 %v11054_v6, %v11049_v63  ;;  %v2157_v17 = vmul.f32 -0.5, %v11055_v52  ;;  %v8207_v36 = vmul.f32 %v11014_v38, %v2140_v24  ;;  %v11058_v9 = vmax.f32 %v11057_v53, 0.0  ;;  %v4527_v6 = vpop.eup %4526  ;;  %v11065_v53 = vld [vmem:[#allocation240_spill] sm:$0xff]  ;;  %v11117_v34 = vld [vmem:[#allocation63_spill] sm:$0xff] }
 0x32b   :  { %vm11060_vm7 = vnez %v11059_v32  ;;  %v3759_v50 = vmul.f32 0.0, %v2603_v4  ;;  %v3884_v43 = vadd.f32 %v3883_v22, %v3757_v45  ;;  %v8220_v35 = vmul.f32 0.6931472, %v4525_v12  ;;  %v11066_v32 = vld [vmem:[#allocation58_spill] sm:$0xff]  ;;  %v11071_v4 = vld [vmem:[#allocation327_spill] sm:$0xff] }
 0x32c   :  { %11056 = vst [vmem:[#allocation195_spill] sm:$0xff] %v8207_v36  ;;  %v11063_v25 = vsel %vm11060_vm7, %v11061_v62, %v11062_v49  ;;  %v2149_v38 = vadd.f32 1.0, %v2148_v27  ;;  %v2160_v24 = vand.u32 2147483647, %v11055_v52  ;;  %v2163_v46 = vadd.f32 1.0, %v11065_v53 }
 0x32d   :  { %v2605_v63 = vadd.f32 %v11063_v25, %v11058_v9  ;;  %11064 = vst [vmem:[#allocation24_spill] sm:$0xff] %v8220_v35  ;;  %v11067_v40 = vmax.f32 %v11066_v32, 0.0  ;;  %vm11069_vm7 = vnez %v11068_v28  ;;  %v11070_v9 = vld [vmem:[#allocation325_spill] sm:$0xff]  ;;  %v3760_v62 = vmul.f32 0.0, %v2604_v2  ;;  %v4529_v41 = vpop.eup %4528  ;;  %v11076_v32 = vld [vmem:[#allocation59_spill] sm:$0xff]  ;;  %v11078_v28 = vld [vmem:[#allocation326_spill] sm:$0xff] }
 0x32e   :  { %v11072_v45 = vsel %vm11069_vm7, %v11070_v9, %v11071_v4  ;;  %v3885_v49 = vadd.f32 %v3884_v43, %v3758_v23  ;;  %vm8231_vm1 = vcmp.lt.f32.partialorder %v2151_v14, 0.0004427343  ;;  %v11073_v25 = vmov 0  ;;  %v11081_v9 = vld [vmem:[#allocation329_spill] sm:$0xff]  ;;  %v11085_v4 = vld [vmem:[#allocation242_spill] sm:$0xff]  ;;  %v11103_v35 = vld [vmem:[#allocation331_spill] sm:$0xff] }
 0x32f   :  { %v2606_v22 = vadd.f32 %v11072_v45, %v11067_v40  ;;  %v11074_v25 = vsel %vm8231_vm1, 4294967295, %v11073_v25  ;;  %4530 = vlog2.f32 %v2154_v15  ;;  %v2158_v12 = vadd.f32 1.0, %v2157_v17 }
 0x330   :  { %11075 = vst [vmem:[#allocation211_spill] sm:$0xff] %v11074_v25  ;;  %v2166_v27 = vmul.f32 -0.5, %v11065_v53  ;;  %v2169_v18 = vand.u32 2147483647, %v11065_v53  ;;  %v11077_v1 = vmax.f32 %v11076_v32, 0.0  ;;  %vm11079_vm9 = vnez %v11078_v28  ;;  %v11135_v25 = vld [vmem:[#allocation88_spill] sm:$0xff] }
 0x331   :  { %v11082_v40 = vsel %vm11079_vm9, %v11080_v48, %v11081_v9  ;;  %v3761_v23 = vmul.f32 0.0, %v2605_v63  ;;  %v3886_v14 = vadd.f32 %v3885_v49, %v3759_v50  ;;  %v8248_v17 = vmul.f32 0.6931472, %v4527_v6  ;;  %v11089_v48 = vld [vmem:[#allocation60_spill] sm:$0xff]  ;;  %v11093_v50 = vld [vmem:[#allocation330_spill] sm:$0xff]  ;;  %v11094_v49 = vld [vmem:[#allocation165_spill] sm:$0xff] }
 0x332   :  { %v2607_v2 = vadd.f32 %v11082_v40, %v11077_v1  ;;  %v8251_v43 = vmul.f32 %v11023_v5, %v2149_v38  ;;  %v2172_v45 = vadd.f32 1.0, %v11085_v4  ;;  %vm8254_vm7 = vcmp.lt.f32.partialorder %v2160_v24, 0.0004427343  ;;  %v11091_v63 = vld [vmem:[#allocation328_spill] sm:$0xff] }
 0x333   :  { %11083 = vst [vmem:[#allocation210_spill] sm:$0xff] %v8248_v17  ;;  %v11086_v32 = vmov 0  ;;  %4532 = vlog2.f32 %v2163_v46  ;;  %v11090_v1 = vmax.f32 %v11089_v48, 0.0  ;;  %vm11092_vm9 = vnez %v11091_v63  ;;  %v11101_v48 = vld [vmem:[#allocation61_spill] sm:$0xff] }
 0x334   :  { %11084 = vst [vmem:[#allocation209_spill] sm:$0xff] %v8251_v43  ;;  %v11087_v32 = vsel %vm8254_vm7, 4294967295, %v11086_v32  ;;  %v11095_v28 = vsel %vm11092_vm9, %v11093_v50, %v11094_v49  ;;  %v3762_v6 = vmul.f32 0.0, %v2606_v22  ;;  %v3887_v40 = vadd.f32 %v3886_v14, %v3760_v62  ;;  %v11105_v50 = vld [vmem:[#allocation332_spill] sm:$0xff]  ;;  %v11116_v17 = vld [vmem:[#allocation245_spill] sm:$0xff] }
 0x335   :  { %11088 = vst [vmem:[#allocation25_spill] sm:$0xff] %v11087_v32  ;;  %v2608_v9 = vadd.f32 %v11095_v28, %v11090_v1  ;;  %v8265_v15 = vmul.f32 0.6931472, %v4529_v41  ;;  %v8268_v5 = vmul.f32 %v11055_v52, %v2158_v12  ;;  %v2167_v38 = vadd.f32 1.0, %v2166_v27  ;;  %v11106_v1 = vld [vmem:[#allocation166_spill] sm:$0xff]  ;;  %v4531_v49 = vpop.eup %4530 }
 0x336   :  { %v2175_v24 = vmul.f32 -0.5, %v11085_v4  ;;  %vm8271_vm11 = vcmp.lt.f32.partialorder %v2169_v18, 0.0004427343  ;;  %v11098_v46 = vmov 0  ;;  %v11102_v63 = vmax.f32 %v11101_v48, 0.0  ;;  %v11108_v18 = vld [vmem:[#allocation244_spill] sm:$0xff] }
 0x337   :  { %11096 = vst [vmem:[#allocation219_spill] sm:$0xff] %v8265_v15  ;;  %v11099_v46 = vsel %vm8271_vm11, 4294967295, %v11098_v46  ;;  %vm11104_vm12 = vnez %v11103_v35  ;;  %v3763_v41 = vmul.f32 0.0, %v2607_v2  ;;  %v3888_v14 = vadd.f32 %v3887_v40, %v3761_v23  ;;  %v11109_v35 = vld [vmem:[#allocation62_spill] sm:$0xff]  ;;  %v11113_v2 = vld [vmem:[#allocation336_spill] sm:$0xff] }
 0x338   :  { %11097 = vst [vmem:[#allocation218_spill] sm:$0xff] %v8268_v5  ;;  %v11107_v22 = vsel %vm11104_vm12, %v11105_v50, %v11106_v1  ;;  %4534 = vlog2.f32 %v2172_v45  ;;  %v2181_v12 = vadd.f32 1.0, %v11108_v18  ;;  %v2184_v27 = vmul.f32 -0.5, %v11108_v18  ;;  %v11124_v15 = vld [vmem:[#allocation64_spill] sm:$0xff]  ;;  %v11165_v32 = vld [vmem:[#allocation14_spill] sm:$0xff] }
 0x339   :  { %11100 = vst [vmem:[#allocation217_spill] sm:$0xff] %v11099_v46  ;;  %v2609_v62 = vadd.f32 %v11107_v22, %v11102_v63  ;;  %v2178_v28 = vand.u32 2147483647, %v11085_v4  ;;  %v11110_v48 = vmax.f32 %v11109_v35, 0.0  ;;  %v11112_v63 = vld [vmem:[#allocation334_spill] sm:$0xff]  ;;  %v3764_v50 = vmul.f32 0.0, %v2608_v9  ;;  %v4533_v35 = vpop.eup %4532 }
 0x33a   :  { %v11114_v23 = vsel %vm7405_vm2, %v11112_v63, %v11113_v2  ;;  %v3889_v1 = vadd.f32 %v3888_v14, %v3762_v6  ;;  %v8301_v22 = vmul.f32 %v11065_v53, %v2167_v38  ;;  %v2176_v52 = vadd.f32 1.0, %v2175_v24  ;;  %v11120_v9 = vld [vmem:[#allocation75_spill] sm:$0xff]  ;;  %v11121_v6 = vld [vmem:[#allocation337_spill] sm:$0xff]  ;;  %v11128_v63 = vld [vmem:[#allocation12_spill] sm:$0xff] }
 0x33b   :  { %v2610_v40 = vadd.f32 %v11114_v23, %v11110_v48  ;;  %v2190_v36 = vadd.f32 1.0, %v11116_v17  ;;  %v2187_v29 = vand.u32 2147483647, %v11108_v18  ;;  %v11118_v59 = vmax.f32 %v11117_v34, 0.0  ;;  %v11127_v34 = vld [vmem:[#allocation338_spill] sm:$0xff] }
 0x33c   :  { %11115 = vst [vmem:[#allocation196_spill] sm:$0xff] %v8301_v22  ;;  %v11122_v14 = vsel %vm7416_vm4, %v11120_v9, %v11121_v6  ;;  %v3765_v2 = vmul.f32 0.0, %v2609_v62  ;;  %v3890_v23 = vadd.f32 %v3889_v1, %v3763_v41  ;;  %v8312_v45 = vmul.f32 0.6931472, %v4531_v49  ;;  %v11140_v1 = vld [vmem:[#allocation13_spill] sm:$0xff] }
 0x33d   :  { %v2611_v48 = vadd.f32 %v11122_v14, %v11118_v59  ;;  %4536 = vlog2.f32 %v2181_v12  ;;  %v2185_v53 = vadd.f32 1.0, %v2184_v27  ;;  %v2193_v38 = vmul.f32 -0.5, %v11116_v17 }
 0x33e   :  { %11123 = vst [vmem:[#allocation26_spill] sm:$0xff] %v8312_v45  ;;  %v2196_v24 = vand.u32 2147483647, %v11116_v17  ;;  %v11125_v43 = vmax.f32 %v11124_v15, 0.0  ;;  %v11129_v10 = vsel %vm7439_vm5, %v11127_v34, %v11128_v63  ;;  %v3766_v9 = vmul.f32 0.0, %v2610_v40  ;;  %v4535_v62 = vpop.eup %4534  ;;  %v11144_v34 = vld [vmem:[#allocation66_spill] sm:$0xff] }
 0x33f   :  { %v3891_v59 = vadd.f32 %v3890_v23, %v3764_v50  ;;  %v8323_v41 = vmul.f32 0.6931472, %v4533_v35  ;;  %v8326_v49 = vmul.f32 %v11085_v4, %v2176_v52  ;;  %vm8328_vm2 = vcmp.lt.f32.partialorder %v2178_v28, 0.0004427343  ;;  %v11139_v50 = vld [vmem:[#allocation174_spill] sm:$0xff]  ;;  %v11407_v23 = vld [vmem:[#allocation155_spill] sm:$0xff] }
 0x340   :  { %v2612_v7 = vadd.f32 %v11129_v10, %v11125_v43  ;;  %4538 = vlog2.f32 %v2190_v36  ;;  %vm8332_vm4 = vcmp.lt.f32.partialorder %v2187_v29, 0.0004427343  ;;  %v11133_v15 = vmov 0  ;;  %v11136_v10 = vld [vmem:[#allocation65_spill] sm:$0xff]  ;;  %v11154_v36 = vld [vmem:[#allocation118_spill] sm:$0xff] }
 0x341   :  { %11130 = vst [vmem:[#allocation229_spill] sm:$0xff] %v8323_v41  ;;  %v11134_v15 = vsel %vm8332_vm4, 4294967295, %v11133_v15  ;;  %v2199_v27 = vadd.f32 1.0, %v11135_v25  ;;  %v11137_v43 = vmax.f32 %v11136_v10, 0.0  ;;  %v11141_v35 = vsel %vm7450_vm10, %v11139_v50, %v11140_v1  ;;  %v11146_v10 = vld [vmem:[#allocation112_spill] sm:$0xff] }
 0x342   :  { %v3767_v52 = vmul.f32 0.0, %v2611_v48  ;;  %v3892_v28 = vadd.f32 %v3891_v59, %v3765_v2  ;;  %v8349_v29 = vmul.f32 %v11108_v18, %v2185_v53  ;;  %v2194_v6 = vadd.f32 1.0, %v2193_v38  ;;  %v11148_v48 = vld [vmem:[#allocation87_spill] sm:$0xff]  ;;  %v11151_v38 = vld [vmem:[#allocation89_spill] sm:$0xff] }
 0x343   :  { %v2613_v4 = vadd.f32 %v11141_v35, %v11137_v43  ;;  %v2202_v14 = vmul.f32 -0.5, %v11135_v25  ;;  %vm8352_vm5 = vcmp.lt.f32.partialorder %v2196_v24, 0.0004427343  ;;  %v11145_v63 = vmax.f32 %v11144_v34, 0.0  ;;  %v11149_v2 = vld [vmem:[#allocation99_spill] sm:$0xff]  ;;  %v4537_v1 = vpop.eup %4536 }
 0x344   :  { %vm11147_vm10 = vnez %v11146_v10  ;;  %v3768_v40 = vmul.f32 0.0, %v2612_v7  ;;  %v3893_v50 = vadd.f32 %v3892_v28, %v3766_v9  ;;  %v2205_v53 = vand.u32 2147483647, %v11135_v25  ;;  %v11152_v34 = vld [vmem:[#allocation67_spill] sm:$0xff]  ;;  %v11157_v7 = vld [vmem:[#allocation178_spill] sm:$0xff] }
 0x345   :  { %v11150_v59 = vsel %vm11147_vm10, %v11148_v48, %v11149_v2  ;;  %v2208_v24 = vadd.f32 1.0, %v11151_v38  ;;  %v2211_v35 = vmul.f32 -0.5, %v11151_v38  ;;  %4540 = vlog2.f32 %v2199_v27  ;;  %v11160_v27 = vld [vmem:[#allocation246_spill] sm:$0xff] }
 0x346   :  { %v2614_v43 = vadd.f32 %v11150_v59, %v11145_v63  ;;  %v11153_v10 = vmax.f32 %v11152_v34, 0.0  ;;  %vm11155_vm12 = vnez %v11154_v36  ;;  %v11156_v63 = vld [vmem:[#allocation119_spill] sm:$0xff]  ;;  %v3769_v48 = vmul.f32 0.0, %v2613_v4  ;;  %v4539_v59 = vpop.eup %4538  ;;  %v11161_v34 = vld [vmem:[#allocation69_spill] sm:$0xff] }
 0x347   :  { %v11158_v9 = vsel %vm11155_vm12, %v11156_v63, %v11157_v7  ;;  %v3894_v2 = vadd.f32 %v3893_v50, %v3767_v52  ;;  %v8377_v46 = vmul.f32 0.6931472, %v4535_v62  ;;  %v8380_v18 = vmul.f32 %v11116_v17, %v2194_v6  ;;  %v11163_v36 = vld [vmem:[#allocation121_spill] sm:$0xff]  ;;  %v11170_v7 = vld [vmem:[#allocation70_spill] sm:$0xff] }
 0x348   :  { %v2615_v28 = vadd.f32 %v11158_v9, %v11153_v10  ;;  %v2203_v41 = vadd.f32 1.0, %v2202_v14  ;;  %v2214_v22 = vand.u32 2147483647, %v11151_v38  ;;  %v2217_v45 = vadd.f32 1.0, %v11160_v27  ;;  %v11166_v63 = vld [vmem:[#allocation129_spill] sm:$0xff] }
 0x349   :  { %11159 = vst [vmem:[#allocation84_spill] sm:$0xff] %v8380_v18  ;;  %v11162_v5 = vmax.f32 %v11161_v34, 0.0  ;;  %vm11164_vm9 = vnez %v11163_v36  ;;  %v3770_v52 = vmul.f32 0.0, %v2614_v43  ;;  %v3895_v50 = vadd.f32 %v3894_v2, %v3768_v40  ;;  %v11182_v34 = vld [vmem:[#allocation122_spill] sm:$0xff] }
 0x34a   :  { %v11167_v10 = vsel %vm11164_vm9, %v11165_v32, %v11166_v63  ;;  %v8391_v62 = vmul.f32 0.6931472, %v4537_v1  ;;  %vm8393_vm10 = vcmp.lt.f32.partialorder %v2205_v53, 0.0004427343  ;;  %v11168_v17 = vmov 0 }
 0x34b   :  { %v2616_v4 = vadd.f32 %v11167_v10, %v11162_v5  ;;  %v11169_v17 = vsel %vm8393_vm10, 4294967295, %v11168_v17  ;;  %4542 = vlog2.f32 %v2208_v24  ;;  %v2212_v6 = vadd.f32 1.0, %v2211_v35  ;;  %v4541_v2 = vpop.eup %4540 }
 0x34c   :  { %v2220_v14 = vmul.f32 -0.5, %v11160_v27  ;;  %v11171_v9 = vmax.f32 %v11170_v7, 0.0  ;;  %vm11172_vm12 = vnez %v10708_v60  ;;  %v3771_v43 = vmul.f32 0.0, %v2615_v28  ;;  %v11179_v28 = vld [vmem:[#allocation113_spill] sm:$0xff] }
 0x34d   :  { %v11173_v32 = vsel %vm11172_vm12, %v7576_v13, %v7613_v37  ;;  %v3896_v40 = vadd.f32 %v3895_v50, %v3769_v48  ;;  %v8409_v53 = vmul.f32 0.6931472, %v4539_v59  ;;  %v8412_v24 = vmul.f32 %v11135_v25, %v2203_v41  ;;  %v11177_v13 = vld [vmem:[#allocation74_spill] sm:$0xff]  ;;  %v11181_v48 = vld [vmem:[#allocation125_spill] sm:$0xff]  ;;  %v11184_v25 = vld [vmem:[#allocation247_spill] sm:$0xff] }
 0x34e   :  { %v2617_v5 = vadd.f32 %v11173_v32, %v11171_v9  ;;  %v2223_v35 = vand.u32 2147483647, %v11160_v27  ;;  %vm8415_vm9 = vcmp.lt.f32.partialorder %v2214_v22, 0.0004427343  ;;  %4544 = vlog2.f32 %v2217_v45  ;;  %v11185_v9 = vld [vmem:[#allocation77_spill] sm:$0xff] }
 0x34f   :  { %11174 = vst [vmem:[#allocation231_spill] sm:$0xff] %v8409_v53  ;;  %v11178_v37 = vmax.f32 %v11177_v13, 0.0  ;;  %vm11180_vm12 = vnez %v11179_v28  ;;  %v3772_v63 = vmul.f32 0.0, %v2616_v4  ;;  %v3897_v10 = vadd.f32 %v3896_v40, %v3770_v52  ;;  %v11187_v13 = vld [vmem:[#allocation15_spill] sm:$0xff]  ;;  %v11198_v41 = vld [vmem:[#allocation249_spill] sm:$0xff]  ;;  %v11199_v53 = vld [vmem:[#allocation82_spill] sm:$0xff] }
 0x350   :  { %v11183_v36 = vsel %vm11180_vm12, %v11181_v48, %v11182_v34  ;;  %v8431_v22 = vmul.f32 %v11151_v38, %v2212_v6  ;;  %v2226_v45 = vadd.f32 1.0, %v11184_v25  ;;  %v2229_v50 = vmul.f32 -0.5, %v11184_v25  ;;  %v11190_v4 = vld [vmem:[#allocation135_spill] sm:$0xff] }
 0x351   :  { %v2618_v59 = vadd.f32 %v11183_v36, %v11178_v37  ;;  %v2221_v7 = vadd.f32 1.0, %v2220_v14  ;;  %v11186_v32 = vmax.f32 %v11185_v9, 0.0  ;;  %vm11188_vm12 = vnez %v11187_v13  ;;  %v11189_v37 = vld [vmem:[#allocation132_spill] sm:$0xff]  ;;  %v4543_v34 = vpop.eup %4542  ;;  %v11424_v14 = vld [vmem:[#allocation93_spill] sm:$0xff] }
 0x352   :  { %v11191_v52 = vsel %vm11188_vm12, %v11189_v37, %v11190_v4  ;;  %v3773_v28 = vmul.f32 0.0, %v2617_v5  ;;  %v3898_v48 = vadd.f32 %v3897_v10, %v3771_v43  ;;  %v8446_v6 = vmul.f32 0.6931472, %v4541_v2  ;;  %v11194_v9 = vld [vmem:[#allocation248_spill] sm:$0xff] }
 0x353   :  { %v2619_v40 = vadd.f32 %v11191_v52, %v11186_v32  ;;  %vm8448_vm4 = vcmp.lt.f32.partialorder %v2223_v35, 0.0004427343  ;;  %v2232_v36 = vand.u32 2147483647, %v11184_v25  ;;  %v2235_v13 = vadd.f32 1.0, %v11194_v9  ;;  %v11195_v37 = vld [vmem:[#allocation80_spill] sm:$0xff] }
 0x354   :  { %v11196_v32 = vmax.f32 %v11195_v37, 0.0  ;;  %v11197_v5 = vsel %vm7644_vm15, %v7658_v8, %v7706_v11  ;;  %v3774_v10 = vmul.f32 0.0, %v2618_v59  ;;  %v3899_v4 = vadd.f32 %v3898_v48, %v3772_v63  ;;  %v4545_v38 = vpop.eup %4544 }
 0x355   :  { %4546 = vlog2.f32 %v2226_v45  ;;  %v2230_v2 = vadd.f32 1.0, %v2229_v50  ;;  %v2238_v35 = vmul.f32 -0.5, %v11194_v9  ;;  %v2241_v52 = vand.u32 2147483647, %v11194_v9 }
 0x356   :  { %v2620_v43 = vadd.f32 %v11197_v5, %v11196_v32  ;;  %v2244_v1 = vadd.f32 1.0, %v11198_v41  ;;  %v11200_v18 = vmax.f32 %v11199_v53, 0.0  ;;  %vm11201_vm12 = vnez %v10760_v58  ;;  %v11274_v5 = vld [vmem:[#allocation161_spill] sm:$0xff]  ;;  %v11429_v58 = vld [vmem:[#allocation164_spill] sm:$0xff] }
 0x357   :  { %v11202_v39 = vsel %vm11201_vm12, %v7678_v51, %v7724_v26  ;;  %v3775_v8 = vmul.f32 0.0, %v2619_v40  ;;  %v3900_v59 = vadd.f32 %v3899_v4, %v3773_v28  ;;  %v8475_v45 = vmul.f32 0.6931472, %v4543_v34  ;;  %v11205_v51 = vld [vmem:[#allocation86_spill] sm:$0xff] }
 0x358   :  { %v2621_v11 = vadd.f32 %v11202_v39, %v11200_v18  ;;  %v8478_v50 = vmul.f32 %v11160_v27, %v2221_v7  ;;  %v2247_v53 = vmul.f32 -0.5, %v11198_v41  ;;  %vm8481_vm15 = vcmp.lt.f32.partialorder %v2232_v36, 0.0004427343 }
 0x359   :  { %4548 = vlog2.f32 %v2235_v13  ;;  %v11206_v26 = vmax.f32 %v11205_v51, 0.0  ;;  %vm11207_vm12 = vnez %v10777_v42  ;;  %v3776_v28 = vmul.f32 0.0, %v2620_v43  ;;  %v11211_v42 = vld [vmem:[#allocation90_spill] sm:$0xff] }
 0x35a   :  { %v11208_v18 = vsel %vm11207_vm12, %v7709_v16, %v7727_v57  ;;  %v3901_v48 = vadd.f32 %v3900_v59, %v3774_v10  ;;  %v8492_v34 = vmul.f32 0.6931472, %v4545_v38  ;;  %v8495_v27 = vmul.f32 %v11184_v25, %v2230_v2  ;;  %v11215_v10 = vld [vmem:[#allocation250_spill] sm:$0xff]  ;;  %v11216_v2 = vld [vmem:[#allocation251_spill] sm:$0xff] }
 0x35b   :  { %v2622_v40 = vadd.f32 %v11208_v18, %v11206_v26  ;;  %v2239_v7 = vadd.f32 1.0, %v2238_v35  ;;  %v2250_v36 = vand.u32 2147483647, %v11198_v41  ;;  %vm8498_vm10 = vcmp.lt.f32.partialorder %v2241_v52, 0.0004427343  ;;  %v4547_v25 = vpop.eup %4546 }
 0x35c   :  { %4550 = vlog2.f32 %v2244_v1  ;;  %v11212_v37 = vmax.f32 %v11211_v42, 0.0  ;;  %vm11213_vm12 = vnez %v10787_v0  ;;  %v3777_v38 = vmul.f32 0.0, %v2621_v11  ;;  %v11217_v0 = vld [vmem:[#allocation92_spill] sm:$0xff] }
 0x35d   :  { %v11214_v16 = vsel %vm11213_vm12, %v7741_v44, %v7775_v56  ;;  %v3902_v32 = vadd.f32 %v3901_v48, %v3775_v8  ;;  %v2248_v43 = vadd.f32 1.0, %v2247_v53  ;;  %v2253_v4 = vadd.f32 1.0, %v11215_v10  ;;  %v11271_v8 = vld [vmem:[#allocation18_spill] sm:$0xff] }
 0x35e   :  { %v2623_v57 = vadd.f32 %v11214_v16, %v11212_v37  ;;  %v2256_v1 = vmul.f32 -0.5, %v11215_v10  ;;  %v2262_v35 = vadd.f32 1.0, %v11216_v2  ;;  %v11218_v52 = vmax.f32 %v11217_v0, 0.0  ;;  %v11225_v37 = vld [vmem:[#allocation98_spill] sm:$0xff] }
 0x35f   :  { %v11219_v44 = vsel %vm7745_vm13, %v7761_v61, %v7807_v3  ;;  %v3778_v39 = vmul.f32 0.0, %v2622_v40  ;;  %v3903_v11 = vadd.f32 %v3902_v32, %v3776_v28  ;;  %v8528_v59 = vmul.f32 %v11194_v9, %v2239_v7  ;;  %v4549_v51 = vpop.eup %4548  ;;  %v11222_v3 = vld [vmem:[#allocation95_spill] sm:$0xff] }
 0x360   :  { %v2624_v56 = vadd.f32 %v11219_v44, %v11218_v52  ;;  %vm8530_vm12 = vcmp.lt.f32.partialorder %v2250_v36, 0.0004427343  ;;  %v11220_v53 = vmov 0  ;;  %v2259_v47 = vand.u32 2147483647, %v11215_v10 }
 0x361   :  { %v11221_v53 = vsel %vm8530_vm12, 4294967295, %v11220_v53  ;;  %v2265_v61 = vmul.f32 -0.5, %v11216_v2  ;;  %v11223_v26 = vmax.f32 %v11222_v3, 0.0  ;;  %v11224_v18 = vsel %vm7777_vm6, %v7791_v30, %v7821_v31 }
 0x362   :  { %v3779_v28 = vmul.f32 0.0, %v2623_v57  ;;  %v3904_v9 = vadd.f32 %v3903_v11, %v3777_v38  ;;  %v8543_v48 = vmul.f32 0.6931472, %v4547_v25  ;;  %v8546_v7 = vmul.f32 %v11198_v41, %v2248_v43  ;;  %v4551_v42 = vpop.eup %4550  ;;  %v11228_v41 = vld [vmem:[#allocation252_spill] sm:$0xff]  ;;  %v11269_v11 = vld [vmem:[#allocation111_spill] sm:$0xff] }
 0x363   :  { %v2625_v40 = vadd.f32 %v11224_v18, %v11223_v26  ;;  %4552 = vlog2.f32 %v2253_v4  ;;  %v2257_v36 = vadd.f32 1.0, %v2256_v1  ;;  %v11226_v16 = vmax.f32 %v11225_v37, 0.0  ;;  %v11239_v18 = vld [vmem:[#allocation105_spill] sm:$0xff] }
 0x364   :  { %4554 = vlog2.f32 %v2262_v35  ;;  %v11227_v21 = vsel %vm7809_vm3, %v7824_v33, %v7856_v20  ;;  %v3780_v31 = vmul.f32 0.0, %v2624_v56  ;;  %v3905_v57 = vadd.f32 %v3904_v9, %v3778_v39  ;;  %v11234_v33 = vld [vmem:[#allocation16_spill] sm:$0xff]  ;;  %v11235_v20 = vld [vmem:[#allocation139_spill] sm:$0xff] }
 0x365   :  { %v2626_v30 = vadd.f32 %v11227_v21, %v11226_v16  ;;  %v8555_v38 = vmul.f32 0.6931472, %v4549_v51  ;;  %v2268_v32 = vand.u32 2147483647, %v11216_v2  ;;  %v2271_v25 = vadd.f32 1.0, %v11228_v41 }
 0x366   :  { %v2274_v43 = vmul.f32 -0.5, %v11228_v41  ;;  %vm8560_vm6 = vcmp.lt.f32.partialorder %v2259_v47, 0.0004427343  ;;  %v11229_v4 = vmov 0  ;;  %v2266_v1 = vadd.f32 1.0, %v2265_v61  ;;  %v11237_v61 = vld [vmem:[#allocation253_spill] sm:$0xff] }
 0x367   :  { %v11230_v4 = vsel %vm8560_vm6, 4294967295, %v11229_v4  ;;  %v11232_v35 = vmax.f32 %v11231_v55, 0.0  ;;  %v11236_v52 = vsel %vm7827_vm0, %v11234_v33, %v11235_v20  ;;  %v3781_v56 = vmul.f32 0.0, %v2625_v40  ;;  %v11242_v40 = vld [vmem:[#allocation134_spill] sm:$0xff] }
 0x368   :  { %v3906_v39 = vadd.f32 %v3905_v57, %v3779_v28  ;;  %v8575_v47 = vmul.f32 0.6931472, %v4551_v42  ;;  %v2277_v51 = vand.u32 2147483647, %v11228_v41  ;;  %v2280_v3 = vadd.f32 1.0, %v11237_v61  ;;  %v11243_v28 = vld [vmem:[#allocation17_spill] sm:$0xff] }
 0x369   :  { %v2627_v44 = vadd.f32 %v11236_v52, %v11232_v35  ;;  %v8580_v26 = vmul.f32 %v11215_v10, %v2257_v36  ;;  %v11240_v9 = vmax.f32 %v11239_v18, 0.0  ;;  %v11244_v16 = vsel %vm7861_vm14, %v11242_v40, %v11243_v28  ;;  %v4553_v35 = vpop.eup %4552  ;;  %v11251_v52 = vld [vmem:[#allocation184_spill] sm:$0xff]  ;;  %v11259_v40 = vld [vmem:[#allocation254_spill] sm:$0xff] }
 0x36a   :  { %v3782_v57 = vmul.f32 0.0, %v2626_v30  ;;  %v3907_v55 = vadd.f32 %v3906_v39, %v3780_v31  ;;  %4556 = vlog2.f32 %v2271_v25  ;;  %v2275_v0 = vadd.f32 1.0, %v2274_v43  ;;  %v4555_v36 = vpop.eup %4554  ;;  %v11249_v30 = vld [vmem:[#allocation107_spill] sm:$0xff]  ;;  %v11253_v39 = vld [vmem:[#allocation145_spill] sm:$0xff]  ;;  %v11254_v18 = vld [vmem:[#allocation152_spill] sm:$0xff] }
 0x36b   :  { %11238 = vst [vmem:[#allocation79_spill] sm:$0xff] %v8580_v26  ;;  %v2628_v21 = vadd.f32 %v11244_v16, %v11240_v9  ;;  %v2283_v10 = vmul.f32 -0.5, %v11237_v61  ;;  %v8595_v33 = vmul.f32 %v11216_v2, %v2266_v1  ;;  %vm8597_vm0 = vcmp.lt.f32.partialorder %v2268_v32, 0.0004427343  ;;  %v11260_v16 = vld [vmem:[#allocation109_spill] sm:$0xff] }
 0x36c   :  { %v11246_v20 = vmov 0  ;;  %v11250_v31 = vmax.f32 %v11249_v30, 0.0  ;;  %vm11252_vm13 = vnez %v11251_v52  ;;  %v3783_v25 = vmul.f32 0.0, %v2627_v44  ;;  %v11262_v52 = vld [vmem:[#allocation142_spill] sm:$0xff]  ;;  %v11264_v44 = vld [vmem:[#allocation71_spill] sm:$0xff]  ;;  %v11346_v26 = vld [vmem:[#allocation201_spill] sm:$0xff] }
 0x36d   :  { %11245 = vst [vmem:[#allocation27_spill] sm:$0xff] %v8595_v33  ;;  %v11247_v20 = vsel %vm8597_vm0, 4294967295, %v11246_v20  ;;  %v11255_v9 = vsel %vm11252_vm13, %v11253_v39, %v11254_v18  ;;  %v3908_v43 = vadd.f32 %v3907_v55, %v3781_v56  ;;  %vm8612_vm3 = vcmp.lt.f32.partialorder %v2277_v51, 0.0004427343  ;;  %v11265_v56 = vld [vmem:[#allocation153_spill] sm:$0xff] }
 0x36e   :  { %11248 = vst [vmem:[#allocation28_spill] sm:$0xff] %v11247_v20  ;;  %v2629_v37 = vadd.f32 %v11255_v9, %v11250_v31  ;;  %v11256_v32 = vmov 0  ;;  %4558 = vlog2.f32 %v2280_v3  ;;  %v2286_v1 = vand.u32 2147483647, %v11237_v61 }
 0x36f   :  { %v11257_v32 = vsel %vm8612_vm3, 4294967295, %v11256_v32  ;;  %v2289_v28 = vadd.f32 1.0, %v11259_v40  ;;  %v11261_v30 = vmax.f32 %v11260_v16, 0.0  ;;  %vm11263_vm14 = vnez %v11262_v52  ;;  %v11273_v52 = vld [vmem:[#allocation72_spill] sm:$0xff] }
 0x370   :  { %11258 = vst [vmem:[#allocation243_spill] sm:$0xff] %v11257_v32  ;;  %v11266_v55 = vsel %vm11263_vm14, %v11264_v44, %v11265_v56  ;;  %v3784_v39 = vmul.f32 0.0, %v2628_v21  ;;  %v3909_v18 = vadd.f32 %v3908_v43, %v3782_v57  ;;  %v8625_v9 = vmul.f32 0.6931472, %v4553_v35  ;;  %v4557_v35 = vpop.eup %4556  ;;  %v11343_v32 = vld [vmem:[#allocation22_spill] sm:$0xff] }
 0x371   :  { %v2630_v31 = vadd.f32 %v11266_v55, %v11261_v30  ;;  %v8628_v51 = vmul.f32 %v11228_v41, %v2275_v0  ;;  %v2284_v3 = vadd.f32 1.0, %v2283_v10  ;;  %v2292_v2 = vmul.f32 -0.5, %v11259_v40  ;;  %v11280_v0 = vld [vmem:[#allocation255_spill] sm:$0xff] }
 0x372   :  { %11267 = vst [vmem:[#allocation202_spill] sm:$0xff] %v8625_v9  ;;  %v2295_v42 = vand.u32 2147483647, %v11259_v40  ;;  %v11270_v16 = vmax.f32 %v11269_v11, 0.0  ;;  %vm11272_vm13 = vnez %v11271_v8  ;;  %v3785_v21 = vmul.f32 0.0, %v2629_v37  ;;  %v11281_v11 = vld [vmem:[#allocation115_spill] sm:$0xff] }
 0x373   :  { %11268 = vst [vmem:[#allocation29_spill] sm:$0xff] %v8628_v51  ;;  %v11275_v44 = vsel %vm11272_vm13, %v11273_v52, %v11274_v5  ;;  %v3910_v57 = vadd.f32 %v3909_v18, %v3783_v25  ;;  %v8639_v43 = vmul.f32 0.6931472, %v4555_v36  ;;  %vm8641_vm14 = vcmp.lt.f32.partialorder %v2286_v1, 0.0004427343  ;;  %v11283_v55 = vld [vmem:[#allocation19_spill] sm:$0xff] }
 0x374   :  { %v2631_v30 = vadd.f32 %v11275_v44, %v11270_v16  ;;  %v11277_v41 = vmov 0  ;;  %v2298_v10 = vadd.f32 1.0, %v11280_v0  ;;  %v2301_v56 = vmul.f32 -0.5, %v11280_v0  ;;  %v11285_v5 = vld [vmem:[#allocation160_spill] sm:$0xff]  ;;  %v11286_v16 = vld [vmem:[#allocation73_spill] sm:$0xff]  ;;  %v4559_v52 = vpop.eup %4558 }
 0x375   :  { %11276 = vst [vmem:[#allocation30_spill] sm:$0xff] %v8639_v43  ;;  %v11278_v41 = vsel %vm8641_vm14, 4294967295, %v11277_v41  ;;  %4560 = vlog2.f32 %v2289_v28  ;;  %v11282_v8 = vmax.f32 %v11281_v11, 0.0  ;;  %vm11284_vm12 = vnez %v11283_v55  ;;  %v11341_v51 = vld [vmem:[#allocation128_spill] sm:$0xff] }
 0x376   :  { %11279 = vst [vmem:[#allocation264_spill] sm:$0xff] %v11278_v41  ;;  %v11287_v37 = vsel %vm11284_vm12, %v11285_v5, %v11286_v16  ;;  %v3786_v18 = vmul.f32 0.0, %v2630_v31  ;;  %v3911_v36 = vadd.f32 %v3910_v57, %v3784_v39  ;;  %v8659_v44 = vmul.f32 %v11237_v61, %v2284_v3  ;;  %v11292_v31 = vld [vmem:[#allocation117_spill] sm:$0xff]  ;;  %v11294_v57 = vld [vmem:[#allocation20_spill] sm:$0xff] }
 0x377   :  { %v2632_v25 = vadd.f32 %v11287_v37, %v11282_v8  ;;  %v2293_v28 = vadd.f32 1.0, %v2292_v2  ;;  %v2304_v11 = vand.u32 2147483647, %v11280_v0  ;;  %v8662_v63 = vmul.f32 0.6931472, %v4557_v35  ;;  %v11296_v8 = vld [vmem:[#allocation187_spill] sm:$0xff] }
 0x378   :  { %11288 = vst [vmem:[#allocation203_spill] sm:$0xff] %v8659_v44  ;;  %vm8664_vm13 = vcmp.lt.f32.partialorder %v2295_v42, 0.0004427343  ;;  %v11290_v55 = vmov 0  ;;  %v11293_v39 = vmax.f32 %v11292_v31, 0.0  ;;  %vm11295_vm12 = vnez %v11294_v57  ;;  %v11297_v5 = vld [vmem:[#allocation172_spill] sm:$0xff] }
 0x379   :  { %11289 = vst [vmem:[#allocation31_spill] sm:$0xff] %v8662_v63  ;;  %v11291_v55 = vsel %vm8664_vm13, 4294967295, %v11290_v55  ;;  %v11298_v16 = vsel %vm11295_vm12, %v11296_v8, %v11297_v5  ;;  %v3787_v1 = vmul.f32 0.0, %v2631_v30  ;;  %v3912_v61 = vadd.f32 %v3911_v36, %v3785_v21  ;;  %v11299_v3 = vld [vmem:[#allocation256_spill] sm:$0xff]  ;;  %v11305_v30 = vld [vmem:[#allocation169_spill] sm:$0xff]  ;;  %v11339_v44 = vld [vmem:[#allocation259_spill] sm:$0xff] }
 0x37a   :  { %v2633_v37 = vadd.f32 %v11298_v16, %v11293_v39  ;;  %4562 = vlog2.f32 %v2298_v10  ;;  %v2302_v2 = vadd.f32 1.0, %v2301_v56  ;;  %v2307_v9 = vadd.f32 1.0, %v11299_v3  ;;  %v11301_v31 = vld [vmem:[#allocation120_spill] sm:$0xff]  ;;  %v11306_v21 = vld [vmem:[#allocation21_spill] sm:$0xff] }
 0x37b   :  { %v2310_v35 = vmul.f32 -0.5, %v11299_v3  ;;  %v8680_v42 = vmul.f32 0.6931472, %v4559_v52  ;;  %v11302_v57 = vmax.f32 %v11301_v31, 0.0  ;;  %v11303_v8 = vld [vmem:[#allocation168_spill] sm:$0xff]  ;;  %v3788_v36 = vmul.f32 0.0, %v2632_v25  ;;  %v4561_v25 = vpop.eup %4560 }
 0x37c   :  { %vm11304_vm12 = vnez %v11303_v8  ;;  %v3913_v39 = vadd.f32 %v3912_v61, %v3786_v18  ;;  %v8694_v52 = vmul.f32 %v11259_v40, %v2293_v28  ;;  %vm8696_vm6 = vcmp.lt.f32.partialorder %v2304_v11, 0.0004427343  ;;  %v11312_v8 = vld [vmem:[#allocation257_spill] sm:$0xff]  ;;  %v11313_v61 = vld [vmem:[#allocation123_spill] sm:$0xff]  ;;  %v11317_v28 = vld [vmem:[#allocation76_spill] sm:$0xff] }
 0x37d   :  { %11300 = vst [vmem:[#allocation268_spill] sm:$0xff] %v8680_v42  ;;  %v11307_v10 = vsel %vm11304_vm12, %v11305_v30, %v11306_v21  ;;  %v11309_v16 = vmov 0  ;;  %v2313_v31 = vand.u32 2147483647, %v11299_v3  ;;  %v11314_v30 = vmax.f32 %v11313_v61, 0.0  ;;  %v11316_v40 = vld [vmem:[#allocation191_spill] sm:$0xff] }
 0x37e   :  { %v2634_v56 = vadd.f32 %v11307_v10, %v11302_v57  ;;  %11308 = vst [vmem:[#allocation266_spill] sm:$0xff] %v8694_v52  ;;  %v11310_v16 = vsel %vm8696_vm6, 4294967295, %v11309_v16  ;;  %v2316_v57 = vadd.f32 1.0, %v11312_v8  ;;  %vm11315_vm12 = vnez %v10963_v54  ;;  %v11320_v18 = vld [vmem:[#allocation124_spill] sm:$0xff]  ;;  %v11382_v52 = vld [vmem:[#allocation11_spill] sm:$0xff] }
 0x37f   :  { %11311 = vst [vmem:[#allocation265_spill] sm:$0xff] %v11310_v16  ;;  %v11318_v11 = vsel %vm11315_vm12, %v11316_v40, %v11317_v28  ;;  %v3789_v10 = vmul.f32 0.0, %v2633_v37  ;;  %v3914_v5 = vadd.f32 %v3913_v39, %v3787_v1  ;;  %v8714_v43 = vmul.f32 %v11280_v0, %v2302_v2  ;;  %v11323_v40 = vld [vmem:[#allocation176_spill] sm:$0xff]  ;;  %v11327_v28 = vld [vmem:[#allocation258_spill] sm:$0xff] }
 0x380   :  { %v2635_v21 = vadd.f32 %v11318_v11, %v11314_v30  ;;  %4564 = vlog2.f32 %v2307_v9  ;;  %v2311_v33 = vadd.f32 1.0, %v2310_v35  ;;  %v2319_v20 = vmul.f32 -0.5, %v11312_v8  ;;  %v11324_v30 = vld [vmem:[#allocation183_spill] sm:$0xff]  ;;  %v4563_v2 = vpop.eup %4562 }
 0x381   :  { %11319 = vst [vmem:[#allocation206_spill] sm:$0xff] %v8714_v43  ;;  %v11321_v54 = vmax.f32 %v11320_v18, 0.0  ;;  %vm11322_vm3 = vnez %v10990_v19  ;;  %v3790_v39 = vmul.f32 0.0, %v2634_v56  ;;  %v3915_v0 = vadd.f32 %v3914_v5, %v3788_v36  ;;  %v11331_v18 = vld [vmem:[#allocation127_spill] sm:$0xff]  ;;  %v11335_v56 = vld [vmem:[#allocation192_spill] sm:$0xff]  ;;  %v11336_v36 = vld [vmem:[#allocation185_spill] sm:$0xff] }
 0x382   :  { %v11325_v37 = vsel %vm11322_vm3, %v11323_v40, %v11324_v30  ;;  %v8728_v9 = vmul.f32 0.6931472, %v4561_v25  ;;  %4566 = vlog2.f32 %v2316_v57  ;;  %v2322_v35 = vand.u32 2147483647, %v11312_v8  ;;  %v11333_v40 = vld [vmem:[#allocation177_spill] sm:$0xff]  ;;  %v11367_v43 = vld [vmem:[#allocation136_spill] sm:$0xff] }
 0x383   :  { %v2636_v1 = vadd.f32 %v11325_v37, %v11321_v54  ;;  %v2328_v11 = vmul.f32 -0.5, %v11327_v28  ;;  %vm8732_vm12 = vcmp.lt.f32.partialorder %v2313_v31, 0.0004427343  ;;  %v11328_v61 = vmov 0 }
 0x384   :  { %11326 = vst [vmem:[#allocation32_spill] sm:$0xff] %v8728_v9  ;;  %v11329_v61 = vsel %vm8732_vm12, 4294967295, %v11328_v61  ;;  %v2325_v19 = vadd.f32 1.0, %v11327_v28  ;;  %v11332_v42 = vmax.f32 %v11331_v18, 0.0  ;;  %vm11334_vm3 = vnez %v11333_v40  ;;  %v11345_v40 = vld [vmem:[#allocation189_spill] sm:$0xff]  ;;  %v11371_v9 = vld [vmem:[#allocation219_spill] sm:$0xff] }
 0x385   :  { %11330 = vst [vmem:[#allocation275_spill] sm:$0xff] %v11329_v61  ;;  %v11337_v5 = vsel %vm11334_vm3, %v11335_v56, %v11336_v36  ;;  %v3791_v54 = vmul.f32 0.0, %v2635_v21  ;;  %v3916_v57 = vadd.f32 %v3915_v0, %v3789_v10  ;;  %v8745_v30 = vmul.f32 %v11299_v3, %v2311_v33 }
 0x386   :  { %v2637_v25 = vadd.f32 %v11337_v5, %v11332_v42  ;;  %v2320_v37 = vadd.f32 1.0, %v2319_v20  ;;  %v2331_v31 = vand.u32 2147483647, %v11327_v28  ;;  %v2334_v41 = vadd.f32 1.0, %v11339_v44  ;;  %v4565_v0 = vpop.eup %4564 }
 0x387   :  { %11338 = vst [vmem:[#allocation271_spill] sm:$0xff] %v8745_v30  ;;  %v8749_v63 = vmul.f32 0.6931472, %v4563_v2  ;;  %v11342_v18 = vmax.f32 %v11341_v51, 0.0  ;;  %vm11344_vm14 = vnez %v11343_v32  ;;  %v3792_v21 = vmul.f32 0.0, %v2636_v1  ;;  %v11350_v32 = vld [vmem:[#allocation131_spill] sm:$0xff] }
 0x388   :  { %v11347_v56 = vsel %vm11344_vm14, %v11345_v40, %v11346_v26  ;;  %v3917_v10 = vadd.f32 %v3916_v57, %v3790_v39  ;;  %vm8762_vm3 = vcmp.lt.f32.partialorder %v2322_v35, 0.0004427343  ;;  %v2329_v3 = vadd.f32 1.0, %v2328_v11  ;;  %v11352_v26 = vld [vmem:[#allocation23_spill] sm:$0xff]  ;;  %v11354_v1 = vld [vmem:[#allocation194_spill] sm:$0xff]  ;;  %v11355_v39 = vld [vmem:[#allocation24_spill] sm:$0xff]  ;;  %v4567_v40 = vpop.eup %4566 }
 0x389   :  { %11340 = vst [vmem:[#allocation279_spill] sm:$0xff] %v8749_v63  ;;  %v2638_v42 = vadd.f32 %v11347_v56, %v11342_v18  ;;  %v2337_v51 = vmul.f32 -0.5, %v11339_v44  ;;  %4568 = vlog2.f32 %v2325_v19  ;;  %v11351_v2 = vmax.f32 %v11350_v32, 0.0  ;;  %v11357_v56 = vld [vmem:[#allocation260_spill] sm:$0xff] }
 0x38a   :  { %vm11353_vm14 = vnez %v11352_v26  ;;  %v3793_v57 = vmul.f32 0.0, %v2637_v25  ;;  %v3918_v18 = vadd.f32 %v3917_v10, %v3791_v54  ;;  %v8775_v35 = vmul.f32 %v11312_v8, %v2320_v37  ;;  %v11360_v25 = vld [vmem:[#allocation133_spill] sm:$0xff]  ;;  %v11363_v8 = vld [vmem:[#allocation195_spill] sm:$0xff]  ;;  %v11364_v37 = vld [vmem:[#allocation210_spill] sm:$0xff] }
 0x38b   :  { %v11356_v36 = vsel %vm11353_vm14, %v11354_v1, %v11355_v39  ;;  %4570 = vlog2.f32 %v2334_v41  ;;  %v2340_v11 = vand.u32 2147483647, %v11339_v44  ;;  %v2343_v33 = vadd.f32 1.0, %v11357_v56  ;;  %v11370_v10 = vld [vmem:[#allocation209_spill] sm:$0xff] }
 0x38c   :  { %v2639_v5 = vadd.f32 %v11356_v36, %v11351_v2  ;;  %vm8783_vm13 = vcmp.lt.f32.partialorder %v2331_v31, 0.0004427343  ;;  %v11361_v54 = vmax.f32 %v11360_v25, 0.0  ;;  %v11365_v41 = vsel %vm8188_vm8, %v11363_v8, %v11364_v37  ;;  %v11376_v37 = vld [vmem:[#allocation141_spill] sm:$0xff] }
 0x38d   :  { %v3794_v26 = vmul.f32 0.0, %v2638_v42  ;;  %v3919_v1 = vadd.f32 %v3918_v18, %v3792_v21  ;;  %v8794_v39 = vmul.f32 0.6931472, %v4565_v0  ;;  %v8797_v36 = vmul.f32 %v11327_v28, %v2329_v3  ;;  %v11375_v3 = vld [vmem:[#allocation261_spill] sm:$0xff]  ;;  %v11513_v28 = vld [vmem:[#allocation78_spill] sm:$0xff] }
 0x38e   :  { %v2640_v2 = vadd.f32 %v11365_v41, %v11361_v54  ;;  %v2338_v19 = vadd.f32 1.0, %v2337_v51  ;;  %v2346_v31 = vmul.f32 -0.5, %v11357_v56  ;;  %v2349_v63 = vand.u32 2147483647, %v11357_v56  ;;  %v11517_v41 = vld [vmem:[#allocation197_spill] sm:$0xff] }
 0x38f   :  { %11366 = vst [vmem:[#allocation33_spill] sm:$0xff] %v8794_v39  ;;  %v11368_v25 = vmax.f32 %v11367_v43, 0.0  ;;  %v11372_v8 = vsel %vm8231_vm1, %v11370_v10, %v11371_v9  ;;  %v3795_v42 = vmul.f32 0.0, %v2639_v5  ;;  %v3920_v21 = vadd.f32 %v3919_v1, %v3793_v57  ;;  %v4569_v18 = vpop.eup %4568  ;;  %v11379_v9 = vld [vmem:[#allocation218_spill] sm:$0xff] }
 0x390   :  { %v8808_v0 = vmul.f32 0.6931472, %v4567_v40  ;;  %vm8810_vm8 = vcmp.lt.f32.partialorder %v2340_v11, 0.0004427343  ;;  %4572 = vlog2.f32 %v2343_v33  ;;  %v2355_v51 = vmul.f32 -0.5, %v11375_v3 }
 0x391   :  { %v2641_v54 = vadd.f32 %v11372_v8, %v11368_v25  ;;  %v2352_v43 = vadd.f32 1.0, %v11375_v3  ;;  %v11377_v16 = vmax.f32 %v11376_v37, 0.0  ;;  %v11380_v25 = vld [vmem:[#allocation26_spill] sm:$0xff]  ;;  %v3796_v40 = vmul.f32 0.0, %v2640_v2  ;;  %v4571_v11 = vpop.eup %4570  ;;  %v11385_v2 = vld [vmem:[#allocation143_spill] sm:$0xff] }
 0x392   :  { %v11381_v5 = vsel %vm8254_vm7, %v11379_v9, %v11380_v25  ;;  %v3921_v1 = vadd.f32 %v3920_v21, %v3794_v26  ;;  %v8828_v10 = vmul.f32 %v11339_v44, %v2338_v19  ;;  %v2347_v8 = vadd.f32 1.0, %v2346_v31  ;;  %v11388_v9 = vld [vmem:[#allocation196_spill] sm:$0xff]  ;;  %v11389_v25 = vld [vmem:[#allocation229_spill] sm:$0xff] }
 0x393   :  { %v2642_v57 = vadd.f32 %v11381_v5, %v11377_v16  ;;  %v2361_v37 = vadd.f32 1.0, %v11382_v52  ;;  %vm8831_vm1 = vcmp.lt.f32.partialorder %v2349_v63, 0.0004427343  ;;  %v2358_v16 = vand.u32 2147483647, %v11375_v3  ;;  %v11496_v63 = vld [vmem:[#allocation97_spill] sm:$0xff] }
 0x394   :  { %v11386_v26 = vmax.f32 %v11385_v2, 0.0  ;;  %v11390_v5 = vsel %vm8271_vm11, %v11388_v9, %v11389_v25  ;;  %v3797_v39 = vmul.f32 0.0, %v2641_v54  ;;  %v3922_v44 = vadd.f32 %v3921_v1, %v3795_v42  ;;  %v11391_v2 = vld [vmem:[#allocation147_spill] sm:$0xff] }
 0x395   :  { %v8847_v19 = vmul.f32 0.6931472, %v4569_v18  ;;  %v2356_v31 = vadd.f32 1.0, %v2355_v51  ;;  %v2364_v30 = vmul.f32 -0.5, %v11382_v52  ;;  %4574 = vlog2.f32 %v2352_v43  ;;  %v11394_v51 = vld [vmem:[#allocation262_spill] sm:$0xff] }
 0x396   :  { %v2643_v33 = vadd.f32 %v11390_v5, %v11386_v26  ;;  %v11392_v61 = vmax.f32 %v11391_v2, 0.0  ;;  %v11393_v26 = vsel %vm8328_vm2, %v8326_v49, %v8377_v46  ;;  %v3798_v42 = vmul.f32 0.0, %v2642_v57  ;;  %v4573_v21 = vpop.eup %4572  ;;  %v11397_v5 = vld [vmem:[#allocation148_spill] sm:$0xff] }
 0x397   :  { %v3923_v1 = vadd.f32 %v3922_v44, %v3796_v40  ;;  %v8857_v9 = vmul.f32 0.6931472, %v4571_v11  ;;  %v8860_v18 = vmul.f32 %v11357_v56, %v2347_v8  ;;  %4576 = vlog2.f32 %v2361_v37 }
 0x398   :  { %v2644_v54 = vadd.f32 %v11393_v26, %v11392_v61  ;;  %v2370_v25 = vadd.f32 1.0, %v11394_v51  ;;  %vm8863_vm11 = vcmp.lt.f32.partialorder %v2358_v16, 0.0004427343  ;;  %v2367_v12 = vand.u32 2147483647, %v11382_v52 }
 0x399   :  { %v11398_v46 = vmax.f32 %v11397_v5, 0.0  ;;  %vm11399_vm7 = vnez %v11134_v15  ;;  %v3799_v57 = vmul.f32 0.0, %v2643_v33  ;;  %v3924_v56 = vadd.f32 %v3923_v1, %v3797_v39  ;;  %v11401_v15 = vld [vmem:[#allocation151_spill] sm:$0xff] }
 0x39a   :  { %v11400_v49 = vsel %vm11399_vm7, %v8349_v29, %v8391_v62  ;;  %v8880_v11 = vmul.f32 %v11375_v3, %v2356_v31  ;;  %v2365_v8 = vadd.f32 1.0, %v2364_v30  ;;  %v2373_v37 = vmul.f32 -0.5, %v11394_v51  ;;  %v11403_v29 = vld [vmem:[#allocation84_spill] sm:$0xff]  ;;  %v11404_v62 = vld [vmem:[#allocation231_spill] sm:$0xff] }
 0x39b   :  { %v2645_v61 = vadd.f32 %v11400_v49, %v11398_v46  ;;  %v2376_v16 = vand.u32 2147483647, %v11394_v51  ;;  %v11402_v44 = vmax.f32 %v11401_v15, 0.0  ;;  %v11405_v39 = vsel %vm8352_vm5, %v11403_v29, %v11404_v62  ;;  %v11406_v31 = vld [vmem:[#allocation263_spill] sm:$0xff]  ;;  %v4575_v5 = vpop.eup %4574 }
 0x39c   :  { %v3800_v2 = vmul.f32 0.0, %v2644_v54  ;;  %v3925_v26 = vadd.f32 %v3924_v56, %v3798_v42  ;;  %v8895_v30 = vmul.f32 0.6931472, %v4573_v21  ;;  %4578 = vlog2.f32 %v2370_v25  ;;  %v11413_v62 = vld [vmem:[#allocation91_spill] sm:$0xff] }
 0x39d   :  { %v2646_v33 = vadd.f32 %v11405_v39, %v11402_v44  ;;  %v2382_v1 = vmul.f32 -0.5, %v11406_v31  ;;  %v2379_v46 = vadd.f32 1.0, %v11406_v31  ;;  %v11408_v49 = vmax.f32 %v11407_v23, 0.0  ;;  %v4577_v44 = vpop.eup %4576 }
 0x39e   :  { %vm11409_vm2 = vnez %v11169_v17  ;;  %v3801_v56 = vmul.f32 0.0, %v2645_v61  ;;  %v3926_v15 = vadd.f32 %v3925_v26, %v3799_v57  ;;  %v8907_v21 = vmul.f32 %v11382_v52, %v2365_v8  ;;  %v11490_v8 = vld [vmem:[#allocation186_spill] sm:$0xff] }
 0x39f   :  { %v11410_v54 = vsel %vm11409_vm2, %v8412_v24, %v8446_v6  ;;  %vm8909_vm5 = vcmp.lt.f32.partialorder %v2367_v12, 0.0004427343  ;;  %v2374_v29 = vadd.f32 1.0, %v2373_v37  ;;  %v2388_v39 = vadd.f32 1.0, %v11413_v62  ;;  %v11416_v24 = vld [vmem:[#allocation156_spill] sm:$0xff] }
 0x3a0   :  { %v2647_v42 = vadd.f32 %v11410_v54, %v11408_v49  ;;  %vm8914_vm14 = vcmp.lt.f32.partialorder %v2376_v16, 0.0004427343  ;;  %v2385_v17 = vand.u32 2147483647, %v11406_v31  ;;  %v11417_v6 = vmax.f32 %v11416_v24, 0.0  ;;  %v11419_v49 = vld [vmem:[#allocation159_spill] sm:$0xff] }
 0x3a1   :  { %v11418_v52 = vsel %vm8415_vm9, %v8431_v22, %v8475_v45  ;;  %v3802_v61 = vmul.f32 0.0, %v2646_v33  ;;  %v3927_v57 = vadd.f32 %v3926_v15, %v3800_v2  ;;  %v8930_v37 = vmul.f32 0.6931472, %v4575_v5 }
 0x3a2   :  { %v2648_v12 = vadd.f32 %v11418_v52, %v11417_v6  ;;  %v2383_v16 = vadd.f32 1.0, %v2382_v1  ;;  %v2391_v26 = vmul.f32 -0.5, %v11413_v62  ;;  %4580 = vlog2.f32 %v2379_v46  ;;  %v4579_v2 = vpop.eup %4578  ;;  %v11425_v6 = vld [vmem:[#allocation163_spill] sm:$0xff]  ;;  %v11428_v52 = vld [vmem:[#allocation94_spill] sm:$0xff]  ;;  %v11536_v46 = vld [vmem:[#allocation205_spill] sm:$0xff] }
 0x3a3   :  { %v11420_v54 = vmax.f32 %v11419_v49, 0.0  ;;  %v11421_v60 = vsel %vm8448_vm4, %v8478_v50, %v8492_v34  ;;  %v3803_v45 = vmul.f32 0.0, %v2647_v42  ;;  %v3928_v33 = vadd.f32 %v3927_v57, %v3801_v56 }
 0x3a4   :  { %v8940_v15 = vmul.f32 0.6931472, %v4577_v44  ;;  %v8943_v5 = vmul.f32 %v11394_v51, %v2374_v29  ;;  %4582 = vlog2.f32 %v2388_v39  ;;  %v2394_v1 = vand.u32 2147483647, %v11413_v62  ;;  %v11466_v44 = vld [vmem:[#allocation264_spill] sm:$0xff] }
 0x3a5   :  { %v2649_v22 = vadd.f32 %v11421_v60, %v11420_v54  ;;  %vm8946_vm9 = vcmp.lt.f32.partialorder %v2385_v17, 0.0004427343  ;;  %v2400_v24 = vmul.f32 -0.5, %v11424_v14  ;;  %v11426_v50 = vmax.f32 %v11425_v6, 0.0 }
 0x3a6   :  { %v11427_v34 = vsel %vm8481_vm15, %v8495_v27, %v8543_v48  ;;  %v3804_v56 = vmul.f32 0.0, %v2648_v12  ;;  %v3929_v51 = vadd.f32 %v3928_v33, %v3802_v61  ;;  %v8963_v29 = vmul.f32 %v11406_v31, %v2383_v16  ;;  %v11434_v33 = vld [vmem:[#allocation167_spill] sm:$0xff] }
 0x3a7   :  { %v2650_v42 = vadd.f32 %v11427_v34, %v11426_v50  ;;  %v2392_v39 = vadd.f32 1.0, %v2391_v26  ;;  %v2397_v17 = vadd.f32 1.0, %v11424_v14  ;;  %v2406_v57 = vadd.f32 1.0, %v11428_v52 }
 0x3a8   :  { %v11430_v49 = vmax.f32 %v11429_v58, 0.0  ;;  %v11431_v27 = vsel %vm8498_vm10, %v8528_v59, %v8555_v38  ;;  %v3805_v12 = vmul.f32 0.0, %v2649_v22  ;;  %v3930_v61 = vadd.f32 %v3929_v51, %v3803_v45  ;;  %v4581_v13 = vpop.eup %4580  ;;  %v11442_v58 = vld [vmem:[#allocation202_spill] sm:$0xff] }
 0x3a9   :  { %v8978_v16 = vmul.f32 0.6931472, %v4579_v2  ;;  %vm8980_vm4 = vcmp.lt.f32.partialorder %v2394_v1, 0.0004427343  ;;  %v2403_v54 = vand.u32 2147483647, %v11424_v14  ;;  %vm11436_vm10 = vnez %v11221_v53 }
 0x3aa   :  { %v2651_v48 = vadd.f32 %v11431_v27, %v11430_v49  ;;  %v2401_v60 = vadd.f32 1.0, %v2400_v24  ;;  %v11435_v59 = vmax.f32 %v11434_v33, 0.0  ;;  %v11437_v38 = vsel %vm11436_vm10, %v8546_v7, %v8575_v47  ;;  %v4583_v2 = vpop.eup %4582  ;;  %v11438_v24 = vld [vmem:[#allocation170_spill] sm:$0xff]  ;;  %v11441_v53 = vld [vmem:[#allocation79_spill] sm:$0xff] }
 0x3ab   :  { %v3806_v45 = vmul.f32 0.0, %v2650_v42  ;;  %v3931_v6 = vadd.f32 %v3930_v61, %v3804_v56  ;;  %v8993_v1 = vmul.f32 %v11413_v62, %v2392_v39  ;;  %4584 = vlog2.f32 %v2397_v17  ;;  %v11451_v33 = vld [vmem:[#allocation27_spill] sm:$0xff]  ;;  %v11461_v62 = vld [vmem:[#allocation29_spill] sm:$0xff] }
 0x3ac   :  { %v2652_v22 = vadd.f32 %v11437_v38, %v11435_v59  ;;  %v2409_v50 = vmul.f32 -0.5, %v11428_v52  ;;  %v2412_v34 = vand.u32 2147483647, %v11428_v52  ;;  %4586 = vlog2.f32 %v2406_v57  ;;  %v11446_v57 = vld [vmem:[#allocation267_spill] sm:$0xff]  ;;  %v11452_v59 = vld [vmem:[#allocation30_spill] sm:$0xff]  ;;  %v11549_v17 = vld [vmem:[#allocation213_spill] sm:$0xff] }
 0x3ad   :  { %v11439_v51 = vmax.f32 %v11438_v24, 0.0  ;;  %vm11440_vm15 = vnez %v11230_v4  ;;  %v3807_v42 = vmul.f32 0.0, %v2651_v48  ;;  %v3932_v56 = vadd.f32 %v3931_v6, %v3805_v12  ;;  %v11448_v48 = vld [vmem:[#allocation171_spill] sm:$0xff] }
 0x3ae   :  { %v11443_v7 = vsel %vm11440_vm15, %v11441_v53, %v11442_v58  ;;  %v9008_v39 = vmul.f32 0.6931472, %v4581_v13  ;;  %vm9010_vm7 = vcmp.lt.f32.partialorder %v2403_v54, 0.0004427343  ;;  %v2415_v49 = vadd.f32 1.0, %v11446_v57  ;;  %v11456_v58 = vld [vmem:[#allocation269_spill] sm:$0xff] }
 0x3af   :  { %v2653_v47 = vadd.f32 %v11443_v7, %v11439_v51  ;;  %v2418_v4 = vmul.f32 -0.5, %v11446_v57  ;;  %v9017_v27 = vmul.f32 %v11424_v14, %v2401_v60  ;;  %v11449_v12 = vmax.f32 %v11448_v48, 0.0  ;;  %v11457_v7 = vld [vmem:[#allocation175_spill] sm:$0xff] }
 0x3b0   :  { %v11453_v38 = vsel %vm8597_vm0, %v11451_v33, %v11452_v59  ;;  %v3808_v6 = vmul.f32 0.0, %v2652_v22  ;;  %v3933_v54 = vadd.f32 %v3932_v56, %v3806_v45  ;;  %v9026_v24 = vmul.f32 0.6931472, %v4583_v2  ;;  %v11459_v61 = vld [vmem:[#allocation243_spill] sm:$0xff] }
 0x3b1   :  { %11447 = vst [vmem:[#allocation34_spill] sm:$0xff] %v9017_v27  ;;  %v2654_v13 = vadd.f32 %v11453_v38, %v11449_v12  ;;  %v2410_v51 = vadd.f32 1.0, %v2409_v50  ;;  %vm9028_vm2 = vcmp.lt.f32.partialorder %v2412_v34, 0.0004427343  ;;  %v2424_v14 = vadd.f32 1.0, %v11456_v58  ;;  %v11462_v33 = vld [vmem:[#allocation31_spill] sm:$0xff]  ;;  %v4585_v56 = vpop.eup %4584 }
 0x3b2   :  { %v2421_v60 = vand.u32 2147483647, %v11446_v57  ;;  %v11458_v48 = vmax.f32 %v11457_v7, 0.0  ;;  %vm11460_vm10 = vnez %v11459_v61  ;;  %v3809_v45 = vmul.f32 0.0, %v2653_v47  ;;  %v4587_v38 = vpop.eup %4586  ;;  %v11464_v61 = vld [vmem:[#allocation179_spill] sm:$0xff]  ;;  %v11469_v47 = vld [vmem:[#allocation268_spill] sm:$0xff] }
 0x3b3   :  { %v11463_v12 = vsel %vm11460_vm10, %v11461_v62, %v11462_v33  ;;  %v3934_v2 = vadd.f32 %v3933_v54, %v3807_v42  ;;  %4588 = vlog2.f32 %v2415_v49  ;;  %v2419_v34 = vadd.f32 1.0, %v2418_v4  ;;  %v11468_v62 = vld [vmem:[#allocation203_spill] sm:$0xff] }
 0x3b4   :  { %v2655_v22 = vadd.f32 %v11463_v12, %v11458_v48  ;;  %v2427_v59 = vmul.f32 -0.5, %v11456_v58  ;;  %v2430_v7 = vand.u32 2147483647, %v11456_v58  ;;  %v11465_v31 = vmax.f32 %v11464_v61, 0.0  ;;  %v11471_v12 = vld [vmem:[#allocation96_spill] sm:$0xff] }
 0x3b5   :  { %vm11467_vm0 = vnez %v11466_v44  ;;  %v3810_v48 = vmul.f32 0.0, %v2654_v13  ;;  %v3935_v33 = vadd.f32 %v3934_v2, %v3808_v6  ;;  %v9059_v4 = vmul.f32 %v11428_v52, %v2410_v51  ;;  %v11478_v6 = vld [vmem:[#allocation266_spill] sm:$0xff]  ;;  %v11479_v2 = vld [vmem:[#allocation32_spill] sm:$0xff] }
 0x3b6   :  { %v11470_v42 = vsel %vm11467_vm0, %v11468_v62, %v11469_v47  ;;  %4590 = vlog2.f32 %v2424_v14  ;;  %v2433_v50 = vadd.f32 1.0, %v11471_v12  ;;  %v9062_v61 = vmul.f32 0.6931472, %v4585_v56  ;;  %v11554_v44 = vld [vmem:[#allocation216_spill] sm:$0xff] }
 0x3b7   :  { %v2656_v54 = vadd.f32 %v11470_v42, %v11465_v31  ;;  %vm9064_vm15 = vcmp.lt.f32.partialorder %v2421_v60, 0.0004427343  ;;  %v11475_v31 = vld [vmem:[#allocation180_spill] sm:$0xff]  ;;  %vm11477_vm10 = vnez %v11291_v55  ;;  %v3811_v42 = vmul.f32 0.0, %v2655_v22 }
 0x3b8   :  { %11472 = vst [vmem:[#allocation208_spill] sm:$0xff] %v9062_v61  ;;  %v11476_v13 = vmax.f32 %v11475_v31, 0.0  ;;  %v11480_v62 = vsel %vm11477_vm10, %v11478_v6, %v11479_v2  ;;  %v3936_v52 = vadd.f32 %v3935_v33, %v3809_v45  ;;  %v9075_v51 = vmul.f32 0.6931472, %v4587_v38  ;;  %v11483_v31 = vld [vmem:[#allocation182_spill] sm:$0xff]  ;;  %v11497_v61 = vld [vmem:[#allocation188_spill] sm:$0xff] }
 0x3b9   :  { %v9078_v14 = vmul.f32 %v11446_v57, %v2419_v34  ;;  %v2428_v56 = vadd.f32 1.0, %v2427_v59  ;;  %v2436_v60 = vmul.f32 -0.5, %v11471_v12  ;;  %vm9081_vm0 = vcmp.lt.f32.partialorder %v2430_v7, 0.0004427343  ;;  %v11486_v6 = vld [vmem:[#allocation206_spill] sm:$0xff]  ;;  %v4589_v2 = vpop.eup %4588 }
 0x3ba   :  { %v2657_v47 = vadd.f32 %v11480_v62, %v11476_v13  ;;  %v11484_v55 = vmax.f32 %v11483_v31, 0.0  ;;  %v11487_v13 = vld [vmem:[#allocation279_spill] sm:$0xff]  ;;  %v3812_v38 = vmul.f32 0.0, %v2656_v54  ;;  %v3937_v33 = vadd.f32 %v3936_v52, %v3810_v48  ;;  %v11489_v34 = vld [vmem:[#allocation270_spill] sm:$0xff]  ;;  %v11494_v54 = vld [vmem:[#allocation33_spill] sm:$0xff] }
 0x3bb   :  { %v11488_v22 = vsel %vm8696_vm6, %v11486_v6, %v11487_v13  ;;  %4592 = vlog2.f32 %v2433_v50  ;;  %v2439_v57 = vand.u32 2147483647, %v11471_v12  ;;  %v2442_v59 = vadd.f32 1.0, %v11489_v34 }
 0x3bc   :  { %v2658_v45 = vadd.f32 %v11488_v22, %v11484_v55  ;;  %v2445_v7 = vmul.f32 -0.5, %v11489_v34  ;;  %v11491_v31 = vmax.f32 %v11490_v8, 0.0  ;;  %v11493_v55 = vld [vmem:[#allocation271_spill] sm:$0xff]  ;;  %v3813_v50 = vmul.f32 0.0, %v2657_v47  ;;  %v4591_v13 = vpop.eup %4590 }
 0x3bd   :  { %v11495_v48 = vsel %vm8732_vm12, %v11493_v55, %v11494_v54  ;;  %v3938_v6 = vadd.f32 %v3937_v33, %v3811_v42  ;;  %v2414_v22 = vsel %vm9028_vm2, %v9059_v4, %v9075_v51  ;;  %v9111_v40 = vmul.f32 %v11456_v58, %v2428_v56  ;;  %v11500_v54 = vld [vmem:[#allocation190_spill] sm:$0xff] }
 0x3be   :  { %v2659_v52 = vadd.f32 %v11495_v48, %v11491_v31  ;;  %v2437_v62 = vadd.f32 1.0, %v2436_v60  ;;  %v2448_v8 = vand.u32 2147483647, %v11489_v34  ;;  %v2451_v3 = vadd.f32 1.0, %v11496_v63 }
 0x3bf   :  { %v11498_v27 = vmax.f32 %v11497_v61, 0.0  ;;  %v11499_v47 = vsel %vm8762_vm3, %v8775_v35, %v8808_v0  ;;  %v3814_v33 = vmul.f32 0.0, %v2658_v45  ;;  %v3939_v31 = vadd.f32 %v3938_v6, %v3812_v38 }
 0x3c0   :  { %v9122_v55 = vmul.f32 0.6931472, %v4589_v2  ;;  %4594 = vlog2.f32 %v2442_v59  ;;  %v2446_v58 = vadd.f32 1.0, %v2445_v7  ;;  %v2454_v56 = vmul.f32 -0.5, %v11496_v63  ;;  %v11505_v59 = vld [vmem:[#allocation272_spill] sm:$0xff] }
 0x3c1   :  { %v2660_v42 = vadd.f32 %v11499_v47, %v11498_v27  ;;  %v2457_v60 = vand.u32 2147483647, %v11496_v63  ;;  %v11501_v48 = vmax.f32 %v11500_v54, 0.0  ;;  %v11502_v20 = vsel %vm8783_vm13, %v8797_v36, %v8847_v19  ;;  %v4593_v27 = vpop.eup %4592  ;;  %v11508_v36 = vld [vmem:[#allocation193_spill] sm:$0xff]  ;;  %v11516_v54 = vld [vmem:[#allocation100_spill] sm:$0xff] }
 0x3c2   :  { %v3815_v35 = vmul.f32 0.0, %v2659_v52  ;;  %v3940_v0 = vadd.f32 %v3939_v31, %v3813_v50  ;;  %v9133_v45 = vmul.f32 0.6931472, %v4591_v13  ;;  %v9136_v38 = vmul.f32 %v11471_v12, %v2437_v62 }
 0x3c3   :  { %v2661_v61 = vadd.f32 %v11502_v20, %v11501_v48  ;;  %vm9138_vm6 = vcmp.lt.f32.partialorder %v2439_v57, 0.0004427343  ;;  %v2463_v7 = vmul.f32 -0.5, %v11505_v59  ;;  %vm9143_vm12 = vcmp.lt.f32.partialorder %v2448_v8, 0.0004427343 }
 0x3c4   :  { %4596 = vlog2.f32 %v2451_v3  ;;  %v11509_v19 = vmax.f32 %v11508_v36, 0.0  ;;  %v11510_v52 = vsel %vm8810_vm8, %v8828_v10, %v8857_v9  ;;  %v3816_v62 = vmul.f32 0.0, %v2660_v42 }
 0x3c5   :  { %v3941_v57 = vadd.f32 %v3940_v0, %v3814_v33  ;;  %v2423_v50 = vsel %vm9064_vm15, %v9078_v14, %v9122_v55  ;;  %v9159_v6 = vmul.f32 %v11489_v34, %v2446_v58  ;;  %v2455_v13 = vadd.f32 1.0, %v2454_v56 }
 0x3c6   :  { %v2662_v12 = vadd.f32 %v11510_v52, %v11509_v19  ;;  %v2460_v8 = vadd.f32 1.0, %v11505_v59  ;;  %vm9162_vm13 = vcmp.lt.f32.partialorder %v2457_v60, 0.0004427343  ;;  %v11514_v10 = vmax.f32 %v11513_v28, 0.0  ;;  %v4595_v31 = vpop.eup %4594 }
 0x3c7   :  { %v11515_v9 = vsel %vm8831_vm1, %v8860_v18, %v8895_v30  ;;  %v3817_v42 = vmul.f32 0.0, %v2661_v61  ;;  %v3942_v33 = vadd.f32 %v3941_v57, %v3815_v35  ;;  %v2432_v34 = vsel %vm9081_vm0, %v9111_v40, %v9133_v45  ;;  %v11521_v57 = vld [vmem:[#allocation199_spill] sm:$0xff]  ;;  %v11559_v45 = vld [vmem:[#allocation221_spill] sm:$0xff] }
 0x3c8   :  { %v2663_v47 = vadd.f32 %v11515_v9, %v11514_v10  ;;  %v9177_v58 = vmul.f32 0.6931472, %v4593_v27  ;;  %v2464_v56 = vadd.f32 1.0, %v2463_v7  ;;  %v2466_v60 = vand.u32 2147483647, %v11505_v59  ;;  %v11520_v7 = vld [vmem:[#allocation273_spill] sm:$0xff] }
 0x3c9   :  { %v2469_v48 = vadd.f32 1.0, %v11516_v54  ;;  %v11518_v20 = vmax.f32 %v11517_v41, 0.0  ;;  %v11519_v18 = vsel %vm8863_vm11, %v8880_v11, %v8930_v37  ;;  %v3818_v61 = vmul.f32 0.0, %v2662_v12  ;;  %v11532_v41 = vld [vmem:[#allocation204_spill] sm:$0xff] }
 0x3ca   :  { %v3943_v35 = vadd.f32 %v3942_v33, %v3816_v62  ;;  %v9189_v0 = vmul.f32 %v11496_v63, %v2455_v13  ;;  %4598 = vlog2.f32 %v2460_v8  ;;  %v2472_v27 = vmul.f32 -0.5, %v11516_v54  ;;  %v4597_v19 = vpop.eup %4596 }
 0x3cb   :  { %v2664_v30 = vadd.f32 %v11519_v18, %v11518_v20  ;;  %v2478_v36 = vadd.f32 1.0, %v11520_v7  ;;  %v2475_v52 = vand.u32 2147483647, %v11516_v54  ;;  %v11522_v28 = vmax.f32 %v11521_v57, 0.0 }
 0x3cc   :  { %v11523_v43 = vsel %vm8909_vm5, %v8907_v21, %v8940_v15  ;;  %v3819_v37 = vmul.f32 0.0, %v2663_v47  ;;  %v3944_v12 = vadd.f32 %v3943_v35, %v3817_v42  ;;  %v2441_v63 = vsel %vm9138_vm6, %v9136_v38, %v9177_v58  ;;  %v11526_v21 = vld [vmem:[#allocation200_spill] sm:$0xff] }
 0x3cd   :  { %v2665_v11 = vadd.f32 %v11523_v43, %v11522_v28  ;;  %v9205_v62 = vmul.f32 0.6931472, %v4595_v31  ;;  %v9208_v13 = vmul.f32 %v11505_v59, %v2464_v56  ;;  %v2481_v8 = vmul.f32 -0.5, %v11520_v7 }
 0x3ce   :  { %vm9211_vm3 = vcmp.lt.f32.partialorder %v2466_v60, 0.0004427343  ;;  %4600 = vlog2.f32 %v2469_v48  ;;  %v11527_v15 = vmax.f32 %v11526_v21, 0.0  ;;  %v11528_v10 = vsel %vm8914_vm14, %v8943_v5, %v8978_v16  ;;  %v11531_v60 = vld [vmem:[#allocation101_spill] sm:$0xff] }
 0x3cf   :  { %v3820_v47 = vmul.f32 0.0, %v2664_v30  ;;  %v3945_v42 = vadd.f32 %v3944_v12, %v3818_v61  ;;  %v9222_v33 = vmul.f32 0.6931472, %v4597_v19  ;;  %v2473_v59 = vadd.f32 1.0, %v2472_v27  ;;  %v11535_v19 = vld [vmem:[#allocation103_spill] sm:$0xff]  ;;  %v11543_v12 = vld [vmem:[#allocation34_spill] sm:$0xff] }
 0x3d0   :  { %v2666_v9 = vadd.f32 %v11528_v10, %v11527_v15  ;;  %4602 = vlog2.f32 %v2478_v36  ;;  %v2484_v31 = vand.u32 2147483647, %v11520_v7  ;;  %vm9225_vm8 = vcmp.lt.f32.partialorder %v2475_v52, 0.0004427343  ;;  %v4599_v30 = vpop.eup %4598 }
 0x3d1   :  { %v2487_v48 = vadd.f32 1.0, %v11531_v60  ;;  %v11533_v23 = vmax.f32 %v11532_v41, 0.0  ;;  %v11534_v5 = vsel %vm8946_vm9, %v8963_v29, %v9008_v39  ;;  %v3821_v20 = vmul.f32 0.0, %v2665_v11 }
 0x3d2   :  { %v3946_v18 = vadd.f32 %v3945_v42, %v3819_v37  ;;  %v2450_v61 = vsel %vm9143_vm12, %v9159_v6, %v9205_v62  ;;  %v2482_v35 = vadd.f32 1.0, %v2481_v8  ;;  %v2490_v27 = vmul.f32 -0.5, %v11531_v60  ;;  %v11544_v62 = vld [vmem:[#allocation208_spill] sm:$0xff] }
 0x3d3   :  { %v2667_v16 = vadd.f32 %v11534_v5, %v11533_v23  ;;  %v2493_v36 = vand.u32 2147483647, %v11531_v60  ;;  %v2496_v52 = vadd.f32 1.0, %v11535_v19  ;;  %v11537_v57 = vmax.f32 %v11536_v46, 0.0 }
 0x3d4   :  { %v11538_v29 = vsel %vm8980_vm4, %v8993_v1, %v9026_v24  ;;  %v3822_v28 = vmul.f32 0.0, %v2666_v9  ;;  %v3947_v43 = vadd.f32 %v3946_v18, %v3820_v47  ;;  %v2459_v32 = vsel %vm9162_vm13, %v9189_v0, %v9222_v33  ;;  %v4601_v37 = vpop.eup %4600  ;;  %v11541_v1 = vld [vmem:[#allocation207_spill] sm:$0xff]  ;;  %v11546_v47 = vld [vmem:[#allocation274_spill] sm:$0xff]  ;;  %v11551_v18 = vld [vmem:[#allocation81_spill] sm:$0xff] }
 0x3d5   :  { %v2668_v39 = vadd.f32 %v11538_v29, %v11537_v57  ;;  %v9256_v6 = vmul.f32 %v11516_v54, %v2473_v59  ;;  %vm9258_vm1 = vcmp.lt.f32.partialorder %v2484_v31, 0.0004427343  ;;  %v2499_v26 = vmul.f32 -0.5, %v11535_v19  ;;  %v11556_v29 = vld [vmem:[#allocation276_spill] sm:$0xff] }
 0x3d6   :  { %4604 = vlog2.f32 %v2487_v48  ;;  %v11542_v24 = vmax.f32 %v11541_v1, 0.0  ;;  %v11545_v8 = vsel %vm9010_vm7, %v11543_v12, %v11544_v62  ;;  %v3823_v0 = vmul.f32 0.0, %v2667_v16  ;;  %v4603_v54 = vpop.eup %4602  ;;  %v11564_v12 = vld [vmem:[#allocation223_spill] sm:$0xff] }
 0x3d7   :  { %v3948_v21 = vadd.f32 %v3947_v43, %v3821_v20  ;;  %v2462_v15 = vmul.f32 0.6931472, %v4599_v30  ;;  %v9271_v10 = vmul.f32 %v11520_v7, %v2482_v35  ;;  %v2491_v9 = vadd.f32 1.0, %v2490_v27 }
 0x3d8   :  { %v2669_v3 = vadd.f32 %v11545_v8, %v11542_v24  ;;  %v2505_v42 = vadd.f32 1.0, %v11546_v47  ;;  %vm9274_vm11 = vcmp.lt.f32.partialorder %v2493_v36, 0.0004427343  ;;  %4606 = vlog2.f32 %v2496_v52  ;;  %v11553_v52 = vld [vmem:[#allocation104_spill] sm:$0xff] }
 0x3d9   :  { %v11550_v59 = vmax.f32 %v11549_v17, 0.0  ;;  %v3824_v48 = vmul.f32 0.0, %v2668_v39  ;;  %v3949_v41 = vadd.f32 %v3948_v21, %v3822_v28  ;;  %v2471_v7 = vmul.f32 0.6931472, %v4601_v37  ;;  %v11561_v37 = vld [vmem:[#allocation106_spill] sm:$0xff]  ;;  %v11566_v21 = vld [vmem:[#allocation108_spill] sm:$0xff] }
 0x3da   :  { %v2500_v23 = vadd.f32 1.0, %v2499_v26  ;;  %v2502_v5 = vand.u32 2147483647, %v11535_v19  ;;  %v2508_v16 = vmul.f32 -0.5, %v11546_v47  ;;  %v9287_v20 = vmul.f32 0.6931472, %v4603_v54 }
 0x3db   :  { %v2670_v31 = vadd.f32 %v2414_v22, %v11550_v59  ;;  %v11552_v30 = vmax.f32 %v11551_v18, 0.0  ;;  %v3825_v4 = vmul.f32 0.0, %v2669_v3  ;;  %v3950_v51 = vadd.f32 %v3949_v41, %v3823_v0  ;;  %v11572_v41 = vld [vmem:[#allocation226_spill] sm:$0xff] }
 0x3dc   :  { %v2468_v22 = vsel %vm9211_vm3, %v9208_v13, %v2462_v15  ;;  %v9300_v35 = vmul.f32 %v11531_v60, %v2491_v9  ;;  %4608 = vlog2.f32 %v2505_v42  ;;  %v2511_v27 = vand.u32 2147483647, %v11546_v47  ;;  %v4605_v36 = vpop.eup %4604  ;;  %v11567_v15 = vld [vmem:[#allocation224_spill] sm:$0xff] }
 0x3dd   :  { %v2671_v53 = vadd.f32 %v2423_v50, %v11552_v30  ;;  %v2514_v46 = vadd.f32 1.0, %v11553_v52  ;;  %v11555_v57 = vmax.f32 %v11554_v44, 0.0  ;;  %v3826_v55 = vmul.f32 0.0, %v2670_v31 }
 0x3de   :  { %v3951_v50 = vadd.f32 %v3950_v51, %v3824_v48  ;;  %v2477_v13 = vsel %vm9225_vm8, %v9256_v6, %v2471_v7  ;;  %v9315_v25 = vmul.f32 %v11535_v19, %v2500_v23  ;;  %v2509_v60 = vadd.f32 1.0, %v2508_v16  ;;  %v4607_v28 = vpop.eup %4606 }
 0x3df   :  { %v2672_v14 = vadd.f32 %v2432_v34, %v11555_v57  ;;  %v2523_v39 = vadd.f32 1.0, %v11556_v29  ;;  %v2486_v49 = vsel %vm9258_vm1, %v9271_v10, %v9287_v20  ;;  %vm9322_vm5 = vcmp.lt.f32.partialorder %v2502_v5, 0.0004427343 }
 0x3e0   :  { %v11560_v34 = vmax.f32 %v11559_v45, 0.0  ;;  %v3827_v19 = vmul.f32 0.0, %v2671_v53  ;;  %v3952_v43 = vadd.f32 %v3951_v50, %v3825_v4  ;;  %v2489_v6 = vmul.f32 0.6931472, %v4605_v36  ;;  %v11576_v53 = vld [vmem:[#allocation228_spill] sm:$0xff] }
 0x3e1   :  { %v2517_v26 = vmul.f32 -0.5, %v11553_v52  ;;  %v2520_v11 = vand.u32 2147483647, %v11553_v52  ;;  %v2532_v1 = vadd.f32 1.0, %v11561_v37  ;;  %vm9336_vm14 = vcmp.lt.f32.partialorder %v2511_v27, 0.0004427343 }
 0x3e2   :  { %v2673_v56 = vadd.f32 %v2441_v63, %v11560_v34  ;;  %4610 = vlog2.f32 %v2514_v46  ;;  %v11565_v2 = vmax.f32 %v11564_v12, 0.0  ;;  %v3828_v8 = vmul.f32 0.0, %v2672_v14  ;;  %v4609_v58 = vpop.eup %4608  ;;  %v11578_v14 = vld [vmem:[#allocation233_spill] sm:$0xff] }
 0x3e3   :  { %v3953_v38 = vadd.f32 %v3952_v43, %v3826_v55  ;;  %v2510_v63 = vmul.f32 %v11546_v47, %v2509_v60  ;;  %4612 = vlog2.f32 %v2523_v39  ;;  %v2526_v3 = vmul.f32 -0.5, %v11556_v29  ;;  %v11571_v47 = vld [vmem:[#allocation114_spill] sm:$0xff] }
 0x3e4   :  { %v2674_v62 = vadd.f32 %v2450_v61, %v11565_v2  ;;  %v2529_v0 = vand.u32 2147483647, %v11556_v29  ;;  %v2541_v54 = vadd.f32 1.0, %v11566_v21  ;;  %v11568_v10 = vmax.f32 %v11567_v15, 0.0 }
 0x3e5   :  { %v3829_v42 = vmul.f32 0.0, %v2673_v56  ;;  %v3954_v17 = vadd.f32 %v3953_v38, %v3827_v19  ;;  %v2495_v61 = vsel %vm9274_vm11, %v9300_v35, %v2489_v6  ;;  %v2518_v59 = vadd.f32 1.0, %v2517_v26  ;;  %v11580_v19 = vld [vmem:[#allocation235_spill] sm:$0xff] }
 0x3e6   :  { %v2675_v9 = vadd.f32 %v2459_v32, %v11568_v10  ;;  %vm9351_vm9 = vcmp.lt.f32.partialorder %v2520_v11, 0.0004427343  ;;  %4614 = vlog2.f32 %v2532_v1  ;;  %v2550_v48 = vadd.f32 1.0, %v11571_v47  ;;  %v11586_v10 = vld [vmem:[#allocation237_spill] sm:$0xff] }
 0x3e7   :  { %v11573_v7 = vmax.f32 %v11572_v41, 0.0  ;;  %v3830_v5 = vmul.f32 0.0, %v2674_v62  ;;  %v3955_v16 = vadd.f32 %v3954_v17, %v3828_v8  ;;  %v2498_v32 = vmul.f32 0.6931472, %v4607_v28  ;;  %v11584_v62 = vld [vmem:[#allocation236_spill] sm:$0xff] }
 0x3e8   :  { %v2527_v20 = vadd.f32 1.0, %v2526_v3  ;;  %vm9358_vm4 = vcmp.lt.f32.partialorder %v2529_v0, 0.0004427343  ;;  %v2535_v33 = vmul.f32 -0.5, %v11561_v37  ;;  %v4611_v30 = vpop.eup %4610  ;;  %4616 = vlog2.f32 %v2541_v54 }
 0x3e9   :  { %v2676_v23 = vadd.f32 %v2468_v22, %v11573_v7  ;;  %v11577_v4 = vmax.f32 %v11576_v53, 0.0  ;;  %v3831_v35 = vmul.f32 0.0, %v2675_v9  ;;  %v3956_v27 = vadd.f32 %v3955_v16, %v3829_v42  ;;  %v4613_v36 = vpop.eup %4612 }
 0x3ea   :  { %v2507_v46 = vmul.f32 0.6931472, %v4609_v58  ;;  %v2519_v22 = vmul.f32 %v11553_v52, %v2518_v59  ;;  %v2538_v44 = vand.u32 2147483647, %v11561_v37  ;;  %v2544_v57 = vmul.f32 -0.5, %v11566_v21  ;;  %v4620_v59 = vld [vmem:[#allocation2 + $0x3e8] sm:$0xff] }
 0x3eb   :  { %v2677_v51 = vadd.f32 %v2477_v13, %v11577_v4  ;;  %4618 = vlog2.f32 %v2550_v48  ;;  %v11579_v55 = vmax.f32 %v11578_v14, 0.0  ;;  %v3832_v60 = vmul.f32 0.0, %v2676_v23 }
 0x3ec   :  { %v3957_v39 = vadd.f32 %v3956_v27, %v3830_v5  ;;  %v4615_v28 = vpop.eup %4614  ;;  %v2504_v13 = vsel %vm9322_vm5, %v9315_v25, %v2498_v32  ;;  %v2516_v45 = vmul.f32 0.6931472, %v4611_v30  ;;  %v2536_v34 = vadd.f32 1.0, %v2535_v33  ;;  %v4621_v33 = vld [vmem:[#allocation2 + $0x3f0] sm:$0xff] }
 0x3ed   :  { %v2678_v50 = vadd.f32 %v2486_v49, %v11579_v55  ;;  %v2553_v56 = vmul.f32 -0.5, %v11571_v47  ;;  %v2528_v52 = vmul.f32 %v11556_v29, %v2527_v20  ;;  %v11581_v43 = vmax.f32 %v11580_v19, 0.0 }
 0x3ee   :  { %v3833_v26 = vmul.f32 0.0, %v2677_v51  ;;  %v3958_v11 = vadd.f32 %v3957_v39, %v3831_v35  ;;  %v2513_v49 = vsel %vm9336_vm14, %v2510_v63, %v2507_v46  ;;  %v2525_v1 = vmul.f32 0.6931472, %v4613_v36  ;;  %v4617_v40 = vpop.eup %4616  ;;  %v11592_v51 = vld [vmem:[#allocation241_spill] sm:$0xff] }
 0x3ef   :  { %v2679_v6 = vadd.f32 %v2495_v61, %v11581_v43  ;;  %vm9379_vm7 = vcmp.lt.f32.partialorder %v2538_v44, 0.0004427343  ;;  %v2545_v25 = vadd.f32 1.0, %v2544_v57  ;;  %v2547_v2 = vand.u32 2147483647, %v11566_v21 }
 0x3f0   :  { %v11585_v8 = vmax.f32 %v11584_v62, 0.0  ;;  %v3834_v38 = vmul.f32 0.0, %v2678_v50  ;;  %v3959_v58 = vadd.f32 %v3958_v11, %v3832_v60  ;;  %v2522_v3 = vsel %vm9351_vm9, %v2519_v22, %v2516_v45  ;;  %v4622_v22 = vld [vmem:[#allocation2 + $0x3f8] sm:$0xff] }
 0x3f1   :  { %v2534_v0 = vmul.f32 0.6931472, %v4615_v28  ;;  %v2537_v24 = vmul.f32 %v11561_v37, %v2536_v34  ;;  %v2554_v63 = vadd.f32 1.0, %v2553_v56  ;;  %v4619_v54 = vpop.eup %4618  ;;  %v2556_v15 = vand.u32 2147483647, %v11571_v47  ;;  %v11590_v37 = vld [vmem:[#allocation239_spill] sm:$0xff] }
 0x3f2   :  { %v2680_v29 = vadd.f32 %v2504_v13, %v11585_v8  ;;  %v11587_v9 = vmax.f32 %v11586_v10, 0.0  ;;  %v3835_v17 = vmul.f32 0.0, %v2679_v6  ;;  %v3960_v61 = vadd.f32 %v3959_v58, %v3833_v26 }
 0x3f3   :  { %v892_v48 = vmax.f32 %v4620_v59, 0.0  ;;  %v2531_v41 = vsel %vm9358_vm4, %v2528_v52, %v2525_v1  ;;  %v2543_v7 = vmul.f32 0.6931472, %v4617_v40  ;;  %v2546_v31 = vmul.f32 %v11566_v21, %v2545_v25  ;;  %v3714_v25 = vld [vmem:[#allocation6] sm:$0x1] }
 0x3f4   :  { %v2681_v42 = vadd.f32 %v2513_v49, %v11587_v9  ;;  %vm9395_vm2 = vcmp.lt.f32.partialorder %v2547_v2, 0.0004427343  ;;  %v11591_v5 = vmax.f32 %v11590_v37, 0.0  ;;  %v3836_v32 = vmul.f32 0.0, %v2680_v29 }
 0x3f5   :  { %v3961_v20 = vadd.f32 %v3960_v61, %v3834_v38  ;;  %v893_v30 = vmax.f32 %v4621_v33, 0.0  ;;  %v2540_v53 = vsel %vm9379_vm7, %v2537_v24, %v2534_v0  ;;  %v2552_v4 = vmul.f32 0.6931472, %v4619_v54 }
 0x3f6   :  { %v2682_v16 = vadd.f32 %v2522_v3, %v11591_v5  ;;  %v2555_v18 = vmul.f32 %v11571_v47, %v2554_v63  ;;  %vm2557_vm15 = vcmp.lt.f32.partialorder %v2556_v15, 0.0004427343  ;;  %v11593_v21 = vmax.f32 %v11592_v51, 0.0 }
 0x3f7   :  { %v3837_v27 = vmul.f32 0.0, %v2681_v42  ;;  %v3962_v36 = vadd.f32 %v3961_v20, %v3835_v17  ;;  %v2549_v46 = vsel %vm9395_vm2, %v2546_v31, %v2543_v7  ;;  %v894_v44 = vmax.f32 %v4622_v22, 0.0 }
 0x3f8   :  { %v2683_v35 = vadd.f32 %v2531_v41, %v11593_v21  ;;  %v2684_v57 = vadd.f32 %v2540_v53, %v892_v48  ;;  %v3838_v14 = vmul.f32 0.0, %v2682_v16  ;;  %v2558_v50 = vsel %vm2557_vm15, %v2555_v18, %v2552_v4 }
 0x3f9   :  { %v3963_v55 = vadd.f32 %v3962_v36, %v3836_v32  ;;  %v2685_v60 = vadd.f32 %v2549_v46, %v893_v30  ;;  %v2686_v13 = vadd.f32 %v2558_v50, %v894_v44 }
 0x3fa   :  { %v3839_v39 = vmul.f32 0.0, %v2683_v35  ;;  %v3840_v47 = vmul.f32 0.0, %v2684_v57 }
 0x3fb   :  { %v3964_v28 = vadd.f32 %v3963_v55, %v3837_v27  ;;  %v3841_v34 = vmul.f32 0.0, %v2685_v60  ;;  %v3842_v52 = vmul.f32 0.0, %v2686_v13 }
 0x3fd   :  { %v3965_v45 = vadd.f32 %v3964_v28, %v3838_v14 }
 0x3ff   :  { %v3966_v56 = vadd.f32 %v3965_v45, %v3839_v39 }
 0x401   :  { %v3967_v19 = vadd.f32 %v3966_v56, %v3840_v47 }
 0x403   :  { %v3968_v43 = vadd.f32 %v3967_v19, %v3841_v34 }
 0x405   :  { %v3969_v6 = vadd.f32 %v3968_v43, %v3842_v52 }
 0x407   :  { %v3970_v26 = vrot.slane %v3969_v6, 4 }
 0x409   :  { %v3971_v11 = vadd.f32 %v3970_v26, %v3969_v6 }
 0x40b   :  { %v3972_v49 = vrot.slane %v3971_v11, 2 }
 0x40d   :  { %v3973_v1 = vadd.f32 %v3972_v49, %v3971_v11 }
 0x40f   :  { %v3974_v12 = vrot.slane %v3973_v1, 1 }
 0x411   :  { %v3975_v40 = vadd.f32 %v3974_v12, %v3973_v1 }
 0x413   :  { %v3976_v2 = vadd.f32 %v3975_v40, %v3714_v25 }
 0x415   :  { %3977 = vst [vmem:[#allocation6] sm:$0x1] %v3976_v2 }
 0x416   :  { %3999 = dma.vmem_to_hbm [thread:$0]  %s3995_s23, 16, %s3997_s26, [#allocation7]  }
 0x417   :  { %4697 = dma.done.wait [#allocation4], 16  }
 0x418   :  { %4698 = vsyncadd [#allocation4], 4294967280 }
 0x419   :  { %4699 = dma.done.wait [#allocation7], 16  }
 0x41a   :  { %4700 = vsyncadd [#allocation7], 4294967280 }
 0x41b   :  { %4008 = vsyncpa [#allocation3], 1 }
 0x41c   :  { %4009 = vsyncpa [#allocation4], 1 }
 0x41d   :  { %4010 = vsyncpa [#allocation7], 1 }

</bundles_post_ra>
